<compile_context>
chip_gen: v7x
topology: tpu7x:2x2x1
jax: 0.10.0
libtpu: 0.0.40
codegen_flags: <defaults>
</compile_context>

<pallas_src>
import jax
import jax.numpy as jnp
from jax.experimental import pallas as pl
from jax.experimental.pallas import tpu as pltpu

EPS = 1e-5
LANE = 128


def _round_up(v, m):
    return (v + m - 1) // m * m


def residual_block_kernel(x_ref, w1_ref, w2_ref, g1_ref, b1_ref, g2_ref,
                          b2_ref, out_ref, pad_ref):
    """Fully fused ResidualBlock forward.

    x_ref   : (N, H, W, CP)       lane-dense input activations (channel-padded)
    w*_ref  : (9*CP, CP) bf16     im2col-reshaped conv weights, (kh, kw, ci) major
    g*/b*   : (1, CP)   f32       BN gamma / beta, channel-padded with zeros
    out_ref : (N*H*W, CP) f32     lane-dense output (channel-padded)
    pad_ref : (N, H+2, WP2, CP)   VMEM scratch holding the zero-haloed activation
    """
    N, H, W, CP = x_ref.shape
    WP2 = pad_ref.shape[2]
    M = N * H * W
    inv_m = 1.0 / M

    # ---- zero only the halo border of the scratch (interior is overwritten) ----
    pad_ref[:, 0:1, :, :] = jnp.zeros((N, 1, WP2, CP), jnp.float32)
    pad_ref[:, H + 1:H + 2, :, :] = jnp.zeros((N, 1, WP2, CP), jnp.float32)
    pad_ref[:, :, 0:1, :] = jnp.zeros((N, H + 2, 1, CP), jnp.float32)
    pad_ref[:, :, W + 1:WP2, :] = jnp.zeros((N, H + 2, WP2 - (W + 1), CP),
                                            jnp.float32)

    x = x_ref[...]                                   # lane-dense, unmasked vld
    pad_ref[:, 1:H + 1, 1:W + 1, :] = x              # interior fill
    residual = x.reshape(M, CP)

    def conv3x3(w_ref):
        # Grouped accumulation: 3 MXU contractions of K = 3*CP each (per kh),
        # bf16 operands, f32 accumulation.  No (M, 9*CP) patch ever lives.
        acc = jnp.zeros((M, CP), jnp.float32)
        for kh in range(3):
            taps = [
                pad_ref[:, kh:kh + H, kw:kw + W, :]
                .reshape(M, CP).astype(jnp.bfloat16)
                for kw in range(3)
            ]
            group = jnp.concatenate(taps, axis=-1)            # (M, 3*CP) bf16
            w_grp = w_ref[kh * 3 * CP:(kh + 1) * 3 * CP, :]   # (3*CP, CP) bf16
            acc = acc + jnp.dot(group, w_grp,
                                preferred_element_type=jnp.float32)
        return acc                                            # (M, CP) f32

    def batchnorm(y, g, b):
        # One-pass batch statistics (biased variance), rsqrt lands on the EUP.
        mean = jnp.sum(y, axis=0, keepdims=True) * inv_m
        ex2 = jnp.sum(y * y, axis=0, keepdims=True) * inv_m
        var = ex2 - mean * mean
        scale = g * jax.lax.rsqrt(var + EPS)
        shift = b - mean * scale
        return y * scale + shift

    # ---- stage 1: conv1 -> bn1 -> relu (never leaves VMEM) ----
    y = jnp.maximum(batchnorm(conv3x3(w1_ref), g1_ref[...], b1_ref[...]), 0.0)

    # Re-fill the interior of the padded scratch with y (halo stays zero).
    pad_ref[:, 1:H + 1, 1:W + 1, :] = y.reshape(N, H, W, CP)

    # ---- stage 2: conv2 -> bn2 -> +residual -> relu ----
    z = batchnorm(conv3x3(w2_ref), g2_ref[...], b2_ref[...])
    out_ref[...] = jnp.maximum(z + residual, 0.0)


@jax.jit
def residual_block(x_nchw, w1, g1, b1, w2, g2, b2):
    """x_nchw: (N, C, H, W) f32; w*: (Cout, Cin, 3, 3) f32 (PyTorch OIHW)."""
    x_nchw = x_nchw.astype(jnp.float32)
    N, C, H, W = x_nchw.shape
    CP = _round_up(C, LANE)                       # lane-dense channel count
    WP2 = _round_up(W + 2, 8)                     # sublane-aligned padded width
    M = N * H * W

    # NCHW -> NHWC + channel pad fused in the wrapper (tiny XLA work) so the
    # kernel input is lane-dense.
    x = jnp.transpose(x_nchw, (0, 2, 3, 1))
    x = jnp.pad(x, ((0, 0), (0, 0), (0, 0), (0, CP - C)))

    def prep_w(w):
        wh = jnp.transpose(w.astype(jnp.float32), (2, 3, 1, 0))  # OIHW -> HWIO
        wh = jnp.pad(wh, ((0, 0), (0, 0), (0, CP - C), (0, CP - C)))
        # im2col layout: row index = (kh*3 + kw)*CP + ci; bf16 MXU operands.
        return wh.reshape(9 * CP, CP).astype(jnp.bfloat16)

    def prep_vec(v):
        # Zero-padded gamma/beta keeps padded channels exactly 0 through BN.
        return jnp.pad(v.astype(jnp.float32), (0, CP - C)).reshape(1, CP)

    w1m, w2m = prep_w(w1), prep_w(w2)
    g1p, b1p, g2p, b2p = map(prep_vec, (g1, b1, g2, b2))

    vmem = pl.BlockSpec(memory_space=pltpu.MemorySpace.VMEM)

    # VMEM budget derived from actual buffers (cap 40 MiB: inside v7x's 64 MiB
    # per-TC VMEM, above the 16/32 MiB scoped defaults on v5e/v6e).
    scratch_bytes = 4 * N * (H + 2) * WP2 * CP
    io_bytes = 4 * (x.size + M * CP + 4 * CP) + 2 * (w1m.size + w2m.size)
    work_bytes = 4 * 4 * M * CP                   # acc / group / y temporaries
    vmem_limit = min(40 * 1024 * 1024,
                     max(16 * 1024 * 1024,
                         2 * (scratch_bytes + io_bytes + work_bytes)))

    flops = 2 * (2 * M * (9 * CP) * CP)           # two convs
    bytes_accessed = io_bytes

    out2d = pl.pallas_call(
        residual_block_kernel,
        out_shape=jax.ShapeDtypeStruct((M, CP), jnp.float32),
        in_specs=[vmem] * 7,
        out_specs=vmem,
        scratch_shapes=[pltpu.VMEM((N, H + 2, WP2, CP), jnp.float32)],
        compiler_params=pltpu.CompilerParams(vmem_limit_bytes=vmem_limit),
        cost_estimate=pl.CostEstimate(
            flops=flops, transcendentals=2 * CP,
            bytes_accessed=bytes_accessed),
    )(x, w1m, w2m, g1p, b1p, g2p, b2p)

    out = out2d.reshape(N, H, W, CP)[..., :C]     # drop channel padding
    return jnp.transpose(out, (0, 3, 1, 2))       # -> NCHW


def residual_block_ref(x, w1, g1, b1, w2, g2, b2):
    """Pure-JAX f32 reference (NCHW, matches PyTorch train-mode semantics)."""
    def conv(z, w):
        return jax.lax.conv_general_dilated(
            z, w, window_strides=(1, 1), padding=((1, 1), (1, 1)),
            dimension_numbers=('NCHW', 'OIHW', 'NCHW'))

    def bn(z, g, b):
        mean = jnp.mean(z, axis=(0, 2, 3), keepdims=True)
        var = jnp.mean(jnp.square(z - mean), axis=(0, 2, 3), keepdims=True)
        return ((z - mean) / jnp.sqrt(var + EPS)) * g.reshape(1, -1, 1, 1) \
            + b.reshape(1, -1, 1, 1)

    out = jax.nn.relu(bn(conv(x, w1), g1, b1))
    out = bn(conv(out, w2), g2, b2) + x
    return jax.nn.relu(out)


if __name__ == "__main__":
    # ResidualBlock requires in_channels == out_channels for the residual add.
    N, C, H, W = 2, 4, 16, 16
    key = jax.random.PRNGKey(0)
    kx, k1, k2 = jax.random.split(key, 3)

    x = jax.random.normal(kx, (N, C, H, W), jnp.float32)
    fan_in = C * 3 * 3
    w1 = jax.random.normal(k1, (C, C, 3, 3), jnp.float32) / jnp.sqrt(fan_in)
    w2 = jax.random.normal(k2, (C, C, 3, 3), jnp.float32) / jnp.sqrt(fan_in)
    # BatchNorm2d default init: weight (gamma)=1, bias (beta)=0.
    g1 = jnp.ones((C,), jnp.float32)
    b1 = jnp.zeros((C,), jnp.float32)
    g2 = jnp.ones((C,), jnp.float32)
    b2 = jnp.zeros((C,), jnp.float32)

    out = residual_block(x, w1, g1, b1, w2, g2, b2)
    out = jax.block_until_ready(out)

    ref = residual_block_ref(x, w1, g1, b1, w2, g2, b2)
    assert out.shape == (N, C, H, W)
    # Tolerance reflects bf16 MXU operands (f32 accumulation) vs. the f32
    # reference: two bf16 convs give per-element errors of a few 1e-3.
    assert bool(jnp.allclose(out, ref, atol=2e-2, rtol=2e-2)), \
        f"max abs err = {float(jnp.max(jnp.abs(out - ref)))}"
    print("KERNEL_OK")
</pallas_src>

<mosaic_0001>
module attributes {stable_mosaic.version = 11 : i64} {
  func.func @residual_block_kernel(%arg0: memref<2x16x16x128xf32, #tpu.memory_space<vmem>>, %arg1: memref<1152x128xbf16, #tpu.memory_space<vmem>>, %arg2: memref<1152x128xbf16, #tpu.memory_space<vmem>>, %arg3: memref<1x128xf32, #tpu.memory_space<vmem>>, %arg4: memref<1x128xf32, #tpu.memory_space<vmem>>, %arg5: memref<1x128xf32, #tpu.memory_space<vmem>>, %arg6: memref<1x128xf32, #tpu.memory_space<vmem>>, %arg7: memref<512x128xf32, #tpu.memory_space<vmem>>, %arg8: memref<2x18x24x128xf32, #tpu.memory_space<vmem>>) attributes {dimension_semantics = [], scalar_prefetch = 0 : i64, scratch_operands = 1 : i64, tpu.core_type = #tpu.core_type<tc>} {
    %cst = arith.constant 0.000000e+00 : f32
    %0 = vector.broadcast %cst : f32 to vector<2x1x24x128xf32>
    %c0 = arith.constant 0 : index
    %c0_0 = arith.constant 0 : index
    %c0_1 = arith.constant 0 : index
    %c0_2 = arith.constant 0 : index
    %1 = vector.load %arg8[%c0, %c0_0, %c0_1, %c0_2] : memref<2x18x24x128xf32, #tpu.memory_space<vmem>>, vector<2x1x24x128xf32>
    tpu.vector_store %arg8[%c0, %c0_0, %c0_1, %c0_2], %0 {strides = array<i32>} : memref<2x18x24x128xf32, #tpu.memory_space<vmem>>, vector<2x1x24x128xf32>,
    %cst_3 = arith.constant 0.000000e+00 : f32
    %2 = vector.broadcast %cst_3 : f32 to vector<2x1x24x128xf32>
    %c0_4 = arith.constant 0 : index
    %c17 = arith.constant 17 : index
    %c0_5 = arith.constant 0 : index
    %c0_6 = arith.constant 0 : index
    %3 = vector.load %arg8[%c0_4, %c17, %c0_5, %c0_6] : memref<2x18x24x128xf32, #tpu.memory_space<vmem>>, vector<2x1x24x128xf32>
    tpu.vector_store %arg8[%c0_4, %c17, %c0_5, %c0_6], %2 {strides = array<i32>} : memref<2x18x24x128xf32, #tpu.memory_space<vmem>>, vector<2x1x24x128xf32>,
    %cst_7 = arith.constant 0.000000e+00 : f32
    %4 = vector.broadcast %cst_7 : f32 to vector<2x18x1x128xf32>
    %c0_8 = arith.constant 0 : index
    %c0_9 = arith.constant 0 : index
    %c0_10 = arith.constant 0 : index
    %c0_11 = arith.constant 0 : index
    %5 = vector.load %arg8[%c0_8, %c0_9, %c0_10, %c0_11] : memref<2x18x24x128xf32, #tpu.memory_space<vmem>>, vector<2x18x1x128xf32>
    tpu.vector_store %arg8[%c0_8, %c0_9, %c0_10, %c0_11], %4 {strides = array<i32>} : memref<2x18x24x128xf32, #tpu.memory_space<vmem>>, vector<2x18x1x128xf32>,
    %cst_12 = arith.constant 0.000000e+00 : f32
    %6 = vector.broadcast %cst_12 : f32 to vector<2x18x7x128xf32>
    %c0_13 = arith.constant 0 : index
    %c0_14 = arith.constant 0 : index
    %c17_15 = arith.constant 17 : index
    %c0_16 = arith.constant 0 : index
    %7 = vector.load %arg8[%c0_13, %c0_14, %c17_15, %c0_16] : memref<2x18x24x128xf32, #tpu.memory_space<vmem>>, vector<2x18x7x128xf32>
    tpu.vector_store %arg8[%c0_13, %c0_14, %c17_15, %c0_16], %6 {strides = array<i32>} : memref<2x18x24x128xf32, #tpu.memory_space<vmem>>, vector<2x18x7x128xf32>,
    %c0_17 = arith.constant 0 : index
    %c0_18 = arith.constant 0 : index
    %c0_19 = arith.constant 0 : index
    %c0_20 = arith.constant 0 : index
    %8 = vector.load %arg0[%c0_17, %c0_18, %c0_19, %c0_20] : memref<2x16x16x128xf32, #tpu.memory_space<vmem>>, vector<2x16x16x128xf32>
    %c0_21 = arith.constant 0 : index
    %c1 = arith.constant 1 : index
    %c1_22 = arith.constant 1 : index
    %c0_23 = arith.constant 0 : index
    %9 = vector.load %arg8[%c0_21, %c1, %c1_22, %c0_23] : memref<2x18x24x128xf32, #tpu.memory_space<vmem>>, vector<2x16x16x128xf32>
    tpu.vector_store %arg8[%c0_21, %c1, %c1_22, %c0_23], %8 {strides = array<i32>} : memref<2x18x24x128xf32, #tpu.memory_space<vmem>>, vector<2x16x16x128xf32>,
    %10 = vector.shape_cast %8 : vector<2x16x16x128xf32> to vector<512x128xf32>
    %cst_24 = arith.constant 0.000000e+00 : f32
    %11 = vector.broadcast %cst_24 : f32 to vector<512x128xf32>
    %c0_25 = arith.constant 0 : index
    %c0_26 = arith.constant 0 : index
    %c0_27 = arith.constant 0 : index
    %c0_28 = arith.constant 0 : index
    %12 = vector.load %arg8[%c0_25, %c0_26, %c0_27, %c0_28] : memref<2x18x24x128xf32, #tpu.memory_space<vmem>>, vector<2x16x16x128xf32>
    %13 = vector.shape_cast %12 : vector<2x16x16x128xf32> to vector<512x128xf32>
    %14 = arith.truncf %13 : vector<512x128xf32> to vector<512x128xbf16>
    %c0_29 = arith.constant 0 : index
    %c0_30 = arith.constant 0 : index
    %c1_31 = arith.constant 1 : index
    %c0_32 = arith.constant 0 : index
    %15 = vector.load %arg8[%c0_29, %c0_30, %c1_31, %c0_32] : memref<2x18x24x128xf32, #tpu.memory_space<vmem>>, vector<2x16x16x128xf32>
    %16 = vector.shape_cast %15 : vector<2x16x16x128xf32> to vector<512x128xf32>
    %17 = arith.truncf %16 : vector<512x128xf32> to vector<512x128xbf16>
    %c0_33 = arith.constant 0 : index
    %c0_34 = arith.constant 0 : index
    %c2 = arith.constant 2 : index
    %c0_35 = arith.constant 0 : index
    %18 = vector.load %arg8[%c0_33, %c0_34, %c2, %c0_35] : memref<2x18x24x128xf32, #tpu.memory_space<vmem>>, vector<2x16x16x128xf32>
    %19 = vector.shape_cast %18 : vector<2x16x16x128xf32> to vector<512x128xf32>
    %20 = arith.truncf %19 : vector<512x128xf32> to vector<512x128xbf16>
    %21 = tpu.concatenate %14, %17, %20 in 1 : vector<512x128xbf16>, vector<512x128xbf16>, vector<512x128xbf16> -> vector<512x384xbf16>
    %c0_36 = arith.constant 0 : index
    %c0_37 = arith.constant 0 : index
    %22 = vector.load %arg1[%c0_36, %c0_37] : memref<1152x128xbf16, #tpu.memory_space<vmem>>, vector<384x128xbf16>
    %cst_38 = arith.constant dense<0.000000e+00> : vector<512x128xf32>
    %23 = tpu.matmul %21, %22, %cst_38 {dimension_numbers = #tpu.dot_dimension_numbers<[1], [0], [0], [1], [0, 0, 1, 1], [], []>} : vector<512x384xbf16>, vector<384x128xbf16>, vector<512x128xf32> -> vector<512x128xf32>
    %24 = arith.addf %11, %23 : vector<512x128xf32>
    %c0_39 = arith.constant 0 : index
    %c1_40 = arith.constant 1 : index
    %c0_41 = arith.constant 0 : index
    %c0_42 = arith.constant 0 : index
    %25 = vector.load %arg8[%c0_39, %c1_40, %c0_41, %c0_42] : memref<2x18x24x128xf32, #tpu.memory_space<vmem>>, vector<2x16x16x128xf32>
    %26 = vector.shape_cast %25 : vector<2x16x16x128xf32> to vector<512x128xf32>
    %27 = arith.truncf %26 : vector<512x128xf32> to vector<512x128xbf16>
    %c0_43 = arith.constant 0 : index
    %c1_44 = arith.constant 1 : index
    %c1_45 = arith.constant 1 : index
    %c0_46 = arith.constant 0 : index
    %28 = vector.load %arg8[%c0_43, %c1_44, %c1_45, %c0_46] : memref<2x18x24x128xf32, #tpu.memory_space<vmem>>, vector<2x16x16x128xf32>
    %29 = vector.shape_cast %28 : vector<2x16x16x128xf32> to vector<512x128xf32>
    %30 = arith.truncf %29 : vector<512x128xf32> to vector<512x128xbf16>
    %c0_47 = arith.constant 0 : index
    %c1_48 = arith.constant 1 : index
    %c2_49 = arith.constant 2 : index
    %c0_50 = arith.constant 0 : index
    %31 = vector.load %arg8[%c0_47, %c1_48, %c2_49, %c0_50] : memref<2x18x24x128xf32, #tpu.memory_space<vmem>>, vector<2x16x16x128xf32>
    %32 = vector.shape_cast %31 : vector<2x16x16x128xf32> to vector<512x128xf32>
    %33 = arith.truncf %32 : vector<512x128xf32> to vector<512x128xbf16>
    %34 = tpu.concatenate %27, %30, %33 in 1 : vector<512x128xbf16>, vector<512x128xbf16>, vector<512x128xbf16> -> vector<512x384xbf16>
    %c384 = arith.constant 384 : index
    %c0_51 = arith.constant 0 : index
    %35 = vector.load %arg1[%c384, %c0_51] : memref<1152x128xbf16, #tpu.memory_space<vmem>>, vector<384x128xbf16>
    %cst_52 = arith.constant dense<0.000000e+00> : vector<512x128xf32>
    %36 = tpu.matmul %34, %35, %cst_52 {dimension_numbers = #tpu.dot_dimension_numbers<[1], [0], [0], [1], [0, 0, 1, 1], [], []>} : vector<512x384xbf16>, vector<384x128xbf16>, vector<512x128xf32> -> vector<512x128xf32>
    %37 = arith.addf %24, %36 : vector<512x128xf32>
    %c0_53 = arith.constant 0 : index
    %c2_54 = arith.constant 2 : index
    %c0_55 = arith.constant 0 : index
    %c0_56 = arith.constant 0 : index
    %38 = vector.load %arg8[%c0_53, %c2_54, %c0_55, %c0_56] : memref<2x18x24x128xf32, #tpu.memory_space<vmem>>, vector<2x16x16x128xf32>
    %39 = vector.shape_cast %38 : vector<2x16x16x128xf32> to vector<512x128xf32>
    %40 = arith.truncf %39 : vector<512x128xf32> to vector<512x128xbf16>
    %c0_57 = arith.constant 0 : index
    %c2_58 = arith.constant 2 : index
    %c1_59 = arith.constant 1 : index
    %c0_60 = arith.constant 0 : index
    %41 = vector.load %arg8[%c0_57, %c2_58, %c1_59, %c0_60] : memref<2x18x24x128xf32, #tpu.memory_space<vmem>>, vector<2x16x16x128xf32>
    %42 = vector.shape_cast %41 : vector<2x16x16x128xf32> to vector<512x128xf32>
    %43 = arith.truncf %42 : vector<512x128xf32> to vector<512x128xbf16>
    %c0_61 = arith.constant 0 : index
    %c2_62 = arith.constant 2 : index
    %c2_63 = arith.constant 2 : index
    %c0_64 = arith.constant 0 : index
    %44 = vector.load %arg8[%c0_61, %c2_62, %c2_63, %c0_64] : memref<2x18x24x128xf32, #tpu.memory_space<vmem>>, vector<2x16x16x128xf32>
    %45 = vector.shape_cast %44 : vector<2x16x16x128xf32> to vector<512x128xf32>
    %46 = arith.truncf %45 : vector<512x128xf32> to vector<512x128xbf16>
    %47 = tpu.concatenate %40, %43, %46 in 1 : vector<512x128xbf16>, vector<512x128xbf16>, vector<512x128xbf16> -> vector<512x384xbf16>
    %c768 = arith.constant 768 : index
    %c0_65 = arith.constant 0 : index
    %48 = vector.load %arg1[%c768, %c0_65] : memref<1152x128xbf16, #tpu.memory_space<vmem>>, vector<384x128xbf16>
    %cst_66 = arith.constant dense<0.000000e+00> : vector<512x128xf32>
    %49 = tpu.matmul %47, %48, %cst_66 {dimension_numbers = #tpu.dot_dimension_numbers<[1], [0], [0], [1], [0, 0, 1, 1], [], []>} : vector<512x384xbf16>, vector<384x128xbf16>, vector<512x128xf32> -> vector<512x128xf32>
    %50 = arith.addf %37, %49 : vector<512x128xf32>
    %c0_67 = arith.constant 0 : index
    %c0_68 = arith.constant 0 : index
    %51 = vector.load %arg3[%c0_67, %c0_68] : memref<1x128xf32, #tpu.memory_space<vmem>>, vector<1x128xf32>
    %c0_69 = arith.constant 0 : index
    %c0_70 = arith.constant 0 : index
    %52 = vector.load %arg4[%c0_69, %c0_70] : memref<1x128xf32, #tpu.memory_space<vmem>>, vector<1x128xf32>
    %cst_71 = arith.constant dense<0.000000e+00> : vector<128xf32>
    %53 = vector.multi_reduction <add>, %50, %cst_71 [0] : vector<512x128xf32> to vector<128xf32>
    %54 = vector.shape_cast %53 : vector<128xf32> to vector<1x128xf32>
    %cst_72 = arith.constant 0.001953125 : f32
    %55 = vector.broadcast %cst_72 : f32 to vector<1x128xf32>
    %56 = arith.mulf %54, %55 : vector<1x128xf32>
    %57 = arith.mulf %50, %50 : vector<512x128xf32>
    %cst_73 = arith.constant dense<0.000000e+00> : vector<128xf32>
    %58 = vector.multi_reduction <add>, %57, %cst_73 [0] : vector<512x128xf32> to vector<128xf32>
    %59 = vector.shape_cast %58 : vector<128xf32> to vector<1x128xf32>
    %cst_74 = arith.constant 0.001953125 : f32
    %60 = vector.broadcast %cst_74 : f32 to vector<1x128xf32>
    %61 = arith.mulf %59, %60 : vector<1x128xf32>
    %62 = arith.mulf %56, %56 : vector<1x128xf32>
    %63 = arith.subf %61, %62 : vector<1x128xf32>
    %cst_75 = arith.constant 9.99999974E-6 : f32
    %64 = vector.broadcast %cst_75 : f32 to vector<1x128xf32>
    %65 = arith.addf %63, %64 : vector<1x128xf32>
    %66 = math.rsqrt %65 : vector<1x128xf32>
    %67 = arith.mulf %51, %66 : vector<1x128xf32>
    %68 = arith.mulf %56, %67 : vector<1x128xf32>
    %69 = arith.subf %52, %68 : vector<1x128xf32>
    %70 = vector.broadcast %67 : vector<1x128xf32> to vector<512x128xf32>
    %71 = arith.mulf %50, %70 : vector<512x128xf32>
    %72 = vector.broadcast %69 : vector<1x128xf32> to vector<512x128xf32>
    %73 = arith.addf %71, %72 : vector<512x128xf32>
    %cst_76 = arith.constant 0.000000e+00 : f32
    %74 = vector.broadcast %cst_76 : f32 to vector<512x128xf32>
    %75 = arith.maximumf %73, %74 : vector<512x128xf32>
    %76 = vector.shape_cast %75 : vector<512x128xf32> to vector<2x16x16x128xf32>
    %c0_77 = arith.constant 0 : index
    %c1_78 = arith.constant 1 : index
    %c1_79 = arith.constant 1 : index
    %c0_80 = arith.constant 0 : index
    %77 = vector.load %arg8[%c0_77, %c1_78, %c1_79, %c0_80] : memref<2x18x24x128xf32, #tpu.memory_space<vmem>>, vector<2x16x16x128xf32>
    tpu.vector_store %arg8[%c0_77, %c1_78, %c1_79, %c0_80], %76 {strides = array<i32>} : memref<2x18x24x128xf32, #tpu.memory_space<vmem>>, vector<2x16x16x128xf32>,
    %cst_81 = arith.constant 0.000000e+00 : f32
    %78 = vector.broadcast %cst_81 : f32 to vector<512x128xf32>
    %c0_82 = arith.constant 0 : index
    %c0_83 = arith.constant 0 : index
    %c0_84 = arith.constant 0 : index
    %c0_85 = arith.constant 0 : index
    %79 = vector.load %arg8[%c0_82, %c0_83, %c0_84, %c0_85] : memref<2x18x24x128xf32, #tpu.memory_space<vmem>>, vector<2x16x16x128xf32>
    %80 = vector.shape_cast %79 : vector<2x16x16x128xf32> to vector<512x128xf32>
    %81 = arith.truncf %80 : vector<512x128xf32> to vector<512x128xbf16>
    %c0_86 = arith.constant 0 : index
    %c0_87 = arith.constant 0 : index
    %c1_88 = arith.constant 1 : index
    %c0_89 = arith.constant 0 : index
    %82 = vector.load %arg8[%c0_86, %c0_87, %c1_88, %c0_89] : memref<2x18x24x128xf32, #tpu.memory_space<vmem>>, vector<2x16x16x128xf32>
    %83 = vector.shape_cast %82 : vector<2x16x16x128xf32> to vector<512x128xf32>
    %84 = arith.truncf %83 : vector<512x128xf32> to vector<512x128xbf16>
    %c0_90 = arith.constant 0 : index
    %c0_91 = arith.constant 0 : index
    %c2_92 = arith.constant 2 : index
    %c0_93 = arith.constant 0 : index
    %85 = vector.load %arg8[%c0_90, %c0_91, %c2_92, %c0_93] : memref<2x18x24x128xf32, #tpu.memory_space<vmem>>, vector<2x16x16x128xf32>
    %86 = vector.shape_cast %85 : vector<2x16x16x128xf32> to vector<512x128xf32>
    %87 = arith.truncf %86 : vector<512x128xf32> to vector<512x128xbf16>
    %88 = tpu.concatenate %81, %84, %87 in 1 : vector<512x128xbf16>, vector<512x128xbf16>, vector<512x128xbf16> -> vector<512x384xbf16>
    %c0_94 = arith.constant 0 : index
    %c0_95 = arith.constant 0 : index
    %89 = vector.load %arg2[%c0_94, %c0_95] : memref<1152x128xbf16, #tpu.memory_space<vmem>>, vector<384x128xbf16>
    %cst_96 = arith.constant dense<0.000000e+00> : vector<512x128xf32>
    %90 = tpu.matmul %88, %89, %cst_96 {dimension_numbers = #tpu.dot_dimension_numbers<[1], [0], [0], [1], [0, 0, 1, 1], [], []>} : vector<512x384xbf16>, vector<384x128xbf16>, vector<512x128xf32> -> vector<512x128xf32>
    %91 = arith.addf %78, %90 : vector<512x128xf32>
    %c0_97 = arith.constant 0 : index
    %c1_98 = arith.constant 1 : index
    %c0_99 = arith.constant 0 : index
    %c0_100 = arith.constant 0 : index
    %92 = vector.load %arg8[%c0_97, %c1_98, %c0_99, %c0_100] : memref<2x18x24x128xf32, #tpu.memory_space<vmem>>, vector<2x16x16x128xf32>
    %93 = vector.shape_cast %92 : vector<2x16x16x128xf32> to vector<512x128xf32>
    %94 = arith.truncf %93 : vector<512x128xf32> to vector<512x128xbf16>
    %c0_101 = arith.constant 0 : index
    %c1_102 = arith.constant 1 : index
    %c1_103 = arith.constant 1 : index
    %c0_104 = arith.constant 0 : index
    %95 = vector.load %arg8[%c0_101, %c1_102, %c1_103, %c0_104] : memref<2x18x24x128xf32, #tpu.memory_space<vmem>>, vector<2x16x16x128xf32>
    %96 = vector.shape_cast %95 : vector<2x16x16x128xf32> to vector<512x128xf32>
    %97 = arith.truncf %96 : vector<512x128xf32> to vector<512x128xbf16>
    %c0_105 = arith.constant 0 : index
    %c1_106 = arith.constant 1 : index
    %c2_107 = arith.constant 2 : index
    %c0_108 = arith.constant 0 : index
    %98 = vector.load %arg8[%c0_105, %c1_106, %c2_107, %c0_108] : memref<2x18x24x128xf32, #tpu.memory_space<vmem>>, vector<2x16x16x128xf32>
    %99 = vector.shape_cast %98 : vector<2x16x16x128xf32> to vector<512x128xf32>
    %100 = arith.truncf %99 : vector<512x128xf32> to vector<512x128xbf16>
    %101 = tpu.concatenate %94, %97, %100 in 1 : vector<512x128xbf16>, vector<512x128xbf16>, vector<512x128xbf16> -> vector<512x384xbf16>
    %c384_109 = arith.constant 384 : index
    %c0_110 = arith.constant 0 : index
    %102 = vector.load %arg2[%c384_109, %c0_110] : memref<1152x128xbf16, #tpu.memory_space<vmem>>, vector<384x128xbf16>
    %cst_111 = arith.constant dense<0.000000e+00> : vector<512x128xf32>
    %103 = tpu.matmul %101, %102, %cst_111 {dimension_numbers = #tpu.dot_dimension_numbers<[1], [0], [0], [1], [0, 0, 1, 1], [], []>} : vector<512x384xbf16>, vector<384x128xbf16>, vector<512x128xf32> -> vector<512x128xf32>
    %104 = arith.addf %91, %103 : vector<512x128xf32>
    %c0_112 = arith.constant 0 : index
    %c2_113 = arith.constant 2 : index
    %c0_114 = arith.constant 0 : index
    %c0_115 = arith.constant 0 : index
    %105 = vector.load %arg8[%c0_112, %c2_113, %c0_114, %c0_115] : memref<2x18x24x128xf32, #tpu.memory_space<vmem>>, vector<2x16x16x128xf32>
    %106 = vector.shape_cast %105 : vector<2x16x16x128xf32> to vector<512x128xf32>
    %107 = arith.truncf %106 : vector<512x128xf32> to vector<512x128xbf16>
    %c0_116 = arith.constant 0 : index
    %c2_117 = arith.constant 2 : index
    %c1_118 = arith.constant 1 : index
    %c0_119 = arith.constant 0 : index
    %108 = vector.load %arg8[%c0_116, %c2_117, %c1_118, %c0_119] : memref<2x18x24x128xf32, #tpu.memory_space<vmem>>, vector<2x16x16x128xf32>
    %109 = vector.shape_cast %108 : vector<2x16x16x128xf32> to vector<512x128xf32>
    %110 = arith.truncf %109 : vector<512x128xf32> to vector<512x128xbf16>
    %c0_120 = arith.constant 0 : index
    %c2_121 = arith.constant 2 : index
    %c2_122 = arith.constant 2 : index
    %c0_123 = arith.constant 0 : index
    %111 = vector.load %arg8[%c0_120, %c2_121, %c2_122, %c0_123] : memref<2x18x24x128xf32, #tpu.memory_space<vmem>>, vector<2x16x16x128xf32>
    %112 = vector.shape_cast %111 : vector<2x16x16x128xf32> to vector<512x128xf32>
    %113 = arith.truncf %112 : vector<512x128xf32> to vector<512x128xbf16>
    %114 = tpu.concatenate %107, %110, %113 in 1 : vector<512x128xbf16>, vector<512x128xbf16>, vector<512x128xbf16> -> vector<512x384xbf16>
    %c768_124 = arith.constant 768 : index
    %c0_125 = arith.constant 0 : index
    %115 = vector.load %arg2[%c768_124, %c0_125] : memref<1152x128xbf16, #tpu.memory_space<vmem>>, vector<384x128xbf16>
    %cst_126 = arith.constant dense<0.000000e+00> : vector<512x128xf32>
    %116 = tpu.matmul %114, %115, %cst_126 {dimension_numbers = #tpu.dot_dimension_numbers<[1], [0], [0], [1], [0, 0, 1, 1], [], []>} : vector<512x384xbf16>, vector<384x128xbf16>, vector<512x128xf32> -> vector<512x128xf32>
    %117 = arith.addf %104, %116 : vector<512x128xf32>
    %c0_127 = arith.constant 0 : index
    %c0_128 = arith.constant 0 : index
    %118 = vector.load %arg5[%c0_127, %c0_128] : memref<1x128xf32, #tpu.memory_space<vmem>>, vector<1x128xf32>
    %c0_129 = arith.constant 0 : index
    %c0_130 = arith.constant 0 : index
    %119 = vector.load %arg6[%c0_129, %c0_130] : memref<1x128xf32, #tpu.memory_space<vmem>>, vector<1x128xf32>
    %cst_131 = arith.constant dense<0.000000e+00> : vector<128xf32>
    %120 = vector.multi_reduction <add>, %117, %cst_131 [0] : vector<512x128xf32> to vector<128xf32>
    %121 = vector.shape_cast %120 : vector<128xf32> to vector<1x128xf32>
    %cst_132 = arith.constant 0.001953125 : f32
    %122 = vector.broadcast %cst_132 : f32 to vector<1x128xf32>
    %123 = arith.mulf %121, %122 : vector<1x128xf32>
    %124 = arith.mulf %117, %117 : vector<512x128xf32>
    %cst_133 = arith.constant dense<0.000000e+00> : vector<128xf32>
    %125 = vector.multi_reduction <add>, %124, %cst_133 [0] : vector<512x128xf32> to vector<128xf32>
    %126 = vector.shape_cast %125 : vector<128xf32> to vector<1x128xf32>
    %cst_134 = arith.constant 0.001953125 : f32
    %127 = vector.broadcast %cst_134 : f32 to vector<1x128xf32>
    %128 = arith.mulf %126, %127 : vector<1x128xf32>
    %129 = arith.mulf %123, %123 : vector<1x128xf32>
    %130 = arith.subf %128, %129 : vector<1x128xf32>
    %cst_135 = arith.constant 9.99999974E-6 : f32
    %131 = vector.broadcast %cst_135 : f32 to vector<1x128xf32>
    %132 = arith.addf %130, %131 : vector<1x128xf32>
    %133 = math.rsqrt %132 : vector<1x128xf32>
    %134 = arith.mulf %118, %133 : vector<1x128xf32>
    %135 = arith.mulf %123, %134 : vector<1x128xf32>
    %136 = arith.subf %119, %135 : vector<1x128xf32>
    %137 = vector.broadcast %134 : vector<1x128xf32> to vector<512x128xf32>
    %138 = arith.mulf %117, %137 : vector<512x128xf32>
    %139 = vector.broadcast %136 : vector<1x128xf32> to vector<512x128xf32>
    %140 = arith.addf %138, %139 : vector<512x128xf32>
    %141 = arith.addf %140, %10 : vector<512x128xf32>
    %cst_136 = arith.constant 0.000000e+00 : f32
    %142 = vector.broadcast %cst_136 : f32 to vector<512x128xf32>
    %143 = arith.maximumf %141, %142 : vector<512x128xf32>
    %c0_137 = arith.constant 0 : index
    %c0_138 = arith.constant 0 : index
    %144 = vector.load %arg7[%c0_137, %c0_138] : memref<512x128xf32, #tpu.memory_space<vmem>>, vector<512x128xf32>
    tpu.vector_store %arg7[%c0_137, %c0_138], %143 {strides = array<i32>} : memref<512x128xf32, #tpu.memory_space<vmem>>, vector<512x128xf32>,
    return
  }
}

</mosaic_0001>

<bundles_post_ra>
// kernel: residual_block.1
= control target key start
LH: loop header
LB: loop body
LE: loop exit
PB: predicated region body
PF: predicated region fallthrough
CT: control target
= control target key end

     0   :  { %v14539_v0 = vmov 0   ;;  %v8769_v2 = vmov 0.0   ;;  %s14531_s1 = inlined_call_operand.vmem [shape: bf16[1152,128], index: 1, kind: input, shape index: {}]   ;;  %s14532_s0 = inlined_call_operand.vmem [shape: f32[2,16,16,128], index: 0, kind: input, shape index: {}]   ;;  %s14533_s2 = inlined_call_operand.vmem [shape: bf16[1152,128], index: 2, kind: input, shape index: {}]   ;;  %s14534_s3 = inlined_call_operand.vmem [shape: f32[1,128], index: 3, kind: input, shape index: {}]   ;;  %s14535_s4 = inlined_call_operand.vmem [shape: f32[1,128], index: 4, kind: input, shape index: {}]   ;;  %s14536_s5 = inlined_call_operand.vmem [shape: f32[1,128], index: 5, kind: input, shape index: {}]   ;;  %s14537_s6 = inlined_call_operand.vmem [shape: f32[1,128], index: 6, kind: input, shape index: {}]   ;;  %s14538_s7 = inlined_call_operand.vmem [shape: f32[512,128], index: 7, kind: output, shape index: {}]  }
   0x1   :  { %1057 = vmatprep.subr.bf16.mxu0 %v14539_v0  ;;  %v8814_v1 = vld [vmem:[%s14531_s1 + $0xc0] sm:$0xff]   ;;  %77 = vst [vmem:[#allocation2 + $0x29] sm:$0x7f] %v8769_v2  ;;  %27 = vst [vmem:[#allocation2] sm:$0xff] %v8769_v2  ;;  %v8616_v4 = vld [vmem:[%s14531_s1 + $0xc8] sm:$0xff]  }
   0x2   :  { %28 = vst [vmem:[#allocation2 + $0x8] sm:$0xff] %v8769_v2  ;;  %29 = vst [vmem:[#allocation2 + $0x10] sm:$0xff] %v8769_v2  ;;  %v8615_v3 = vld [vmem:[%s14531_s1 + $0x140] sm:$0xff]   ;;  %1058 = vmatpush1.bf16.msra.mxu0 %v8814_v1  ;;  %v8617_v5 = vld [vmem:[%s14531_s1 + $0x148] sm:$0xff]  }
   0x3   :  { %30 = vst [vmem:[#allocation2 + $0x1b0] sm:$0xff] %v8769_v2  ;;  %31 = vst [vmem:[#allocation2 + $0x1b8] sm:$0xff] %v8769_v2  ;;  %8132 = vmatprep.subr.bf16.mxu1 %v8615_v3  ;;  %1059 = vmatprep.subr.bf16.mxu0 %v14539_v0  ;;  %v8619_v6 = vld [vmem:[%s14531_s1 + $0x150] sm:$0xff]   ;;  %v8621_v8 = vld [vmem:[%s14531_s1 + $0x158] sm:$0xff]  }
   0x4   :  { %32 = vst [vmem:[#allocation2 + $0x1c0] sm:$0xff] %v8769_v2  ;;  %34 = vst [vmem:[#allocation2 + $0x198] sm:$0xff] %v8769_v2  ;;  %8133 = vmatpush3.bf16.msra.mxu1 %v8615_v3  ;;  %v8618_v7 = vld [vmem:[%s14531_s1 + $0xd0] sm:$0xff]   ;;  %v8620_v9 = vld [vmem:[%s14531_s1 + $0xd8] sm:$0xff]  }
   0x5   :  { %35 = vst [vmem:[#allocation2 + $0x1a0] sm:$0xff] %v8769_v2  ;;  %36 = vst [vmem:[#allocation2 + $0x1a8] sm:$0xff] %v8769_v2  ;;  %8134 = vmatprep.subr.bf16.mxu1 %v8617_v5  ;;  %v8623_v10 = vld [vmem:[%s14531_s1 + $0x160] sm:$0xff]   ;;  %v8624_v12 = vld [vmem:[%s14531_s1 + $0xe8] sm:$0xff]  }
   0x6   :  { %37 = vst [vmem:[#allocation2 + $0x348] sm:$0xff] %v8769_v2  ;;  %38 = vst [vmem:[#allocation2 + $0x350] sm:$0xff] %v8769_v2  ;;  %1060 = vmatpush1.bf16.msra.mxu0 %v8616_v4  ;;  %v8622_v11 = vld [vmem:[%s14531_s1 + $0xe0] sm:$0xff]   ;;  %v8943_v14 = vld [vmem:[%s14532_s0 + $0x8] sm:$0xff] }
   0x7   :  { %39 = vst [vmem:[#allocation2 + $0x358] sm:$0xff] %v8769_v2  ;;  %41 = vst [vmem:[#allocation2 + $0x18] sm:$0x1] %v8769_v2  ;;  %1061 = vmatprep.subr.bf16.mxu0 %v14539_v0  ;;  %v8938_v13 = vld [vmem:[%s14532_s0] sm:$0xff]  ;;  %v8625_v15 = vld [vmem:[%s14531_s1 + $0x168] sm:$0xff]  }
   0x8   :  { %42 = vst [vmem:[#allocation2 + $0x30] sm:$0x1] %v8769_v2  ;;  %43 = vst [vmem:[#allocation2 + $0x48] sm:$0x1] %v8769_v2  ;;  %8135 = vmatpush3.bf16.msra.mxu1 %v8617_v5  ;;  %v8953_v16 = vld [vmem:[%s14532_s0 + $0x10] sm:$0xff]  ;;  %v737_v17 = vpack.c.bf16 %v8943_v14, %v8938_v13  ;;  %v8960_v18 = vld [vmem:[%s14532_s0 + $0x18] sm:$0xff] }
   0x9   :  { %44 = vst [vmem:[#allocation2 + $0x60] sm:$0x1] %v8769_v2  ;;  %45 = vst [vmem:[#allocation2 + $0x78] sm:$0x1] %v8769_v2  ;;  %8136 = vmatprep.subr.bf16.mxu1 %v8619_v6  ;;  %v8626_v19 = vld [vmem:[%s14531_s1 + $0xf0] sm:$0xff]   ;;  %v8971_v20 = vld [vmem:[%s14532_s0 + $0x20] sm:$0xff] }
   0xa   :  { %46 = vst [vmem:[#allocation2 + $0x90] sm:$0x1] %v8769_v2  ;;  %47 = vst [vmem:[#allocation2 + $0xa8] sm:$0x1] %v8769_v2  ;;  %1062 = vmatpush1.bf16.msra.mxu0 %v8618_v7  ;;  %1089 = vmatprep.mubr.bf16.mxu0 %v737_v17  ;;  %v8976_v21 = vld [vmem:[%s14532_s0 + $0x28] sm:$0xff]  ;;  %v8627_v22 = vld [vmem:[%s14531_s1 + $0x170] sm:$0xff]  }
   0xb   :  { %48 = vst [vmem:[#allocation2 + $0xc0] sm:$0x1] %v8769_v2  ;;  %49 = vst [vmem:[#allocation2 + $0xd8] sm:$0x1] %v8769_v2  ;;  %1063 = vmatprep.subr.bf16.mxu0 %v14539_v0  ;;  %v8986_v23 = vld [vmem:[%s14532_s0 + $0x30] sm:$0xff]  ;;  %v8991_v24 = vld [vmem:[%s14532_s0 + $0x38] sm:$0xff] }
   0xc   :  { %50 = vst [vmem:[#allocation2 + $0xf0] sm:$0x1] %v8769_v2  ;;  %51 = vst [vmem:[#allocation2 + $0x108] sm:$0x1] %v8769_v2  ;;  %8137 = vmatpush3.bf16.msra.mxu1 %v8619_v6  ;;  %v8629_v27 = vld [vmem:[%s14531_s1 + $0x178] sm:$0xff]   ;;  %v9002_v29 = vld [vmem:[%s14532_s0 + $0x40] sm:$0xff] }
   0xd   :  { %52 = vst [vmem:[#allocation2 + $0x120] sm:$0x1] %v8769_v2  ;;  %53 = vst [vmem:[#allocation2 + $0x138] sm:$0x1] %v8769_v2  ;;  %8138 = vmatprep.subr.bf16.mxu1 %v8621_v8  ;;  %v9007_v30 = vld [vmem:[%s14532_s0 + $0x48] sm:$0xff]  ;;  %v8628_v31 = vld [vmem:[%s14531_s1 + $0xf8] sm:$0xff]  }
   0xe   :  { %54 = vst [vmem:[#allocation2 + $0x150] sm:$0x1] %v8769_v2  ;;  %55 = vst [vmem:[#allocation2 + $0x168] sm:$0x1] %v8769_v2  ;;  %1064 = vmatpush1.bf16.msra.mxu0 %v8620_v9  ;;  %v9018_v33 = vld [vmem:[%s14532_s0 + $0x50] sm:$0xff]  ;;  %v9023_v36 = vld [vmem:[%s14532_s0 + $0x58] sm:$0xff] }
   0xf   :  { %56 = vst [vmem:[#allocation2 + $0x180] sm:$0x1] %v8769_v2  ;;  %59 = vst [vmem:[#allocation2 + $0x1c8] sm:$0x1] %v8769_v2  ;;  %1065 = vmatprep.subr.bf16.mxu0 %v14539_v0  ;;  %v8630_v38 = vld [vmem:[%s14531_s1 + $0x100] sm:$0xff]   ;;  %v9042_v43 = vld [vmem:[%s14532_s0 + $0x68] sm:$0xff] }
  0x10   :  { %60 = vst [vmem:[#allocation2 + $0x1e0] sm:$0x1] %v8769_v2  ;;  %61 = vst [vmem:[#allocation2 + $0x1f8] sm:$0x1] %v8769_v2  ;;  %8139 = vmatpush3.bf16.msra.mxu1 %v8621_v8  ;;  %v8631_v40 = vld [vmem:[%s14531_s1] sm:$0xff]   ;;  %v8632_v44 = vld [vmem:[%s14531_s1 + $0x108] sm:$0xff]  }
  0x11   :  { %62 = vst [vmem:[#allocation2 + $0x210] sm:$0x1] %v8769_v2  ;;  %63 = vst [vmem:[#allocation2 + $0x228] sm:$0x1] %v8769_v2  ;;  %8140 = vmatprep.subr.bf16.mxu1 %v8623_v10  ;;  %v9037_v41 = vld [vmem:[%s14532_s0 + $0x60] sm:$0xff]  ;;  %v9053_v45 = vld [vmem:[%s14532_s0 + $0x70] sm:$0xff] }
  0x12   :  { %64 = vst [vmem:[#allocation2 + $0x240] sm:$0x1] %v8769_v2  ;;  %65 = vst [vmem:[#allocation2 + $0x258] sm:$0x1] %v8769_v2  ;;  %1066 = vmatpush1.bf16.msra.mxu0 %v8622_v11  ;;  %v9058_v46 = vld [vmem:[%s14532_s0 + $0x78] sm:$0xff]  ;;  %v8634_v47 = vld [vmem:[%s14531_s1 + $0x8] sm:$0xff]  }
  0x13   :  { %66 = vst [vmem:[#allocation2 + $0x270] sm:$0x1] %v8769_v2  ;;  %67 = vst [vmem:[#allocation2 + $0x288] sm:$0x1] %v8769_v2  ;;  %1067 = vmatprep.subr.bf16.mxu0 %v14539_v0  ;;  %v8633_v50 = vld [vmem:[%s14531_s1 + $0x110] sm:$0xff]   ;;  %v9073_v53 = vld [vmem:[%s14532_s0 + $0x80] sm:$0xff] }
  0x14   :  { %68 = vst [vmem:[#allocation2 + $0x2a0] sm:$0x1] %v8769_v2  ;;  %69 = vst [vmem:[#allocation2 + $0x2b8] sm:$0x1] %v8769_v2  ;;  %8141 = vmatpush3.bf16.msra.mxu1 %v8623_v10  ;;  %v9078_v54 = vld [vmem:[%s14532_s0 + $0x88] sm:$0xff]  ;;  %v9083_v55 = vld [vmem:[%s14532_s0 + $0x90] sm:$0xff] }
  0x15   :  { %70 = vst [vmem:[#allocation2 + $0x2d0] sm:$0x1] %v8769_v2  ;;  %71 = vst [vmem:[#allocation2 + $0x2e8] sm:$0x1] %v8769_v2  ;;  %8142 = vmatprep.subr.bf16.mxu1 %v8625_v15  ;;  %v9091_v57 = vld [vmem:[%s14532_s0 + $0x98] sm:$0xff]  ;;  %v8637_v59 = vld [vmem:[%s14531_s1 + $0x10] sm:$0xff]  }
  0x16   :  { %72 = vst [vmem:[#allocation2 + $0x300] sm:$0x1] %v8769_v2  ;;  %73 = vst [vmem:[#allocation2 + $0x318] sm:$0x1] %v8769_v2  ;;  %1068 = vmatpush1.bf16.msra.mxu0 %v8624_v12  ;;  %v8635_v60 = vld [vmem:[%s14531_s1 + $0x118] sm:$0xff]   ;;  %v9105_v61 = vld [vmem:[%s14532_s0 + $0xa0] sm:$0xff] }
  0x17   :  { %74 = vst [vmem:[#allocation2 + $0x330] sm:$0x1] %v8769_v2  ;;  %78 = vst [vmem:[#allocation2 + $0x41] sm:$0x7f] %v8769_v2  ;;  %1069 = vmatprep.subr.bf16.mxu0 %v14539_v0  ;;  %v8640_v63 = vld [vmem:[%s14531_s1 + $0x18] sm:$0xff]   ;;  %v9113_v1 = vld [vmem:[%s14532_s0 + $0xa8] sm:$0xff] }
  0x18   :  { %79 = vst [vmem:[#allocation2 + $0x59] sm:$0x7f] %v8769_v2  ;;  %80 = vst [vmem:[#allocation2 + $0x71] sm:$0x7f] %v8769_v2  ;;  %8143 = vmatpush3.bf16.msra.mxu1 %v8625_v15  ;;  %v9126_v3 = vld [vmem:[%s14532_s0 + $0xb8] sm:$0xff]  ;;  %v9134_v7 = vld [vmem:[%s14532_s0 + $0xc0] sm:$0xff] }
  0x19   :  { %81 = vst [vmem:[#allocation2 + $0x89] sm:$0x7f] %v8769_v2  ;;  %82 = vst [vmem:[#allocation2 + $0xa1] sm:$0x7f] %v8769_v2  ;;  %8144 = vmatprep.subr.bf16.mxu1 %v8627_v22  ;;  %v9139_v8 = vld [vmem:[%s14532_s0 + $0xc8] sm:$0xff]  ;;  %v8636_v9 = vld [vmem:[%s14531_s1 + $0x120] sm:$0xff]  }
  0x1a   :  { %83 = vst [vmem:[#allocation2 + $0xb9] sm:$0x7f] %v8769_v2  ;;  %84 = vst [vmem:[#allocation2 + $0xd1] sm:$0x7f] %v8769_v2  ;;  %1070 = vmatpush1.bf16.msra.mxu0 %v8626_v19  ;;  %v9149_v10 = vld [vmem:[%s14532_s0 + $0xd0] sm:$0xff]  ;;  %v9155_v12 = vld [vmem:[%s14532_s0 + $0xd8] sm:$0xff] }
  0x1b   :  { %85 = vst [vmem:[#allocation2 + $0xe9] sm:$0x7f] %v8769_v2  ;;  %86 = vst [vmem:[#allocation2 + $0x101] sm:$0x7f] %v8769_v2  ;;  %1071 = vmatprep.subr.bf16.mxu0 %v14539_v0  ;;  %v8642_v17 = vld [vmem:[%s14531_s1 + $0x20] sm:$0xff]  }
  0x1c   :  { %87 = vst [vmem:[#allocation2 + $0x119] sm:$0x7f] %v8769_v2  ;;  %88 = vst [vmem:[#allocation2 + $0x131] sm:$0x7f] %v8769_v2  ;;  %8145 = vmatpush3.bf16.msra.mxu1 %v8627_v22  ;;  %v9166_v19 = vld [vmem:[%s14532_s0 + $0xe0] sm:$0xff]  ;;  %v8638_v22 = vld [vmem:[%s14531_s1 + $0x128] sm:$0xff]  }
  0x1d   :  { %89 = vst [vmem:[#allocation2 + $0x149] sm:$0x7f] %v8769_v2  ;;  %90 = vst [vmem:[#allocation2 + $0x161] sm:$0x7f] %v8769_v2  ;;  %8146 = vmatprep.subr.bf16.mxu1 %v8629_v27 }
  0x1e   :  { %91 = vst [vmem:[#allocation2 + $0x179] sm:$0x7f] %v8769_v2  ;;  %92 = vst [vmem:[#allocation2 + $0x191] sm:$0x7f] %v8769_v2  ;;  %1072 = vmatpush1.bf16.msra.mxu0 %v8628_v31  ;;  %v9185_v31 = vld [vmem:[%s14532_s0 + $0xf0] sm:$0xff] }
  0x1f   :  { %95 = vst [vmem:[#allocation2 + $0x1d9] sm:$0x7f] %v8769_v2  ;;  %96 = vst [vmem:[#allocation2 + $0x1f1] sm:$0x7f] %v8769_v2  ;;  %1073 = vmatprep.subr.bf16.mxu0 %v14539_v0 }
  0x20   :  { %97 = vst [vmem:[#allocation2 + $0x209] sm:$0x7f] %v8769_v2  ;;  %98 = vst [vmem:[#allocation2 + $0x221] sm:$0x7f] %v8769_v2  ;;  %8147 = vmatpush3.bf16.msra.mxu1 %v8629_v27 }
  0x21   :  { %99 = vst [vmem:[#allocation2 + $0x239] sm:$0x7f] %v8769_v2  ;;  %100 = vst [vmem:[#allocation2 + $0x251] sm:$0x7f] %v8769_v2  ;;  %1779 = vmatprep.subr.bf16.mxu1 %v14539_v0 }
  0x22   :  { %101 = vst [vmem:[#allocation2 + $0x269] sm:$0x7f] %v8769_v2  ;;  %102 = vst [vmem:[#allocation2 + $0x281] sm:$0x7f] %v8769_v2  ;;  %1074 = vmatpush1.bf16.msra.mxu0 %v8630_v38  ;;  %v9201_v38 = vld [vmem:[%s14532_s0 + $0x100] sm:$0xff] }
  0x23   :  { %103 = vst [vmem:[#allocation2 + $0x299] sm:$0x7f] %v8769_v2  ;;  %104 = vst [vmem:[#allocation2 + $0x2b1] sm:$0x7f] %v8769_v2  ;;  %1075 = vmatprep.subr.bf16.mxu0 %v14539_v0 }
  0x24   :  { %105 = vst [vmem:[#allocation2 + $0x2c9] sm:$0x7f] %v8769_v2  ;;  %106 = vst [vmem:[#allocation2 + $0x2e1] sm:$0x7f] %v8769_v2 }
  0x25   :  { %107 = vst [vmem:[#allocation2 + $0x2f9] sm:$0x7f] %v8769_v2  ;;  %108 = vst [vmem:[#allocation2 + $0x311] sm:$0x7f] %v8769_v2 }
  0x26   :  { %109 = vst [vmem:[#allocation2 + $0x329] sm:$0x7f] %v8769_v2  ;;  %110 = vst [vmem:[#allocation2 + $0x341] sm:$0x7f] %v8769_v2  ;;  %1076 = vmatpush1.bf16.msra.mxu0 %v8632_v44 }
  0x27   :  { %40 = vst [vmem:[#allocation2] sm:$0x1] %v8769_v2  ;;  %57 = vst [vmem:[#allocation2 + $0x198] sm:$0x1] %v8769_v2  ;;  %1077 = vmatprep.subr.bf16.mxu0 %v14539_v0 }
  0x28   :  { %58 = vst [vmem:[#allocation2 + $0x1b0] sm:$0x1] %v8769_v2  ;;  %75 = vst [vmem:[#allocation2 + $0x348] sm:$0x1] %v8769_v2 }
  0x29   :  { %76 = vst [vmem:[#allocation2 + $0x11] sm:$0x7f] %v8769_v2  ;;  %93 = vst [vmem:[#allocation2 + $0x1a9] sm:$0x7f] %v8769_v2 }
  0x2a   :  { %94 = vst [vmem:[#allocation2 + $0x1c1] sm:$0x7f] %v8769_v2  ;;  %111 = vst [vmem:[#allocation2 + $0x359] sm:$0x7f] %v8769_v2  ;;  %1078 = vmatpush1.bf16.msra.mxu0 %v8633_v50  ;;  %v9121_v2 = vld [vmem:[%s14532_s0 + $0xb0] sm:$0xff] }
  0x2b   :  { %14711 = vst [vmem:[#allocation3_spill] sm:$0xff] %v8938_v13  ;;  %14712 = vst [vmem:[#allocation4_spill] sm:$0xff] %v8943_v14  ;;  %1079 = vmatprep.subr.bf16.mxu0 %v14539_v0 }
  0x2c   :  { %177 = vst [vmem:[#allocation2 + $0x19] sm:$0xff] %v8938_v13  ;;  %178 = vst [vmem:[#allocation2 + $0x21] sm:$0xff] %v8943_v14  ;;  %v14765_v14 = vmov 0   ;;  %v9387_v13 = vld [vmem:[%s14532_s0 + $0x1b8] sm:$0xff] }
  0x2d   :  { %14713 = vst [vmem:[#allocation5_spill] sm:$0xff] %v8953_v16  ;;  %14714 = vst [vmem:[#allocation6_spill] sm:$0xff] %v8960_v18 }
  0x2e   :  { %179 = vst [vmem:[#allocation2 + $0x31] sm:$0xff] %v8953_v16  ;;  %180 = vst [vmem:[#allocation2 + $0x39] sm:$0xff] %v8960_v18  ;;  %1080 = vmatpush1.bf16.msra.mxu0 %v8635_v60  ;;  %v9244_v60 = vld [vmem:[%s14532_s0 + $0x130] sm:$0xff] }
  0x2f   :  { %14715 = vst [vmem:[#allocation7_spill] sm:$0xff] %v8971_v20  ;;  %14716 = vst [vmem:[#allocation8_spill] sm:$0xff] %v8976_v21  ;;  %1081 = vmatprep.subr.bf16.mxu0 %v14539_v0 }
  0x30   :  { %181 = vst [vmem:[#allocation2 + $0x49] sm:$0xff] %v8971_v20  ;;  %182 = vst [vmem:[#allocation2 + $0x51] sm:$0xff] %v8976_v21 }
  0x31   :  { %14717 = vst [vmem:[#allocation9_spill] sm:$0xff] %v8986_v23  ;;  %14718 = vst [vmem:[#allocation10_spill] sm:$0xff] %v8991_v24 }
  0x32   :  { %183 = vst [vmem:[#allocation2 + $0x61] sm:$0xff] %v8986_v23  ;;  %184 = vst [vmem:[#allocation2 + $0x69] sm:$0xff] %v8991_v24  ;;  %1082 = vmatpush1.bf16.msra.mxu0 %v8636_v9  ;;  %v9263_v9 = vpack.c.bf16 %v8960_v18, %v8953_v16 }
  0x33   :  { %v769_v25 = vld [vmem:[#allocation2 + $0x1a] sm:$0xff]  ;;  %v770_v26 = vld [vmem:[#allocation2 + $0x22] sm:$0xff]  ;;  %14719 = vst [vmem:[#allocation11_spill] sm:$0xff] %v9002_v29  ;;  %14720 = vst [vmem:[#allocation12_spill] sm:$0xff] %v9007_v30  ;;  %1083 = vmatprep.subr.bf16.mxu0 %v14539_v0 }
  0x34   :  { %v833_v28 = vpack.c.bf16 %v770_v26, %v769_v25  ;;  %185 = vst [vmem:[#allocation2 + $0x79] sm:$0xff] %v9002_v29  ;;  %186 = vst [vmem:[#allocation2 + $0x81] sm:$0xff] %v9007_v30  ;;  %v9174_v26 = vld [vmem:[%s14532_s0 + $0xe8] sm:$0xff]  ;;  %v577_v50 = vld [vmem:[#allocation2 + $0x18] sm:$0xff] }
  0x35   :  { %v771_v32 = vld [vmem:[#allocation2 + $0x32] sm:$0xff]  ;;  %14721 = vst [vmem:[#allocation13_spill] sm:$0xff] %v9018_v33  ;;  %v772_v34 = vld [vmem:[#allocation2 + $0x3a] sm:$0xff]  ;;  %14722 = vst [vmem:[#allocation14_spill] sm:$0xff] %v9023_v36 }
  0x36   :  { %8148 = vmatprep.mubr.bf16.mxu1 %v833_v28  ;;  %187 = vst [vmem:[#allocation2 + $0x91] sm:$0xff] %v9018_v33  ;;  %188 = vst [vmem:[#allocation2 + $0x99] sm:$0xff] %v9023_v36  ;;  %v834_v39 = vpack.c.bf16 %v772_v34, %v771_v32  ;;  %v8643_v28 = vld [vmem:[%s14531_s1 + $0x28] sm:$0xff]   ;;  %v9190_v32 = vld [vmem:[%s14532_s0 + $0xf8] sm:$0xff]  ;;  %1084 = vmatpush1.bf16.msra.mxu0 %v8638_v22 }
  0x37   :  { %v773_v35 = vld [vmem:[#allocation2 + $0x4a] sm:$0xff]  ;;  %v774_v37 = vld [vmem:[#allocation2 + $0x52] sm:$0xff]  ;;  %14723 = vst [vmem:[#allocation15_spill] sm:$0xff] %v9037_v41  ;;  %14724 = vst [vmem:[#allocation16_spill] sm:$0xff] %v9042_v43  ;;  %1085 = vmatprep.subr.bf16.mxu0 %v14539_v0 }
  0x38   :  { %v835_v42 = vpack.c.bf16 %v774_v37, %v773_v35  ;;  %189 = vst [vmem:[#allocation2 + $0xa9] sm:$0xff] %v9037_v41  ;;  %190 = vst [vmem:[#allocation2 + $0xb1] sm:$0xff] %v9042_v43  ;;  %8149 = vmatmul.mubr.bf16.vlgmr.msra.gmra.mrb[0].mxu1 %v834_v39  ;;  %v8639_v37 = vld [vmem:[%s14531_s1 + $0x130] sm:$0xff]  }
  0x39   :  { %14725 = vst [vmem:[#allocation17_spill] sm:$0xff] %v9053_v45  ;;  %14726 = vst [vmem:[#allocation18_spill] sm:$0xff] %v9058_v46  ;;  %1780 = vmatpush1.bf16.msra.mxu1 %v8631_v40  ;;  %v775_v48 = vld [vmem:[#allocation2 + $0x62] sm:$0xff]  ;;  %v776_v49 = vld [vmem:[#allocation2 + $0x6a] sm:$0xff] }
  0x3a   :  { %191 = vst [vmem:[#allocation2 + $0xc1] sm:$0xff] %v9053_v45  ;;  %192 = vst [vmem:[#allocation2 + $0xc9] sm:$0xff] %v9058_v46  ;;  %8152 = vmatprep.mubr.bf16.mxu1 %v835_v42  ;;  %1781 = vmatprep.subr.bf16.mxu1 %v14539_v0  ;;  %v836_v56 = vpack.c.bf16 %v776_v49, %v775_v48  ;;  %v8644_v40 = vld [vmem:[%s14531_s1 + $0x30] sm:$0xff]   ;;  %v9210_v42 = vld [vmem:[%s14532_s0 + $0x108] sm:$0xff] }
  0x3b   :  { %v777_v51 = vld [vmem:[#allocation2 + $0x7a] sm:$0xff]  ;;  %v778_v52 = vld [vmem:[#allocation2 + $0x82] sm:$0xff]  ;;  %14727 = vst [vmem:[#allocation19_spill] sm:$0xff] %v9073_v53  ;;  %14728 = vst [vmem:[#allocation20_spill] sm:$0xff] %v9078_v54  ;;  %1086 = vmatpush1.bf16.msra.mxu0 %v8639_v37 }
  0x3c   :  { %14729 = vst [vmem:[#allocation21_spill] sm:$0xff] %v9083_v55  ;;  %193 = vst [vmem:[#allocation2 + $0xd9] sm:$0xff] %v9073_v53  ;;  %v837_v58 = vpack.c.bf16 %v778_v52, %v777_v51  ;;  %v9222_v48 = vld [vmem:[%s14532_s0 + $0x118] sm:$0xff]  ;;  %v578_v51 = vld [vmem:[#allocation2 + $0x20] sm:$0xff]  ;;  %1087 = vmatprep.subr.bf16.mxu0 %v14539_v0 }
  0x3d   :  { %194 = vst [vmem:[#allocation2 + $0xe1] sm:$0xff] %v9078_v54  ;;  %14730 = vst [vmem:[#allocation22_spill] sm:$0xff] %v9091_v57  ;;  %1782 = vmatpush1.bf16.msra.mxu1 %v8634_v47  ;;  %v779_v62 = vld [vmem:[#allocation2 + $0x92] sm:$0xff]  ;;  %v780_v4 = vld [vmem:[#allocation2 + $0x9a] sm:$0xff] }
  0x3e   :  { %195 = vst [vmem:[#allocation2 + $0xf1] sm:$0xff] %v9083_v55  ;;  %196 = vst [vmem:[#allocation2 + $0xf9] sm:$0xff] %v9091_v57  ;;  %1783 = vmatprep.subr.bf16.mxu1 %v14539_v0  ;;  %v838_v11 = vpack.c.bf16 %v780_v4, %v779_v62  ;;  %v9217_v47 = vld [vmem:[%s14532_s0 + $0x110] sm:$0xff]  ;;  %v8641_v49 = vld [vmem:[%s14531_s1 + $0x138] sm:$0xff]  }
  0x3f   :  { %14731 = vst [vmem:[#allocation23_spill] sm:$0xff] %v9105_v61  ;;  %14732 = vst [vmem:[#allocation24_spill] sm:$0xff] %v9113_v1  ;;  %v781_v5 = vld [vmem:[#allocation2 + $0xaa] sm:$0xff]  ;;  %v782_v6 = vld [vmem:[#allocation2 + $0xb2] sm:$0xff]  ;;  %1088 = vmatpush1.bf16.msra.mxu0 %v8641_v49 }
  0x40   :  { %197 = vst [vmem:[#allocation2 + $0x109] sm:$0xff] %v9105_v61  ;;  %8153 = vmatmul.mubr.bf16.gmra.mrb[4].mxu1 %v836_v56  ;;  %198 = vst [vmem:[#allocation2 + $0x111] sm:$0xff] %v9113_v1  ;;  %v839_v15 = vpack.c.bf16 %v782_v6, %v781_v5  ;;  %v9254_v4 = vld [vmem:[%s14532_s0 + $0x138] sm:$0xff]  ;;  %v9257_v5 = vpack.c.bf16 %v578_v51, %v577_v50  ;;  %v8647_v50 = vld [vmem:[%s14531_s1 + $0x48] sm:$0xff]  }
  0x41   :  { %14733 = vst [vmem:[#allocation25_spill] sm:$0xff] %v9121_v2  ;;  %14734 = vst [vmem:[#allocation26_spill] sm:$0xff] %v9126_v3  ;;  %8156 = vmatprep.mubr.bf16.mxu1 %v837_v58  ;;  %1784 = vmatpush1.bf16.msra.mxu1 %v8637_v59  ;;  %v783_v25 = vld [vmem:[#allocation2 + $0xc2] sm:$0xff]  ;;  %v784_v27 = vld [vmem:[#allocation2 + $0xca] sm:$0xff] }
  0x42   :  { %199 = vst [vmem:[#allocation2 + $0x121] sm:$0xff] %v9121_v2  ;;  %200 = vst [vmem:[#allocation2 + $0x129] sm:$0xff] %v9126_v3  ;;  %1785 = vmatprep.subr.bf16.mxu1 %v14539_v0  ;;  %v840_v39 = vpack.c.bf16 %v784_v27, %v783_v25  ;;  %v9234_v58 = vld [vmem:[%s14532_s0 + $0x120] sm:$0xff]  ;;  %v9239_v59 = vld [vmem:[%s14532_s0 + $0x128] sm:$0xff]  ;;  %1090 = vmatmul.mubr.bf16.vlgmr.msra.gmra.mrb[0].mxu0 %v9257_v5 }
  0x43   :  { %14735 = vst [vmem:[#allocation27_spill] sm:$0xff] %v9134_v7  ;;  %14736 = vst [vmem:[#allocation28_spill] sm:$0xff] %v9139_v8  ;;  %v8646_v25 = vld [vmem:[%s14531_s1 + $0x40] sm:$0xff]   ;;  %v9283_v27 = vld [vmem:[%s14532_s0 + $0x150] sm:$0xff]  ;;  %1097 = vmatprep.mubr.bf16.mxu0 %v9263_v9 }
  0x44   :  { %201 = vst [vmem:[#allocation2 + $0x139] sm:$0xff] %v9134_v7  ;;  %202 = vst [vmem:[#allocation2 + $0x141] sm:$0xff] %v9139_v8  ;;  %v785_v34 = vld [vmem:[#allocation2 + $0xda] sm:$0xff]  ;;  %v786_v35 = vld [vmem:[#allocation2 + $0xe2] sm:$0xff] }
  0x45   :  { %14737 = vst [vmem:[#allocation29_spill] sm:$0xff] %v9149_v10  ;;  %14738 = vst [vmem:[#allocation30_spill] sm:$0xff] %v9155_v12  ;;  %1786 = vmatpush1.bf16.msra.mxu1 %v8640_v63  ;;  %v841_v44 = vpack.c.bf16 %v786_v35, %v785_v34  ;;  %v787_v52 = vld [vmem:[#allocation2 + $0xf2] sm:$0xff]  ;;  %v788_v56 = vld [vmem:[#allocation2 + $0xfa] sm:$0xff] }
  0x46   :  { %203 = vst [vmem:[#allocation2 + $0x151] sm:$0xff] %v9149_v10  ;;  %204 = vst [vmem:[#allocation2 + $0x159] sm:$0xff] %v9155_v12  ;;  %1787 = vmatprep.subr.bf16.mxu1 %v14539_v0  ;;  %v8645_v63 = vld [vmem:[%s14531_s1 + $0x38] sm:$0xff]   ;;  %v579_v34 = vld [vmem:[#allocation2 + $0x30] sm:$0xff] }
  0x47   :  { %14739 = vst [vmem:[#allocation31_spill] sm:$0xff] %v9166_v19  ;;  %14740 = vst [vmem:[#allocation32_spill] sm:$0xff] %v9174_v26  ;;  %v789_v62 = vld [vmem:[#allocation2 + $0x10a] sm:$0xff]  ;;  %v790_v6 = vld [vmem:[#allocation2 + $0x112] sm:$0xff] }
  0x48   :  { %205 = vst [vmem:[#allocation2 + $0x169] sm:$0xff] %v9166_v19  ;;  %8157 = vmatmul.mubr.bf16.gmra.mrb[8].mxu1 %v838_v11  ;;  %206 = vst [vmem:[#allocation2 + $0x171] sm:$0xff] %v9174_v26  ;;  %v9268_v11 = vld [vmem:[%s14532_s0 + $0x140] sm:$0xff]  ;;  %v843_v22 = vpack.c.bf16 %v790_v6, %v789_v62  ;;  %v580_v35 = vld [vmem:[#allocation2 + $0x38] sm:$0xff] }
  0x49   :  { %14741 = vst [vmem:[#allocation33_spill] sm:$0xff] %v9185_v31  ;;  %8160 = vmatprep.mubr.bf16.mxu1 %v839_v15  ;;  %1788 = vmatpush1.bf16.msra.mxu1 %v8642_v17  ;;  %14742 = vst [vmem:[#allocation34_spill] sm:$0xff] %v9190_v32  ;;  %v842_v15 = vpack.c.bf16 %v788_v56, %v787_v52  ;;  %v9273_v17 = vld [vmem:[%s14532_s0 + $0x148] sm:$0xff]  ;;  %v9309_v52 = vpack.c.bf16 %v580_v35, %v579_v34  ;;  %v9316_v56 = vld [vmem:[%s14532_s0 + $0x170] sm:$0xff] }
  0x4a   :  { %207 = vst [vmem:[#allocation2 + $0x181] sm:$0xff] %v9185_v31  ;;  %1789 = vmatprep.subr.bf16.mxu1 %v14539_v0  ;;  %208 = vst [vmem:[#allocation2 + $0x189] sm:$0xff] %v9190_v32  ;;  %v791_v37 = vld [vmem:[#allocation2 + $0x122] sm:$0xff]  ;;  %v9321_v62 = vld [vmem:[%s14532_s0 + $0x178] sm:$0xff] }
  0x4b   :  { %14743 = vst [vmem:[#allocation35_spill] sm:$0xff] %v9201_v38  ;;  %14744 = vst [vmem:[#allocation36_spill] sm:$0xff] %v9210_v42  ;;  %v794_v49 = vld [vmem:[#allocation2 + $0x142] sm:$0xff]  ;;  %v9345_v35 = vld [vmem:[%s14532_s0 + $0x190] sm:$0xff]  ;;  %1098 = vmatmul.mubr.bf16.gmra.mrb[4].mxu0 %v9309_v52 }
  0x4c   :  { %209 = vst [vmem:[#allocation2 + $0x1c9] sm:$0xff] %v9201_v38  ;;  %210 = vst [vmem:[#allocation2 + $0x1d1] sm:$0xff] %v9210_v42  ;;  %v9306_v51 = vld [vmem:[%s14532_s0 + $0x168] sm:$0xff] }
  0x4d   :  { %1790 = vmatpush1.bf16.msra.mxu1 %v8643_v28  ;;  %14745 = vst [vmem:[#allocation37_spill] sm:$0xff] %v9217_v47  ;;  %14746 = vst [vmem:[#allocation38_spill] sm:$0xff] %v9222_v48  ;;  %v9290_v28 = vld [vmem:[%s14532_s0 + $0x158] sm:$0xff]  ;;  %v9340_v34 = vld [vmem:[%s14532_s0 + $0x188] sm:$0xff] }
  0x4e   :  { %1791 = vmatprep.subr.bf16.mxu1 %v14539_v0  ;;  %211 = vst [vmem:[#allocation2 + $0x1e1] sm:$0xff] %v9217_v47  ;;  %212 = vst [vmem:[#allocation2 + $0x1e9] sm:$0xff] %v9222_v48 }
  0x4f   :  { %14747 = vst [vmem:[#allocation39_spill] sm:$0xff] %v9234_v58  ;;  %14748 = vst [vmem:[#allocation40_spill] sm:$0xff] %v9239_v59  ;;  %v797_v18 = vld [vmem:[#allocation2 + $0x16a] sm:$0xff]  ;;  %v798_v16 = vld [vmem:[#allocation2 + $0x172] sm:$0xff] }
  0x50   :  { %8161 = vmatmul.mubr.bf16.gmra.mrb[12].mxu1 %v840_v39  ;;  %14749 = vst [vmem:[#allocation41_spill] sm:$0xff] %v9244_v60  ;;  %213 = vst [vmem:[#allocation2 + $0x1f9] sm:$0xff] %v9234_v58  ;;  %v792_v39 = vld [vmem:[#allocation2 + $0x12a] sm:$0xff] }
  0x51   :  { %8164 = vmatprep.mubr.bf16.mxu1 %v841_v44  ;;  %1792 = vmatpush1.bf16.msra.mxu1 %v8644_v40  ;;  %214 = vst [vmem:[#allocation2 + $0x201] sm:$0xff] %v9239_v59  ;;  %14750 = vst [vmem:[#allocation42_spill] sm:$0xff] %v9254_v4  ;;  %v793_v40 = vld [vmem:[#allocation2 + $0x13a] sm:$0xff]  ;;  %v844_v6 = vpack.c.bf16 %v792_v39, %v791_v37  ;;  %v581_v37 = vld [vmem:[#allocation2 + $0x48] sm:$0xff] }
  0x52   :  { %215 = vst [vmem:[#allocation2 + $0x211] sm:$0xff] %v9244_v60  ;;  %1793 = vmatprep.subr.bf16.mxu1 %v14539_v0  ;;  %216 = vst [vmem:[#allocation2 + $0x219] sm:$0xff] %v9254_v4  ;;  %v9298_v44 = vld [vmem:[%s14532_s0 + $0x160] sm:$0xff]  ;;  %v9354_v39 = vld [vmem:[%s14532_s0 + $0x198] sm:$0xff] }
  0x53   :  { %14751 = vst [vmem:[#allocation43_spill] sm:$0xff] %v9268_v11  ;;  %14752 = vst [vmem:[#allocation44_spill] sm:$0xff] %v9273_v17 }
  0x54   :  { %217 = vst [vmem:[#allocation2 + $0x229] sm:$0xff] %v9268_v11  ;;  %218 = vst [vmem:[#allocation2 + $0x231] sm:$0xff] %v9273_v17 }
  0x55   :  { %1794 = vmatpush1.bf16.msra.mxu1 %v8645_v63  ;;  %14753 = vst [vmem:[#allocation45_spill] sm:$0xff] %v9283_v27  ;;  %14754 = vst [vmem:[#allocation46_spill] sm:$0xff] %v9290_v28  ;;  %v9325_v63 = vpack.c.bf16 %v8976_v21, %v8971_v20  ;;  %v8649_v21 = vld [vmem:[%s14531_s1 + $0x58] sm:$0xff]   ;;  %v9370_v20 = vld [vmem:[%s14532_s0 + $0x1a8] sm:$0xff] }
  0x56   :  { %1795 = vmatprep.subr.bf16.mxu1 %v14539_v0  ;;  %219 = vst [vmem:[#allocation2 + $0x241] sm:$0xff] %v9283_v27  ;;  %220 = vst [vmem:[#allocation2 + $0x249] sm:$0xff] %v9290_v28 }
  0x57   :  { %14755 = vst [vmem:[#allocation47_spill] sm:$0xff] %v9298_v44  ;;  %14756 = vst [vmem:[#allocation48_spill] sm:$0xff] %v9306_v51  ;;  %1105 = vmatprep.mubr.bf16.mxu0 %v9325_v63 }
  0x58   :  { %8165 = vmatmul.mubr.bf16.gmra.mrb[16].mxu1 %v842_v15  ;;  %221 = vst [vmem:[#allocation2 + $0x259] sm:$0xff] %v9298_v44  ;;  %222 = vst [vmem:[#allocation2 + $0x261] sm:$0xff] %v9306_v51  ;;  %v8648_v15 = vld [vmem:[%s14531_s1 + $0x50] sm:$0xff]  }
  0x59   :  { %8168 = vmatprep.mubr.bf16.mxu1 %v843_v22  ;;  %1796 = vmatpush1.bf16.msra.mxu1 %v8646_v25  ;;  %14757 = vst [vmem:[#allocation49_spill] sm:$0xff] %v9316_v56  ;;  %14758 = vst [vmem:[#allocation50_spill] sm:$0xff] %v9321_v62  ;;  %v845_v22 = vpack.c.bf16 %v794_v49, %v793_v40  ;;  %v9335_v25 = vld [vmem:[%s14532_s0 + $0x180] sm:$0xff]  ;;  %v582_v40 = vld [vmem:[#allocation2 + $0x50] sm:$0xff] }
  0x5a   :  { %1797 = vmatprep.subr.bf16.mxu1 %v14539_v0  ;;  %223 = vst [vmem:[#allocation2 + $0x271] sm:$0xff] %v9316_v56  ;;  %224 = vst [vmem:[#allocation2 + $0x279] sm:$0xff] %v9321_v62  ;;  %v795_v49 = vld [vmem:[#allocation2 + $0x152] sm:$0xff] }
  0x5b   :  { %14759 = vst [vmem:[#allocation51_spill] sm:$0xff] %v9335_v25  ;;  %14760 = vst [vmem:[#allocation52_spill] sm:$0xff] %v9340_v34 }
  0x5c   :  { %14761 = vst [vmem:[#allocation53_spill] sm:$0xff] %v9345_v35  ;;  %225 = vst [vmem:[#allocation2 + $0x289] sm:$0xff] %v9335_v25 }
  0x5d   :  { %1798 = vmatpush1.bf16.msra.mxu1 %v8647_v50  ;;  %226 = vst [vmem:[#allocation2 + $0x291] sm:$0xff] %v9340_v34  ;;  %14762 = vst [vmem:[#allocation54_spill] sm:$0xff] %v9354_v39  ;;  %v9362_v50 = vld [vmem:[%s14532_s0 + $0x1a0] sm:$0xff] }
  0x5e   :  { %1799 = vmatprep.subr.bf16.mxu1 %v14539_v0  ;;  %227 = vst [vmem:[#allocation2 + $0x2a1] sm:$0xff] %v9345_v35  ;;  %228 = vst [vmem:[#allocation2 + $0x2a9] sm:$0xff] %v9354_v39  ;;  %v796_v0 = vld [vmem:[#allocation2 + $0x15a] sm:$0xff] }
  0x5f   :  { %14763 = vst [vmem:[#allocation55_spill] sm:$0xff] %v9362_v50  ;;  %14764 = vst [vmem:[#allocation56_spill] sm:$0xff] %v9370_v20 }
  0x60   :  { %8169 = vmatmul.mubr.bf16.gmra.mrb[20].mxu1 %v844_v6  ;;  %229 = vst [vmem:[#allocation2 + $0x2b9] sm:$0xff] %v9362_v50  ;;  %v9373_v6 = vpack.c.bf16 %v582_v40, %v581_v37  ;;  %230 = vst [vmem:[#allocation2 + $0x2c1] sm:$0xff] %v9370_v20  ;;  %v846_v37 = vpack.c.bf16 %v796_v0, %v795_v49  ;;  %v847_v40 = vpack.c.bf16 %v798_v16, %v797_v18  ;;  %v8650_v20 = vld [vmem:[%s14531_s1 + $0x60] sm:$0xff]   ;;  %v584_v50 = vld [vmem:[#allocation2 + $0x68] sm:$0xff] }
  0x61   :  { %8172 = vmatprep.mubr.bf16.mxu1 %v845_v22  ;;  %1800 = vmatpush1.bf16.msra.mxu1 %v8648_v15  ;;  %v9380_v15 = vld [vmem:[%s14532_s0 + $0x1b0] sm:$0xff]  ;;  %v740_v22 = vpack.c.bf16 %v8991_v24, %v8986_v23  ;;  %14767 = vst [vmem:[#allocation58_spill] sm:$0xff] %v9387_v13  ;;  %232 = vst [vmem:[#allocation2 + $0x2d9] sm:$0xff] %v9387_v13  ;;  %v9397_v24 = vld [vmem:[%s14532_s0 + $0x1c0] sm:$0xff] }
  0x62   :  { %1801 = vmatprep.subr.bf16.mxu1 %v14765_v14  ;;  %14766 = vst [vmem:[#allocation57_spill] sm:$0xff] %v9380_v15  ;;  %231 = vst [vmem:[#allocation2 + $0x2d1] sm:$0xff] %v9380_v15  ;;  %1106 = vmatmul.mubr.bf16.gmra.mrb[8].mxu0 %v9373_v6  ;;  %v583_v23 = vld [vmem:[#allocation2 + $0x60] sm:$0xff]  ;;  %v9404_v0 = vld [vmem:[%s14532_s0 + $0x1c8] sm:$0xff] }
  0x63   :  { %14768 = vst [vmem:[#allocation59_spill] sm:$0xff] %v9397_v24  ;;  %14769 = vst [vmem:[#allocation60_spill] sm:$0xff] %v9404_v0  ;;  %1113 = vmatprep.mubr.bf16.mxu0 %v740_v22  ;;  %v9411_v16 = vld [vmem:[%s14532_s0 + $0x1d0] sm:$0xff]  ;;  %v9416_v18 = vld [vmem:[%s14532_s0 + $0x1d8] sm:$0xff]  ;;  %v9423_v13 = vpack.c.bf16 %v584_v50, %v583_v23  ;;  %v741_v23 = vpack.c.bf16 %v9007_v30, %v9002_v29 }
  0x64   :  { %233 = vst [vmem:[#allocation2 + $0x2e9] sm:$0xff] %v9397_v24  ;;  %234 = vst [vmem:[#allocation2 + $0x2f1] sm:$0xff] %v9404_v0  ;;  %v800_v49 = vld [vmem:[#allocation2 + $0x18a] sm:$0xff]  ;;  %v802_v0 = vld [vmem:[#allocation2 + $0x1d2] sm:$0xff] }
  0x65   :  { %1802 = vmatpush1.bf16.msra.mxu1 %v8649_v21  ;;  %14770 = vst [vmem:[#allocation61_spill] sm:$0xff] %v9411_v16  ;;  %14771 = vst [vmem:[#allocation62_spill] sm:$0xff] %v9416_v18  ;;  %v799_v21 = vld [vmem:[#allocation2 + $0x182] sm:$0xff]  ;;  %v801_v22 = vld [vmem:[#allocation2 + $0x1ca] sm:$0xff] }
  0x66   :  { %1803 = vmatprep.subr.bf16.mxu1 %v14765_v14  ;;  %235 = vst [vmem:[#allocation2 + $0x301] sm:$0xff] %v9411_v16  ;;  %236 = vst [vmem:[#allocation2 + $0x309] sm:$0xff] %v9416_v18  ;;  %v8651_v24 = vld [vmem:[%s14531_s1 + $0x68] sm:$0xff]   ;;  %v175_v50 = vld [vmem:[%s14532_s0 + $0x1f8] sm:$0xff]  ;;  %v848_v18 = vpack.c.bf16 %v800_v49, %v799_v21  ;;  %v849_v15 = vpack.c.bf16 %v802_v0, %v801_v22 }
  0x67   :  { %v8652_v16 = vld [vmem:[%s14531_s1 + $0x70] sm:$0xff]   ;;  %240 = vst [vmem:[#allocation2 + $0x339] sm:$0xff] %v175_v50  ;;  %v8654_v30 = vld [vmem:[%s14531_s1 + $0x80] sm:$0xff]   ;;  %v585_v29 = vld [vmem:[#allocation2 + $0x78] sm:$0xff] }
  0x68   :  { %8173 = vmatmul.mubr.bf16.gmra.mrb[24].mxu1 %v846_v37  ;;  %v9429_v37 = vld [vmem:[%s14532_s0 + $0x1e0] sm:$0xff]  ;;  %8212 = vmatprep.subr.bf16.mxu0 %v8654_v30  ;;  %v804_v49 = vld [vmem:[#allocation2 + $0x1ea] sm:$0xff] }
  0x69   :  { %8176 = vmatprep.mubr.bf16.mxu1 %v847_v40  ;;  %1804 = vmatpush1.bf16.msra.mxu1 %v8650_v20  ;;  %14772 = vst [vmem:[#allocation63_spill] sm:$0xff] %v9429_v37  ;;  %v9434_v40 = vld [vmem:[%s14532_s0 + $0x1e8] sm:$0xff]  ;;  %v174_v20 = vld [vmem:[%s14532_s0 + $0x1f0] sm:$0xff]  ;;  %237 = vst [vmem:[#allocation2 + $0x319] sm:$0xff] %v9429_v37 }
  0x6a   :  { %1805 = vmatprep.subr.bf16.mxu1 %v14765_v14  ;;  %14773 = vst [vmem:[#allocation64_spill] sm:$0xff] %v9434_v40  ;;  %238 = vst [vmem:[#allocation2 + $0x321] sm:$0xff] %v9434_v40  ;;  %1114 = vmatmul.mubr.bf16.gmra.mrb[12].mxu0 %v9423_v13  ;;  %v586_v40 = vld [vmem:[#allocation2 + $0x80] sm:$0xff] }
  0x6b   :  { %239 = vst [vmem:[#allocation2 + $0x331] sm:$0xff] %v174_v20  ;;  %1121 = vmatprep.mubr.bf16.mxu0 %v741_v23  ;;  %v803_v21 = vld [vmem:[#allocation2 + $0x1e2] sm:$0xff]  ;;  %8213 = vmatpush3.bf16.msra.mxu0 %v8654_v30  ;;  %v9457_v0 = vpack.c.bf16 %v586_v40, %v585_v29  ;;  %v805_v22 = vld [vmem:[#allocation2 + $0x1fa] sm:$0xff]  ;;  %v742_v23 = vpack.c.bf16 %v9023_v36, %v9018_v33  ;;  %v587_v30 = vld [vmem:[#allocation2 + $0x90] sm:$0xff] }
  0x6c   :  { %v806_v20 = vld [vmem:[#allocation2 + $0x202] sm:$0xff]  ;;  %v850_v50 = vpack.c.bf16 %v804_v49, %v803_v21  ;;  %v808_v40 = vld [vmem:[#allocation2 + $0x21a] sm:$0xff]  ;;  %v809_v21 = vld [vmem:[#allocation2 + $0x22a] sm:$0xff] }
  0x6d   :  { %1806 = vmatpush1.bf16.msra.mxu1 %v8651_v24  ;;  %v8653_v24 = vld [vmem:[%s14531_s1 + $0x78] sm:$0xff]   ;;  %v8657_v29 = vld [vmem:[%s14531_s1 + $0x88] sm:$0xff]   ;;  %v590_v33 = vld [vmem:[#allocation2 + $0xb0] sm:$0xff] }
  0x6e   :  { %1807 = vmatprep.subr.bf16.mxu1 %v14765_v14  ;;  %8214 = vmatprep.subr.bf16.mxu0 %v8657_v29  ;;  %v810_v49 = vld [vmem:[#allocation2 + $0x232] sm:$0xff]  ;;  %v814_v37 = vld [vmem:[#allocation2 + $0x262] sm:$0xff] }
  0x6f   :  { %8215 = vmatpush3.bf16.msra.mxu0 %v8657_v29  ;;  %v813_v29 = vld [vmem:[#allocation2 + $0x25a] sm:$0xff] }
  0x70   :  { %8177 = vmatmul.mubr.bf16.gmra.mrb[28].mxu1 %v848_v18  ;;  %v851_v18 = vpack.c.bf16 %v806_v20, %v805_v22  ;;  %v853_v20 = vpack.c.bf16 %v810_v49, %v809_v21  ;;  %v591_v21 = vld [vmem:[#allocation2 + $0xc0] sm:$0xff]  ;;  %v592_v49 = vld [vmem:[#allocation2 + $0xc8] sm:$0xff] }
  0x71   :  { %8180 = vmatprep.mubr.bf16.mxu1 %v849_v15  ;;  %1808 = vmatpush1.bf16.msra.mxu1 %v8652_v16  ;;  %v588_v15 = vld [vmem:[#allocation2 + $0x98] sm:$0xff] }
  0x72   :  { %1809 = vmatprep.subr.bf16.mxu1 %v14765_v14  ;;  %1122 = vmatmul.mubr.bf16.gmra.mrb[16].mxu0 %v9457_v0  ;;  %v807_v16 = vld [vmem:[#allocation2 + $0x212] sm:$0xff]  ;;  %v9467_v36 = vpack.c.bf16 %v588_v15, %v587_v30  ;;  %v812_v30 = vld [vmem:[#allocation2 + $0x24a] sm:$0xff] }
  0x73   :  { %1129 = vmatprep.mubr.bf16.mxu0 %v742_v23  ;;  %v852_v22 = vpack.c.bf16 %v808_v40, %v807_v16  ;;  %v589_v23 = vld [vmem:[#allocation2 + $0xa8] sm:$0xff]  ;;  %v744_v16 = vpack.c.bf16 %v9058_v46, %v9053_v45 }
  0x74   :  { %v9475_v15 = vpack.c.bf16 %v590_v33, %v589_v23  ;;  %v818_v33 = vld [vmem:[#allocation2 + $0x292] sm:$0xff]  ;;  %v9480_v23 = vpack.c.bf16 %v592_v49, %v591_v21  ;;  %v746_v21 = vpack.c.bf16 %v9091_v57, %v9083_v55 }
  0x75   :  { %1810 = vmatpush1.bf16.msra.mxu1 %v8653_v24  ;;  %v743_v24 = vpack.c.bf16 %v9042_v43, %v9037_v41  ;;  %v817_v43 = vld [vmem:[#allocation2 + $0x28a] sm:$0xff]  ;;  %v745_v41 = vpack.c.bf16 %v9078_v54, %v9073_v53  ;;  %v8663_v49 = vld [vmem:[%s14531_s1 + $0x98] sm:$0xff]  }
  0x76   :  { %2838 = vmatprep.subr.bf16.mxu1 %v14765_v14 }
  0x78   :  { %8181 = vmatmul.mubr.bf16.gmra.mrb[32].mxu1 %v850_v50  ;;  %v8660_v50 = vld [vmem:[%s14531_s1 + $0x90] sm:$0xff]  }
  0x79   :  { %8184 = vmatprep.mubr.bf16.mxu1 %v851_v18  ;;  %v811_v18 = vld [vmem:[#allocation2 + $0x242] sm:$0xff]  ;;  %8216 = vmatprep.subr.bf16.mxu0 %v8660_v50 }
  0x7a   :  { %1130 = vmatmul.mubr.bf16.gmra.mrb[20].mxu0 %v9467_v36  ;;  %v854_v40 = vpack.c.bf16 %v812_v30, %v811_v18  ;;  %v594_v18 = vld [vmem:[#allocation2 + $0xe0] sm:$0xff]  ;;  %v857_v30 = vpack.c.bf16 %v818_v33, %v817_v43  ;;  %v595_v43 = vld [vmem:[#allocation2 + $0xf0] sm:$0xff] }
  0x7b   :  { %1137 = vmatprep.mubr.bf16.mxu0 %v743_v24  ;;  %8217 = vmatpush3.bf16.msra.mxu0 %v8660_v50  ;;  %v855_v24 = vpack.c.bf16 %v814_v37, %v813_v29  ;;  %v593_v50 = vld [vmem:[#allocation2 + $0xd8] sm:$0xff]  ;;  %v819_v37 = vld [vmem:[#allocation2 + $0x2a2] sm:$0xff]  ;;  %v820_v29 = vld [vmem:[#allocation2 + $0x2aa] sm:$0xff] }
  0x7c   :  { %v9485_v45 = vpack.c.bf16 %v594_v18, %v593_v50  ;;  %8218 = vmatprep.subr.bf16.mxu0 %v8663_v49  ;;  %v825_v50 = vld [vmem:[#allocation2 + $0x2ea] sm:$0xff]  ;;  %v826_v18 = vld [vmem:[#allocation2 + $0x2f2] sm:$0xff] }
  0x7f   :  { %8219 = vmatpush3.bf16.msra.mxu0 %v8663_v49  ;;  %v828_v49 = vld [vmem:[#allocation2 + $0x30a] sm:$0xff] }
  0x80   :  { %8185 = vmatmul.mubr.bf16.gmra.mrb[36].mxu1 %v852_v22  ;;  %v815_v22 = vld [vmem:[#allocation2 + $0x272] sm:$0xff] }
  0x81   :  { %8188 = vmatprep.mubr.bf16.mxu1 %v853_v20  ;;  %v816_v20 = vld [vmem:[#allocation2 + $0x27a] sm:$0xff] }
  0x82   :  { %1138 = vmatmul.mubr.bf16.gmra.mrb[24].mxu0 %v9475_v15  ;;  %v856_v46 = vpack.c.bf16 %v816_v20, %v815_v22  ;;  %v596_v22 = vld [vmem:[#allocation2 + $0xf8] sm:$0xff] }
  0x83   :  { %1145 = vmatprep.mubr.bf16.mxu0 %v744_v16  ;;  %v821_v16 = vld [vmem:[#allocation2 + $0x2ba] sm:$0xff]  ;;  %v9493_v33 = vpack.c.bf16 %v596_v22, %v595_v43  ;;  %v830_v22 = vld [vmem:[#allocation2 + $0x322] sm:$0xff] }
  0x84   :  { %v829_v43 = vld [vmem:[#allocation2 + $0x31a] sm:$0xff] }
  0x88   :  { %8189 = vmatmul.mubr.bf16.gmra.mrb[40].mxu1 %v854_v40  ;;  %v822_v40 = vld [vmem:[#allocation2 + $0x2c2] sm:$0xff] }
  0x89   :  { %8192 = vmatprep.mubr.bf16.mxu1 %v855_v24  ;;  %v858_v24 = vpack.c.bf16 %v820_v29, %v819_v37  ;;  %v859_v20 = vpack.c.bf16 %v822_v40, %v821_v16  ;;  %v861_v29 = vpack.c.bf16 %v826_v18, %v825_v50  ;;  %v597_v16 = vld [vmem:[#allocation2 + $0x108] sm:$0xff]  ;;  %v598_v40 = vld [vmem:[#allocation2 + $0x110] sm:$0xff]  ;;  %v832_v18 = vld [vmem:[#allocation2 + $0x33a] sm:$0xff] }
  0x8a   :  { %1146 = vmatmul.mubr.bf16.gmra.mrb[28].mxu0 %v9480_v23  ;;  %v831_v50 = vld [vmem:[#allocation2 + $0x332] sm:$0xff] }
  0x8b   :  { %1153 = vmatprep.mubr.bf16.mxu0 %v745_v41  ;;  %v823_v41 = vld [vmem:[#allocation2 + $0x2d2] sm:$0xff] }
  0x90   :  { %8193 = vmatmul.mubr.bf16.gmra.mrb[44].mxu1 %v856_v46  ;;  %v824_v46 = vld [vmem:[#allocation2 + $0x2da] sm:$0xff] }
  0x91   :  { %8196 = vmatprep.mubr.bf16.mxu1 %v857_v30  ;;  %v747_v30 = vpack.c.bf16 %v9113_v1, %v9105_v61  ;;  %v860_v37 = vpack.c.bf16 %v824_v46, %v823_v41  ;;  %v863_v1 = vpack.c.bf16 %v830_v22, %v829_v43  ;;  %v599_v41 = vld [vmem:[#allocation2 + $0x120] sm:$0xff]  ;;  %v600_v46 = vld [vmem:[#allocation2 + $0x128] sm:$0xff]  ;;  %v377_v61 = vld [vmem:[#allocation2 + $0x211] sm:$0xff] }
  0x92   :  { %1154 = vmatmul.mubr.bf16.gmra.mrb[32].mxu0 %v9485_v45  ;;  %v339_v43 = vld [vmem:[#allocation2 + $0x19] sm:$0xff]  ;;  %v340_v22 = vld [vmem:[#allocation2 + $0x21] sm:$0xff] }
  0x93   :  { %1161 = vmatprep.mubr.bf16.mxu0 %v746_v21  ;;  %v827_v21 = vld [vmem:[#allocation2 + $0x302] sm:$0xff] }
  0x94   :  { %v862_v57 = vpack.c.bf16 %v828_v49, %v827_v21  ;;  %v601_v21 = vld [vmem:[#allocation2 + $0x138] sm:$0xff]  ;;  %v602_v49 = vld [vmem:[#allocation2 + $0x140] sm:$0xff] }
  0x98   :  { %8197 = vmatmul.mubr.bf16.gmra.mrb[48].mxu1 %v858_v24  ;;  %v9498_v24 = vpack.c.bf16 %v598_v40, %v597_v16  ;;  %v749_v16 = vpack.c.bf16 %v9139_v8, %v9134_v7  ;;  %v864_v40 = vpack.c.bf16 %v832_v18, %v831_v50  ;;  %v402_v18 = vpack.c.bf16 %v340_v22, %v339_v43  ;;  %v606_v43 = vld [vmem:[#allocation2 + $0x170] sm:$0xff]  ;;  %v8659_v22 = vld [vmem:[%s14531_s1 + $0x198] sm:$0xff]  }
  0x99   :  { %8200 = vmatprep.mubr.bf16.mxu1 %v859_v20  ;;  %v748_v20 = vpack.c.bf16 %v9126_v3, %v9121_v2  ;;  %v639_v8 = vld [vmem:[#allocation2 + $0x330] sm:$0xff]  ;;  %v640_v7 = vld [vmem:[#allocation2 + $0x338] sm:$0xff]  ;;  %v433_v2 = vld [vmem:[#allocation2 + $0x2] sm:$0xff] }
  0x9a   :  { %1162 = vmatmul.mubr.bf16.gmra.mrb[36].mxu0 %v9493_v33 }
  0x9b   :  { %1169 = vmatprep.mubr.bf16.mxu0 %v747_v30  ;;  %v9503_v30 = vpack.c.bf16 %v600_v46, %v599_v41  ;;  %v8666_v41 = vld [vmem:[%s14531_s1 + $0xa0] sm:$0xff]   ;;  %v9515_v46 = vld [vmem:[#allocation2 + $0x8] sm:$0xff] }
  0x9c   :  { %8220 = vmatprep.subr.bf16.mxu0 %v8666_v41 }
  0x9d   :  { %8221 = vmatpush3.bf16.msra.mxu0 %v8666_v41  ;;  %v752_v41 = vpack.c.bf16 %v9190_v32, %v9185_v31  ;;  %v14783_v31 = vld [vmem:[#allocation63_spill] sm:$0xff] }
  0xa0   :  { %8201 = vmatmul.mubr.bf16.gmra.mrb[52].mxu1 %v860_v37  ;;  %v337_v37 = vld [vmem:[#allocation2 + $0x1] sm:$0xff] }
  0xa1   :  { %8204 = vmatprep.mubr.bf16.mxu1 %v861_v29  ;;  %v338_v29 = vld [vmem:[#allocation2 + $0x9] sm:$0xff] }
  0xa2   :  { %1170 = vmatmul.mubr.bf16.gmra.mrb[40].mxu0 %v9498_v24  ;;  %v401_v3 = vpack.c.bf16 %v338_v29, %v337_v37  ;;  %v603_v37 = vld [vmem:[#allocation2 + $0x150] sm:$0xff]  ;;  %v604_v29 = vld [vmem:[#allocation2 + $0x158] sm:$0xff] }
  0xa3   :  { %1177 = vmatprep.mubr.bf16.mxu0 %v748_v20  ;;  %v750_v20 = vpack.c.bf16 %v9155_v12, %v9149_v10  ;;  %v9776_v10 = vld [vmem:[#allocation2 + $0x331] sm:$0xff] }
  0xa4   :  { %14786 = vst [vmem:[#allocation67_spill] sm:$0xff] %v9776_v10 }
  0xa8   :  { %8205 = vmatmul.mubr.bf16.gmra.mrb[56].mxu1 %v862_v57  ;;  %v241_v57 = vld [vmem:[#allocation2] sm:$0xff] }
  0xa9   :  { %8208 = vmatprep.mubr.bf16.mxu1 %v863_v1  ;;  %v9508_v1 = vpack.c.bf16 %v602_v49, %v601_v21  ;;  %v305_v50 = vpack.c.bf16 %v9515_v46, %v241_v57  ;;  %v751_v21 = vpack.c.bf16 %v9174_v26, %v9166_v19  ;;  %v8658_v49 = vld [vmem:[%s14531_s1 + $0x190] sm:$0xff]   ;;  %v605_v57 = vld [vmem:[#allocation2 + $0x168] sm:$0xff] }
  0xaa   :  { %1178 = vmatmul.mubr.bf16.gmra.mrb[44].mxu0 %v9503_v30  ;;  %v14784_v26 = vld [vmem:[#allocation64_spill] sm:$0xff] }
  0xab   :  { %1185 = vmatprep.mubr.bf16.mxu0 %v749_v16  ;;  %v8656_v16 = vld [vmem:[%s14531_s1 + $0x188] sm:$0xff]   ;;  %v767_v19 = vpack.c.bf16 %v14784_v26, %v14783_v31 }
  0xac   :  { %v376_v31 = vld [vmem:[#allocation2 + $0x201] sm:$0xff] }
  0xb0   :  { %8209 = vmatmul.mubr.bf16.gmra.mrb[60].mxu1 %v864_v40  ;;  %v9525_v40 = vpack.c.bf16 %v604_v29, %v603_v37  ;;  %v345_v29 = vld [vmem:[#allocation2 + $0x61] sm:$0xff] }
  0xb1   :  { %1811 = vmatprep.mubr.bf16.mxu1 %v401_v3  ;;  %v8655_v3 = vld [vmem:[%s14531_s1 + $0x180] sm:$0xff]  }
  0xb2   :  { %1186 = vmatmul.mubr.bf16.gmra.mrb[48].mxu0 %v9508_v1 }
  0xb3   :  { %1193 = vmatprep.mubr.bf16.mxu0 %v750_v20  ;;  %v9540_v20 = vpack.c.bf16 %v606_v43, %v605_v57  ;;  %v609_v57 = vld [vmem:[#allocation2 + $0x1c8] sm:$0xff]  ;;  %v610_v43 = vld [vmem:[#allocation2 + $0x1d0] sm:$0xff] }
  0xb8   :  { %1812 = vmatmul.mubr.bf16.vlgmr.msra.gmra.mrb[64].mxu1 %v305_v50  ;;  %v8661_v50 = vld [vmem:[%s14531_s1 + $0x1a0] sm:$0xff]  }
  0xb9   :  { %2839 = vmatpush1.bf16.msra.mxu1 %v8655_v3  ;;  %1819 = vmatprep.mubr.bf16.mxu1 %v402_v18  ;;  %v8662_v3 = vld [vmem:[%s14531_s1 + $0x1a8] sm:$0xff]  }
  0xba   :  { %2840 = vmatprep.subr.bf16.mxu1 %v14765_v14  ;;  %1194 = vmatmul.mubr.bf16.gmra.mrb[52].mxu0 %v9525_v40  ;;  %v8669_v18 = vld [vmem:[%s14531_s1 + $0xa8] sm:$0xff]  }
  0xbb   :  { %1201 = vmatprep.mubr.bf16.mxu0 %v751_v21  ;;  %v753_v21 = vpack.c.bf16 %v9210_v42, %v9201_v38  ;;  %8222 = vmatprep.subr.bf16.mxu0 %v8669_v18 }
  0xbc   :  { %8223 = vmatpush3.bf16.msra.mxu0 %v8669_v18  ;;  %v8667_v18 = vld [vmem:[%s14531_s1 + $0x1c0] sm:$0xff]  }
  0xbd   :  { %2841 = vmatpush1.bf16.msra.mxu1 %v8656_v16  ;;  %v346_v16 = vld [vmem:[#allocation2 + $0x69] sm:$0xff] }
  0xbe   :  { %2842 = vmatprep.subr.bf16.mxu1 %v14765_v14 }
  0xc0   :  { %1820 = vmatmul.mubr.bf16.gmra.mrb[68].mxu1 %v9257_v5  ;;  %v607_v5 = vld [vmem:[#allocation2 + $0x180] sm:$0xff] }
  0xc1   :  { %1827 = vmatprep.mubr.bf16.mxu1 %v9263_v9  ;;  %2843 = vmatpush1.bf16.msra.mxu1 %v8658_v49  ;;  %v608_v9 = vld [vmem:[#allocation2 + $0x188] sm:$0xff]  ;;  %v8670_v49 = vld [vmem:[%s14531_s1 + $0xb0] sm:$0xff]  }
  0xc2   :  { %2844 = vmatprep.subr.bf16.mxu1 %v14765_v14  ;;  %1202 = vmatmul.mubr.bf16.gmra.mrb[56].mxu0 %v9540_v20  ;;  %v656_v37 = vpack.c.bf16 %v608_v9, %v607_v5  ;;  %v347_v5 = vld [vmem:[#allocation2 + $0x79] sm:$0xff]  ;;  %v348_v9 = vld [vmem:[#allocation2 + $0x81] sm:$0xff] }
  0xc3   :  { %1209 = vmatprep.mubr.bf16.mxu0 %v752_v41  ;;  %8224 = vmatprep.subr.bf16.mxu0 %v8670_v49  ;;  %v8671_v41 = vld [vmem:[%s14531_s1 + $0xb8] sm:$0xff]  }
  0xc4   :  { %8225 = vmatpush3.bf16.msra.mxu0 %v8670_v49  ;;  %v755_v49 = vpack.c.bf16 %v9239_v59, %v9234_v58 }
  0xc5   :  { %2845 = vmatpush1.bf16.msra.mxu1 %v8659_v22  ;;  %v8665_v22 = vld [vmem:[%s14531_s1 + $0x1b8] sm:$0xff]   ;;  %8226 = vmatprep.subr.bf16.mxu0 %v8671_v41 }
  0xc6   :  { %2846 = vmatprep.subr.bf16.mxu1 %v14765_v14 }
  0xc8   :  { %1828 = vmatmul.mubr.bf16.gmra.mrb[72].mxu1 %v9309_v52  ;;  %v405_v52 = vpack.c.bf16 %v346_v16, %v345_v29  ;;  %8227 = vmatpush3.bf16.msra.mxu0 %v8671_v41  ;;  %v612_v29 = vld [vmem:[#allocation2 + $0x1e8] sm:$0xff] }
  0xc9   :  { %1835 = vmatprep.mubr.bf16.mxu1 %v9325_v63  ;;  %2847 = vmatpush1.bf16.msra.mxu1 %v8661_v50  ;;  %v8664_v63 = vld [vmem:[%s14531_s1 + $0x1b0] sm:$0xff]   ;;  %v9575_v50 = vpack.c.bf16 %v610_v43, %v609_v57  ;;  %v8668_v16 = vld [vmem:[%s14531_s1 + $0x1c8] sm:$0xff]   ;;  %v613_v43 = vld [vmem:[#allocation2 + $0x1f8] sm:$0xff] }
  0xca   :  { %2848 = vmatprep.subr.bf16.mxu1 %v14765_v14  ;;  %1210 = vmatmul.mubr.bf16.gmra.mrb[60].mxu0 %v656_v37  ;;  %v611_v37 = vld [vmem:[#allocation2 + $0x1e0] sm:$0xff] }
  0xcb   :  { %1217 = vmatprep.mubr.bf16.mxu0 %v753_v21  ;;  %v9589_v21 = vpack.c.bf16 %v612_v29, %v611_v37  ;;  %v616_v37 = vld [vmem:[#allocation2 + $0x218] sm:$0xff] }
  0xcd   :  { %2849 = vmatpush1.bf16.msra.mxu1 %v8662_v3  ;;  %v406_v3 = vpack.c.bf16 %v348_v9, %v347_v5  ;;  %v351_v5 = vld [vmem:[#allocation2 + $0xa9] sm:$0xff]  ;;  %v352_v9 = vld [vmem:[#allocation2 + $0xb1] sm:$0xff] }
  0xce   :  { %2850 = vmatprep.subr.bf16.mxu1 %v14765_v14 }
  0xd0   :  { %1836 = vmatmul.mubr.bf16.gmra.mrb[76].mxu1 %v9373_v6  ;;  %v754_v6 = vpack.c.bf16 %v9222_v48, %v9217_v47  ;;  %v14780_v47 = vld [vmem:[#allocation61_spill] sm:$0xff] }
  0xd1   :  { %1843 = vmatprep.mubr.bf16.mxu1 %v405_v52  ;;  %2851 = vmatpush1.bf16.msra.mxu1 %v8664_v63  ;;  %v349_v52 = vld [vmem:[#allocation2 + $0x91] sm:$0xff]  ;;  %v350_v63 = vld [vmem:[#allocation2 + $0x99] sm:$0xff] }
  0xd2   :  { %2852 = vmatprep.subr.bf16.mxu1 %v14765_v14  ;;  %1218 = vmatmul.mubr.bf16.gmra.mrb[64].mxu0 %v9575_v50  ;;  %v407_v57 = vpack.c.bf16 %v350_v63, %v349_v52  ;;  %v354_v52 = vld [vmem:[#allocation2 + $0xc9] sm:$0xff]  ;;  %v757_v63 = vpack.c.bf16 %v9273_v17, %v9268_v11 }
  0xd3   :  { %1225 = vmatprep.mubr.bf16.mxu0 %v754_v6  ;;  %v756_v6 = vpack.c.bf16 %v9254_v4, %v9244_v60  ;;  %v14778_v4 = vld [vmem:[#allocation59_spill] sm:$0xff]  ;;  %v14779_v60 = vld [vmem:[#allocation60_spill] sm:$0xff] }
  0xd5   :  { %2853 = vmatpush1.bf16.msra.mxu1 %v8665_v22  ;;  %v614_v22 = vld [vmem:[#allocation2 + $0x200] sm:$0xff] }
  0xd6   :  { %2854 = vmatprep.subr.bf16.mxu1 %v14765_v14  ;;  %v9600_v41 = vpack.c.bf16 %v614_v22, %v613_v43  ;;  %v355_v43 = vld [vmem:[#allocation2 + $0xd9] sm:$0xff]  ;;  %v356_v22 = vld [vmem:[#allocation2 + $0xe1] sm:$0xff] }
  0xd8   :  { %1844 = vmatmul.mubr.bf16.gmra.mrb[80].mxu1 %v9423_v13  ;;  %v8672_v13 = vld [vmem:[%s14531_s1 + $0x1d0] sm:$0xff]  }
  0xd9   :  { %1851 = vmatprep.mubr.bf16.mxu1 %v406_v3  ;;  %2855 = vmatpush1.bf16.msra.mxu1 %v8667_v18  ;;  %v408_v3 = vpack.c.bf16 %v352_v9, %v351_v5  ;;  %v615_v18 = vld [vmem:[#allocation2 + $0x210] sm:$0xff]  ;;  %v758_v5 = vpack.c.bf16 %v9290_v28, %v9283_v27  ;;  %v410_v9 = vpack.c.bf16 %v356_v22, %v355_v43 }
  0xda   :  { %2856 = vmatprep.subr.bf16.mxu1 %v14765_v14  ;;  %1226 = vmatmul.mubr.bf16.gmra.mrb[68].mxu0 %v9589_v21  ;;  %v9610_v29 = vpack.c.bf16 %v616_v37, %v615_v18  ;;  %v357_v37 = vld [vmem:[#allocation2 + $0xf1] sm:$0xff]  ;;  %v760_v43 = vpack.c.bf16 %v9321_v62, %v9316_v56 }
  0xdb   :  { %1233 = vmatprep.mubr.bf16.mxu0 %v755_v49 }
  0xdd   :  { %2857 = vmatpush1.bf16.msra.mxu1 %v8668_v16  ;;  %v353_v16 = vld [vmem:[#allocation2 + $0xc1] sm:$0xff] }
  0xde   :  { %2858 = vmatprep.subr.bf16.mxu1 %v14765_v14  ;;  %v409_v49 = vpack.c.bf16 %v354_v52, %v353_v16  ;;  %v759_v16 = vpack.c.bf16 %v9306_v51, %v9298_v44  ;;  %v14776_v51 = vld [vmem:[#allocation57_spill] sm:$0xff]  ;;  %v14777_v44 = vld [vmem:[#allocation58_spill] sm:$0xff] }
  0xdf   :  { %v764_v28 = vpack.c.bf16 %v14777_v44, %v14776_v51 }
  0xe0   :  { %1852 = vmatmul.mubr.bf16.gmra.mrb[84].mxu1 %v9457_v0  ;;  %v8673_v0 = vld [vmem:[%s14531_s1 + $0x1d8] sm:$0xff]  }
  0xe1   :  { %1859 = vmatprep.mubr.bf16.mxu1 %v407_v57  ;;  %2859 = vmatpush1.bf16.msra.mxu1 %v8672_v13  ;;  %v618_v57 = vld [vmem:[#allocation2 + $0x230] sm:$0xff] }
  0xe2   :  { %2860 = vmatprep.subr.bf16.mxu1 %v14765_v14  ;;  %1234 = vmatmul.mubr.bf16.gmra.mrb[72].mxu0 %v9600_v41 }
  0xe3   :  { %1241 = vmatprep.mubr.bf16.mxu0 %v756_v6  ;;  %v619_v6 = vld [vmem:[#allocation2 + $0x240] sm:$0xff] }
  0xe5   :  { %2861 = vmatpush1.bf16.msra.mxu1 %v8673_v0  ;;  %v358_v0 = vld [vmem:[#allocation2 + $0xf9] sm:$0xff] }
  0xe6   :  { %2862 = vmatprep.subr.bf16.mxu1 %v14765_v14  ;;  %v411_v52 = vpack.c.bf16 %v358_v0, %v357_v37  ;;  %v761_v0 = vpack.c.bf16 %v9340_v34, %v9335_v25  ;;  %v14775_v34 = vld [vmem:[#allocation56_spill] sm:$0xff] }
  0xe8   :  { %1860 = vmatmul.mubr.bf16.gmra.mrb[88].mxu1 %v9467_v36  ;;  %v617_v36 = vld [vmem:[#allocation2 + $0x228] sm:$0xff] }
  0xe9   :  { %1867 = vmatprep.mubr.bf16.mxu1 %v408_v3  ;;  %v9617_v13 = vpack.c.bf16 %v618_v57, %v617_v36  ;;  %v620_v3 = vld [vmem:[#allocation2 + $0x248] sm:$0xff]  ;;  %v360_v57 = vld [vmem:[#allocation2 + $0x111] sm:$0xff] }
  0xea   :  { %1242 = vmatmul.mubr.bf16.gmra.mrb[76].mxu0 %v9610_v29  ;;  %v9626_v18 = vpack.c.bf16 %v620_v3, %v619_v6  ;;  %v359_v36 = vld [vmem:[#allocation2 + $0x109] sm:$0xff]  ;;  %v361_v3 = vld [vmem:[#allocation2 + $0x121] sm:$0xff] }
  0xeb   :  { %1249 = vmatprep.mubr.bf16.mxu0 %v757_v63  ;;  %v622_v63 = vld [vmem:[#allocation2 + $0x260] sm:$0xff]  ;;  %v412_v22 = vpack.c.bf16 %v360_v57, %v359_v36  ;;  %v626_v36 = vld [vmem:[#allocation2 + $0x290] sm:$0xff] }
  0xf0   :  { %1868 = vmatmul.mubr.bf16.gmra.mrb[92].mxu1 %v9475_v15  ;;  %v8674_v15 = vld [vmem:[%s14531_s1 + $0x1e0] sm:$0xff]  }
  0xf1   :  { %1875 = vmatprep.mubr.bf16.mxu1 %v409_v49  ;;  %2863 = vmatpush1.bf16.msra.mxu1 %v8674_v15  ;;  %v362_v15 = vld [vmem:[#allocation2 + $0x129] sm:$0xff] }
  0xf2   :  { %1250 = vmatmul.mubr.bf16.gmra.mrb[80].mxu0 %v9617_v13  ;;  %2864 = vmatprep.subr.bf16.mxu1 %v14765_v14 }
  0xf3   :  { %1257 = vmatprep.mubr.bf16.mxu0 %v758_v5  ;;  %v623_v5 = vld [vmem:[#allocation2 + $0x270] sm:$0xff] }
  0xf8   :  { %1876 = vmatmul.mubr.bf16.gmra.mrb[96].mxu1 %v9480_v23  ;;  %v621_v23 = vld [vmem:[#allocation2 + $0x258] sm:$0xff] }
  0xf9   :  { %1883 = vmatprep.mubr.bf16.mxu1 %v410_v9  ;;  %v9633_v49 = vpack.c.bf16 %v622_v63, %v621_v23  ;;  %v624_v9 = vld [vmem:[#allocation2 + $0x278] sm:$0xff]  ;;  %v625_v63 = vld [vmem:[#allocation2 + $0x288] sm:$0xff] }
  0xfa   :  { %1258 = vmatmul.mubr.bf16.gmra.mrb[84].mxu0 %v9626_v18  ;;  %v9642_v6 = vpack.c.bf16 %v624_v9, %v623_v5  ;;  %v9655_v57 = vpack.c.bf16 %v626_v36, %v625_v63  ;;  %v762_v9 = vpack.c.bf16 %v9354_v39, %v9345_v35  ;;  %v8676_v63 = vld [vmem:[%s14531_s1 + $0x1f0] sm:$0xff]   ;;  %v366_v35 = vld [vmem:[#allocation2 + $0x159] sm:$0xff] }
  0xfb   :  { %1265 = vmatprep.mubr.bf16.mxu0 %v759_v16  ;;  %v365_v39 = vld [vmem:[#allocation2 + $0x151] sm:$0xff] }
  0xfc   :  { %v415_v62 = vpack.c.bf16 %v366_v35, %v365_v39 }
 0x100   :  { %1884 = vmatmul.mubr.bf16.gmra.mrb[100].mxu1 %v9485_v45  ;;  %v8675_v45 = vld [vmem:[%s14531_s1 + $0x1e8] sm:$0xff]  }
 0x101   :  { %1891 = vmatprep.mubr.bf16.mxu1 %v411_v52  ;;  %2865 = vmatpush1.bf16.msra.mxu1 %v8675_v45 }
 0x102   :  { %1266 = vmatmul.mubr.bf16.gmra.mrb[88].mxu0 %v9633_v49  ;;  %2866 = vmatprep.subr.bf16.mxu1 %v14765_v14 }
 0x103   :  { %1273 = vmatprep.mubr.bf16.mxu0 %v760_v43  ;;  %v363_v43 = vld [vmem:[#allocation2 + $0x139] sm:$0xff] }
 0x105   :  { %2867 = vmatpush1.bf16.msra.mxu1 %v8676_v63  ;;  %v367_v63 = vld [vmem:[#allocation2 + $0x169] sm:$0xff] }
 0x106   :  { %2868 = vmatprep.subr.bf16.mxu1 %v14765_v14 }
 0x108   :  { %1892 = vmatmul.mubr.bf16.gmra.mrb[104].mxu1 %v9493_v33  ;;  %v413_v33 = vpack.c.bf16 %v362_v15, %v361_v3 }
 0x109   :  { %1899 = vmatprep.mubr.bf16.mxu1 %v412_v22  ;;  %v364_v22 = vld [vmem:[#allocation2 + $0x141] sm:$0xff] }
 0x10a   :  { %1274 = vmatmul.mubr.bf16.gmra.mrb[92].mxu0 %v9642_v6  ;;  %v414_v15 = vpack.c.bf16 %v364_v22, %v363_v43  ;;  %v14774_v22 = vld [vmem:[#allocation55_spill] sm:$0xff] }
 0x10b   :  { %v9644_v37 = vpop.f32.mrb[0].mxu1  ;;  %1281 = vmatprep.mubr.bf16.mxu0 %v761_v0  ;;  %v763_v25 = vpack.c.bf16 %v14775_v34, %v14774_v22  ;;  %v368_v34 = vld [vmem:[#allocation2 + $0x171] sm:$0xff] }
 0x10c   :  { %v1380_v16 = vpop.f32.mrb[1].mxu1  ;;  %v416_v27 = vpack.c.bf16 %v368_v34, %v367_v63  ;;  %v369_v34 = vld [vmem:[#allocation2 + $0x1b1] sm:$0xff]  ;;  %v370_v63 = vld [vmem:[#allocation2 + $0x1b9] sm:$0xff] }
 0x10d   :  { %v9649_v52 = vpop.f32.mrb[2].mxu1 }
 0x10e   :  { %v9651_v23 = vpop.f32.mrb[3].mxu1 }
 0x110   :  { %1900 = vmatmul.mubr.bf16.gmra.mrb[108].mxu1 %v9498_v24  ;;  %v627_v24 = vld [vmem:[#allocation2 + $0x2a0] sm:$0xff] }
 0x111   :  { %1907 = vmatprep.mubr.bf16.mxu1 %v413_v33  ;;  %v628_v33 = vld [vmem:[#allocation2 + $0x2a8] sm:$0xff] }
 0x112   :  { %1282 = vmatmul.mubr.bf16.gmra.mrb[96].mxu0 %v9655_v57  ;;  %v9672_v36 = vpack.c.bf16 %v628_v33, %v627_v24  ;;  %v630_v24 = vld [vmem:[#allocation2 + $0x2c0] sm:$0xff] }
 0x113   :  { %v9657_v5 = vpop.f32.mrb[4].mxu1  ;;  %1289 = vmatprep.mubr.bf16.mxu0 %v762_v9 }
 0x114   :  { %v9661_v45 = vpop.f32.mrb[5].mxu1 }
 0x115   :  { %v9663_v3 = vpop.f32.mrb[6].mxu1 }
 0x116   :  { %v9665_v0 = vpop.f32.mrb[7].mxu1 }
 0x118   :  { %1908 = vmatmul.mubr.bf16.gmra.mrb[112].mxu1 %v9503_v30 }
 0x119   :  { %1915 = vmatprep.mubr.bf16.mxu1 %v414_v15  ;;  %v629_v15 = vld [vmem:[#allocation2 + $0x2b8] sm:$0xff] }
 0x11a   :  { %1290 = vmatmul.mubr.bf16.gmra.mrb[100].mxu0 %v9672_v36  ;;  %v9687_v33 = vpack.c.bf16 %v630_v24, %v629_v15  ;;  %v8677_v15 = vld [vmem:[%s14531_s1 + $0x1f8] sm:$0xff]   ;;  %v1091_v24 = vpop.f32.mrb[0].mxu0 }
 0x11b   :  { %v9674_v43 = vpop.f32.mrb[8].mxu1  ;;  %1297 = vmatprep.mubr.bf16.mxu0 %v763_v25  ;;  %v9704_v44 = vadd.f32 %v1380_v16, %v1091_v24  ;;  %v1093_v51 = vpop.f32.mrb[1].mxu0  ;;  %2869 = vmatpush1.bf16.msra.mxu1 %v8677_v15  ;;  %v634_v15 = vld [vmem:[#allocation2 + $0x2f0] sm:$0xff] }
 0x11c   :  { %v9679_v9 = vpop.f32.mrb[9].mxu1  ;;  %v417_v51 = vpack.c.bf16 %v370_v63, %v369_v34  ;;  %v372_v34 = vld [vmem:[#allocation2 + $0x1d1] sm:$0xff] }
 0x11d   :  { %v9681_v30 = vpop.f32.mrb[10].mxu1 }
 0x11e   :  { %v9683_v56 = vpop.f32.mrb[11].mxu1 }
 0x120   :  { %1916 = vmatmul.mubr.bf16.gmra.mrb[116].mxu1 %v9508_v1  ;;  %v632_v1 = vld [vmem:[#allocation2 + $0x2d8] sm:$0xff] }
 0x121   :  { %1923 = vmatprep.mubr.bf16.mxu1 %v415_v62  ;;  %v631_v62 = vld [vmem:[#allocation2 + $0x2d0] sm:$0xff] }
 0x122   :  { %1298 = vmatmul.mubr.bf16.gmra.mrb[104].mxu0 %v9687_v33  ;;  %v9706_v17 = vpack.c.bf16 %v632_v1, %v631_v62  ;;  %v633_v1 = vld [vmem:[#allocation2 + $0x2e8] sm:$0xff] }
 0x123   :  { %v9689_v22 = vpop.f32.mrb[12].mxu1  ;;  %1305 = vmatprep.mubr.bf16.mxu0 %v764_v28  ;;  %v1094_v28 = vpop.f32.mrb[2].mxu0 }
 0x124   :  { %v9693_v35 = vpop.f32.mrb[13].mxu1  ;;  %v9713_v59 = vadd.f32 %v9651_v23, %v1094_v28 }
 0x125   :  { %v9695_v39 = vpop.f32.mrb[14].mxu1 }
 0x126   :  { %v9697_v25 = vpop.f32.mrb[15].mxu1 }
 0x128   :  { %1924 = vmatmul.mubr.bf16.gmra.mrb[120].mxu1 %v9525_v40  ;;  %v765_v40 = vpack.c.bf16 %v14779_v60, %v14778_v4  ;;  %v273_v60 = vld [vmem:[#allocation2 + $0x1b0] sm:$0xff] }
 0x129   :  { %1931 = vmatprep.mubr.bf16.mxu1 %v416_v27  ;;  %v1096_v27 = vpop.f32.mrb[3].mxu0  ;;  %v371_v4 = vld [vmem:[#allocation2 + $0x1c9] sm:$0xff] }
 0x12a   :  { %1306 = vmatmul.mubr.bf16.gmra.mrb[108].mxu0 %v9706_v17  ;;  %v1099_v24 = vpop.f32.mrb[4].mxu0  ;;  %v9726_v27 = vpack.c.bf16 %v634_v15, %v633_v1  ;;  %v9741_v1 = vld [vmem:[%s14531_s1 + $0x200] sm:$0xff]  }
 0x12b   :  { %v9708_v11 = vpop.f32.mrb[16].mxu1  ;;  %1313 = vmatprep.mubr.bf16.mxu0 %v765_v40  ;;  %v9724_v23 = vadd.f32 %v9644_v37, %v1099_v24  ;;  %v1101_v28 = vpop.f32.mrb[5].mxu0  ;;  %v14781_v40 = vld [vmem:[#allocation62_spill] sm:$0xff]  ;;  %v418_v24 = vpack.c.bf16 %v372_v34, %v371_v4  ;;  %8292 = vmatprep.subr.bf16.mxu0 %v9741_v1  ;;  %v374_v4 = vld [vmem:[#allocation2 + $0x1e9] sm:$0xff] }
 0x12c   :  { %v9715_v58 = vpop.f32.mrb[17].mxu1  ;;  %v1102_v48 = vpop.f32.mrb[6].mxu0  ;;  %v766_v42 = vpack.c.bf16 %v14781_v40, %v14780_v47  ;;  %v373_v47 = vld [vmem:[#allocation2 + $0x1e1] sm:$0xff] }
 0x12d   :  { %v9717_v16 = vpop.f32.mrb[18].mxu1  ;;  %v9733_v38 = vadd.f32 %v9649_v52, %v1102_v48  ;;  %v1104_v37 = vpop.f32.mrb[7].mxu0  ;;  %v635_v48 = vld [vmem:[#allocation2 + $0x300] sm:$0xff]  ;;  %v636_v52 = vld [vmem:[#allocation2 + $0x308] sm:$0xff] }
 0x12e   :  { %v9719_v62 = vpop.f32.mrb[19].mxu1  ;;  %v9752_v40 = vpack.c.bf16 %v636_v52, %v635_v48  ;;  %v637_v48 = vld [vmem:[#allocation2 + $0x318] sm:$0xff]  ;;  %v638_v52 = vld [vmem:[#allocation2 + $0x320] sm:$0xff] }
 0x12f   :  { %v9772_v26 = vpack.c.bf16 %v638_v52, %v637_v48 }
 0x130   :  { %1932 = vmatmul.mubr.bf16.gmra.mrb[124].mxu1 %v9540_v20  ;;  %14782 = vst [vmem:[#allocation65_spill] sm:$0xff] %v9752_v40 }
 0x131   :  { %1939 = vmatprep.mubr.bf16.mxu1 %v417_v51  ;;  %v321_v51 = vpack.c.bf16 %v9515_v46, %v273_v60  ;;  %14785 = vst [vmem:[#allocation66_spill] sm:$0xff] %v9772_v26 }
 0x132   :  { %1314 = vmatmul.mubr.bf16.gmra.mrb[112].mxu0 %v9726_v27 }
 0x133   :  { %v9728_v63 = vpop.f32.mrb[20].mxu1  ;;  %1321 = vmatprep.mubr.bf16.mxu0 %v766_v42 }
 0x134   :  { %v9735_v20 = vpop.f32.mrb[21].mxu1 }
 0x135   :  { %v9743_v15 = vpop.f32.mrb[22].mxu1  ;;  %v1107_v60 = vpop.f32.mrb[8].mxu0 }
 0x136   :  { %v9745_v28 = vpop.f32.mrb[23].mxu1  ;;  %v9750_v46 = vadd.f32 %v9661_v45, %v1107_v60  ;;  %v1109_v37 = vpop.f32.mrb[9].mxu0  ;;  %v419_v45 = vpack.c.bf16 %v374_v4, %v373_v47 }
 0x137   :  { %v1110_v32 = vpop.f32.mrb[10].mxu0 }
 0x138   :  { %1940 = vmatmul.mubr.bf16.gmra.mrb[128].mxu1 %v321_v51  ;;  %v9759_v42 = vadd.f32 %v9665_v0, %v1110_v32 }
 0x139   :  { %1947 = vmatprep.mubr.bf16.mxu1 %v418_v24  ;;  %v1112_v24 = vpop.f32.mrb[11].mxu0 }
 0x13a   :  { %1322 = vmatmul.mubr.bf16.gmra.mrb[116].mxu0 %v9752_v40  ;;  %v375_v24 = vld [vmem:[#allocation2 + $0x1f9] sm:$0xff] }
 0x13b   :  { %v9754_v34 = vpop.f32.mrb[24].mxu1  ;;  %1329 = vmatprep.mubr.bf16.mxu0 %v767_v19  ;;  %v9778_v19 = vld [vmem:[#allocation2 + $0x339] sm:$0xff]  ;;  %v420_v52 = vpack.c.bf16 %v376_v31, %v375_v24 }
 0x13c   :  { %v9761_v51 = vpop.f32.mrb[25].mxu1  ;;  %14787 = vst [vmem:[#allocation68_spill] sm:$0xff] %v9778_v19  ;;  %v378_v31 = vld [vmem:[#allocation2 + $0x219] sm:$0xff] }
 0x13d   :  { %v9763_v12 = vpop.f32.mrb[26].mxu1  ;;  %v1115_v37 = vpop.f32.mrb[12].mxu0 }
 0x13e   :  { %v9765_v60 = vpop.f32.mrb[27].mxu1  ;;  %v9770_v32 = vadd.f32 %v9657_v5, %v1115_v37  ;;  %v1117_v0 = vpop.f32.mrb[13].mxu0 }
 0x13f   :  { %v1118_v4 = vpop.f32.mrb[14].mxu0 }
 0x140   :  { %1948 = vmatmul.mubr.bf16.gmra.mrb[132].mxu1 %v9575_v50  ;;  %v768_v50 = vpack.c.bf16 %v9778_v19, %v9776_v10  ;;  %v1120_v37 = vpop.f32.mrb[15].mxu0  ;;  %v434_v19 = vld [vmem:[#allocation2 + $0xa] sm:$0xff] }
 0x141   :  { %1955 = vmatprep.mubr.bf16.mxu1 %v419_v45  ;;  %v9783_v45 = vadd.f32 %v9663_v3, %v1118_v4  ;;  %v672_v37 = vpack.c.bf16 %v640_v7, %v639_v8  ;;  %v497_v54 = vpack.c.bf16 %v434_v19, %v433_v2  ;;  %v435_v7 = vld [vmem:[#allocation2 + $0x1a] sm:$0xff]  ;;  %v436_v8 = vld [vmem:[#allocation2 + $0x22] sm:$0xff] }
 0x142   :  { %1330 = vmatmul.mubr.bf16.gmra.mrb[120].mxu0 %v9772_v26  ;;  %v498_v19 = vpack.c.bf16 %v436_v8, %v435_v7 }
 0x143   :  { %v9774_v47 = vpop.f32.mrb[28].mxu1  ;;  %1337 = vmatprep.mubr.bf16.mxu0 %v768_v50 }
 0x144   :  { %v9785_v5 = vpop.f32.mrb[29].mxu1 }
 0x145   :  { %v9787_v48 = vpop.f32.mrb[30].mxu1  ;;  %v1123_v10 = vpop.f32.mrb[16].mxu0 }
 0x146   :  { %v9789_v0 = vpop.f32.mrb[31].mxu1  ;;  %v9794_v3 = vadd.f32 %v9679_v9, %v1123_v10  ;;  %v1125_v4 = vpop.f32.mrb[17].mxu0  ;;  %v437_v10 = vld [vmem:[#allocation2 + $0x32] sm:$0xff]  ;;  %v438_v9 = vld [vmem:[#allocation2 + $0x3a] sm:$0xff] }
 0x147   :  { %v1126_v55 = vpop.f32.mrb[18].mxu0  ;;  %v379_v4 = vld [vmem:[#allocation2 + $0x229] sm:$0xff] }
 0x148   :  { %1956 = vmatmul.mubr.bf16.gmra.mrb[136].mxu1 %v9589_v21  ;;  %v9799_v50 = vadd.f32 %v9683_v56, %v1126_v55  ;;  %v1128_v21 = vpop.f32.mrb[19].mxu0 }
 0x149   :  { %1963 = vmatprep.mubr.bf16.mxu1 %v420_v52  ;;  %v421_v52 = vpack.c.bf16 %v378_v31, %v377_v61  ;;  %v380_v21 = vld [vmem:[#allocation2 + $0x231] sm:$0xff] }
 0x14a   :  { %1338 = vmatmul.mubr.bf16.gmra.mrb[124].mxu0 %v672_v37  ;;  %v9813_v37 = vpack.c.bf16 %v438_v9, %v437_v10  ;;  %v422_v7 = vpack.c.bf16 %v380_v21, %v379_v4  ;;  %v439_v10 = vld [vmem:[#allocation2 + $0x4a] sm:$0xff]  ;;  %v440_v9 = vld [vmem:[#allocation2 + $0x52] sm:$0xff] }
 0x14b   :  { %v9796_v24 = vpop.f32.mrb[32].mxu1  ;;  %8228 = vmatprep.mubr.bf16.mxu0 %v497_v54  ;;  %v9836_v21 = vpack.c.bf16 %v440_v9, %v439_v10 }
 0x14c   :  { %v9801_v53 = vpop.f32.mrb[33].mxu1  ;;  %14790 = vst [vmem:[#allocation71_spill] sm:$0xff] %v9813_v37 }
 0x14d   :  { %v9803_v26 = vpop.f32.mrb[34].mxu1  ;;  %v1131_v2 = vpop.f32.mrb[20].mxu0  ;;  %14793 = vst [vmem:[#allocation74_spill] sm:$0xff] %v9836_v21 }
 0x14e   :  { %14788 = vst [vmem:[#allocation69_spill] sm:$0xff] %v9803_v26  ;;  %v9805_v40 = vpop.f32.mrb[35].mxu1  ;;  %v9809_v55 = vadd.f32 %v9674_v43, %v1131_v2  ;;  %v1133_v56 = vpop.f32.mrb[21].mxu0  ;;  %v8679_v43 = vld [vmem:[%s14531_s1 + $0x208] sm:$0xff]   ;;  %v8680_v2 = vld [vmem:[%s14531_s1 + $0x210] sm:$0xff]  }
 0x14f   :  { %v1134_v31 = vpop.f32.mrb[22].mxu0 }
 0x150   :  { %1964 = vmatmul.mubr.bf16.gmra.mrb[140].mxu1 %v9600_v41  ;;  %v9816_v54 = vadd.f32 %v9681_v30, %v1134_v31  ;;  %v1136_v26 = vpop.f32.mrb[23].mxu0  ;;  %v441_v30 = vld [vmem:[#allocation2 + $0x62] sm:$0xff] }
 0x151   :  { %1971 = vmatprep.mubr.bf16.mxu1 %v421_v52  ;;  %v442_v26 = vld [vmem:[#allocation2 + $0x6a] sm:$0xff]  ;;  %v381_v31 = vld [vmem:[#allocation2 + $0x241] sm:$0xff] }
 0x152   :  { %8229 = vmatmul.mubr.bf16.vlgmr.msra.gmra.mrb[128].mxu0 %v498_v19 }
 0x153   :  { %v9811_v61 = vpop.f32.mrb[36].mxu1  ;;  %8232 = vmatprep.mubr.bf16.mxu0 %v9813_v37  ;;  %8293 = vmatpush3.bf16.msra.mxu0 %v9741_v1  ;;  %v382_v37 = vld [vmem:[#allocation2 + $0x249] sm:$0xff] }
 0x154   :  { %14789 = vst [vmem:[#allocation70_spill] sm:$0xff] %v9811_v61  ;;  %v9818_v41 = vpop.f32.mrb[37].mxu1  ;;  %8294 = vmatprep.subr.bf16.mxu0 %v8679_v43  ;;  %v423_v9 = vpack.c.bf16 %v382_v37, %v381_v31 }
 0x155   :  { %v9823_v52 = vpop.f32.mrb[38].mxu1  ;;  %v1139_v56 = vpop.f32.mrb[24].mxu0 }
 0x156   :  { %14791 = vst [vmem:[#allocation72_spill] sm:$0xff] %v9823_v52  ;;  %v9825_v8 = vpop.f32.mrb[39].mxu1  ;;  %v9834_v4 = vadd.f32 %v9693_v35, %v1139_v56  ;;  %v1141_v19 = vpop.f32.mrb[25].mxu0  ;;  %v9840_v52 = vpack.c.bf16 %v442_v26, %v441_v30  ;;  %v8681_v35 = vld [vmem:[%s14531_s1 + $0x218] sm:$0xff]  }
 0x157   :  { %14792 = vst [vmem:[#allocation73_spill] sm:$0xff] %v9825_v8  ;;  %8295 = vmatpush3.bf16.msra.mxu0 %v8679_v43  ;;  %v443_v43 = vld [vmem:[#allocation2 + $0x7a] sm:$0xff]  ;;  %v445_v30 = vld [vmem:[#allocation2 + $0x92] sm:$0xff] }
 0x158   :  { %1972 = vmatmul.mubr.bf16.gmra.mrb[144].mxu1 %v9610_v29  ;;  %v1142_v29 = vpop.f32.mrb[26].mxu0  ;;  %14795 = vst [vmem:[#allocation76_spill] sm:$0xff] %v9840_v52  ;;  %8296 = vmatprep.subr.bf16.mxu0 %v8680_v2  ;;  %v446_v26 = vld [vmem:[#allocation2 + $0x9a] sm:$0xff] }
 0x159   :  { %1979 = vmatprep.mubr.bf16.mxu1 %v422_v7  ;;  %v9843_v61 = vadd.f32 %v9697_v25, %v1142_v29  ;;  %v1144_v7 = vpop.f32.mrb[27].mxu0  ;;  %v444_v25 = vld [vmem:[#allocation2 + $0x82] sm:$0xff] }
 0x15a   :  { %8233 = vmatmul.mubr.bf16.gmra.mrb[132].mxu0 %v9836_v21  ;;  %v8682_v19 = vld [vmem:[%s14531_s1 + $0x220] sm:$0xff]   ;;  %v9863_v7 = vpack.c.bf16 %v444_v25, %v443_v43 }
 0x15b   :  { %v9838_v1 = vpop.f32.mrb[40].mxu1  ;;  %8236 = vmatprep.mubr.bf16.mxu0 %v9840_v52  ;;  %8297 = vmatpush3.bf16.msra.mxu0 %v8680_v2  ;;  %v383_v52 = vld [vmem:[#allocation2 + $0x259] sm:$0xff]  ;;  %v384_v21 = vld [vmem:[#allocation2 + $0x261] sm:$0xff] }
 0x15c   :  { %14794 = vst [vmem:[#allocation75_spill] sm:$0xff] %v9838_v1  ;;  %v9845_v8 = vpop.f32.mrb[41].mxu1  ;;  %8298 = vmatprep.subr.bf16.mxu0 %v8681_v35  ;;  %14798 = vst [vmem:[#allocation79_spill] sm:$0xff] %v9863_v7  ;;  %v424_v25 = vpack.c.bf16 %v384_v21, %v383_v52 }
 0x15d   :  { %v9850_v10 = vpop.f32.mrb[42].mxu1  ;;  %v1147_v29 = vpop.f32.mrb[28].mxu0 }
 0x15e   :  { %14796 = vst [vmem:[#allocation77_spill] sm:$0xff] %v9850_v10  ;;  %v9852_v56 = vpop.f32.mrb[43].mxu1  ;;  %v9861_v37 = vadd.f32 %v9689_v22, %v1147_v29  ;;  %v1149_v31 = vpop.f32.mrb[29].mxu0  ;;  %v9867_v10 = vpack.c.bf16 %v446_v26, %v445_v30  ;;  %v8683_v22 = vld [vmem:[%s14531_s1 + $0x228] sm:$0xff]  }
 0x15f   :  { %14797 = vst [vmem:[#allocation78_spill] sm:$0xff] %v9852_v56  ;;  %8299 = vmatpush3.bf16.msra.mxu0 %v8681_v35  ;;  %v447_v35 = vld [vmem:[#allocation2 + $0xaa] sm:$0xff]  ;;  %v449_v30 = vld [vmem:[#allocation2 + $0xc2] sm:$0xff] }
 0x160   :  { %1980 = vmatmul.mubr.bf16.gmra.mrb[148].mxu1 %v9617_v13  ;;  %v1150_v13 = vpop.f32.mrb[30].mxu0  ;;  %14800 = vst [vmem:[#allocation81_spill] sm:$0xff] %v9867_v10  ;;  %8300 = vmatprep.subr.bf16.mxu0 %v8682_v19  ;;  %v450_v26 = vld [vmem:[#allocation2 + $0xca] sm:$0xff] }
 0x161   :  { %1987 = vmatprep.mubr.bf16.mxu1 %v423_v9  ;;  %v9870_v1 = vadd.f32 %v9695_v39, %v1150_v13  ;;  %v1152_v9 = vpop.f32.mrb[31].mxu0  ;;  %v448_v39 = vld [vmem:[#allocation2 + $0xb2] sm:$0xff] }
 0x162   :  { %8237 = vmatmul.mubr.bf16.gmra.mrb[136].mxu0 %v9863_v7  ;;  %v8684_v31 = vld [vmem:[%s14531_s1 + $0x230] sm:$0xff]   ;;  %v9890_v9 = vpack.c.bf16 %v448_v39, %v447_v35 }
 0x163   :  { %v9865_v2 = vpop.f32.mrb[44].mxu1  ;;  %8240 = vmatprep.mubr.bf16.mxu0 %v9867_v10  ;;  %8301 = vmatpush3.bf16.msra.mxu0 %v8682_v19  ;;  %v9894_v10 = vpack.c.bf16 %v450_v26, %v449_v30  ;;  %v453_v30 = vld [vmem:[#allocation2 + $0xf2] sm:$0xff]  ;;  %v454_v26 = vld [vmem:[#allocation2 + $0xfa] sm:$0xff] }
 0x164   :  { %14799 = vst [vmem:[#allocation80_spill] sm:$0xff] %v9865_v2  ;;  %v9872_v56 = vpop.f32.mrb[45].mxu1  ;;  %8302 = vmatprep.subr.bf16.mxu0 %v8683_v22  ;;  %v386_v2 = vld [vmem:[#allocation2 + $0x279] sm:$0xff] }
 0x165   :  { %v9877_v43 = vpop.f32.mrb[46].mxu1  ;;  %v1155_v13 = vpop.f32.mrb[32].mxu0 }
 0x166   :  { %14801 = vst [vmem:[#allocation82_spill] sm:$0xff] %v9877_v43  ;;  %v9879_v29 = vpop.f32.mrb[47].mxu1  ;;  %v9888_v52 = vadd.f32 %v9715_v58, %v1155_v13  ;;  %v1157_v21 = vpop.f32.mrb[33].mxu0  ;;  %v385_v43 = vld [vmem:[#allocation2 + $0x271] sm:$0xff] }
 0x167   :  { %14802 = vst [vmem:[#allocation83_spill] sm:$0xff] %v9879_v29  ;;  %8303 = vmatpush3.bf16.msra.mxu0 %v8683_v22  ;;  %v8685_v58 = vld [vmem:[%s14531_s1 + $0x238] sm:$0xff]   ;;  %v425_v39 = vpack.c.bf16 %v386_v2, %v385_v43 }
 0x168   :  { %1988 = vmatmul.mubr.bf16.gmra.mrb[152].mxu1 %v9626_v18  ;;  %v1158_v18 = vpop.f32.mrb[34].mxu0  ;;  %8304 = vmatprep.subr.bf16.mxu0 %v8684_v31  ;;  %v451_v22 = vld [vmem:[#allocation2 + $0xda] sm:$0xff] }
 0x169   :  { %1995 = vmatprep.mubr.bf16.mxu1 %v424_v25  ;;  %v9897_v7 = vadd.f32 %v9719_v62, %v1158_v18  ;;  %v1160_v25 = vpop.f32.mrb[35].mxu0  ;;  %v452_v62 = vld [vmem:[#allocation2 + $0xe2] sm:$0xff] }
 0x16a   :  { %8241 = vmatmul.mubr.bf16.gmra.mrb[140].mxu0 %v9890_v9  ;;  %v9914_v43 = vpack.c.bf16 %v452_v62, %v451_v22  ;;  %v387_v25 = vld [vmem:[#allocation2 + $0x289] sm:$0xff] }
 0x16b   :  { %v9892_v19 = vpop.f32.mrb[48].mxu1  ;;  %8244 = vmatprep.mubr.bf16.mxu0 %v9894_v10  ;;  %8305 = vmatpush3.bf16.msra.mxu0 %v8684_v31 }
 0x16c   :  { %14803 = vst [vmem:[#allocation84_spill] sm:$0xff] %v9892_v19  ;;  %v9899_v29 = vpop.f32.mrb[49].mxu1  ;;  %8306 = vmatprep.subr.bf16.mxu0 %v8685_v58 }
 0x16d   :  { %14804 = vst [vmem:[#allocation85_spill] sm:$0xff] %v9899_v29  ;;  %v9904_v35 = vpop.f32.mrb[50].mxu1  ;;  %v1163_v21 = vpop.f32.mrb[36].mxu0  ;;  %v9918_v29 = vpack.c.bf16 %v454_v26, %v453_v30  ;;  %v455_v30 = vld [vmem:[#allocation2 + $0x10a] sm:$0xff]  ;;  %v456_v26 = vld [vmem:[#allocation2 + $0x112] sm:$0xff] }
 0x16e   :  { %14805 = vst [vmem:[#allocation86_spill] sm:$0xff] %v9904_v35  ;;  %v9906_v13 = vpop.f32.mrb[51].mxu1  ;;  %v9912_v18 = vadd.f32 %v9708_v11, %v1163_v21  ;;  %v1165_v2 = vpop.f32.mrb[37].mxu0  ;;  %v388_v35 = vld [vmem:[#allocation2 + $0x291] sm:$0xff] }
 0x16f   :  { %14806 = vst [vmem:[#allocation87_spill] sm:$0xff] %v9906_v13  ;;  %v1166_v13 = vpop.f32.mrb[38].mxu0  ;;  %8307 = vmatpush3.bf16.msra.mxu0 %v8685_v58  ;;  %v426_v22 = vpack.c.bf16 %v388_v35, %v387_v25  ;;  %v458_v58 = vld [vmem:[#allocation2 + $0x12a] sm:$0xff]  ;;  %v389_v35 = vld [vmem:[#allocation2 + $0x2a1] sm:$0xff] }
 0x170   :  { %1996 = vmatmul.mubr.bf16.gmra.mrb[156].mxu1 %v9633_v49  ;;  %v9921_v49 = vadd.f32 %v9717_v16, %v1166_v13  ;;  %4777 = vmatprep.subr.bf16.mxu0 %v14765_v14  ;;  %v457_v16 = vld [vmem:[#allocation2 + $0x122] sm:$0xff] }
 0x171   :  { %2003 = vmatprep.mubr.bf16.mxu1 %v425_v39  ;;  %v1168_v39 = vpop.f32.mrb[39].mxu0  ;;  %v390_v25 = vld [vmem:[#allocation2 + $0x2a9] sm:$0xff] }
 0x172   :  { %8245 = vmatmul.mubr.bf16.gmra.mrb[144].mxu0 %v9914_v43  ;;  %v9936_v39 = vpack.c.bf16 %v456_v26, %v455_v30  ;;  %v459_v30 = vld [vmem:[#allocation2 + $0x13a] sm:$0xff]  ;;  %v460_v26 = vld [vmem:[#allocation2 + $0x142] sm:$0xff] }
 0x173   :  { %v9916_v19 = vpop.f32.mrb[52].mxu1  ;;  %8248 = vmatprep.mubr.bf16.mxu0 %v9918_v29 }
 0x174   :  { %14807 = vst [vmem:[#allocation88_spill] sm:$0xff] %v9916_v19  ;;  %v9923_v31 = vpop.f32.mrb[53].mxu1  ;;  %14811 = vst [vmem:[#allocation92_spill] sm:$0xff] %v9936_v39  ;;  %v9940_v19 = vpack.c.bf16 %v458_v58, %v457_v16  ;;  %v461_v16 = vld [vmem:[#allocation2 + $0x152] sm:$0xff]  ;;  %v462_v58 = vld [vmem:[#allocation2 + $0x15a] sm:$0xff] }
 0x175   :  { %14808 = vst [vmem:[#allocation89_spill] sm:$0xff] %v9923_v31  ;;  %v9926_v11 = vpop.f32.mrb[54].mxu1  ;;  %v1171_v13 = vpop.f32.mrb[40].mxu0 }
 0x176   :  { %14809 = vst [vmem:[#allocation90_spill] sm:$0xff] %v9926_v11  ;;  %v9928_v62 = vpop.f32.mrb[55].mxu1  ;;  %v9934_v21 = vadd.f32 %v9735_v20, %v1171_v13  ;;  %v1173_v2 = vpop.f32.mrb[41].mxu0  ;;  %14813 = vst [vmem:[#allocation94_spill] sm:$0xff] %v9940_v19  ;;  %v427_v20 = vpack.c.bf16 %v390_v25, %v389_v35  ;;  %v391_v35 = vld [vmem:[#allocation2 + $0x2b9] sm:$0xff]  ;;  %v392_v25 = vld [vmem:[#allocation2 + $0x2c1] sm:$0xff] }
 0x177   :  { %14810 = vst [vmem:[#allocation91_spill] sm:$0xff] %v9928_v62  ;;  %v1174_v11 = vpop.f32.mrb[42].mxu0  ;;  %v9957_v2 = vpack.c.bf16 %v460_v26, %v459_v30  ;;  %v463_v30 = vld [vmem:[#allocation2 + $0x16a] sm:$0xff]  ;;  %v464_v26 = vld [vmem:[#allocation2 + $0x172] sm:$0xff] }
 0x178   :  { %2004 = vmatmul.mubr.bf16.gmra.mrb[160].mxu1 %v9642_v6  ;;  %v9943_v62 = vadd.f32 %v9745_v28, %v1174_v11  ;;  %v1176_v31 = vpop.f32.mrb[43].mxu0 }
 0x179   :  { %2011 = vmatprep.mubr.bf16.mxu1 %v426_v22  ;;  %14817 = vst [vmem:[#allocation98_spill] sm:$0xff] %v9957_v2 }
 0x17a   :  { %8249 = vmatmul.mubr.bf16.gmra.mrb[148].mxu0 %v9936_v39 }
 0x17b   :  { %v9938_v14 = vpop.f32.mrb[56].mxu1  ;;  %8252 = vmatprep.mubr.bf16.mxu0 %v9940_v19 }
 0x17c   :  { %14812 = vst [vmem:[#allocation93_spill] sm:$0xff] %v9938_v14  ;;  %v9945_v6 = vpop.f32.mrb[57].mxu1 }
 0x17d   :  { %14814 = vst [vmem:[#allocation95_spill] sm:$0xff] %v9945_v6  ;;  %v9947_v22 = vpop.f32.mrb[58].mxu1  ;;  %v1179_v28 = vpop.f32.mrb[44].mxu0 }
 0x17e   :  { %14815 = vst [vmem:[#allocation96_spill] sm:$0xff] %v9947_v22  ;;  %v9949_v13 = vpop.f32.mrb[59].mxu1  ;;  %v9955_v11 = vadd.f32 %v9728_v63, %v1179_v28  ;;  %v1181_v31 = vpop.f32.mrb[45].mxu0  ;;  %v428_v63 = vpack.c.bf16 %v392_v25, %v391_v35  ;;  %v393_v35 = vld [vmem:[#allocation2 + $0x2d1] sm:$0xff]  ;;  %v394_v25 = vld [vmem:[#allocation2 + $0x2d9] sm:$0xff] }
 0x17f   :  { %14816 = vst [vmem:[#allocation97_spill] sm:$0xff] %v9949_v13  ;;  %v1182_v14 = vpop.f32.mrb[46].mxu0  ;;  %v9961_v13 = vpack.c.bf16 %v462_v58, %v461_v16  ;;  %v465_v16 = vld [vmem:[#allocation2 + $0x1b2] sm:$0xff]  ;;  %v466_v58 = vld [vmem:[#allocation2 + $0x1ba] sm:$0xff]  ;;  %v9978_v31 = vpack.c.bf16 %v464_v26, %v463_v30  ;;  %v429_v39 = vpack.c.bf16 %v394_v25, %v393_v35  ;;  %v467_v26 = vld [vmem:[#allocation2 + $0x1ca] sm:$0xff] }
 0x180   :  { %2012 = vmatmul.mubr.bf16.gmra.mrb[164].mxu1 %v9655_v57  ;;  %v9964_v6 = vadd.f32 %v9743_v15, %v1182_v14  ;;  %v1184_v19 = vpop.f32.mrb[47].mxu0 }
 0x181   :  { %2019 = vmatprep.mubr.bf16.mxu1 %v427_v20  ;;  %14819 = vst [vmem:[#allocation100_spill] sm:$0xff] %v9961_v13 }
 0x182   :  { %8253 = vmatmul.mubr.bf16.gmra.mrb[152].mxu0 %v9957_v2 }
 0x183   :  { %v9959_v22 = vpop.f32.mrb[60].mxu1  ;;  %8256 = vmatprep.mubr.bf16.mxu0 %v9961_v13 }
 0x184   :  { %14818 = vst [vmem:[#allocation99_spill] sm:$0xff] %v9959_v22  ;;  %v9966_v57 = vpop.f32.mrb[61].mxu1 }
 0x185   :  { %14820 = vst [vmem:[#allocation101_spill] sm:$0xff] %v9966_v57  ;;  %v9968_v20 = vpop.f32.mrb[62].mxu1  ;;  %v1187_v14 = vpop.f32.mrb[48].mxu0 }
 0x186   :  { %14821 = vst [vmem:[#allocation102_spill] sm:$0xff] %v9968_v20  ;;  %v9970_v28 = vpop.f32.mrb[63].mxu1  ;;  %v9976_v15 = vadd.f32 %v9761_v51, %v1187_v14  ;;  %v1189_v19 = vpop.f32.mrb[49].mxu0  ;;  %v468_v14 = vld [vmem:[#allocation2 + $0x1d2] sm:$0xff] }
 0x187   :  { %14822 = vst [vmem:[#allocation103_spill] sm:$0xff] %v9970_v28  ;;  %v1190_v22 = vpop.f32.mrb[50].mxu0  ;;  %v513_v28 = vpack.c.bf16 %v466_v58, %v465_v16 }
 0x188   :  { %2020 = vmatmul.mubr.bf16.gmra.mrb[168].mxu1 %v9672_v36  ;;  %v9984_v36 = vadd.f32 %v9765_v60, %v1190_v22  ;;  %v1192_v2 = vpop.f32.mrb[51].mxu0 }
 0x189   :  { %2027 = vmatprep.mubr.bf16.mxu1 %v428_v63  ;;  %v395_v2 = vld [vmem:[#allocation2 + $0x2e9] sm:$0xff] }
 0x18a   :  { %8257 = vmatmul.mubr.bf16.gmra.mrb[156].mxu0 %v9978_v31 }
 0x18b   :  { %v1813_v20 = vpop.f32.mrb[64].mxu1  ;;  %8260 = vmatprep.mubr.bf16.mxu0 %v513_v28 }
 0x18c   :  { %v9981_v57 = vadd.f32 %v1813_v20, %v9704_v44  ;;  %v1815_v13 = vpop.f32.mrb[65].mxu1  ;;  %v469_v44 = vld [vmem:[#allocation2 + $0x1e2] sm:$0xff]  ;;  %v470_v20 = vld [vmem:[#allocation2 + $0x1ea] sm:$0xff] }
 0x18d   :  { %v1816_v63 = vpop.f32.mrb[66].mxu1  ;;  %v1195_v16 = vpop.f32.mrb[52].mxu0  ;;  %v514_v13 = vpack.c.bf16 %v468_v14, %v467_v26  ;;  %v515_v35 = vpack.c.bf16 %v470_v20, %v469_v44  ;;  %v471_v26 = vld [vmem:[#allocation2 + $0x1fa] sm:$0xff]  ;;  %v472_v14 = vld [vmem:[#allocation2 + $0x202] sm:$0xff]  ;;  %v473_v44 = vld [vmem:[#allocation2 + $0x212] sm:$0xff] }
 0x18e   :  { %v9987_v51 = vadd.f32 %v1816_v63, %v9713_v59  ;;  %v1818_v30 = vpop.f32.mrb[67].mxu1  ;;  %v9992_v60 = vadd.f32 %v9754_v34, %v1195_v16  ;;  %v1197_v22 = vpop.f32.mrb[53].mxu0  ;;  %v396_v59 = vld [vmem:[#allocation2 + $0x2f1] sm:$0xff] }
 0x18f   :  { %v1198_v19 = vpop.f32.mrb[54].mxu0 }
 0x190   :  { %2028 = vmatmul.mubr.bf16.gmra.mrb[172].mxu1 %v9687_v33  ;;  %v9998_v25 = vadd.f32 %v9763_v12, %v1198_v19  ;;  %v1200_v63 = vpop.f32.mrb[55].mxu0 }
 0x191   :  { %2035 = vmatprep.mubr.bf16.mxu1 %v429_v39  ;;  %v430_v39 = vpack.c.bf16 %v396_v59, %v395_v2  ;;  %v397_v2 = vld [vmem:[#allocation2 + $0x301] sm:$0xff]  ;;  %v398_v59 = vld [vmem:[#allocation2 + $0x309] sm:$0xff] }
 0x192   :  { %8261 = vmatmul.mubr.bf16.gmra.mrb[160].mxu0 %v514_v13 }
 0x193   :  { %v1821_v58 = vpop.f32.mrb[68].mxu1  ;;  %8264 = vmatprep.mubr.bf16.mxu0 %v515_v35 }
 0x194   :  { %v9995_v28 = vadd.f32 %v1821_v58, %v9724_v23  ;;  %v1823_v33 = vpop.f32.mrb[69].mxu1  ;;  %v474_v23 = vld [vmem:[#allocation2 + $0x21a] sm:$0xff]  ;;  %v516_v58 = vpack.c.bf16 %v472_v14, %v471_v26  ;;  %v475_v26 = vld [vmem:[#allocation2 + $0x22a] sm:$0xff]  ;;  %v476_v14 = vld [vmem:[#allocation2 + $0x232] sm:$0xff] }
 0x195   :  { %v1824_v30 = vpop.f32.mrb[70].mxu1  ;;  %v1203_v20 = vpop.f32.mrb[56].mxu0  ;;  %v517_v33 = vpack.c.bf16 %v474_v23, %v473_v44  ;;  %v477_v44 = vld [vmem:[#allocation2 + $0x242] sm:$0xff] }
 0x196   :  { %v10001_v34 = vadd.f32 %v1824_v30, %v9733_v38  ;;  %v1826_v16 = vpop.f32.mrb[71].mxu1  ;;  %v10005_v12 = vadd.f32 %v9785_v5, %v1203_v20  ;;  %v1205_v22 = vpop.f32.mrb[57].mxu0 }
 0x197   :  { %v1206_v19 = vpop.f32.mrb[58].mxu0  ;;  %v518_v22 = vpack.c.bf16 %v476_v14, %v475_v26  ;;  %v480_v26 = vld [vmem:[#allocation2 + $0x262] sm:$0xff]  ;;  %v14823_v14 = vld [vmem:[#allocation65_spill] sm:$0xff] }
 0x198   :  { %2036 = vmatmul.mubr.bf16.gmra.mrb[176].mxu1 %v9706_v17  ;;  %v10011_v35 = vadd.f32 %v9789_v0, %v1206_v19  ;;  %v1208_v63 = vpop.f32.mrb[59].mxu0 }
 0x199   :  { %2043 = vmatprep.mubr.bf16.mxu1 %v430_v39  ;;  %v431_v39 = vpack.c.bf16 %v398_v59, %v397_v2  ;;  %v399_v2 = vld [vmem:[#allocation2 + $0x319] sm:$0xff]  ;;  %v400_v59 = vld [vmem:[#allocation2 + $0x321] sm:$0xff] }
 0x19a   :  { %8265 = vmatmul.mubr.bf16.gmra.mrb[164].mxu0 %v516_v58 }
 0x19b   :  { %v1829_v38 = vpop.f32.mrb[72].mxu1  ;;  %8268 = vmatprep.mubr.bf16.mxu0 %v517_v33 }
 0x19c   :  { %v10008_v13 = vadd.f32 %v1829_v38, %v9750_v46  ;;  %v1831_v17 = vpop.f32.mrb[73].mxu1  ;;  %v478_v46 = vld [vmem:[#allocation2 + $0x24a] sm:$0xff] }
 0x19d   :  { %v1832_v30 = vpop.f32.mrb[74].mxu1  ;;  %v1211_v23 = vpop.f32.mrb[60].mxu0  ;;  %v519_v19 = vpack.c.bf16 %v478_v46, %v477_v44  ;;  %v481_v44 = vld [vmem:[#allocation2 + $0x272] sm:$0xff] }
 0x19e   :  { %v10014_v5 = vadd.f32 %v1832_v30, %v9759_v42  ;;  %v1834_v16 = vpop.f32.mrb[75].mxu1  ;;  %v10018_v0 = vadd.f32 %v9774_v47, %v1211_v23  ;;  %v1213_v20 = vpop.f32.mrb[61].mxu0  ;;  %v432_v30 = vpack.c.bf16 %v400_v59, %v399_v2  ;;  %v2454_v2 = vld [vmem:[#allocation2 + $0x31] sm:$0xff]  ;;  %v2455_v59 = vld [vmem:[#allocation2 + $0x39] sm:$0xff] }
 0x19f   :  { %v1214_v38 = vpop.f32.mrb[62].mxu0  ;;  %v479_v16 = vld [vmem:[#allocation2 + $0x25a] sm:$0xff] }
 0x1a0   :  { %2044 = vmatmul.mubr.bf16.gmra.mrb[180].mxu1 %v9726_v27  ;;  %v10024_v33 = vadd.f32 %v9787_v48, %v1214_v38  ;;  %v1216_v17 = vpop.f32.mrb[63].mxu0  ;;  %v520_v20 = vpack.c.bf16 %v480_v26, %v479_v16  ;;  %v483_v16 = vld [vmem:[#allocation2 + $0x28a] sm:$0xff]  ;;  %v484_v26 = vld [vmem:[#allocation2 + $0x292] sm:$0xff] }
 0x1a1   :  { %2051 = vmatprep.mubr.bf16.mxu1 %v431_v39 }
 0x1a2   :  { %8269 = vmatmul.mubr.bf16.gmra.mrb[168].mxu0 %v518_v22 }
 0x1a3   :  { %v1837_v42 = vpop.f32.mrb[76].mxu1  ;;  %8272 = vmatprep.mubr.bf16.mxu0 %v519_v19 }
 0x1a4   :  { %v10021_v58 = vadd.f32 %v1837_v42, %v9770_v32  ;;  %v1839_v27 = vpop.f32.mrb[77].mxu1  ;;  %v482_v32 = vld [vmem:[#allocation2 + $0x27a] sm:$0xff] }
 0x1a5   :  { %v1840_v63 = vpop.f32.mrb[78].mxu1  ;;  %v1219_v46 = vpop.f32.mrb[64].mxu0  ;;  %v521_v38 = vpack.c.bf16 %v482_v32, %v481_v44  ;;  %v485_v44 = vld [vmem:[#allocation2 + $0x2a2] sm:$0xff] }
 0x1a6   :  { %v10027_v47 = vadd.f32 %v1840_v63, %v9783_v45  ;;  %v1842_v39 = vpop.f32.mrb[79].mxu1  ;;  %v10031_v48 = vadd.f32 %v9801_v53, %v1219_v46  ;;  %v1221_v23 = vpop.f32.mrb[65].mxu0  ;;  %v2359_v46 = vld [vmem:[#allocation2 + $0x38] sm:$0xff] }
 0x1a7   :  { %v1222_v42 = vpop.f32.mrb[66].mxu0 }
 0x1a8   :  { %2052 = vmatmul.mubr.bf16.gmra.mrb[184].mxu1 %v14823_v14  ;;  %v10037_v19 = vadd.f32 %v9805_v40, %v1222_v42  ;;  %v1224_v17 = vpop.f32.mrb[67].mxu0  ;;  %v14826_v14 = vld [vmem:[#allocation66_spill] sm:$0xff]  ;;  %v2358_v40 = vld [vmem:[#allocation2 + $0x30] sm:$0xff] }
 0x1a9   :  { %2059 = vmatprep.mubr.bf16.mxu1 %v432_v30  ;;  %v2518_v30 = vpack.c.bf16 %v2455_v59, %v2454_v2  ;;  %v522_v59 = vpack.c.bf16 %v484_v26, %v483_v16  ;;  %v14827_v17 = vld [vmem:[#allocation69_spill] sm:$0xff]  ;;  %v487_v26 = vld [vmem:[#allocation2 + $0x2ba] sm:$0xff] }
 0x1aa   :  { %8273 = vmatmul.mubr.bf16.gmra.mrb[172].mxu0 %v520_v20 }
 0x1ab   :  { %v1845_v45 = vpop.f32.mrb[80].mxu1  ;;  %8276 = vmatprep.mubr.bf16.mxu0 %v521_v38 }
 0x1ac   :  { %v10034_v22 = vadd.f32 %v1845_v45, %v9794_v3  ;;  %v1847_v27 = vpop.f32.mrb[81].mxu1  ;;  %v486_v3 = vld [vmem:[#allocation2 + $0x2aa] sm:$0xff] }
 0x1ad   :  { %v1848_v63 = vpop.f32.mrb[82].mxu1  ;;  %v1227_v32 = vpop.f32.mrb[68].mxu0  ;;  %v2457_v45 = vld [vmem:[#allocation2 + $0x51] sm:$0xff]  ;;  %v523_v38 = vpack.c.bf16 %v486_v3, %v485_v44 }
 0x1ae   :  { %14824 = vst [vmem:[#allocation65_spill] sm:$0xff] %v10034_v22  ;;  %v10040_v53 = vadd.f32 %v1848_v63, %v9799_v50  ;;  %v1850_v39 = vpop.f32.mrb[83].mxu1  ;;  %v10044_v23 = vadd.f32 %v9796_v24, %v1227_v32  ;;  %v1229_v2 = vpop.f32.mrb[69].mxu0  ;;  %v2456_v50 = vld [vmem:[#allocation2 + $0x49] sm:$0xff]  ;;  %v489_v44 = vld [vmem:[#allocation2 + $0x2d2] sm:$0xff] }
 0x1af   :  { %v1230_v20 = vpop.f32.mrb[70].mxu0  ;;  %v2519_v22 = vpack.c.bf16 %v2457_v45, %v2456_v50  ;;  %v488_v32 = vld [vmem:[#allocation2 + $0x2c2] sm:$0xff] }
 0x1b0   :  { %14825 = vst [vmem:[#allocation104_spill] sm:$0xff] %v10040_v53  ;;  %2060 = vmatmul.mubr.bf16.gmra.mrb[188].mxu1 %v14826_v14  ;;  %v10050_v63 = vadd.f32 %v14827_v17, %v1230_v20  ;;  %v1232_v14 = vpop.f32.mrb[71].mxu0  ;;  %v2360_v2 = vld [vmem:[#allocation2 + $0x48] sm:$0xff]  ;;  %v524_v50 = vpack.c.bf16 %v488_v32, %v487_v26  ;;  %v14830_v17 = vld [vmem:[#allocation73_spill] sm:$0xff] }
 0x1b1   :  { %2870 = vmatprep.mubr.bf16.mxu1 %v2518_v30  ;;  %v2422_v30 = vpack.c.bf16 %v2359_v46, %v2358_v40  ;;  %v2458_v45 = vld [vmem:[#allocation2 + $0x61] sm:$0xff]  ;;  %v491_v32 = vld [vmem:[#allocation2 + $0x2ea] sm:$0xff] }
 0x1b2   :  { %8277 = vmatmul.mubr.bf16.gmra.mrb[176].mxu0 %v522_v59 }
 0x1b3   :  { %v1853_v42 = vpop.f32.mrb[84].mxu1  ;;  %8280 = vmatprep.mubr.bf16.mxu0 %v523_v38 }
 0x1b4   :  { %v10047_v27 = vadd.f32 %v1853_v42, %v9809_v55  ;;  %v1855_v39 = vpop.f32.mrb[85].mxu1  ;;  %v490_v55 = vld [vmem:[#allocation2 + $0x2da] sm:$0xff]  ;;  %v2361_v42 = vld [vmem:[#allocation2 + $0x50] sm:$0xff] }
 0x1b5   :  { %v1856_v53 = vpop.f32.mrb[86].mxu1  ;;  %v1235_v3 = vpop.f32.mrb[72].mxu0  ;;  %v525_v59 = vpack.c.bf16 %v490_v55, %v489_v44  ;;  %v493_v44 = vld [vmem:[#allocation2 + $0x302] sm:$0xff] }
 0x1b6   :  { %v10053_v24 = vadd.f32 %v1856_v53, %v9816_v54  ;;  %v1858_v16 = vpop.f32.mrb[87].mxu1  ;;  %v10056_v40 = vadd.f32 %v9818_v41, %v1235_v3  ;;  %v1237_v46 = vpop.f32.mrb[73].mxu0  ;;  %v2459_v54 = vld [vmem:[#allocation2 + $0x69] sm:$0xff]  ;;  %v492_v3 = vld [vmem:[#allocation2 + $0x2f2] sm:$0xff] }
 0x1b7   :  { %v1238_v20 = vpop.f32.mrb[74].mxu0  ;;  %v2362_v46 = vld [vmem:[#allocation2 + $0x60] sm:$0xff] }
 0x1b8   :  { %14828 = vst [vmem:[#allocation66_spill] sm:$0xff] %v10053_v24  ;;  %2871 = vmatmul.mubr.bf16.vlgmr.msra.gmra.mrb[192].mxu1 %v2422_v30  ;;  %v10062_v39 = vadd.f32 %v14830_v17, %v1238_v20  ;;  %v1240_v14 = vpop.f32.mrb[75].mxu0  ;;  %v2520_v24 = vpack.c.bf16 %v2459_v54, %v2458_v45  ;;  %v14832_v20 = vld [vmem:[#allocation70_spill] sm:$0xff]  ;;  %v526_v45 = vpack.c.bf16 %v492_v3, %v491_v32 }
 0x1b9   :  { %2878 = vmatprep.mubr.bf16.mxu1 %v2519_v22  ;;  %v2423_v22 = vpack.c.bf16 %v2361_v42, %v2360_v2  ;;  %v2460_v54 = vld [vmem:[#allocation2 + $0x79] sm:$0xff] }
 0x1ba   :  { %8281 = vmatmul.mubr.bf16.gmra.mrb[180].mxu0 %v524_v50  ;;  %v495_v3 = vld [vmem:[#allocation2 + $0x31a] sm:$0xff] }
 0x1bb   :  { %v1861_v53 = vpop.f32.mrb[88].mxu1  ;;  %8284 = vmatprep.mubr.bf16.mxu0 %v525_v59 }
 0x1bc   :  { %v10059_v38 = vadd.f32 %v1861_v53, %v9834_v4  ;;  %v1863_v30 = vpop.f32.mrb[89].mxu1  ;;  %v494_v4 = vld [vmem:[#allocation2 + $0x30a] sm:$0xff] }
 0x1bd   :  { %v1864_v16 = vpop.f32.mrb[90].mxu1  ;;  %v1243_v55 = vpop.f32.mrb[76].mxu0  ;;  %v2363_v53 = vld [vmem:[#allocation2 + $0x68] sm:$0xff]  ;;  %v527_v50 = vpack.c.bf16 %v494_v4, %v493_v44  ;;  %v2365_v4 = vld [vmem:[#allocation2 + $0x80] sm:$0xff] }
 0x1be   :  { %14829 = vst [vmem:[#allocation69_spill] sm:$0xff] %v10059_v38  ;;  %v10065_v41 = vadd.f32 %v1864_v16, %v9843_v61  ;;  %v1866_v26 = vpop.f32.mrb[91].mxu1  ;;  %v10068_v2 = vadd.f32 %v14832_v20, %v1243_v55  ;;  %v1245_v42 = vpop.f32.mrb[77].mxu0  ;;  %v2461_v61 = vld [vmem:[#allocation2 + $0x81] sm:$0xff] }
 0x1bf   :  { %v1246_v30 = vpop.f32.mrb[78].mxu0  ;;  %v2521_v38 = vpack.c.bf16 %v2461_v61, %v2460_v54  ;;  %v496_v20 = vld [vmem:[#allocation2 + $0x322] sm:$0xff]  ;;  %v2463_v54 = vld [vmem:[#allocation2 + $0x99] sm:$0xff] }
 0x1c0   :  { %14831 = vst [vmem:[#allocation73_spill] sm:$0xff] %v10065_v41  ;;  %2879 = vmatmul.mubr.bf16.gmra.mrb[196].mxu1 %v2423_v22  ;;  %v14833_v22 = vld [vmem:[#allocation72_spill] sm:$0xff]  ;;  %v1248_v26 = vpop.f32.mrb[79].mxu0 }
 0x1c1   :  { %2886 = vmatprep.mubr.bf16.mxu1 %v2520_v24  ;;  %v10074_v14 = vadd.f32 %v14833_v22, %v1246_v30  ;;  %v2424_v24 = vpack.c.bf16 %v2363_v53, %v2362_v46  ;;  %v528_v53 = vpack.c.bf16 %v496_v20, %v495_v3  ;;  %v2367_v20 = vld [vmem:[#allocation2 + $0x98] sm:$0xff] }
 0x1c2   :  { %8285 = vmatmul.mubr.bf16.gmra.mrb[184].mxu0 %v526_v45  ;;  %v14834_v45 = vld [vmem:[#allocation78_spill] sm:$0xff] }
 0x1c3   :  { %v1869_v17 = vpop.f32.mrb[92].mxu1  ;;  %8288 = vmatprep.mubr.bf16.mxu0 %v527_v50 }
 0x1c4   :  { %v10071_v59 = vadd.f32 %v1869_v17, %v9861_v37  ;;  %v1871_v16 = vpop.f32.mrb[93].mxu1  ;;  %v2364_v37 = vld [vmem:[#allocation2 + $0x78] sm:$0xff] }
 0x1c5   :  { %v1872_v41 = vpop.f32.mrb[94].mxu1  ;;  %v1251_v44 = vpop.f32.mrb[80].mxu0  ;;  %v2462_v17 = vld [vmem:[#allocation2 + $0x91] sm:$0xff]  ;;  %v2425_v22 = vpack.c.bf16 %v2365_v4, %v2364_v37  ;;  %v2464_v37 = vld [vmem:[#allocation2 + $0xa9] sm:$0xff] }
 0x1c6   :  { %v10077_v55 = vadd.f32 %v1872_v41, %v9870_v1  ;;  %v1874_v32 = vpop.f32.mrb[95].mxu1  ;;  %v10080_v42 = vadd.f32 %v9845_v8, %v1251_v44  ;;  %v1253_v46 = vpop.f32.mrb[81].mxu0  ;;  %v14836_v44 = vld [vmem:[#allocation75_spill] sm:$0xff]  ;;  %v2465_v4 = vld [vmem:[#allocation2 + $0xb1] sm:$0xff] }
 0x1c7   :  { %v1254_v1 = vpop.f32.mrb[82].mxu0  ;;  %v14835_v32 = vld [vmem:[#allocation71_spill] sm:$0xff] }
 0x1c8   :  { %2887 = vmatmul.mubr.bf16.gmra.mrb[200].mxu1 %v2424_v24  ;;  %v10086_v30 = vadd.f32 %v14834_v45, %v1254_v1  ;;  %v2522_v24 = vpack.c.bf16 %v2463_v54, %v2462_v17  ;;  %v14837_v54 = vld [vmem:[#allocation77_spill] sm:$0xff] }
 0x1c9   :  { %2894 = vmatprep.mubr.bf16.mxu1 %v2521_v38  ;;  %v1256_v38 = vpop.f32.mrb[83].mxu0 }
 0x1ca   :  { %8289 = vmatmul.mubr.bf16.gmra.mrb[188].mxu0 %v528_v53 }
 0x1cb   :  { %v1877_v61 = vpop.f32.mrb[96].mxu1  ;;  %8308 = vmatprep.mubr.bf16.mxu0 %v14835_v32  ;;  %v14838_v32 = vld [vmem:[#allocation74_spill] sm:$0xff] }
 0x1cc   :  { %v10083_v41 = vadd.f32 %v1877_v61, %v9888_v52  ;;  %v1879_v50 = vpop.f32.mrb[97].mxu1  ;;  %v2366_v52 = vld [vmem:[#allocation2 + $0x90] sm:$0xff] }
 0x1cd   :  { %v1880_v16 = vpop.f32.mrb[98].mxu1  ;;  %v1259_v3 = vpop.f32.mrb[84].mxu0  ;;  %v2426_v50 = vpack.c.bf16 %v2367_v20, %v2366_v52  ;;  %v2466_v20 = vld [vmem:[#allocation2 + $0xc1] sm:$0xff] }
 0x1ce   :  { %v10089_v8 = vadd.f32 %v1880_v16, %v9897_v7  ;;  %v1882_v26 = vpop.f32.mrb[99].mxu1  ;;  %v10093_v46 = vadd.f32 %v14836_v44, %v1259_v3  ;;  %v1261_v61 = vpop.f32.mrb[85].mxu0  ;;  %v2523_v16 = vpack.c.bf16 %v2465_v4, %v2464_v37  ;;  %v14839_v3 = vld [vmem:[#allocation76_spill] sm:$0xff] }
 0x1cf   :  { %v1262_v17 = vpop.f32.mrb[86].mxu0  ;;  %v2369_v61 = vld [vmem:[#allocation2 + $0xb0] sm:$0xff] }
 0x1d0   :  { %2895 = vmatmul.mubr.bf16.gmra.mrb[204].mxu1 %v2425_v22  ;;  %v10099_v53 = vadd.f32 %v14837_v54, %v1262_v17  ;;  %v1264_v22 = vpop.f32.mrb[87].mxu0  ;;  %v2467_v17 = vld [vmem:[#allocation2 + $0xc9] sm:$0xff]  ;;  %v14840_v54 = vld [vmem:[#allocation83_spill] sm:$0xff] }
 0x1d1   :  { %2902 = vmatprep.mubr.bf16.mxu1 %v2522_v24 }
 0x1d2   :  { %8309 = vmatmul.mubr.bf16.vlgmr.msra.gmra.mrb[192].mxu0 %v14838_v32 }
 0x1d3   :  { %v1885_v1 = vpop.f32.mrb[100].mxu1  ;;  %8312 = vmatprep.mubr.bf16.mxu0 %v14839_v3  ;;  %v14842_v3 = vld [vmem:[#allocation79_spill] sm:$0xff] }
 0x1d4   :  { %v10096_v7 = vadd.f32 %v1885_v1, %v9912_v18  ;;  %v1887_v45 = vpop.f32.mrb[101].mxu1  ;;  %v2368_v18 = vld [vmem:[#allocation2 + $0xa8] sm:$0xff] }
 0x1d5   :  { %v1888_v38 = vpop.f32.mrb[102].mxu1  ;;  %v1267_v44 = vpop.f32.mrb[88].mxu0 }
 0x1d6   :  { %v10102_v24 = vadd.f32 %v1888_v38, %v9921_v49  ;;  %v1890_v26 = vpop.f32.mrb[103].mxu1  ;;  %v10107_v1 = vadd.f32 %v9872_v56, %v1267_v44  ;;  %v1269_v52 = vpop.f32.mrb[89].mxu0  ;;  %v14843_v44 = vld [vmem:[#allocation81_spill] sm:$0xff] }
 0x1d7   :  { %v1270_v4 = vpop.f32.mrb[90].mxu0  ;;  %v2524_v26 = vpack.c.bf16 %v2467_v17, %v2466_v20 }
 0x1d8   :  { %2903 = vmatmul.mubr.bf16.gmra.mrb[208].mxu1 %v2426_v50  ;;  %v10113_v45 = vadd.f32 %v14840_v54, %v1270_v4  ;;  %v2427_v50 = vpack.c.bf16 %v2369_v61, %v2368_v18  ;;  %v1272_v38 = vpop.f32.mrb[91].mxu0  ;;  %v14844_v4 = vld [vmem:[#allocation80_spill] sm:$0xff]  ;;  %v2468_v61 = vld [vmem:[#allocation2 + $0xd9] sm:$0xff] }
 0x1d9   :  { %2910 = vmatprep.mubr.bf16.mxu1 %v2523_v16  ;;  %v14845_v38 = vld [vmem:[#allocation82_spill] sm:$0xff] }
 0x1da   :  { %8313 = vmatmul.mubr.bf16.gmra.mrb[196].mxu0 %v14842_v3 }
 0x1db   :  { %v1893_v37 = vpop.f32.mrb[104].mxu1  ;;  %8316 = vmatprep.mubr.bf16.mxu0 %v14843_v44 }
 0x1dc   :  { %v10110_v49 = vadd.f32 %v1893_v37, %v9934_v21  ;;  %v1895_v22 = vpop.f32.mrb[105].mxu1  ;;  %v2370_v21 = vld [vmem:[#allocation2 + $0xc0] sm:$0xff]  ;;  %v2371_v37 = vld [vmem:[#allocation2 + $0xc8] sm:$0xff] }
 0x1dd   :  { %v1896_v16 = vpop.f32.mrb[106].mxu1  ;;  %v1275_v52 = vpop.f32.mrb[92].mxu0  ;;  %v2469_v22 = vld [vmem:[#allocation2 + $0xe1] sm:$0xff] }
 0x1de   :  { %v10116_v32 = vadd.f32 %v1896_v16, %v9943_v62  ;;  %v1898_v56 = vpop.f32.mrb[107].mxu1  ;;  %v10121_v54 = vadd.f32 %v14844_v4, %v1275_v52  ;;  %v1277_v18 = vpop.f32.mrb[93].mxu0  ;;  %v2525_v44 = vpack.c.bf16 %v2469_v22, %v2468_v61 }
 0x1df   :  { %v1278_v17 = vpop.f32.mrb[94].mxu0  ;;  %v2373_v18 = vld [vmem:[#allocation2 + $0xe0] sm:$0xff] }
 0x1e0   :  { %14841 = vst [vmem:[#allocation70_spill] sm:$0xff] %v10116_v32  ;;  %2911 = vmatmul.mubr.bf16.gmra.mrb[212].mxu1 %v2427_v50  ;;  %v10127_v16 = vadd.f32 %v14845_v38, %v1278_v17  ;;  %v2428_v50 = vpack.c.bf16 %v2371_v37, %v2370_v21  ;;  %v1280_v3 = vpop.f32.mrb[95].mxu0  ;;  %v2470_v37 = vld [vmem:[#allocation2 + $0xf1] sm:$0xff]  ;;  %v2471_v38 = vld [vmem:[#allocation2 + $0xf9] sm:$0xff] }
 0x1e1   :  { %2918 = vmatprep.mubr.bf16.mxu1 %v2524_v26 }
 0x1e2   :  { %8317 = vmatmul.mubr.bf16.gmra.mrb[200].mxu0 %v9890_v9 }
 0x1e3   :  { %v1901_v20 = vpop.f32.mrb[108].mxu1  ;;  %8320 = vmatprep.mubr.bf16.mxu0 %v9894_v10 }
 0x1e4   :  { %v10124_v62 = vadd.f32 %v1901_v20, %v9955_v11  ;;  %v1903_v56 = vpop.f32.mrb[109].mxu1  ;;  %v2372_v11 = vld [vmem:[#allocation2 + $0xd8] sm:$0xff]  ;;  %v14846_v20 = vld [vmem:[#allocation85_spill] sm:$0xff] }
 0x1e5   :  { %v1904_v26 = vpop.f32.mrb[110].mxu1  ;;  %v1283_v4 = vpop.f32.mrb[96].mxu0  ;;  %v14847_v56 = vld [vmem:[#allocation87_spill] sm:$0xff] }
 0x1e6   :  { %v10130_v32 = vadd.f32 %v1904_v26, %v9964_v6  ;;  %v1906_v52 = vpop.f32.mrb[111].mxu1  ;;  %v10135_v17 = vadd.f32 %v14846_v20, %v1283_v4  ;;  %v1285_v21 = vpop.f32.mrb[97].mxu0 }
 0x1e7   :  { %v1286_v22 = vpop.f32.mrb[98].mxu0  ;;  %v2375_v21 = vld [vmem:[#allocation2 + $0xf8] sm:$0xff] }
 0x1e8   :  { %2919 = vmatmul.mubr.bf16.gmra.mrb[216].mxu1 %v2428_v50  ;;  %v10141_v9 = vadd.f32 %v14847_v56, %v1286_v22  ;;  %v2429_v50 = vpack.c.bf16 %v2373_v18, %v2372_v11  ;;  %v1288_v3 = vpop.f32.mrb[99].mxu0  ;;  %v2472_v18 = vld [vmem:[#allocation2 + $0x109] sm:$0xff]  ;;  %v2473_v56 = vld [vmem:[#allocation2 + $0x111] sm:$0xff] }
 0x1e9   :  { %2926 = vmatprep.mubr.bf16.mxu1 %v2525_v44  ;;  %v2526_v44 = vpack.c.bf16 %v2471_v38, %v2470_v37 }
 0x1ea   :  { %8321 = vmatmul.mubr.bf16.gmra.mrb[204].mxu0 %v9914_v43 }
 0x1eb   :  { %v1909_v61 = vpop.f32.mrb[112].mxu1  ;;  %8324 = vmatprep.mubr.bf16.mxu0 %v9918_v29 }
 0x1ec   :  { %v10138_v6 = vadd.f32 %v1909_v61, %v9976_v15  ;;  %v1911_v10 = vpop.f32.mrb[113].mxu1  ;;  %v2374_v15 = vld [vmem:[#allocation2 + $0xf0] sm:$0xff]  ;;  %v14849_v61 = vld [vmem:[#allocation84_spill] sm:$0xff] }
 0x1ed   :  { %v1912_v26 = vpop.f32.mrb[114].mxu1  ;;  %v1291_v20 = vpop.f32.mrb[100].mxu0  ;;  %v14850_v10 = vld [vmem:[#allocation86_spill] sm:$0xff] }
 0x1ee   :  { %v10144_v52 = vadd.f32 %v1912_v26, %v9984_v36  ;;  %v1914_v4 = vpop.f32.mrb[115].mxu1  ;;  %v10149_v22 = vadd.f32 %v14849_v61, %v1291_v20  ;;  %v1293_v11 = vpop.f32.mrb[101].mxu0  ;;  %v14852_v61 = vld [vmem:[#allocation92_spill] sm:$0xff] }
 0x1ef   :  { %v1294_v38 = vpop.f32.mrb[102].mxu0  ;;  %v14853_v11 = vld [vmem:[#allocation94_spill] sm:$0xff] }
 0x1f0   :  { %14848 = vst [vmem:[#allocation72_spill] sm:$0xff] %v10144_v52  ;;  %2927 = vmatmul.mubr.bf16.gmra.mrb[220].mxu1 %v2429_v50  ;;  %v10155_v43 = vadd.f32 %v14850_v10, %v1294_v38  ;;  %v2430_v50 = vpack.c.bf16 %v2375_v21, %v2374_v15  ;;  %v1296_v3 = vpop.f32.mrb[103].mxu0  ;;  %v14854_v38 = vld [vmem:[#allocation89_spill] sm:$0xff]  ;;  %v2474_v21 = vld [vmem:[#allocation2 + $0x121] sm:$0xff] }
 0x1f1   :  { %2934 = vmatprep.mubr.bf16.mxu1 %v2526_v44  ;;  %v2527_v44 = vpack.c.bf16 %v2473_v56, %v2472_v18  ;;  %v14857_v3 = vld [vmem:[#allocation91_spill] sm:$0xff] }
 0x1f2   :  { %8325 = vmatmul.mubr.bf16.gmra.mrb[208].mxu0 %v14852_v61 }
 0x1f3   :  { %v1917_v37 = vpop.f32.mrb[116].mxu1  ;;  %8328 = vmatprep.mubr.bf16.mxu0 %v14853_v11 }
 0x1f4   :  { %v10152_v36 = vadd.f32 %v1917_v37, %v9992_v60  ;;  %v1919_v29 = vpop.f32.mrb[117].mxu1  ;;  %v2376_v60 = vld [vmem:[#allocation2 + $0x108] sm:$0xff]  ;;  %v2377_v37 = vld [vmem:[#allocation2 + $0x110] sm:$0xff] }
 0x1f5   :  { %v1920_v26 = vpop.f32.mrb[118].mxu1  ;;  %v1299_v52 = vpop.f32.mrb[104].mxu0  ;;  %v2475_v29 = vld [vmem:[#allocation2 + $0x129] sm:$0xff] }
 0x1f6   :  { %v10158_v4 = vadd.f32 %v1920_v26, %v9998_v25  ;;  %v1922_v20 = vpop.f32.mrb[119].mxu1  ;;  %v10163_v10 = vadd.f32 %v14854_v38, %v1299_v52  ;;  %v1301_v15 = vpop.f32.mrb[105].mxu0  ;;  %v2528_v11 = vpack.c.bf16 %v2475_v29, %v2474_v21  ;;  %v14860_v38 = vld [vmem:[#allocation98_spill] sm:$0xff]  ;;  %v2477_v29 = vld [vmem:[#allocation2 + $0x141] sm:$0xff] }
 0x1f7   :  { %v1302_v56 = vpop.f32.mrb[106].mxu0  ;;  %v14861_v15 = vld [vmem:[#allocation100_spill] sm:$0xff]  ;;  %v2476_v21 = vld [vmem:[#allocation2 + $0x139] sm:$0xff] }
 0x1f8   :  { %14851 = vst [vmem:[#allocation78_spill] sm:$0xff] %v10158_v4  ;;  %2935 = vmatmul.mubr.bf16.gmra.mrb[224].mxu1 %v2430_v50  ;;  %14855 = vst [vmem:[#allocation71_spill] sm:$0xff] %v10163_v10  ;;  %v10169_v26 = vadd.f32 %v14857_v3, %v1302_v56  ;;  %v2431_v50 = vpack.c.bf16 %v2377_v37, %v2376_v60  ;;  %v1304_v61 = vpop.f32.mrb[107].mxu0  ;;  %v2578_v10 = vld [vmem:[#allocation2 + $0x182] sm:$0xff] }
 0x1f9   :  { %2942 = vmatprep.mubr.bf16.mxu1 %v2527_v44  ;;  %v2378_v56 = vld [vmem:[#allocation2 + $0x120] sm:$0xff]  ;;  %v2379_v3 = vld [vmem:[#allocation2 + $0x128] sm:$0xff] }
 0x1fa   :  { %14858 = vst [vmem:[#allocation77_spill] sm:$0xff] %v10169_v26  ;;  %8329 = vmatmul.mubr.bf16.gmra.mrb[212].mxu0 %v14860_v38  ;;  %v14865_v38 = vld [vmem:[#allocation90_spill] sm:$0xff]  ;;  %v2529_v26 = vpack.c.bf16 %v2477_v29, %v2476_v21 }
 0x1fb   :  { %v1925_v18 = vpop.f32.mrb[120].mxu1  ;;  %8332 = vmatprep.mubr.bf16.mxu0 %v14861_v15  ;;  %v2478_v29 = vld [vmem:[#allocation2 + $0x151] sm:$0xff] }
 0x1fc   :  { %v10166_v25 = vadd.f32 %v1925_v18, %v10005_v12  ;;  %v1927_v20 = vpop.f32.mrb[121].mxu1  ;;  %v2579_v12 = vld [vmem:[#allocation2 + $0x18a] sm:$0xff] }
 0x1fd   :  { %v1928_v44 = vpop.f32.mrb[122].mxu1  ;;  %v1307_v18 = vpop.f32.mrb[108].mxu0  ;;  %v14862_v20 = vld [vmem:[#allocation88_spill] sm:$0xff] }
 0x1fe   :  { %14856 = vst [vmem:[#allocation75_spill] sm:$0xff] %v10166_v25  ;;  %v10172_v4 = vadd.f32 %v1928_v44, %v10011_v35  ;;  %v1930_v52 = vpop.f32.mrb[123].mxu1  ;;  %v10177_v60 = vadd.f32 %v14862_v20, %v1307_v18  ;;  %v1309_v37 = vpop.f32.mrb[109].mxu0  ;;  %v2628_v44 = vpack.c.bf16 %v2579_v12, %v2578_v10  ;;  %v2581_v10 = vld [vmem:[#allocation2 + $0x1a2] sm:$0xff]  ;;  %v2583_v12 = vld [vmem:[#allocation2 + $0x1ea] sm:$0xff] }
 0x1ff   :  { %v1310_v61 = vpop.f32.mrb[110].mxu0  ;;  %v2580_v37 = vld [vmem:[#allocation2 + $0x19a] sm:$0xff] }
 0x200   :  { %14859 = vst [vmem:[#allocation74_spill] sm:$0xff] %v10172_v4  ;;  %2943 = vmatmul.mubr.bf16.gmra.mrb[228].mxu1 %v2431_v50  ;;  %14863 = vst [vmem:[#allocation76_spill] sm:$0xff] %v10177_v60  ;;  %v10183_v50 = vadd.f32 %v14865_v38, %v1310_v61  ;;  %v2432_v4 = vpack.c.bf16 %v2379_v3, %v2378_v56  ;;  %v2380_v61 = vld [vmem:[#allocation2 + $0x138] sm:$0xff]  ;;  %v2381_v38 = vld [vmem:[#allocation2 + $0x140] sm:$0xff] }
 0x201   :  { %2950 = vmatprep.mubr.bf16.mxu1 %v2528_v11  ;;  %v1312_v11 = vpop.f32.mrb[111].mxu0  ;;  %v14868_v56 = vld [vmem:[#allocation95_spill] sm:$0xff] }
 0x202   :  { %14866 = vst [vmem:[#allocation79_spill] sm:$0xff] %v10183_v50  ;;  %8333 = vmatmul.mubr.bf16.gmra.mrb[216].mxu0 %v9978_v31 }
 0x203   :  { %v1933_v35 = vpop.f32.mrb[124].mxu1  ;;  %8336 = vmatprep.mubr.bf16.mxu0 %v2628_v44 }
 0x204   :  { %v10180_v52 = vadd.f32 %v1933_v35, %v10018_v0  ;;  %v1935_v15 = vpop.f32.mrb[125].mxu1  ;;  %v2582_v0 = vld [vmem:[#allocation2 + $0x1e2] sm:$0xff] }
 0x205   :  { %v1936_v25 = vpop.f32.mrb[126].mxu1  ;;  %v1315_v35 = vpop.f32.mrb[112].mxu0  ;;  %v2630_v31 = vpack.c.bf16 %v2583_v12, %v2582_v0  ;;  %v2586_v0 = vld [vmem:[#allocation2 + $0x212] sm:$0xff] }
 0x206   :  { %14864 = vst [vmem:[#allocation83_spill] sm:$0xff] %v10180_v52  ;;  %v10186_v18 = vadd.f32 %v1936_v25, %v10024_v33  ;;  %v1938_v20 = vpop.f32.mrb[127].mxu1  ;;  %v10190_v3 = vadd.f32 %v14868_v56, %v1315_v35  ;;  %v1317_v21 = vpop.f32.mrb[113].mxu0  ;;  %v2479_v33 = vld [vmem:[#allocation2 + $0x159] sm:$0xff]  ;;  %v2629_v25 = vpack.c.bf16 %v2581_v10, %v2580_v37  ;;  %v2585_v10 = vld [vmem:[#allocation2 + $0x202] sm:$0xff] }
 0x207   :  { %v1318_v11 = vpop.f32.mrb[114].mxu0  ;;  %v2530_v52 = vpack.c.bf16 %v2479_v33, %v2478_v29  ;;  %v2584_v37 = vld [vmem:[#allocation2 + $0x1fa] sm:$0xff]  ;;  %v2382_v21 = vld [vmem:[#allocation2 + $0x150] sm:$0xff] }
 0x208   :  { %14867 = vst [vmem:[#allocation81_spill] sm:$0xff] %v10186_v18  ;;  %2951 = vmatmul.mubr.bf16.gmra.mrb[232].mxu1 %v2432_v4  ;;  %v14869_v4 = vld [vmem:[#allocation97_spill] sm:$0xff]  ;;  %v1320_v18 = vpop.f32.mrb[115].mxu0 }
 0x209   :  { %2958 = vmatprep.mubr.bf16.mxu1 %v2529_v26  ;;  %v10196_v20 = vadd.f32 %v14869_v4, %v1318_v11  ;;  %v2433_v26 = vpack.c.bf16 %v2381_v38, %v2380_v61  ;;  %v2480_v38 = vld [vmem:[#allocation2 + $0x169] sm:$0xff]  ;;  %v2481_v29 = vld [vmem:[#allocation2 + $0x171] sm:$0xff] }
 0x20a   :  { %8337 = vmatmul.mubr.bf16.gmra.mrb[220].mxu0 %v2629_v25 }
 0x20b   :  { %v1941_v15 = vpop.f32.mrb[128].mxu1  ;;  %14870 = vst [vmem:[#allocation80_spill] sm:$0xff] %v10196_v20  ;;  %8340 = vmatprep.mubr.bf16.mxu0 %v2630_v31  ;;  %v14874_v31 = vld [vmem:[#allocation96_spill] sm:$0xff] }
 0x20c   :  { %v10193_v44 = vadd.f32 %v1941_v15, %v10031_v48  ;;  %v1943_v50 = vpop.f32.mrb[129].mxu1  ;;  %v2587_v48 = vld [vmem:[#allocation2 + $0x21a] sm:$0xff] }
 0x20d   :  { %v1944_v60 = vpop.f32.mrb[130].mxu1  ;;  %v1323_v12 = vpop.f32.mrb[116].mxu0  ;;  %v2383_v15 = vld [vmem:[#allocation2 + $0x158] sm:$0xff]  ;;  %v14872_v50 = vld [vmem:[#allocation93_spill] sm:$0xff]  ;;  %v2632_v25 = vpack.c.bf16 %v2587_v48, %v2586_v0  ;;  %v2590_v0 = vld [vmem:[#allocation2 + $0x242] sm:$0xff] }
 0x20e   :  { %v10199_v35 = vadd.f32 %v1944_v60, %v10037_v19  ;;  %v1946_v56 = vpop.f32.mrb[131].mxu1  ;;  %v10202_v61 = vadd.f32 %v14872_v50, %v1323_v12  ;;  %v1325_v18 = vpop.f32.mrb[117].mxu0  ;;  %v2631_v19 = vpack.c.bf16 %v2585_v10, %v2584_v37  ;;  %v2588_v37 = vld [vmem:[#allocation2 + $0x22a] sm:$0xff]  ;;  %v2589_v10 = vld [vmem:[#allocation2 + $0x232] sm:$0xff] }
 0x20f   :  { %v1326_v33 = vpop.f32.mrb[118].mxu0  ;;  %v2384_v18 = vld [vmem:[#allocation2 + $0x168] sm:$0xff] }
 0x210   :  { %14871 = vst [vmem:[#allocation82_spill] sm:$0xff] %v10199_v35  ;;  %2959 = vmatmul.mubr.bf16.gmra.mrb[236].mxu1 %v2433_v26  ;;  %14873 = vst [vmem:[#allocation85_spill] sm:$0xff] %v10202_v61  ;;  %v10208_v4 = vadd.f32 %v14874_v31, %v1326_v33  ;;  %v1328_v56 = vpop.f32.mrb[119].mxu0  ;;  %v2531_v35 = vpack.c.bf16 %v2481_v29, %v2480_v38  ;;  %v14876_v33 = vld [vmem:[#allocation101_spill] sm:$0xff]  ;;  %v2482_v38 = vld [vmem:[#allocation2 + $0x181] sm:$0xff] }
 0x211   :  { %2966 = vmatprep.mubr.bf16.mxu1 %v2530_v52  ;;  %v2434_v52 = vpack.c.bf16 %v2383_v15, %v2382_v21  ;;  %v2483_v29 = vld [vmem:[#allocation2 + $0x189] sm:$0xff] }
 0x212   :  { %14875 = vst [vmem:[#allocation87_spill] sm:$0xff] %v10208_v4  ;;  %8341 = vmatmul.mubr.bf16.gmra.mrb[224].mxu0 %v2631_v19  ;;  %v2532_v61 = vpack.c.bf16 %v2483_v29, %v2482_v38  ;;  %v2484_v38 = vld [vmem:[#allocation2 + $0x199] sm:$0xff]  ;;  %v2485_v29 = vld [vmem:[#allocation2 + $0x1a1] sm:$0xff] }
 0x213   :  { %v1949_v60 = vpop.f32.mrb[132].mxu1  ;;  %8344 = vmatprep.mubr.bf16.mxu0 %v2632_v25 }
 0x214   :  { %v10205_v11 = vadd.f32 %v1949_v60, %v10044_v23  ;;  %v1951_v26 = vpop.f32.mrb[133].mxu1  ;;  %v2591_v23 = vld [vmem:[#allocation2 + $0x24a] sm:$0xff] }
 0x215   :  { %v1952_v20 = vpop.f32.mrb[134].mxu1  ;;  %v1331_v48 = vpop.f32.mrb[120].mxu0  ;;  %v2385_v60 = vld [vmem:[#allocation2 + $0x170] sm:$0xff]  ;;  %v2634_v19 = vpack.c.bf16 %v2591_v23, %v2590_v0  ;;  %v14878_v26 = vld [vmem:[#allocation103_spill] sm:$0xff] }
 0x216   :  { %v10211_v12 = vadd.f32 %v1952_v20, %v10050_v63  ;;  %v1954_v50 = vpop.f32.mrb[135].mxu1  ;;  %v10214_v21 = vadd.f32 %v14876_v33, %v1331_v48  ;;  %v1333_v15 = vpop.f32.mrb[121].mxu0  ;;  %v2633_v63 = vpack.c.bf16 %v2589_v10, %v2588_v37  ;;  %v2592_v37 = vld [vmem:[#allocation2 + $0x25a] sm:$0xff]  ;;  %v2593_v10 = vld [vmem:[#allocation2 + $0x262] sm:$0xff]  ;;  %v2594_v0 = vld [vmem:[#allocation2 + $0x272] sm:$0xff] }
 0x217   :  { %v1334_v31 = vpop.f32.mrb[122].mxu0  ;;  %v2386_v15 = vld [vmem:[#allocation2 + $0x180] sm:$0xff] }
 0x218   :  { %2967 = vmatmul.mubr.bf16.gmra.mrb[240].mxu1 %v2434_v52  ;;  %14877 = vst [vmem:[#allocation84_spill] sm:$0xff] %v10214_v21  ;;  %v10220_v52 = vadd.f32 %v14878_v26, %v1334_v31  ;;  %v1336_v50 = vpop.f32.mrb[123].mxu0  ;;  %v14880_v31 = vld [vmem:[#allocation99_spill] sm:$0xff]  ;;  %v2533_v21 = vpack.c.bf16 %v2485_v29, %v2484_v38  ;;  %v2487_v38 = vld [vmem:[#allocation2 + $0x1e9] sm:$0xff] }
 0x219   :  { %2974 = vmatprep.mubr.bf16.mxu1 %v2531_v35  ;;  %v2435_v35 = vpack.c.bf16 %v2385_v60, %v2384_v18 }
 0x21a   :  { %14879 = vst [vmem:[#allocation86_spill] sm:$0xff] %v10220_v52  ;;  %8345 = vmatmul.mubr.bf16.gmra.mrb[228].mxu0 %v2633_v63 }
 0x21b   :  { %v1957_v20 = vpop.f32.mrb[136].mxu1  ;;  %8348 = vmatprep.mubr.bf16.mxu0 %v2634_v19 }
 0x21c   :  { %v10217_v25 = vadd.f32 %v1957_v20, %v10056_v40  ;;  %v1959_v56 = vpop.f32.mrb[137].mxu1  ;;  %v2595_v40 = vld [vmem:[#allocation2 + $0x27a] sm:$0xff]  ;;  %v2387_v20 = vld [vmem:[#allocation2 + $0x188] sm:$0xff] }
 0x21d   :  { %v1960_v4 = vpop.f32.mrb[138].mxu1  ;;  %v1339_v23 = vpop.f32.mrb[124].mxu0  ;;  %v2636_v63 = vpack.c.bf16 %v2595_v40, %v2594_v0  ;;  %v14881_v56 = vld [vmem:[#allocation102_spill] sm:$0xff]  ;;  %v2598_v0 = vld [vmem:[#allocation2 + $0x2a2] sm:$0xff] }
 0x21e   :  { %v10223_v48 = vadd.f32 %v1960_v4, %v10062_v39  ;;  %v1962_v33 = vpop.f32.mrb[139].mxu1  ;;  %v10226_v18 = vadd.f32 %v14880_v31, %v1339_v23  ;;  %v1341_v60 = vpop.f32.mrb[125].mxu0  ;;  %v2635_v39 = vpack.c.bf16 %v2593_v10, %v2592_v37  ;;  %v2596_v37 = vld [vmem:[#allocation2 + $0x28a] sm:$0xff]  ;;  %v2597_v10 = vld [vmem:[#allocation2 + $0x292] sm:$0xff] }
 0x21f   :  { %v1342_v26 = vpop.f32.mrb[126].mxu0  ;;  %v2388_v60 = vld [vmem:[#allocation2 + $0x198] sm:$0xff]  ;;  %v2637_v29 = vpack.c.bf16 %v2597_v10, %v2596_v37 }
 0x220   :  { %2975 = vmatmul.mubr.bf16.gmra.mrb[244].mxu1 %v2435_v35  ;;  %v10232_v35 = vadd.f32 %v14881_v56, %v1342_v26  ;;  %v1344_v33 = vpop.f32.mrb[127].mxu0 }
 0x221   :  { %2982 = vmatprep.mubr.bf16.mxu1 %v2532_v61  ;;  %v2436_v61 = vpack.c.bf16 %v2387_v20, %v2386_v15  ;;  %v2486_v20 = vld [vmem:[#allocation2 + $0x1e1] sm:$0xff] }
 0x222   :  { %8349 = vmatmul.mubr.bf16.gmra.mrb[232].mxu0 %v2635_v39 }
 0x223   :  { %v1965_v4 = vpop.f32.mrb[140].mxu1  ;;  %8352 = vmatprep.mubr.bf16.mxu0 %v2636_v63 }
 0x224   :  { %v10229_v19 = vadd.f32 %v1965_v4, %v10068_v2  ;;  %v1967_v50 = vpop.f32.mrb[141].mxu1  ;;  %v2599_v2 = vld [vmem:[#allocation2 + $0x2aa] sm:$0xff] }
 0x225   :  { %v1968_v52 = vpop.f32.mrb[142].mxu1  ;;  %v8230_v40 = vpop.f32.mrb[128].mxu0  ;;  %v2638_v26 = vpack.c.bf16 %v2599_v2, %v2598_v0  ;;  %v2601_v0 = vld [vmem:[#allocation2 + $0x2c2] sm:$0xff]  ;;  %v2603_v2 = vld [vmem:[#allocation2 + $0x2da] sm:$0xff] }
 0x226   :  { %v10235_v23 = vadd.f32 %v1968_v52, %v10074_v14  ;;  %v1970_v31 = vpop.f32.mrb[143].mxu1  ;;  %v10238_v4 = vadd.f32 %v8230_v40, %v9995_v28  ;;  %v2102_v15 = vpop.f32.mrb[129].mxu0  ;;  %v10249_v28 = vld [vmem:[#allocation2 + $0x8] sm:$0xff] }
 0x227   :  { %v10241_v52 = vadd.f32 %v2102_v15, %v9981_v57  ;;  %v8231_v39 = vpop.f32.mrb[130].mxu0  ;;  %v2534_v57 = vpack.c.bf16 %v2487_v38, %v2486_v20  ;;  %v2390_v15 = vld [vmem:[#allocation2 + $0x1e0] sm:$0xff] }
 0x228   :  { %2983 = vmatmul.mubr.bf16.gmra.mrb[248].mxu1 %v2436_v61  ;;  %v2105_v50 = vpop.f32.mrb[131].mxu0  ;;  %v2437_v61 = vpack.c.bf16 %v10249_v28, %v2388_v60  ;;  %v2391_v60 = vld [vmem:[#allocation2 + $0x1e8] sm:$0xff]  ;;  %v2488_v20 = vld [vmem:[#allocation2 + $0x1f9] sm:$0xff] }
 0x229   :  { %2990 = vmatprep.mubr.bf16.mxu1 %v2533_v21  ;;  %v10247_v21 = vadd.f32 %v8231_v39, %v10001_v34  ;;  %v10253_v31 = vadd.f32 %v2105_v50, %v9987_v51  ;;  %v2602_v34 = vld [vmem:[#allocation2 + $0x2d2] sm:$0xff]  ;;  %v2489_v38 = vld [vmem:[#allocation2 + $0x201] sm:$0xff] }
 0x22a   :  { %8353 = vmatmul.mubr.bf16.gmra.mrb[236].mxu0 %v2637_v29 }
 0x22b   :  { %v1973_v14 = vpop.f32.mrb[144].mxu1  ;;  %8356 = vmatprep.mubr.bf16.mxu0 %v2638_v26 }
 0x22c   :  { %v10244_v63 = vadd.f32 %v1973_v14, %v10080_v42  ;;  %v1975_v56 = vpop.f32.mrb[145].mxu1  ;;  %v2600_v42 = vld [vmem:[#allocation2 + $0x2ba] sm:$0xff] }
 0x22d   :  { %v1976_v33 = vpop.f32.mrb[146].mxu1  ;;  %v8234_v40 = vpop.f32.mrb[132].mxu0  ;;  %v2640_v56 = vpack.c.bf16 %v2603_v2, %v2602_v34  ;;  %v2604_v34 = vld [vmem:[#allocation2 + $0x2ea] sm:$0xff]  ;;  %v2606_v2 = vld [vmem:[#allocation2 + $0x302] sm:$0xff] }
 0x22e   :  { %v10256_v37 = vadd.f32 %v1976_v33, %v10086_v30  ;;  %v1978_v10 = vpop.f32.mrb[147].mxu1  ;;  %v10259_v14 = vadd.f32 %v8234_v40, %v10021_v58  ;;  %v2118_v51 = vpop.f32.mrb[133].mxu0  ;;  %v2639_v30 = vpack.c.bf16 %v2601_v0, %v2600_v42  ;;  %v2438_v58 = vpack.c.bf16 %v2391_v60, %v2390_v15  ;;  %v2393_v15 = vld [vmem:[#allocation2 + $0x200] sm:$0xff] }
 0x22f   :  { %v10262_v29 = vadd.f32 %v2118_v51, %v10008_v13  ;;  %v8235_v26 = vpop.f32.mrb[134].mxu0  ;;  %v2535_v42 = vpack.c.bf16 %v2489_v38, %v2488_v20  ;;  %v2607_v51 = vld [vmem:[#allocation2 + $0x30a] sm:$0xff]  ;;  %v2491_v38 = vld [vmem:[#allocation2 + $0x219] sm:$0xff] }
 0x230   :  { %2991 = vmatmul.mubr.bf16.gmra.mrb[252].mxu1 %v2437_v61  ;;  %v10268_v33 = vadd.f32 %v8235_v26, %v10027_v47  ;;  %v2490_v20 = vld [vmem:[#allocation2 + $0x211] sm:$0xff] }
 0x231   :  { %2998 = vmatprep.mubr.bf16.mxu1 %v2534_v57  ;;  %v2121_v57 = vpop.f32.mrb[135].mxu0 }
 0x232   :  { %14882 = vst [vmem:[#allocation92_spill] sm:$0xff] %v10268_v33  ;;  %v10271_v40 = vadd.f32 %v2121_v57, %v10014_v5  ;;  %8357 = vmatmul.mubr.bf16.gmra.mrb[240].mxu0 %v2639_v30  ;;  %v2642_v57 = vpack.c.bf16 %v2607_v51, %v2606_v2  ;;  %v2608_v2 = vld [vmem:[#allocation2 + $0x31a] sm:$0xff]  ;;  %v2610_v51 = vld [vmem:[#allocation2 + $0x332] sm:$0xff] }
 0x233   :  { %v1981_v39 = vpop.f32.mrb[148].mxu1  ;;  %8360 = vmatprep.mubr.bf16.mxu0 %v2640_v56 }
 0x234   :  { %v10265_v50 = vadd.f32 %v1981_v39, %v10093_v46  ;;  %v1983_v61 = vpop.f32.mrb[149].mxu1  ;;  %14883 = vst [vmem:[#allocation94_spill] sm:$0xff] %v10271_v40  ;;  %v2605_v46 = vld [vmem:[#allocation2 + $0x2f2] sm:$0xff] }
 0x235   :  { %v1984_v10 = vpop.f32.mrb[150].mxu1  ;;  %v8238_v47 = vpop.f32.mrb[136].mxu0  ;;  %v2392_v39 = vld [vmem:[#allocation2 + $0x1f8] sm:$0xff]  ;;  %v14885_v61 = vld [vmem:[#allocation65_spill] sm:$0xff] }
 0x236   :  { %v10274_v0 = vadd.f32 %v1984_v10, %v10099_v53  ;;  %v1986_v13 = vpop.f32.mrb[151].mxu1  ;;  %v10277_v60 = vadd.f32 %v8238_v47, %v10047_v27  ;;  %v2134_v5 = vpop.f32.mrb[137].mxu0  ;;  %v2641_v53 = vpack.c.bf16 %v2605_v46, %v2604_v34  ;;  %v2439_v27 = vpack.c.bf16 %v2393_v15, %v2392_v39  ;;  %v2395_v39 = vld [vmem:[#allocation2 + $0x218] sm:$0xff] }
 0x237   :  { %v10280_v30 = vadd.f32 %v2134_v5, %v14885_v61  ;;  %v8239_v56 = vpop.f32.mrb[138].mxu0  ;;  %v2536_v34 = vpack.c.bf16 %v2491_v38, %v2490_v20  ;;  %v2493_v20 = vld [vmem:[#allocation2 + $0x231] sm:$0xff] }
 0x238   :  { %2999 = vmatmul.mubr.bf16.gmra.mrb[0].mxu1 %v2438_v58  ;;  %14884 = vst [vmem:[#allocation89_spill] sm:$0xff] %v10277_v60  ;;  %v2137_v40 = vpop.f32.mrb[139].mxu0  ;;  %v14887_v60 = vld [vmem:[#allocation104_spill] sm:$0xff] }
 0x239   :  { %3006 = vmatprep.mubr.bf16.mxu1 %v2535_v42  ;;  %v14886_v42 = vld [vmem:[#allocation66_spill] sm:$0xff]  ;;  %v10289_v33 = vadd.f32 %v2137_v40, %v14887_v60  ;;  %v2492_v60 = vld [vmem:[#allocation2 + $0x229] sm:$0xff] }
 0x23a   :  { %v10286_v13 = vadd.f32 %v8239_v56, %v14886_v42  ;;  %8361 = vmatmul.mubr.bf16.gmra.mrb[244].mxu0 %v2641_v53  ;;  %v2394_v56 = vld [vmem:[#allocation2 + $0x210] sm:$0xff] }
 0x23b   :  { %v1989_v26 = vpop.f32.mrb[152].mxu1  ;;  %14888 = vst [vmem:[#allocation91_spill] sm:$0xff] %v10289_v33  ;;  %8364 = vmatprep.mubr.bf16.mxu0 %v2642_v57 }
 0x23c   :  { %v10283_v58 = vadd.f32 %v1989_v26, %v10107_v1  ;;  %v1991_v10 = vpop.f32.mrb[153].mxu1  ;;  %v2609_v1 = vld [vmem:[#allocation2 + $0x322] sm:$0xff]  ;;  %v2611_v26 = vld [vmem:[#allocation2 + $0x33a] sm:$0xff] }
 0x23d   :  { %v1992_v47 = vpop.f32.mrb[154].mxu1  ;;  %v8242_v61 = vpop.f32.mrb[140].mxu0  ;;  %v14890_v10 = vld [vmem:[#allocation69_spill] sm:$0xff]  ;;  %v2644_v42 = vpack.c.bf16 %v2611_v26, %v2610_v51 }
 0x23e   :  { %v10292_v46 = vadd.f32 %v1992_v47, %v10113_v45  ;;  %v1994_v5 = vpop.f32.mrb[155].mxu1  ;;  %v10295_v15 = vadd.f32 %v8242_v61, %v10071_v59  ;;  %v2150_v40 = vpop.f32.mrb[141].mxu0  ;;  %v2643_v45 = vpack.c.bf16 %v2609_v1, %v2608_v2  ;;  %v2440_v59 = vpack.c.bf16 %v2395_v39, %v2394_v56  ;;  %v2612_v51 = vld [vmem:[#allocation2 + $0x34a] sm:$0xff] }
 0x23f   :  { %v10298_v53 = vadd.f32 %v2150_v40, %v14890_v10  ;;  %v8243_v57 = vpop.f32.mrb[142].mxu0  ;;  %v2537_v2 = vpack.c.bf16 %v2493_v20, %v2492_v60  ;;  %v2495_v10 = vld [vmem:[#allocation2 + $0x249] sm:$0xff] }
 0x240   :  { %3007 = vmatmul.mubr.bf16.gmra.mrb[4].mxu1 %v2439_v27  ;;  %14889 = vst [vmem:[#allocation98_spill] sm:$0xff] %v10295_v15  ;;  %v2153_v5 = vpop.f32.mrb[143].mxu0  ;;  %v14891_v15 = vld [vmem:[#allocation73_spill] sm:$0xff] }
 0x241   :  { %3014 = vmatprep.mubr.bf16.mxu1 %v2536_v34  ;;  %v10304_v34 = vadd.f32 %v8243_v57, %v10077_v55  ;;  %v10307_v33 = vadd.f32 %v2153_v5, %v14891_v15  ;;  %v2396_v55 = vld [vmem:[#allocation2 + $0x228] sm:$0xff] }
 0x242   :  { %8365 = vmatmul.mubr.bf16.gmra.mrb[248].mxu0 %v2643_v45  ;;  %v2494_v15 = vld [vmem:[#allocation2 + $0x241] sm:$0xff] }
 0x243   :  { %v1997_v38 = vpop.f32.mrb[156].mxu1  ;;  %8368 = vmatprep.mubr.bf16.mxu0 %v2644_v42 }
 0x244   :  { %v10301_v27 = vadd.f32 %v1997_v38, %v10121_v54  ;;  %v1999_v47 = vpop.f32.mrb[157].mxu1  ;;  %v2613_v54 = vld [vmem:[#allocation2 + $0x352] sm:$0xff] }
 0x245   :  { %v2000_v61 = vpop.f32.mrb[158].mxu1  ;;  %v8246_v26 = vpop.f32.mrb[144].mxu0  ;;  %v2397_v38 = vld [vmem:[#allocation2 + $0x230] sm:$0xff]  ;;  %v2645_v60 = vpack.c.bf16 %v2613_v54, %v2612_v51  ;;  %v2399_v54 = vld [vmem:[#allocation2 + $0x248] sm:$0xff] }
 0x246   :  { %v10310_v1 = vadd.f32 %v2000_v61, %v10127_v16  ;;  %v2002_v40 = vpop.f32.mrb[159].mxu1  ;;  %v10313_v56 = vadd.f32 %v8246_v26, %v10096_v7  ;;  %v2166_v39 = vpop.f32.mrb[145].mxu0 }
 0x247   :  { %v10316_v16 = vadd.f32 %v2166_v39, %v10083_v41  ;;  %v8247_v45 = vpop.f32.mrb[146].mxu0 }
 0x248   :  { %3015 = vmatmul.mubr.bf16.gmra.mrb[8].mxu1 %v2440_v59  ;;  %v10322_v47 = vadd.f32 %v8247_v45, %v10102_v24  ;;  %v2169_v5 = vpop.f32.mrb[147].mxu0  ;;  %v2441_v59 = vpack.c.bf16 %v2397_v38, %v2396_v55  ;;  %v2496_v55 = vld [vmem:[#allocation2 + $0x259] sm:$0xff]  ;;  %v2497_v38 = vld [vmem:[#allocation2 + $0x261] sm:$0xff] }
 0x249   :  { %3022 = vmatprep.mubr.bf16.mxu1 %v2537_v2  ;;  %v10325_v61 = vadd.f32 %v2169_v5, %v10089_v8  ;;  %v2538_v2 = vpack.c.bf16 %v2495_v10, %v2494_v15 }
 0x24a   :  { %8369 = vmatmul.mubr.bf16.gmra.mrb[252].mxu0 %v2645_v60 }
 0x24b   :  { %v2005_v20 = vpop.f32.mrb[160].mxu1 }
 0x24c   :  { %v10319_v57 = vadd.f32 %v2005_v20, %v10135_v17  ;;  %v2007_v42 = vpop.f32.mrb[161].mxu1  ;;  %v2398_v17 = vld [vmem:[#allocation2 + $0x240] sm:$0xff] }
 0x24d   :  { %v2008_v7 = vpop.f32.mrb[162].mxu1  ;;  %v8250_v51 = vpop.f32.mrb[148].mxu0  ;;  %v2442_v45 = vpack.c.bf16 %v2399_v54, %v2398_v17  ;;  %v2499_v17 = vld [vmem:[#allocation2 + $0x279] sm:$0xff] }
 0x24e   :  { %v10328_v40 = vadd.f32 %v2008_v7, %v10141_v9  ;;  %v2010_v41 = vpop.f32.mrb[163].mxu1  ;;  %v10331_v24 = vadd.f32 %v8250_v51, %v10124_v62  ;;  %v2182_v26 = vpop.f32.mrb[149].mxu0  ;;  %v14894_v62 = vld [vmem:[#allocation70_spill] sm:$0xff] }
 0x24f   :  { %v10334_v8 = vadd.f32 %v2182_v26, %v10110_v49  ;;  %v8251_v15 = vpop.f32.mrb[150].mxu0  ;;  %v2401_v41 = vld [vmem:[#allocation2 + $0x260] sm:$0xff]  ;;  %v2498_v26 = vld [vmem:[#allocation2 + $0x271] sm:$0xff] }
 0x250   :  { %3023 = vmatmul.mubr.bf16.gmra.mrb[12].mxu1 %v2441_v59  ;;  %14892 = vst [vmem:[#allocation100_spill] sm:$0xff] %v10331_v24  ;;  %v10340_v60 = vadd.f32 %v8251_v15, %v10130_v32  ;;  %v2185_v20 = vpop.f32.mrb[151].mxu0  ;;  %v2539_v59 = vpack.c.bf16 %v2497_v38, %v2496_v55  ;;  %v14897_v38 = vld [vmem:[#allocation71_spill] sm:$0xff] }
 0x251   :  { %3030 = vmatprep.mubr.bf16.mxu1 %v2538_v2  ;;  %v10343_v5 = vadd.f32 %v2185_v20, %v14894_v62 }
 0x252   :  { %14893 = vst [vmem:[#allocation88_spill] sm:$0xff] %v10340_v60  ;;  %v14910_v60 = vld [vmem:[#allocation79_spill] sm:$0xff] }
 0x253   :  { %v2013_v39 = vpop.f32.mrb[164].mxu1 }
 0x254   :  { %v10337_v9 = vadd.f32 %v2013_v39, %v10149_v22  ;;  %v2015_v10 = vpop.f32.mrb[165].mxu1  ;;  %v2400_v22 = vld [vmem:[#allocation2 + $0x258] sm:$0xff] }
 0x255   :  { %v2016_v42 = vpop.f32.mrb[166].mxu1  ;;  %v8254_v2 = vpop.f32.mrb[152].mxu0  ;;  %v14898_v10 = vld [vmem:[#allocation78_spill] sm:$0xff] }
 0x256   :  { %v10346_v7 = vadd.f32 %v2016_v42, %v10155_v43  ;;  %v2018_v49 = vpop.f32.mrb[167].mxu1  ;;  %v10349_v51 = vadd.f32 %v8254_v2, %v10152_v36  ;;  %v2198_v32 = vpop.f32.mrb[153].mxu0  ;;  %v2443_v42 = vpack.c.bf16 %v2401_v41, %v2400_v22  ;;  %v14900_v36 = vld [vmem:[#allocation72_spill] sm:$0xff]  ;;  %v14902_v2 = vld [vmem:[#allocation77_spill] sm:$0xff] }
 0x257   :  { %v10352_v39 = vadd.f32 %v2198_v32, %v10138_v6  ;;  %v8255_v55 = vpop.f32.mrb[154].mxu0  ;;  %v2540_v49 = vpack.c.bf16 %v2499_v17, %v2498_v26  ;;  %v2501_v22 = vld [vmem:[#allocation2 + $0x291] sm:$0xff]  ;;  %v14906_v17 = vld [vmem:[#allocation76_spill] sm:$0xff] }
 0x258   :  { %3031 = vmatmul.mubr.bf16.gmra.mrb[16].mxu1 %v2442_v45  ;;  %14895 = vst [vmem:[#allocation90_spill] sm:$0xff] %v10349_v51  ;;  %v10358_v20 = vadd.f32 %v8255_v55, %v14898_v10  ;;  %v2201_v45 = vpop.f32.mrb[155].mxu0  ;;  %v2500_v10 = vld [vmem:[#allocation2 + $0x289] sm:$0xff] }
 0x259   :  { %3038 = vmatprep.mubr.bf16.mxu1 %v2539_v59  ;;  %14896 = vst [vmem:[#allocation95_spill] sm:$0xff] %v10352_v39  ;;  %v10361_v59 = vadd.f32 %v2201_v45, %v14900_v36 }
 0x25a   :  { %14899 = vst [vmem:[#allocation97_spill] sm:$0xff] %v10358_v20  ;;  %v14905_v20 = vld [vmem:[#allocation75_spill] sm:$0xff] }
 0x25b   :  { %v2021_v54 = vpop.f32.mrb[168].mxu1  ;;  %14901 = vst [vmem:[#allocation93_spill] sm:$0xff] %v10361_v59 }
 0x25c   :  { %v10355_v43 = vadd.f32 %v2021_v54, %v14897_v38  ;;  %v2023_v15 = vpop.f32.mrb[169].mxu1  ;;  %v2402_v54 = vld [vmem:[#allocation2 + $0x270] sm:$0xff]  ;;  %v2403_v38 = vld [vmem:[#allocation2 + $0x278] sm:$0xff] }
 0x25d   :  { %v2024_v62 = vpop.f32.mrb[170].mxu1  ;;  %v8258_v32 = vpop.f32.mrb[156].mxu0  ;;  %v14903_v15 = vld [vmem:[#allocation83_spill] sm:$0xff] }
 0x25e   :  { %v10364_v51 = vadd.f32 %v2024_v62, %v14902_v2  ;;  %v2026_v6 = vpop.f32.mrb[171].mxu1  ;;  %v10367_v39 = vadd.f32 %v8258_v32, %v14903_v15  ;;  %v2214_v55 = vpop.f32.mrb[157].mxu0  ;;  %v14909_v32 = vld [vmem:[#allocation74_spill] sm:$0xff] }
 0x25f   :  { %v10370_v45 = vadd.f32 %v2214_v55, %v14905_v20  ;;  %v8259_v26 = vpop.f32.mrb[158].mxu0  ;;  %v2444_v6 = vpack.c.bf16 %v2403_v38, %v2402_v54  ;;  %v2503_v54 = vld [vmem:[#allocation2 + $0x2a9] sm:$0xff] }
 0x260   :  { %3039 = vmatmul.mubr.bf16.gmra.mrb[20].mxu1 %v2443_v42  ;;  %14904 = vst [vmem:[#allocation96_spill] sm:$0xff] %v10367_v39  ;;  %v14907_v42 = vld [vmem:[#allocation81_spill] sm:$0xff]  ;;  %v2541_v39 = vpack.c.bf16 %v2501_v22, %v2500_v10 }
 0x261   :  { %3046 = vmatprep.mubr.bf16.mxu1 %v2540_v49  ;;  %v10376_v2 = vadd.f32 %v8259_v26, %v14907_v42  ;;  %v2217_v49 = vpop.f32.mrb[159].mxu0  ;;  %v2502_v42 = vld [vmem:[#allocation2 + $0x2a1] sm:$0xff] }
 0x262   :  { %v10379_v15 = vadd.f32 %v2217_v49, %v14909_v32 }
 0x263   :  { %v2029_v41 = vpop.f32.mrb[172].mxu1  ;;  %14908 = vst [vmem:[#allocation101_spill] sm:$0xff] %v10376_v2 }
 0x264   :  { %v10373_v62 = vadd.f32 %v2029_v41, %v14906_v17  ;;  %v2031_v36 = vpop.f32.mrb[173].mxu1  ;;  %v2404_v41 = vld [vmem:[#allocation2 + $0x288] sm:$0xff]  ;;  %v2405_v17 = vld [vmem:[#allocation2 + $0x290] sm:$0xff] }
 0x265   :  { %v2032_v59 = vpop.f32.mrb[174].mxu1  ;;  %v8262_v55 = vpop.f32.mrb[160].mxu0 }
 0x266   :  { %v10382_v24 = vadd.f32 %v2032_v59, %v14910_v60  ;;  %v2034_v20 = vpop.f32.mrb[175].mxu1  ;;  %v10385_v36 = vadd.f32 %v8262_v55, %v10205_v11  ;;  %v2230_v26 = vpop.f32.mrb[161].mxu0  ;;  %v14913_v11 = vld [vmem:[#allocation82_spill] sm:$0xff]  ;;  %v2542_v55 = vpack.c.bf16 %v2503_v54, %v2502_v42  ;;  %v14916_v54 = vld [vmem:[#allocation85_spill] sm:$0xff] }
 0x267   :  { %v10388_v49 = vadd.f32 %v2230_v26, %v10193_v44  ;;  %v8263_v10 = vpop.f32.mrb[162].mxu0 }
 0x268   :  { %3047 = vmatmul.mubr.bf16.gmra.mrb[24].mxu1 %v2444_v6  ;;  %14911 = vst [vmem:[#allocation103_spill] sm:$0xff] %v10385_v36  ;;  %v10394_v22 = vadd.f32 %v8263_v10, %v10211_v12  ;;  %v2445_v6 = vpack.c.bf16 %v2405_v17, %v2404_v41  ;;  %v14914_v36 = vld [vmem:[#allocation80_spill] sm:$0xff]  ;;  %v2504_v10 = vld [vmem:[#allocation2 + $0x2b9] sm:$0xff] }
 0x269   :  { %3054 = vmatprep.mubr.bf16.mxu1 %v2541_v39  ;;  %v2233_v39 = vpop.f32.mrb[163].mxu0  ;;  %v2505_v41 = vld [vmem:[#allocation2 + $0x2c1] sm:$0xff] }
 0x26a   :  { %14912 = vst [vmem:[#allocation99_spill] sm:$0xff] %v10394_v22  ;;  %v10397_v20 = vadd.f32 %v2233_v39, %v14913_v11 }
 0x26b   :  { %v2037_v38 = vpop.f32.mrb[176].mxu1 }
 0x26c   :  { %v10391_v60 = vadd.f32 %v2037_v38, %v10190_v3  ;;  %v2039_v59 = vpop.f32.mrb[177].mxu1  ;;  %v2406_v3 = vld [vmem:[#allocation2 + $0x2a0] sm:$0xff]  ;;  %v2407_v38 = vld [vmem:[#allocation2 + $0x2a8] sm:$0xff] }
 0x26d   :  { %v2040_v32 = vpop.f32.mrb[178].mxu1  ;;  %v8266_v26 = vpop.f32.mrb[164].mxu0 }
 0x26e   :  { %v10400_v2 = vadd.f32 %v2040_v32, %v14914_v36  ;;  %v2042_v44 = vpop.f32.mrb[179].mxu1  ;;  %v10403_v59 = vadd.f32 %v8266_v26, %v10229_v19  ;;  %v2246_v12 = vpop.f32.mrb[165].mxu0  ;;  %v2543_v26 = vpack.c.bf16 %v2505_v41, %v2504_v10  ;;  %v14920_v41 = vld [vmem:[#allocation84_spill] sm:$0xff] }
 0x26f   :  { %v10406_v39 = vadd.f32 %v2246_v12, %v10217_v25  ;;  %v8267_v42 = vpop.f32.mrb[166].mxu0 }
 0x270   :  { %3055 = vmatmul.mubr.bf16.gmra.mrb[28].mxu1 %v2445_v6  ;;  %14915 = vst [vmem:[#allocation102_spill] sm:$0xff] %v10403_v59  ;;  %v10412_v6 = vadd.f32 %v8267_v42, %v10235_v23  ;;  %v2249_v11 = vpop.f32.mrb[167].mxu0  ;;  %v14918_v59 = vld [vmem:[#allocation87_spill] sm:$0xff]  ;;  %v2506_v42 = vld [vmem:[#allocation2 + $0x2d1] sm:$0xff] }
 0x271   :  { %3062 = vmatprep.mubr.bf16.mxu1 %v2542_v55  ;;  %v2446_v55 = vpack.c.bf16 %v2407_v38, %v2406_v3  ;;  %v10415_v19 = vadd.f32 %v2249_v11, %v10223_v48  ;;  %v2507_v3 = vld [vmem:[#allocation2 + $0x2d9] sm:$0xff] }
 0x272   :  { %14917 = vst [vmem:[#allocation65_spill] sm:$0xff] %v10412_v6 }
 0x273   :  { %v2045_v17 = vpop.f32.mrb[180].mxu1 }
 0x274   :  { %v10409_v36 = vadd.f32 %v2045_v17, %v14916_v54  ;;  %v2047_v32 = vpop.f32.mrb[181].mxu1  ;;  %v2408_v17 = vld [vmem:[#allocation2 + $0x2b8] sm:$0xff]  ;;  %v2409_v54 = vld [vmem:[#allocation2 + $0x2c0] sm:$0xff] }
 0x275   :  { %v2048_v44 = vpop.f32.mrb[182].mxu1  ;;  %v8270_v12 = vpop.f32.mrb[168].mxu0 }
 0x276   :  { %v10418_v22 = vadd.f32 %v2048_v44, %v14918_v59  ;;  %v2050_v25 = vpop.f32.mrb[183].mxu1  ;;  %v10421_v32 = vadd.f32 %v8270_v12, %v10265_v50  ;;  %v2262_v23 = vpop.f32.mrb[169].mxu0  ;;  %v2544_v12 = vpack.c.bf16 %v2507_v3, %v2506_v42 }
 0x277   :  { %v10424_v48 = vadd.f32 %v2262_v23, %v10244_v63  ;;  %v8271_v10 = vpop.f32.mrb[170].mxu0 }
 0x278   :  { %3063 = vmatmul.mubr.bf16.gmra.mrb[32].mxu1 %v2446_v55  ;;  %14919 = vst [vmem:[#allocation66_spill] sm:$0xff] %v10421_v32  ;;  %v10430_v55 = vadd.f32 %v8271_v10, %v10274_v0  ;;  %v2265_v44 = vpop.f32.mrb[171].mxu0  ;;  %v14921_v32 = vld [vmem:[#allocation86_spill] sm:$0xff]  ;;  %v2508_v10 = vld [vmem:[#allocation2 + $0x2e9] sm:$0xff] }
 0x279   :  { %3070 = vmatprep.mubr.bf16.mxu1 %v2543_v26  ;;  %v2447_v26 = vpack.c.bf16 %v2409_v54, %v2408_v17  ;;  %v10433_v50 = vadd.f32 %v2265_v44, %v10256_v37  ;;  %v2509_v17 = vld [vmem:[#allocation2 + $0x2f1] sm:$0xff] }
 0x27b   :  { %v2053_v38 = vpop.f32.mrb[184].mxu1 }
 0x27c   :  { %v10427_v59 = vadd.f32 %v2053_v38, %v14920_v41  ;;  %v2055_v11 = vpop.f32.mrb[185].mxu1  ;;  %v2410_v38 = vld [vmem:[#allocation2 + $0x2d0] sm:$0xff]  ;;  %v2411_v41 = vld [vmem:[#allocation2 + $0x2d8] sm:$0xff] }
 0x27d   :  { %v2056_v25 = vpop.f32.mrb[186].mxu1  ;;  %v8274_v23 = vpop.f32.mrb[172].mxu0 }
 0x27e   :  { %v10436_v6 = vadd.f32 %v2056_v25, %v14921_v32  ;;  %v2058_v63 = vpop.f32.mrb[187].mxu1  ;;  %v10439_v11 = vadd.f32 %v8274_v23, %v10301_v27  ;;  %v2278_v0 = vpop.f32.mrb[173].mxu0  ;;  %v2448_v25 = vpack.c.bf16 %v2411_v41, %v2410_v38  ;;  %v2511_v38 = vld [vmem:[#allocation2 + $0x309] sm:$0xff] }
 0x27f   :  { %v10442_v37 = vadd.f32 %v2278_v0, %v10283_v58  ;;  %v8275_v42 = vpop.f32.mrb[174].mxu0  ;;  %v2545_v63 = vpack.c.bf16 %v2509_v17, %v2508_v10 }
 0x280   :  { %3071 = vmatmul.mubr.bf16.gmra.mrb[36].mxu1 %v2447_v26  ;;  %v10448_v44 = vadd.f32 %v8275_v42, %v10310_v1  ;;  %v2281_v26 = vpop.f32.mrb[175].mxu0  ;;  %v2510_v42 = vld [vmem:[#allocation2 + $0x301] sm:$0xff] }
 0x281   :  { %3078 = vmatprep.mubr.bf16.mxu1 %v2544_v12  ;;  %v10451_v27 = vadd.f32 %v2281_v26, %v10292_v46 }
 0x283   :  { %v2061_v54 = vpop.f32.mrb[188].mxu1 }
 0x284   :  { %v10445_v32 = vadd.f32 %v2061_v54, %v10226_v18  ;;  %v2063_v3 = vpop.f32.mrb[189].mxu1  ;;  %v2412_v18 = vld [vmem:[#allocation2 + $0x2e8] sm:$0xff]  ;;  %v2413_v54 = vld [vmem:[#allocation2 + $0x2f0] sm:$0xff] }
 0x285   :  { %v2064_v12 = vpop.f32.mrb[190].mxu1  ;;  %v8278_v0 = vpop.f32.mrb[176].mxu0 }
 0x286   :  { %v10454_v23 = vadd.f32 %v2064_v12, %v10232_v35  ;;  %v2066_v58 = vpop.f32.mrb[191].mxu1  ;;  %v10457_v3 = vadd.f32 %v8278_v0, %v10337_v9  ;;  %v2294_v1 = vpop.f32.mrb[177].mxu0 }
 0x287   :  { %v10460_v41 = vadd.f32 %v2294_v1, %v10319_v57  ;;  %v8279_v10 = vpop.f32.mrb[178].mxu0  ;;  %v2414_v57 = vld [vmem:[#allocation2 + $0x300] sm:$0xff]  ;;  %v2415_v1 = vld [vmem:[#allocation2 + $0x308] sm:$0xff] }
 0x288   :  { %3079 = vmatmul.mubr.bf16.gmra.mrb[40].mxu1 %v2448_v25  ;;  %14922 = vst [vmem:[#allocation104_spill] sm:$0xff] %v10457_v3  ;;  %v10465_v35 = vadd.f32 %v8279_v10, %v10346_v7  ;;  %v2297_v26 = vpop.f32.mrb[179].mxu0  ;;  %v2449_v25 = vpack.c.bf16 %v2413_v54, %v2412_v18  ;;  %v2512_v10 = vld [vmem:[#allocation2 + $0x319] sm:$0xff] }
 0x289   :  { %3086 = vmatprep.mubr.bf16.mxu1 %v2545_v63  ;;  %v10468_v12 = vadd.f32 %v2297_v26, %v10328_v40  ;;  %v2546_v63 = vpack.c.bf16 %v2511_v38, %v2510_v42 }
 0x28a   :  { %14923 = vst [vmem:[#allocation69_spill] sm:$0xff] %v10465_v35  ;;  %v2416_v35 = vld [vmem:[#allocation2 + $0x318] sm:$0xff] }
 0x28b   :  { %v10462_v46 = vpop.f32.mrb[192].mxu1 }
 0x28c   :  { %v2874_v17 = vpop.f32.mrb[193].mxu1 }
 0x28d   :  { %v10470_v9 = vpop.f32.mrb[194].mxu1  ;;  %v8282_v0 = vpop.f32.mrb[180].mxu0  ;;  %v2513_v17 = vld [vmem:[#allocation2 + $0x321] sm:$0xff] }
 0x28e   :  { %v2877_v58 = vpop.f32.mrb[195].mxu1  ;;  %v10473_v3 = vadd.f32 %v8282_v0, %v10373_v62  ;;  %v2310_v7 = vpop.f32.mrb[181].mxu0  ;;  %v2547_v62 = vpack.c.bf16 %v2513_v17, %v2512_v10 }
 0x28f   :  { %v10476_v18 = vadd.f32 %v2310_v7, %v10355_v43  ;;  %v8283_v54 = vpop.f32.mrb[182].mxu0  ;;  %v2417_v43 = vld [vmem:[#allocation2 + $0x320] sm:$0xff] }
 0x290   :  { %3087 = vmatmul.mubr.bf16.gmra.mrb[44].mxu1 %v2449_v25  ;;  %14924 = vst [vmem:[#allocation73_spill] sm:$0xff] %v10473_v3  ;;  %v10479_v26 = vadd.f32 %v8283_v54, %v10382_v24  ;;  %v2313_v38 = vpop.f32.mrb[183].mxu0  ;;  %v2450_v25 = vpack.c.bf16 %v2415_v1, %v2414_v57  ;;  %v2514_v24 = vld [vmem:[#allocation2 + $0x331] sm:$0xff]  ;;  %v2515_v54 = vld [vmem:[#allocation2 + $0x339] sm:$0xff] }
 0x291   :  { %3094 = vmatprep.mubr.bf16.mxu1 %v2546_v63  ;;  %14925 = vst [vmem:[#allocation70_spill] sm:$0xff] %v10476_v18  ;;  %v10482_v63 = vadd.f32 %v2313_v38, %v10364_v51  ;;  %v2451_v38 = vpack.c.bf16 %v2417_v43, %v2416_v35 }
 0x293   :  { %v2880_v40 = vpop.f32.mrb[196].mxu1 }
 0x294   :  { %v2882_v42 = vpop.f32.mrb[197].mxu1 }
 0x295   :  { %v2883_v58 = vpop.f32.mrb[198].mxu1  ;;  %v8286_v3 = vpop.f32.mrb[184].mxu0 }
 0x296   :  { %v2885_v0 = vpop.f32.mrb[199].mxu1  ;;  %v10485_v7 = vadd.f32 %v8286_v3, %v10409_v36  ;;  %v2326_v18 = vpop.f32.mrb[185].mxu0  ;;  %v2548_v36 = vpack.c.bf16 %v2515_v54, %v2514_v24 }
 0x297   :  { %v10488_v42 = vadd.f32 %v2326_v18, %v10391_v60  ;;  %v8287_v51 = vpop.f32.mrb[186].mxu0  ;;  %v2419_v60 = vld [vmem:[#allocation2 + $0x338] sm:$0xff] }
 0x298   :  { %3095 = vmatmul.mubr.bf16.gmra.mrb[48].mxu1 %v2450_v25  ;;  %14926 = vst [vmem:[#allocation71_spill] sm:$0xff] %v10485_v7  ;;  %v10491_v1 = vadd.f32 %v8287_v51, %v10418_v22  ;;  %v2329_v17 = vpop.f32.mrb[187].mxu0  ;;  %v2418_v7 = vld [vmem:[#allocation2 + $0x330] sm:$0xff] }
 0x299   :  { %3102 = vmatprep.mubr.bf16.mxu1 %v2547_v62  ;;  %14927 = vst [vmem:[#allocation78_spill] sm:$0xff] %v10488_v42  ;;  %v10494_v25 = vadd.f32 %v2329_v17, %v10400_v2  ;;  %v2516_v22 = vld [vmem:[#allocation2 + $0x349] sm:$0xff]  ;;  %v2517_v51 = vld [vmem:[#allocation2 + $0x351] sm:$0xff]  ;;  %v2452_v17 = vpack.c.bf16 %v2419_v60, %v2418_v7 }
 0x29a   :  { %14928 = vst [vmem:[#allocation72_spill] sm:$0xff] %v10491_v1 }
 0x29b   :  { %v2888_v57 = vpop.f32.mrb[200].mxu1 }
 0x29c   :  { %v2890_v10 = vpop.f32.mrb[201].mxu1 }
 0x29d   :  { %v2891_v62 = vpop.f32.mrb[202].mxu1  ;;  %v8290_v0 = vpop.f32.mrb[188].mxu0 }
 0x29e   :  { %v2893_v3 = vpop.f32.mrb[203].mxu1  ;;  %v10497_v18 = vadd.f32 %v8290_v0, %v10445_v32  ;;  %v2342_v42 = vpop.f32.mrb[189].mxu0  ;;  %v2549_v32 = vpack.c.bf16 %v2517_v51, %v2516_v22 }
 0x29f   :  { %v10500_v10 = vadd.f32 %v2342_v42, %v10427_v59  ;;  %v8291_v2 = vpop.f32.mrb[190].mxu0 }
 0x2a0   :  { %3103 = vmatmul.mubr.bf16.gmra.mrb[52].mxu1 %v2451_v38  ;;  %14929 = vst [vmem:[#allocation77_spill] sm:$0xff] %v10497_v18  ;;  %v10503_v43 = vadd.f32 %v8291_v2, %v10454_v23  ;;  %v2345_v54 = vpop.f32.mrb[191].mxu0  ;;  %v2420_v18 = vld [vmem:[#allocation2 + $0x348] sm:$0xff] }
 0x2a1   :  { %3110 = vmatprep.mubr.bf16.mxu1 %v2548_v36  ;;  %14930 = vst [vmem:[#allocation83_spill] sm:$0xff] %v10500_v10  ;;  %v10506_v38 = vadd.f32 %v2345_v54, %v10436_v6 }
 0x2a2   :  { %14931 = vst [vmem:[#allocation75_spill] sm:$0xff] %v10503_v43 }
 0x2a3   :  { %v2896_v35 = vpop.f32.mrb[204].mxu1 }
 0x2a4   :  { %v2898_v24 = vpop.f32.mrb[205].mxu1 }
 0x2a5   :  { %v2899_v36 = vpop.f32.mrb[206].mxu1  ;;  %v8310_v0 = vpop.f32.mrb[192].mxu0  ;;  %v2453_v24 = vpack.c.bf16 %v10249_v28, %v2420_v18 }
 0x2a6   :  { %v2901_v3 = vpop.f32.mrb[207].mxu1  ;;  %v3170_v59 = vadd.f32 %v8310_v0, %v2880_v40  ;;  %v3161_v42 = vpop.f32.mrb[193].mxu0 }
 0x2a7   :  { %v3162_v1 = vadd.f32 %v3161_v42, %v10462_v46  ;;  %v8311_v23 = vpop.f32.mrb[194].mxu0 }
 0x2a8   :  { %3111 = vmatmul.mubr.bf16.gmra.mrb[56].mxu1 %v2452_v17  ;;  %v10510_v2 = vadd.f32 %v3170_v59, %v10238_v4  ;;  %v3173_v60 = vadd.f32 %v8311_v23, %v2883_v58  ;;  %v3164_v6 = vpop.f32.mrb[195].mxu0 }
 0x2a9   :  { %3118 = vmatprep.mubr.bf16.mxu1 %v2549_v32  ;;  %v10514_v22 = vadd.f32 %v3162_v1, %v10241_v52  ;;  %v3165_v54 = vadd.f32 %v3164_v6, %v10470_v9 }
 0x2aa   :  { %14932 = vst [vmem:[#allocation76_spill] sm:$0xff] %v10510_v2  ;;  %v10518_v40 = vadd.f32 %v3173_v60, %v10247_v21 }
 0x2ab   :  { %v2904_v10 = vpop.f32.mrb[208].mxu1  ;;  %14933 = vst [vmem:[#allocation81_spill] sm:$0xff] %v10514_v22  ;;  %v10521_v46 = vadd.f32 %v3165_v54, %v10253_v31  ;;  %v14938_v31 = vld [vmem:[#allocation92_spill] sm:$0xff] }
 0x2ac   :  { %v2906_v7 = vpop.f32.mrb[209].mxu1  ;;  %14934 = vst [vmem:[#allocation74_spill] sm:$0xff] %v10518_v40 }
 0x2ad   :  { %v2907_v51 = vpop.f32.mrb[210].mxu1  ;;  %14935 = vst [vmem:[#allocation79_spill] sm:$0xff] %v10521_v46  ;;  %v8314_v4 = vpop.f32.mrb[196].mxu0 }
 0x2ae   :  { %v2909_v17 = vpop.f32.mrb[211].mxu1  ;;  %v3186_v32 = vadd.f32 %v8314_v4, %v2896_v35  ;;  %v3177_v58 = vpop.f32.mrb[197].mxu0  ;;  %v14940_v35 = vld [vmem:[#allocation94_spill] sm:$0xff] }
 0x2af   :  { %v3178_v0 = vadd.f32 %v3177_v58, %v2888_v57  ;;  %v8315_v28 = vpop.f32.mrb[198].mxu0 }
 0x2b0   :  { %3119 = vmatmul.mubr.bf16.gmra.mrb[60].mxu1 %v2453_v24  ;;  %v10524_v52 = vadd.f32 %v3186_v32, %v10259_v14  ;;  %v3189_v18 = vadd.f32 %v8315_v28, %v2899_v36  ;;  %v3180_v9 = vpop.f32.mrb[199].mxu0  ;;  %v14942_v36 = vld [vmem:[#allocation89_spill] sm:$0xff] }
 0x2b1   :  { %v10527_v21 = vadd.f32 %v3178_v0, %v10262_v29  ;;  %v3181_v42 = vadd.f32 %v3180_v9, %v2891_v62 }
 0x2b2   :  { %14936 = vst [vmem:[#allocation82_spill] sm:$0xff] %v10524_v52  ;;  %v10530_v23 = vadd.f32 %v3189_v18, %v14938_v31 }
 0x2b3   :  { %v2912_v3 = vpop.f32.mrb[212].mxu1  ;;  %14937 = vst [vmem:[#allocation80_spill] sm:$0xff] %v10527_v21  ;;  %v10533_v60 = vadd.f32 %v3181_v42, %v14940_v35  ;;  %v3552_v42 = vmul.f32 %v10514_v22, %v10514_v22 }
 0x2b4   :  { %v2914_v1 = vpop.f32.mrb[213].mxu1  ;;  %14939 = vst [vmem:[#allocation85_spill] sm:$0xff] %v10530_v23 }
 0x2b5   :  { %v2915_v59 = vpop.f32.mrb[214].mxu1  ;;  %14941 = vst [vmem:[#allocation87_spill] sm:$0xff] %v10533_v60  ;;  %v8318_v57 = vpop.f32.mrb[200].mxu0  ;;  %v3553_v1 = vmul.f32 %v10521_v46, %v10521_v46 }
 0x2b6   :  { %v2917_v7 = vpop.f32.mrb[215].mxu1  ;;  %v3202_v6 = vadd.f32 %v8318_v57, %v2912_v3  ;;  %v3193_v24 = vpop.f32.mrb[201].mxu0 }
 0x2b7   :  { %v3194_v54 = vadd.f32 %v3193_v24, %v2904_v10  ;;  %v8319_v17 = vpop.f32.mrb[202].mxu0  ;;  %v14946_v10 = vld [vmem:[#allocation91_spill] sm:$0xff]  ;;  %v3616_v31 = vadd.f32 %v3553_v1, %v3552_v42 }
 0x2b8   :  { %v10536_v4 = vadd.f32 %v3202_v6, %v14942_v36  ;;  %v3205_v32 = vadd.f32 %v8319_v17, %v2915_v59  ;;  %v3196_v58 = vpop.f32.mrb[203].mxu0  ;;  %v3482_v59 = vadd.f32 %v10521_v46, %v10514_v22 }
 0x2b9   :  { %v10539_v62 = vadd.f32 %v3194_v54, %v10280_v30  ;;  %v3197_v28 = vadd.f32 %v3196_v58, %v2907_v51  ;;  %v8686_v58 = vld [vmem:[%s14533_s2 + $0x140] sm:$0xff]  }
 0x2ba   :  { %14943 = vst [vmem:[#allocation84_spill] sm:$0xff] %v10536_v4  ;;  %v10544_v3 = vadd.f32 %v3205_v32, %v10286_v13  ;;  %v3554_v13 = vmul.f32 %v10510_v2, %v10510_v2  ;;  %v3483_v6 = vadd.f32 %v3482_v59, %v10510_v2  ;;  %8372 = vmatprep.subr.bf16.mxu1 %v8686_v58 }
 0x2bb   :  { %v2920_v14 = vpop.f32.mrb[216].mxu1  ;;  %14944 = vst [vmem:[#allocation86_spill] sm:$0xff] %v10539_v62  ;;  %v10547_v9 = vadd.f32 %v3197_v28, %v14946_v10  ;;  %8373 = vmatpush3.bf16.msra.mxu1 %v8686_v58 }
 0x2bc   :  { %v2922_v29 = vpop.f32.mrb[217].mxu1  ;;  %14945 = vst [vmem:[#allocation92_spill] sm:$0xff] %v10544_v3  ;;  %v3617_v28 = vadd.f32 %v3616_v31, %v3554_v13  ;;  %v3484_v59 = vadd.f32 %v3483_v6, %v10518_v40 }
 0x2bd   :  { %v2923_v0 = vpop.f32.mrb[218].mxu1  ;;  %14947 = vst [vmem:[#allocation94_spill] sm:$0xff] %v10547_v9  ;;  %v8322_v30 = vpop.f32.mrb[204].mxu0 }
 0x2be   :  { %v2925_v18 = vpop.f32.mrb[219].mxu1  ;;  %v3209_v7 = vpop.f32.mrb[205].mxu0  ;;  %v3485_v13 = vadd.f32 %v3484_v59, %v10527_v21 }
 0x2bf   :  { %v3210_v35 = vadd.f32 %v3209_v7, %v2920_v14  ;;  %v8323_v57 = vpop.f32.mrb[206].mxu0  ;;  %v14949_v14 = vld [vmem:[#allocation98_spill] sm:$0xff]  ;;  %v3556_v7 = vmul.f32 %v10527_v21, %v10527_v21 }
 0x2c0   :  { %v3212_v17 = vpop.f32.mrb[207].mxu0 }
 0x2c1   :  { %v10557_v36 = vadd.f32 %v3210_v35, %v10298_v53  ;;  %v3213_v32 = vadd.f32 %v3212_v17, %v2923_v0  ;;  %v3555_v53 = vmul.f32 %v10518_v40, %v10518_v40  ;;  %v14953_v17 = vmov 0  }
 0x2c3   :  { %v2928_v51 = vpop.f32.mrb[220].mxu1  ;;  %14948 = vst [vmem:[#allocation89_spill] sm:$0xff] %v10557_v36  ;;  %v10566_v42 = vadd.f32 %v3213_v32, %v10307_v33  ;;  %v3618_v31 = vadd.f32 %v3617_v28, %v3555_v53  ;;  %v8687_v33 = vld [vmem:[%s14533_s2 + $0xc0] sm:$0xff]   ;;  %v3557_v32 = vmul.f32 %v10533_v60, %v10533_v60 }
 0x2c4   :  { %v3218_v24 = vadd.f32 %v8322_v30, %v2928_v51  ;;  %v2930_v54 = vpop.f32.mrb[221].mxu1  ;;  %4778 = vmatpush1.bf16.msra.mxu0 %v8687_v33 }
 0x2c5   :  { %v2931_v29 = vpop.f32.mrb[222].mxu1  ;;  %14951 = vst [vmem:[#allocation98_spill] sm:$0xff] %v10566_v42  ;;  %v8326_v30 = vpop.f32.mrb[208].mxu0  ;;  %4779 = vmatprep.subr.bf16.mxu0 %v14953_v17 }
 0x2c6   :  { %v10563_v1 = vadd.f32 %v3218_v24, %v14949_v14  ;;  %v3221_v18 = vadd.f32 %v8323_v57, %v2931_v29  ;;  %v2933_v10 = vpop.f32.mrb[223].mxu1  ;;  %v3225_v51 = vpop.f32.mrb[209].mxu0  ;;  %v3619_v29 = vadd.f32 %v3618_v31, %v3556_v7  ;;  %v8688_v31 = vld [vmem:[%s14533_s2 + $0xc8] sm:$0xff]  }
 0x2c7   :  { %v8327_v57 = vpop.f32.mrb[210].mxu0 }
 0x2c8   :  { %14950 = vst [vmem:[#allocation91_spill] sm:$0xff] %v10563_v1  ;;  %v10572_v0 = vadd.f32 %v3221_v18, %v10304_v34  ;;  %v3228_v54 = vpop.f32.mrb[211].mxu0  ;;  %v3486_v18 = vadd.f32 %v3485_v13, %v10533_v60  ;;  %v3620_v59 = vadd.f32 %v3619_v29, %v3557_v32  ;;  %4780 = vmatpush1.bf16.msra.mxu0 %v8688_v31 }
 0x2c9   :  { %4781 = vmatprep.subr.bf16.mxu0 %v14953_v17 }
 0x2ca   :  { %14952 = vst [vmem:[#allocation105_spill] sm:$0xff] %v10572_v0  ;;  %v3567_v2 = vmul.f32 %v10572_v0, %v10572_v0 }
 0x2cb   :  { %v2936_v35 = vpop.f32.mrb[224].mxu1 }
 0x2cc   :  { %v3226_v24 = vadd.f32 %v3225_v51, %v2936_v35  ;;  %v2938_v6 = vpop.f32.mrb[225].mxu1  ;;  %v3487_v35 = vadd.f32 %v3486_v18, %v10524_v52 }
 0x2cd   :  { %v2939_v34 = vpop.f32.mrb[226].mxu1  ;;  %v8330_v53 = vpop.f32.mrb[212].mxu0 }
 0x2ce   :  { %v10584_v58 = vadd.f32 %v3226_v24, %v10316_v16  ;;  %v3229_v28 = vadd.f32 %v3228_v54, %v2939_v34  ;;  %v2941_v14 = vpop.f32.mrb[227].mxu1  ;;  %v3241_v51 = vpop.f32.mrb[213].mxu0  ;;  %v3558_v16 = vmul.f32 %v10524_v52, %v10524_v52 }
 0x2cf   :  { %v8331_v33 = vpop.f32.mrb[214].mxu0  ;;  %v3488_v14 = vadd.f32 %v3487_v35, %v10530_v23 }
 0x2d0   :  { %14954 = vst [vmem:[#allocation106_spill] sm:$0xff] %v10584_v58  ;;  %v10588_v10 = vadd.f32 %v3229_v28, %v10325_v61  ;;  %v3244_v13 = vpop.f32.mrb[215].mxu0  ;;  %v3621_v54 = vadd.f32 %v3620_v59, %v3558_v16  ;;  %v3559_v28 = vmul.f32 %v10530_v23, %v10530_v23 }
 0x2d2   :  { %14955 = vst [vmem:[#allocation107_spill] sm:$0xff] %v10588_v10  ;;  %v3622_v31 = vadd.f32 %v3621_v54, %v3559_v28 }
 0x2d3   :  { %v2944_v7 = vpop.f32.mrb[228].mxu1 }
 0x2d4   :  { %v3234_v24 = vadd.f32 %v8326_v30, %v2944_v7  ;;  %v2946_v6 = vpop.f32.mrb[229].mxu1  ;;  %v3560_v7 = vmul.f32 %v10539_v62, %v10539_v62 }
 0x2d5   :  { %v2947_v61 = vpop.f32.mrb[230].mxu1  ;;  %v10606_v30 = vpop.f32.mrb[216].mxu0 }
 0x2d6   :  { %v10598_v34 = vadd.f32 %v3234_v24, %v10313_v56  ;;  %v3237_v29 = vadd.f32 %v8327_v57, %v2947_v61  ;;  %v2949_v32 = vpop.f32.mrb[231].mxu1  ;;  %v3257_v59 = vpop.f32.mrb[217].mxu0  ;;  %v8689_v56 = vld [vmem:[%s14533_s2 + $0xd0] sm:$0xff]   ;;  %v3489_v24 = vadd.f32 %v3488_v14, %v10539_v62  ;;  %v3623_v54 = vadd.f32 %v3622_v31, %v3560_v7  ;;  %v8690_v31 = vld [vmem:[%s14533_s2 + $0xd8] sm:$0xff]  }
 0x2d7   :  { %v10613_v16 = vpop.f32.mrb[218].mxu0  ;;  %4782 = vmatpush1.bf16.msra.mxu0 %v8689_v56 }
 0x2d8   :  { %14956 = vst [vmem:[#allocation108_spill] sm:$0xff] %v10598_v34  ;;  %v10604_v18 = vadd.f32 %v3237_v29, %v10322_v47  ;;  %v3260_v47 = vpop.f32.mrb[219].mxu0  ;;  %4783 = vmatprep.subr.bf16.mxu0 %v14953_v17  ;;  %v3561_v29 = vmul.f32 %v10547_v9, %v10547_v9  ;;  %v3490_v52 = vadd.f32 %v3489_v24, %v10547_v9 }
 0x2da   :  { %14957 = vst [vmem:[#allocation109_spill] sm:$0xff] %v10604_v18  ;;  %v3624_v56 = vadd.f32 %v3623_v54, %v3561_v29  ;;  %v14960_v29 = vld [vmem:[#allocation100_spill] sm:$0xff] }
 0x2db   :  { %v2952_v57 = vpop.f32.mrb[232].mxu1  ;;  %4784 = vmatpush1.bf16.msra.mxu0 %v8690_v31  ;;  %v14962_v31 = vld [vmem:[#allocation88_spill] sm:$0xff] }
 0x2dc   :  { %v3242_v35 = vadd.f32 %v3241_v51, %v2952_v57  ;;  %v2954_v6 = vpop.f32.mrb[233].mxu1  ;;  %4785 = vmatprep.subr.bf16.mxu0 %v14953_v17 }
 0x2dd   :  { %v2955_v61 = vpop.f32.mrb[234].mxu1  ;;  %v10626_v51 = vpop.f32.mrb[220].mxu0 }
 0x2de   :  { %v10620_v32 = vadd.f32 %v3242_v35, %v10334_v8  ;;  %v3245_v28 = vadd.f32 %v3244_v13, %v2955_v61  ;;  %v2957_v23 = vpop.f32.mrb[235].mxu1  ;;  %v10628_v57 = vpop.f32.mrb[221].mxu0  ;;  %v3562_v8 = vmul.f32 %v10536_v4, %v10536_v4  ;;  %v8691_v35 = vld [vmem:[%s14533_s2 + $0x148] sm:$0xff]  }
 0x2df   :  { %v10633_v6 = vpop.f32.mrb[222].mxu0  ;;  %v3491_v23 = vadd.f32 %v3490_v52, %v10536_v4  ;;  %8374 = vmatprep.subr.bf16.mxu1 %v8691_v35  ;;  %v3563_v52 = vmul.f32 %v10544_v3, %v10544_v3 }
 0x2e0   :  { %14958 = vst [vmem:[#allocation110_spill] sm:$0xff] %v10620_v32  ;;  %v10624_v14 = vadd.f32 %v3245_v28, %v10343_v5  ;;  %v10638_v24 = vpop.f32.mrb[223].mxu0  ;;  %v3625_v54 = vadd.f32 %v3624_v56, %v3562_v8  ;;  %8375 = vmatpush3.bf16.msra.mxu1 %v8691_v35  ;;  %v3564_v56 = vmul.f32 %v10557_v36, %v10557_v36 }
 0x2e2   :  { %14959 = vst [vmem:[#allocation111_spill] sm:$0xff] %v10624_v14  ;;  %v3626_v4 = vadd.f32 %v3625_v54, %v3563_v52  ;;  %v3565_v52 = vmul.f32 %v10566_v42, %v10566_v42 }
 0x2e3   :  { %v2960_v7 = vpop.f32.mrb[236].mxu1 }
 0x2e4   :  { %v3250_v13 = vadd.f32 %v8330_v53, %v2960_v7  ;;  %v2962_v5 = vpop.f32.mrb[237].mxu1  ;;  %v3492_v53 = vadd.f32 %v3491_v23, %v10544_v3 }
 0x2e5   :  { %v2963_v61 = vpop.f32.mrb[238].mxu1  ;;  %v10653_v5 = vpop.f32.mrb[224].mxu0 }
 0x2e6   :  { %v10645_v28 = vadd.f32 %v3250_v13, %v14960_v29  ;;  %v3253_v9 = vadd.f32 %v8331_v33, %v2963_v61  ;;  %v2965_v62 = vpop.f32.mrb[239].mxu1  ;;  %v10657_v8 = vpop.f32.mrb[225].mxu0  ;;  %v3493_v23 = vadd.f32 %v3492_v53, %v10557_v36  ;;  %v3627_v29 = vadd.f32 %v3626_v4, %v3564_v56  ;;  %v14966_v53 = vld [vmem:[#allocation93_spill] sm:$0xff]  ;;  %v8693_v4 = vld [vmem:[%s14533_s2 + $0xe8] sm:$0xff]  }
 0x2e7   :  { %v8692_v62 = vld [vmem:[%s14533_s2 + $0xe0] sm:$0xff]   ;;  %v10662_v13 = vpop.f32.mrb[226].mxu0 }
 0x2e8   :  { %14961 = vst [vmem:[#allocation100_spill] sm:$0xff] %v10645_v28  ;;  %v10651_v7 = vadd.f32 %v3253_v9, %v14962_v31  ;;  %v10665_v61 = vpop.f32.mrb[227].mxu0  ;;  %4786 = vmatpush1.bf16.msra.mxu0 %v8692_v62  ;;  %v14964_v31 = vld [vmem:[#allocation95_spill] sm:$0xff]  ;;  %v3494_v40 = vadd.f32 %v3493_v23, %v10566_v42  ;;  %v3628_v62 = vadd.f32 %v3627_v29, %v3565_v52  ;;  %v14968_v52 = vld [vmem:[#allocation90_spill] sm:$0xff] }
 0x2e9   :  { %4787 = vmatprep.subr.bf16.mxu0 %v14953_v17 }
 0x2ea   :  { %14963 = vst [vmem:[#allocation88_spill] sm:$0xff] %v10651_v7 }
 0x2eb   :  { %v2968_v33 = vpop.f32.mrb[240].mxu1 }
 0x2ec   :  { %v3258_v35 = vadd.f32 %v3257_v59, %v2968_v33  ;;  %v2970_v9 = vpop.f32.mrb[241].mxu1  ;;  %4788 = vmatpush1.bf16.msra.mxu0 %v8693_v4 }
 0x2ed   :  { %v2971_v54 = vpop.f32.mrb[242].mxu1  ;;  %v10677_v33 = vpop.f32.mrb[228].mxu0  ;;  %4789 = vmatprep.subr.bf16.mxu0 %v14953_v17 }
 0x2ee   :  { %v10671_v3 = vadd.f32 %v3258_v35, %v14964_v31  ;;  %v3261_v60 = vadd.f32 %v3260_v47, %v2971_v54  ;;  %v2973_v21 = vpop.f32.mrb[243].mxu1  ;;  %v10679_v9 = vpop.f32.mrb[229].mxu0  ;;  %v3495_v47 = vadd.f32 %v3494_v40, %v10563_v1 }
 0x2ef   :  { %v10684_v36 = vpop.f32.mrb[230].mxu0  ;;  %v3566_v21 = vmul.f32 %v10563_v1, %v10563_v1 }
 0x2f0   :  { %14965 = vst [vmem:[#allocation95_spill] sm:$0xff] %v10671_v3  ;;  %v10675_v59 = vadd.f32 %v3261_v60, %v14966_v53  ;;  %v10690_v35 = vpop.f32.mrb[231].mxu0  ;;  %v3496_v40 = vadd.f32 %v3495_v47, %v10572_v0 }
 0x2f1   :  { %v3629_v29 = vadd.f32 %v3628_v62, %v3566_v21  ;;  %v3568_v62 = vmul.f32 %v10584_v58, %v10584_v58 }
 0x2f2   :  { %14967 = vst [vmem:[#allocation93_spill] sm:$0xff] %v10675_v59  ;;  %v3497_v47 = vadd.f32 %v3496_v40, %v10584_v58 }
 0x2f3   :  { %v2976_v56 = vpop.f32.mrb[244].mxu1  ;;  %v3630_v4 = vadd.f32 %v3629_v29, %v3567_v2 }
 0x2f4   :  { %v3266_v60 = vadd.f32 %v10606_v30, %v2976_v56  ;;  %v2978_v23 = vpop.f32.mrb[245].mxu1  ;;  %v14970_v30 = vld [vmem:[#allocation97_spill] sm:$0xff]  ;;  %v3498_v40 = vadd.f32 %v3497_v47, %v10588_v10 }
 0x2f5   :  { %v2979_v54 = vpop.f32.mrb[246].mxu1  ;;  %v10703_v23 = vpop.f32.mrb[232].mxu0  ;;  %v3631_v29 = vadd.f32 %v3630_v4, %v3568_v62 }
 0x2f6   :  { %v10694_v31 = vadd.f32 %v3266_v60, %v14968_v52  ;;  %v3269_v53 = vadd.f32 %v10613_v16, %v2979_v54  ;;  %v2981_v42 = vpop.f32.mrb[247].mxu1  ;;  %v10707_v21 = vpop.f32.mrb[233].mxu0  ;;  %v3499_v62 = vadd.f32 %v3498_v40, %v10598_v34 }
 0x2f7   :  { %v8694_v42 = vld [vmem:[%s14533_s2 + $0xf0] sm:$0xff]   ;;  %v10712_v60 = vpop.f32.mrb[234].mxu0 }
 0x2f8   :  { %14969 = vst [vmem:[#allocation90_spill] sm:$0xff] %v10694_v31  ;;  %v10701_v56 = vadd.f32 %v3269_v53, %v14970_v30  ;;  %v10716_v53 = vpop.f32.mrb[235].mxu0  ;;  %4790 = vmatpush1.bf16.msra.mxu0 %v8694_v42  ;;  %v3569_v30 = vmul.f32 %v10588_v10, %v10588_v10  ;;  %v3500_v40 = vadd.f32 %v3499_v62, %v10604_v18  ;;  %v14975_v10 = vld [vmem:[#allocation101_spill] sm:$0xff] }
 0x2f9   :  { %4791 = vmatprep.subr.bf16.mxu0 %v14953_v17 }
 0x2fa   :  { %14971 = vst [vmem:[#allocation97_spill] sm:$0xff] %v10701_v56  ;;  %v3632_v4 = vadd.f32 %v3631_v29, %v3569_v30  ;;  %v8696_v29 = vld [vmem:[%s14533_s2 + $0x150] sm:$0xff]  }
 0x2fb   :  { %v2984_v16 = vpop.f32.mrb[248].mxu1  ;;  %8376 = vmatprep.subr.bf16.mxu1 %v8696_v29 }
 0x2fc   :  { %v3274_v54 = vadd.f32 %v10628_v57, %v2984_v16  ;;  %v2986_v52 = vpop.f32.mrb[249].mxu1  ;;  %v3570_v57 = vmul.f32 %v10598_v34, %v10598_v34  ;;  %8377 = vmatpush3.bf16.msra.mxu1 %v8696_v29 }
 0x2fd   :  { %v2987_v2 = vpop.f32.mrb[250].mxu1  ;;  %v10731_v16 = vpop.f32.mrb[236].mxu0 }
 0x2fe   :  { %v10722_v0 = vadd.f32 %v3274_v54, %v10370_v45  ;;  %v3277_v1 = vadd.f32 %v10638_v24, %v2987_v2  ;;  %v2989_v46 = vpop.f32.mrb[251].mxu1  ;;  %v10734_v52 = vpop.f32.mrb[237].mxu0  ;;  %v8695_v45 = vld [vmem:[%s14533_s2 + $0xf8] sm:$0xff]   ;;  %v3633_v47 = vadd.f32 %v3632_v4, %v3570_v57  ;;  %v3571_v54 = vmul.f32 %v10604_v18, %v10604_v18  ;;  %v14974_v4 = vld [vmem:[#allocation96_spill] sm:$0xff] }
 0x2ff   :  { %v10739_v24 = vpop.f32.mrb[238].mxu0  ;;  %4792 = vmatpush1.bf16.msra.mxu0 %v8695_v45  ;;  %v3572_v57 = vmul.f32 %v10620_v32, %v10620_v32  ;;  %v3573_v18 = vmul.f32 %v10624_v14, %v10624_v14 }
 0x300   :  { %14972 = vst [vmem:[#allocation112_spill] sm:$0xff] %v10722_v0  ;;  %v10729_v42 = vadd.f32 %v3277_v1, %v10379_v15  ;;  %v10744_v2 = vpop.f32.mrb[239].mxu0  ;;  %4793 = vmatprep.subr.bf16.mxu0 %v14953_v17  ;;  %v3634_v45 = vadd.f32 %v3633_v47, %v3571_v54 }
 0x302   :  { %14973 = vst [vmem:[#allocation113_spill] sm:$0xff] %v10729_v42  ;;  %v3635_v62 = vadd.f32 %v3634_v45, %v3572_v57 }
 0x303   :  { %v2992_v46 = vpop.f32.mrb[252].mxu1 }
 0x304   :  { %v3282_v15 = vadd.f32 %v10626_v51, %v2992_v46  ;;  %v2994_v1 = vpop.f32.mrb[253].mxu1 }
 0x305   :  { %v2995_v30 = vpop.f32.mrb[254].mxu1  ;;  %v3501_v1 = vadd.f32 %v3500_v40, %v10620_v32  ;;  %v10761_v22 = vpop.f32.mrb[240].mxu0 }
 0x306   :  { %v10754_v34 = vadd.f32 %v3282_v15, %v14974_v4  ;;  %v3285_v51 = vadd.f32 %v10633_v6, %v2995_v30  ;;  %v2997_v46 = vpop.f32.mrb[255].mxu1  ;;  %v10765_v43 = vpop.f32.mrb[241].mxu0  ;;  %v8697_v6 = vld [vmem:[%s14533_s2 + $0x100] sm:$0xff]   ;;  %v3636_v4 = vadd.f32 %v3635_v62, %v3573_v18  ;;  %v3576_v18 = vmul.f32 %v10671_v3, %v10671_v3 }
 0x307   :  { %v10770_v29 = vpop.f32.mrb[242].mxu0  ;;  %v3502_v47 = vadd.f32 %v3501_v1, %v10624_v14  ;;  %4794 = vmatpush1.bf16.msra.mxu0 %v8697_v6 }
 0x308   :  { %v10759_v58 = vadd.f32 %v3285_v51, %v14975_v10  ;;  %v3574_v10 = vmul.f32 %v10645_v28, %v10645_v28  ;;  %v10776_v40 = vpop.f32.mrb[243].mxu0  ;;  %4795 = vmatprep.subr.bf16.mxu0 %v14953_v17 }
 0x309   :  { %v3503_v51 = vadd.f32 %v3502_v47, %v10645_v28 }
 0x30a   :  { %v3637_v14 = vadd.f32 %v3636_v4, %v3574_v10 }
 0x30b   :  { %v3000_v15 = vpop.f32.mrb[0].mxu1 }
 0x30c   :  { %v3290_v54 = vadd.f32 %v10657_v8, %v3000_v15  ;;  %v3002_v30 = vpop.f32.mrb[1].mxu1  ;;  %v3575_v8 = vmul.f32 %v10651_v7, %v10651_v7 }
 0x30d   :  { %v3003_v57 = vpop.f32.mrb[2].mxu1  ;;  %v10789_v6 = vpop.f32.mrb[244].mxu0  ;;  %v3504_v30 = vadd.f32 %v3503_v51, %v10651_v7  ;;  %v3577_v51 = vmul.f32 %v10675_v59, %v10675_v59 }
 0x30e   :  { %v10781_v46 = vadd.f32 %v3290_v54, %v10388_v49  ;;  %v3293_v45 = vadd.f32 %v10665_v61, %v3003_v57  ;;  %v3005_v1 = vpop.f32.mrb[3].mxu1  ;;  %v10794_v62 = vpop.f32.mrb[245].mxu0  ;;  %v3638_v61 = vadd.f32 %v3637_v14, %v3575_v8  ;;  %v3578_v8 = vmul.f32 %v10694_v31, %v10694_v31 }
 0x30f   :  { %v10796_v47 = vpop.f32.mrb[246].mxu0  ;;  %v3505_v10 = vadd.f32 %v3504_v30, %v10671_v3  ;;  %v14976_v1 = vld [vmem:[#allocation103_spill] sm:$0xff] }
 0x310   :  { %v10787_v15 = vadd.f32 %v3293_v45, %v10397_v20  ;;  %v10800_v20 = vpop.f32.mrb[247].mxu0  ;;  %v3639_v45 = vadd.f32 %v3638_v61, %v3576_v18 }
 0x311   :  { %v3506_v14 = vadd.f32 %v3505_v10, %v10675_v59 }
 0x312   :  { %v3640_v18 = vadd.f32 %v3639_v45, %v3577_v51  ;;  %v3580_v45 = vmul.f32 %v10722_v0, %v10722_v0 }
 0x313   :  { %v3008_v49 = vpop.f32.mrb[4].mxu1  ;;  %v3507_v61 = vadd.f32 %v3506_v14, %v10694_v31 }
 0x314   :  { %v3298_v54 = vadd.f32 %v10653_v5, %v3008_v49  ;;  %v3010_v57 = vpop.f32.mrb[5].mxu1  ;;  %v14977_v5 = vld [vmem:[#allocation99_spill] sm:$0xff] }
 0x315   :  { %v3011_v4 = vpop.f32.mrb[6].mxu1  ;;  %v10814_v49 = vpop.f32.mrb[248].mxu0 }
 0x316   :  { %v10805_v7 = vadd.f32 %v3298_v54, %v14976_v1  ;;  %v3301_v28 = vadd.f32 %v10662_v13, %v3011_v4  ;;  %v3013_v32 = vpop.f32.mrb[7].mxu1  ;;  %v10817_v57 = vpop.f32.mrb[249].mxu0  ;;  %v3641_v13 = vadd.f32 %v3640_v18, %v3578_v8 }
 0x317   :  { %v10819_v1 = vpop.f32.mrb[250].mxu0  ;;  %v3579_v32 = vmul.f32 %v10701_v56, %v10701_v56 }
 0x318   :  { %v10812_v30 = vadd.f32 %v3301_v28, %v14977_v5  ;;  %v10824_v59 = vpop.f32.mrb[251].mxu0  ;;  %v3508_v5 = vadd.f32 %v3507_v61, %v10701_v56  ;;  %v3581_v61 = vmul.f32 %v10729_v42, %v10729_v42 }
 0x319   :  { %v3642_v18 = vadd.f32 %v3641_v13, %v3579_v32  ;;  %v3582_v13 = vmul.f32 %v10754_v34, %v10754_v34 }
 0x31a   :  { %v3509_v31 = vadd.f32 %v3508_v5, %v10722_v0 }
 0x31b   :  { %v3016_v54 = vpop.f32.mrb[8].mxu1 }
 0x31c   :  { %v3306_v10 = vadd.f32 %v10679_v9, %v3016_v54  ;;  %v3018_v4 = vpop.f32.mrb[9].mxu1 }
 0x31d   :  { %v3019_v28 = vpop.f32.mrb[10].mxu1  ;;  %v10837_v54 = vpop.f32.mrb[252].mxu0  ;;  %v3643_v4 = vadd.f32 %v3642_v18, %v3580_v45 }
 0x31e   :  { %v10830_v51 = vadd.f32 %v3306_v10, %v10406_v39  ;;  %v3309_v14 = vadd.f32 %v10690_v35, %v3019_v28  ;;  %v3021_v8 = vpop.f32.mrb[11].mxu1  ;;  %14978 = vst [vmem:[#allocation96_spill] sm:$0xff] %v10837_v54  ;;  %v10841_v56 = vpop.f32.mrb[253].mxu0  ;;  %v3510_v35 = vadd.f32 %v3509_v31, %v10729_v42  ;;  %v3583_v31 = vmul.f32 %v10759_v58, %v10759_v58  ;;  %v14981_v42 = vld [vmem:[#allocation65_spill] sm:$0xff] }
 0x31f   :  { %v10843_v39 = vpop.f32.mrb[254].mxu0  ;;  %v3644_v5 = vadd.f32 %v3643_v4, %v3581_v61 }
 0x320   :  { %v10835_v9 = vadd.f32 %v3309_v14, %v10415_v19  ;;  %14979 = vst [vmem:[#allocation101_spill] sm:$0xff] %v10843_v39  ;;  %v10849_v10 = vpop.f32.mrb[255].mxu0  ;;  %v3511_v45 = vadd.f32 %v3510_v35, %v10754_v34  ;;  %v14980_v14 = vld [vmem:[#allocation102_spill] sm:$0xff] }
 0x321   :  { %v3645_v39 = vadd.f32 %v3644_v5, %v3582_v13 }
 0x323   :  { %v3024_v3 = vpop.f32.mrb[12].mxu1  ;;  %v3646_v61 = vadd.f32 %v3645_v39, %v3583_v31  ;;  %v3586_v39 = vmul.f32 %v10805_v7, %v10805_v7 }
 0x324   :  { %v3314_v32 = vadd.f32 %v10677_v33, %v3024_v3  ;;  %v3026_v19 = vpop.f32.mrb[13].mxu1  ;;  %v3512_v3 = vadd.f32 %v3511_v45, %v10759_v58  ;;  %v3584_v33 = vmul.f32 %v10781_v46, %v10781_v46 }
 0x325   :  { %v3027_v28 = vpop.f32.mrb[14].mxu1  ;;  %v3585_v19 = vmul.f32 %v10787_v15, %v10787_v15 }
 0x326   :  { %v10853_v8 = vadd.f32 %v3314_v32, %v14980_v14  ;;  %v3317_v18 = vadd.f32 %v10684_v36, %v3027_v28  ;;  %v3029_v0 = vpop.f32.mrb[15].mxu1  ;;  %v3513_v35 = vadd.f32 %v3512_v3, %v10781_v46  ;;  %v3647_v13 = vadd.f32 %v3646_v61, %v3584_v33 }
 0x328   :  { %v10859_v54 = vadd.f32 %v3317_v18, %v14981_v42  ;;  %v3514_v45 = vadd.f32 %v3513_v35, %v10787_v15  ;;  %v3588_v35 = vmul.f32 %v10830_v51, %v10830_v51 }
 0x32a   :  { %v3515_v18 = vadd.f32 %v3514_v45, %v10805_v7 }
 0x32b   :  { %v3032_v4 = vpop.f32.mrb[16].mxu1 }
 0x32c   :  { %v3322_v32 = vadd.f32 %v10707_v21, %v3032_v4  ;;  %v3034_v36 = vpop.f32.mrb[17].mxu1  ;;  %v3648_v21 = vadd.f32 %v3647_v13, %v3585_v19  ;;  %v3516_v61 = vadd.f32 %v3515_v18, %v10812_v30 }
 0x32d   :  { %v3035_v0 = vpop.f32.mrb[18].mxu1 }
 0x32e   :  { %v10869_v42 = vadd.f32 %v3322_v32, %v10424_v48  ;;  %v3325_v28 = vadd.f32 %v10716_v53, %v3035_v0  ;;  %v3037_v5 = vpop.f32.mrb[19].mxu1  ;;  %v3649_v3 = vadd.f32 %v3648_v21, %v3586_v39  ;;  %v3587_v48 = vmul.f32 %v10812_v30, %v10812_v30  ;;  %v14982_v32 = vld [vmem:[#allocation66_spill] sm:$0xff] }
 0x32f   :  { %v3517_v19 = vadd.f32 %v3516_v61, %v10830_v51  ;;  %v3589_v5 = vmul.f32 %v10835_v9, %v10835_v9  ;;  %v3590_v21 = vmul.f32 %v10853_v8, %v10853_v8  ;;  %v3591_v61 = vmul.f32 %v10859_v54, %v10859_v54 }
 0x330   :  { %v10876_v14 = vadd.f32 %v3325_v28, %v10433_v50  ;;  %v3650_v13 = vadd.f32 %v3649_v3, %v3587_v48 }
 0x331   :  { %v3518_v39 = vadd.f32 %v3517_v19, %v10835_v9 }
 0x333   :  { %v3040_v31 = vpop.f32.mrb[20].mxu1  ;;  %v3519_v48 = vadd.f32 %v3518_v39, %v10853_v8 }
 0x334   :  { %v3330_v33 = vadd.f32 %v10703_v23, %v3040_v31  ;;  %v3042_v53 = vpop.f32.mrb[21].mxu1  ;;  %v3651_v23 = vadd.f32 %v3650_v13, %v3588_v35 }
 0x335   :  { %v3043_v4 = vpop.f32.mrb[22].mxu1 }
 0x336   :  { %v10886_v50 = vadd.f32 %v3330_v33, %v14982_v32  ;;  %v3333_v36 = vadd.f32 %v10712_v60, %v3043_v4  ;;  %v3045_v0 = vpop.f32.mrb[23].mxu1  ;;  %v3652_v3 = vadd.f32 %v3651_v23, %v3589_v5  ;;  %v3592_v32 = vmul.f32 %v10869_v42, %v10869_v42 }
 0x337   :  { %v3593_v5 = vmul.f32 %v10876_v14, %v10876_v14 }
 0x338   :  { %v10891_v28 = vadd.f32 %v3333_v36, %v10430_v55  ;;  %v3653_v4 = vadd.f32 %v3652_v3, %v3590_v21 }
 0x33a   :  { %v3654_v0 = vadd.f32 %v3653_v4, %v3591_v61 }
 0x33b   :  { %v3048_v45 = vpop.f32.mrb[24].mxu1 }
 0x33c   :  { %v3338_v18 = vadd.f32 %v10734_v52, %v3048_v45  ;;  %v3050_v60 = vpop.f32.mrb[25].mxu1  ;;  %v3520_v52 = vadd.f32 %v3519_v48, %v10859_v54  ;;  %v3655_v23 = vadd.f32 %v3654_v0, %v3592_v32 }
 0x33d   :  { %v3051_v31 = vpop.f32.mrb[26].mxu1 }
 0x33e   :  { %v10901_v55 = vadd.f32 %v3338_v18, %v10442_v37  ;;  %v3341_v33 = vadd.f32 %v10744_v2, %v3051_v31  ;;  %v3053_v53 = vpop.f32.mrb[27].mxu1  ;;  %v3521_v37 = vadd.f32 %v3520_v52, %v10869_v42  ;;  %v3594_v18 = vmul.f32 %v10886_v50, %v10886_v50 }
 0x340   :  { %v10907_v35 = vadd.f32 %v3341_v33, %v10451_v27  ;;  %v3522_v21 = vadd.f32 %v3521_v37, %v10876_v14  ;;  %v3596_v61 = vmul.f32 %v10901_v55, %v10901_v55 }
 0x342   :  { %v3523_v31 = vadd.f32 %v3522_v21, %v10886_v50 }
 0x343   :  { %v3056_v36 = vpop.f32.mrb[28].mxu1 }
 0x344   :  { %v3346_v13 = vadd.f32 %v10731_v16, %v3056_v36  ;;  %v3058_v2 = vpop.f32.mrb[29].mxu1  ;;  %v3656_v16 = vadd.f32 %v3655_v23, %v3593_v5  ;;  %v3524_v4 = vadd.f32 %v3523_v31, %v10891_v28  ;;  %v8698_v36 = vld [vmem:[%s14533_s2 + $0x108] sm:$0xff]  }
 0x345   :  { %v3059_v19 = vpop.f32.mrb[30].mxu1  ;;  %4796 = vmatpush1.bf16.msra.mxu0 %v8698_v36 }
 0x346   :  { %v10917_v27 = vadd.f32 %v3346_v13, %v10439_v11  ;;  %v3349_v45 = vadd.f32 %v10739_v24, %v3059_v19  ;;  %v3061_v39 = vpop.f32.mrb[31].mxu1  ;;  %v3657_v48 = vadd.f32 %v3656_v16, %v3594_v18  ;;  %v3595_v11 = vmul.f32 %v10891_v28, %v10891_v28  ;;  %4797 = vmatprep.subr.bf16.mxu0 %v14953_v17  ;;  %v14983_v18 = vld [vmem:[#allocation104_spill] sm:$0xff] }
 0x348   :  { %v10924_v60 = vadd.f32 %v3349_v45, %v10448_v44  ;;  %v3658_v0 = vadd.f32 %v3657_v48, %v3595_v11  ;;  %v3598_v23 = vmul.f32 %v10917_v27, %v10917_v27  ;;  %v8700_v48 = vld [vmem:[%s14533_s2 + $0x118] sm:$0xff]  }
 0x34a   :  { %v3659_v13 = vadd.f32 %v3658_v0, %v3596_v61  ;;  %v8702_v61 = vld [vmem:[%s14533_s2 + $0x120] sm:$0xff]  }
 0x34b   :  { %v3064_v3 = vpop.f32.mrb[32].mxu1 }
 0x34c   :  { %v3354_v33 = vadd.f32 %v10765_v43, %v3064_v3  ;;  %v3066_v24 = vpop.f32.mrb[33].mxu1  ;;  %v3525_v43 = vadd.f32 %v3524_v4, %v10901_v55 }
 0x34d   :  { %v3067_v53 = vpop.f32.mrb[34].mxu1  ;;  %v14984_v24 = vld [vmem:[#allocation69_spill] sm:$0xff] }
 0x34e   :  { %v10934_v44 = vadd.f32 %v3354_v33, %v10460_v41  ;;  %v3357_v52 = vadd.f32 %v10776_v40, %v3067_v53  ;;  %v3069_v32 = vpop.f32.mrb[35].mxu1  ;;  %v3597_v41 = vmul.f32 %v10907_v35, %v10907_v35  ;;  %v8699_v40 = vld [vmem:[%s14533_s2 + $0x110] sm:$0xff]   ;;  %v3526_v19 = vadd.f32 %v3525_v43, %v10907_v35 }
 0x34f   :  { %4798 = vmatpush1.bf16.msra.mxu0 %v8699_v40  ;;  %v3599_v33 = vmul.f32 %v10924_v60, %v10924_v60 }
 0x350   :  { %v10942_v37 = vadd.f32 %v3357_v52, %v10468_v12  ;;  %4799 = vmatprep.subr.bf16.mxu0 %v14953_v17  ;;  %v3660_v39 = vadd.f32 %v3659_v13, %v3597_v41  ;;  %v3527_v21 = vadd.f32 %v3526_v19, %v10917_v27  ;;  %v3600_v4 = vmul.f32 %v10934_v44, %v10934_v44  ;;  %v8704_v52 = vld [vmem:[%s14533_s2 + $0x160] sm:$0xff]   ;;  %v14985_v19 = vld [vmem:[#allocation70_spill] sm:$0xff] }
 0x352   :  { %v3661_v11 = vadd.f32 %v3660_v39, %v3598_v23 }
 0x353   :  { %v3072_v2 = vpop.f32.mrb[36].mxu1  ;;  %4800 = vmatpush1.bf16.msra.mxu0 %v8700_v48 }
 0x354   :  { %v3362_v12 = vadd.f32 %v10761_v22, %v3072_v2  ;;  %v3074_v5 = vpop.f32.mrb[37].mxu1  ;;  %v8701_v22 = vld [vmem:[%s14533_s2 + $0x158] sm:$0xff]   ;;  %4801 = vmatprep.subr.bf16.mxu0 %v14953_v17  ;;  %v3662_v36 = vadd.f32 %v3661_v11, %v3599_v33  ;;  %v3601_v2 = vmul.f32 %v10942_v37, %v10942_v37 }
 0x355   :  { %v3075_v45 = vpop.f32.mrb[38].mxu1  ;;  %8378 = vmatprep.subr.bf16.mxu1 %v8701_v22 }
 0x356   :  { %v10957_v16 = vadd.f32 %v3362_v12, %v14983_v18  ;;  %v3365_v31 = vadd.f32 %v10770_v29, %v3075_v45  ;;  %v3077_v3 = vpop.f32.mrb[39].mxu1  ;;  %8379 = vmatpush3.bf16.msra.mxu1 %v8701_v22  ;;  %v3528_v29 = vadd.f32 %v3527_v21, %v10924_v60  ;;  %v3663_v40 = vadd.f32 %v3662_v36, %v3600_v4  ;;  %v8706_v45 = vld [vmem:[%s14533_s2 + $0x168] sm:$0xff]   ;;  %v8708_v4 = vld [vmem:[%s14533_s2 + $0x138] sm:$0xff]   ;;  %v14987_v36 = vld [vmem:[#allocation73_spill] sm:$0xff] }
 0x357   :  { %4802 = vmatpush1.bf16.msra.mxu0 %v8702_v61  ;;  %8380 = vmatprep.subr.bf16.mxu1 %v8704_v52 }
 0x358   :  { %v10969_v53 = vadd.f32 %v3365_v31, %v14984_v24  ;;  %v3529_v0 = vadd.f32 %v3528_v29, %v10934_v44  ;;  %4803 = vmatprep.subr.bf16.mxu0 %v14953_v17  ;;  %v3602_v21 = vmul.f32 %v10957_v16, %v10957_v16  ;;  %v8707_v31 = vld [vmem:[%s14533_s2 + $0x170] sm:$0xff]   ;;  %v3664_v3 = vadd.f32 %v3663_v40, %v3601_v2 }
 0x35a   :  { %8381 = vmatpush3.bf16.msra.mxu1 %v8704_v52  ;;  %v3530_v39 = vadd.f32 %v3529_v0, %v10942_v37  ;;  %v3665_v11 = vadd.f32 %v3664_v3, %v3602_v21  ;;  %v3603_v33 = vmul.f32 %v10969_v53, %v10969_v53  ;;  %v11023_v52 = vld [vmem:[%s14533_s2 + $0x80] sm:$0xff]  }
 0x35b   :  { %v3080_v32 = vpop.f32.mrb[40].mxu1  ;;  %8382 = vmatprep.subr.bf16.mxu1 %v8706_v45  ;;  %14986 = vst [vmem:[#allocation103_spill] sm:$0xff] %v11023_v52 }
 0x35c   :  { %v3370_v43 = vadd.f32 %v10794_v62, %v3080_v32  ;;  %v3082_v13 = vpop.f32.mrb[41].mxu1  ;;  %v8703_v62 = vld [vmem:[%s14533_s2 + $0x128] sm:$0xff]   ;;  %v3531_v48 = vadd.f32 %v3530_v39, %v10957_v16 }
 0x35d   :  { %v3083_v41 = vpop.f32.mrb[42].mxu1  ;;  %4804 = vmatpush1.bf16.msra.mxu0 %v8703_v62 }
 0x35e   :  { %v10987_v23 = vadd.f32 %v3370_v43, %v14985_v19  ;;  %v3373_v12 = vadd.f32 %v10800_v20, %v3083_v41  ;;  %v3085_v5 = vpop.f32.mrb[43].mxu1  ;;  %4805 = vmatprep.subr.bf16.mxu0 %v14953_v17  ;;  %v8705_v20 = vld [vmem:[%s14533_s2 + $0x130] sm:$0xff]   ;;  %8383 = vmatpush3.bf16.msra.mxu1 %v8706_v45  ;;  %v3532_v32 = vadd.f32 %v3531_v48, %v10969_v53 }
 0x35f   :  { %8384 = vmatprep.subr.bf16.mxu1 %v8707_v31  ;;  %v3666_v41 = vadd.f32 %v3665_v11, %v3603_v33 }
 0x360   :  { %v11000_v18 = vadd.f32 %v3373_v12, %v10482_v63  ;;  %v8709_v63 = vld [vmem:[%s14533_s2 + $0x178] sm:$0xff]   ;;  %v3533_v40 = vadd.f32 %v3532_v32, %v10987_v23 }
 0x361   :  { %4806 = vmatpush1.bf16.msra.mxu0 %v8705_v20 }
 0x362   :  { %4807 = vmatprep.subr.bf16.mxu0 %v14953_v17  ;;  %8385 = vmatpush3.bf16.msra.mxu1 %v8707_v31  ;;  %v3605_v12 = vmul.f32 %v11000_v18, %v11000_v18  ;;  %v14988_v31 = vld [vmem:[#allocation78_spill] sm:$0xff] }
 0x363   :  { %v3088_v22 = vpop.f32.mrb[44].mxu1  ;;  %8386 = vmatprep.subr.bf16.mxu1 %v8709_v63 }
 0x364   :  { %v3378_v24 = vadd.f32 %v10789_v6, %v3088_v22  ;;  %v3090_v29 = vpop.f32.mrb[45].mxu1  ;;  %v3604_v6 = vmul.f32 %v10987_v23, %v10987_v23 }
 0x365   :  { %v3091_v61 = vpop.f32.mrb[46].mxu1  ;;  %4808 = vmatpush1.bf16.msra.mxu0 %v8708_v4 }
 0x366   :  { %v11029_v0 = vadd.f32 %v3378_v24, %v14987_v36  ;;  %v3381_v43 = vadd.f32 %v10796_v47, %v3091_v61  ;;  %v3093_v13 = vpop.f32.mrb[47].mxu1  ;;  %8387 = vmatpush3.bf16.msra.mxu1 %v8709_v63  ;;  %8452 = vmatprep.subr.bf16.mxu0 %v11023_v52  ;;  %v3667_v19 = vadd.f32 %v3666_v41, %v3604_v6  ;;  %v15022_v52 = vld [vmem:[#allocation111_spill] sm:$0xff] }
 0x367   :  { %5499 = vmatprep.subr.bf16.mxu1 %v14953_v17  ;;  %v3534_v47 = vadd.f32 %v3533_v40, %v11000_v18  ;;  %v14989_v13 = vld [vmem:[#allocation71_spill] sm:$0xff]  ;;  %v15020_v17 = vld [vmem:[#allocation110_spill] sm:$0xff] }
 0x368   :  { %v11034_v2 = vadd.f32 %v3381_v43, %v10479_v26  ;;  %v3606_v62 = vmul.f32 %v11029_v0, %v11029_v0  ;;  %v3668_v21 = vadd.f32 %v3667_v19, %v3605_v12 }
 0x369   :  { %v3535_v20 = vadd.f32 %v3534_v47, %v11029_v0 }
 0x36a   :  { %v3669_v22 = vadd.f32 %v3668_v21, %v3606_v62  ;;  %v3607_v11 = vmul.f32 %v11034_v2, %v11034_v2 }
 0x36b   :  { %v3096_v5 = vpop.f32.mrb[48].mxu1 }
 0x36c   :  { %v3386_v45 = vadd.f32 %v10817_v57, %v3096_v5  ;;  %v3098_v26 = vpop.f32.mrb[49].mxu1  ;;  %v3536_v57 = vadd.f32 %v3535_v20, %v11034_v2  ;;  %v3670_v4 = vadd.f32 %v3669_v22, %v3607_v11  ;;  %v14990_v5 = vld [vmem:[#allocation72_spill] sm:$0xff] }
 0x36d   :  { %v3099_v39 = vpop.f32.mrb[50].mxu1 }
 0x36e   :  { %v11046_v3 = vadd.f32 %v3386_v45, %v14988_v31  ;;  %v3389_v48 = vadd.f32 %v10824_v59, %v3099_v39  ;;  %v3101_v63 = vpop.f32.mrb[51].mxu1 }
 0x370   :  { %v11052_v33 = vadd.f32 %v3389_v48, %v10494_v25  ;;  %v3608_v24 = vmul.f32 %v11046_v3, %v11046_v3  ;;  %v3537_v61 = vadd.f32 %v3536_v57, %v11046_v3  ;;  %v14991_v48 = vld [vmem:[#allocation83_spill] sm:$0xff] }
 0x372   :  { %v3671_v36 = vadd.f32 %v3670_v4, %v3608_v24  ;;  %v3609_v43 = vmul.f32 %v11052_v33, %v11052_v33  ;;  %v3538_v19 = vadd.f32 %v3537_v61, %v11052_v33 }
 0x373   :  { %v3104_v29 = vpop.f32.mrb[52].mxu1 }
 0x374   :  { %v3394_v32 = vadd.f32 %v10814_v49, %v3104_v29  ;;  %v3106_v59 = vpop.f32.mrb[53].mxu1  ;;  %v3672_v49 = vadd.f32 %v3671_v36, %v3609_v43  ;;  %v14992_v36 = vld [vmem:[#allocation96_spill] sm:$0xff] }
 0x375   :  { %v3107_v6 = vpop.f32.mrb[54].mxu1 }
 0x376   :  { %v11062_v25 = vadd.f32 %v3394_v32, %v14989_v13  ;;  %v3397_v41 = vadd.f32 %v10819_v1, %v3107_v6  ;;  %v3109_v40 = vpop.f32.mrb[55].mxu1 }
 0x378   :  { %v3610_v12 = vmul.f32 %v11062_v25, %v11062_v25  ;;  %v11069_v47 = vadd.f32 %v3397_v41, %v14990_v5  ;;  %v3539_v62 = vadd.f32 %v3538_v19, %v11062_v25  ;;  %v14993_v41 = vld [vmem:[#allocation77_spill] sm:$0xff] }
 0x379   :  { %v14994_v19 = vld [vmem:[#allocation101_spill] sm:$0xff] }
 0x37a   :  { %v3673_v26 = vadd.f32 %v3672_v49, %v3610_v12  ;;  %v3611_v39 = vmul.f32 %v11069_v47, %v11069_v47  ;;  %v3540_v31 = vadd.f32 %v3539_v62, %v11069_v47  ;;  %v14995_v62 = vld [vmem:[#allocation75_spill] sm:$0xff] }
 0x37b   :  { %v3112_v45 = vpop.f32.mrb[56].mxu1 }
 0x37c   :  { %v3402_v21 = vadd.f32 %v10841_v56, %v3112_v45  ;;  %v3114_v1 = vpop.f32.mrb[57].mxu1  ;;  %v3674_v57 = vadd.f32 %v3673_v26, %v3611_v39 }
 0x37d   :  { %v3115_v20 = vpop.f32.mrb[58].mxu1 }
 0x37e   :  { %v11077_v63 = vadd.f32 %v3402_v21, %v14991_v48  ;;  %v3405_v22 = vadd.f32 %v10849_v10, %v3115_v20  ;;  %v3117_v11 = vpop.f32.mrb[59].mxu1 }
 0x380   :  { %v3541_v24 = vadd.f32 %v3540_v31, %v11077_v63  ;;  %v3612_v29 = vmul.f32 %v11077_v63, %v11077_v63  ;;  %v11084_v4 = vadd.f32 %v3405_v22, %v10506_v38 }
 0x382   :  { %v3675_v56 = vadd.f32 %v3674_v57, %v3612_v29  ;;  %v3542_v61 = vadd.f32 %v3541_v24, %v11084_v4  ;;  %v3613_v32 = vmul.f32 %v11084_v4, %v11084_v4 }
 0x383   :  { %v3120_v59 = vpop.f32.mrb[60].mxu1 }
 0x384   :  { %v3676_v6 = vadd.f32 %v3675_v56, %v3613_v32  ;;  %v3410_v10 = vadd.f32 %v14992_v36, %v3120_v59  ;;  %v3122_v43 = vpop.f32.mrb[61].mxu1 }
 0x385   :  { %v3123_v13 = vpop.f32.mrb[62].mxu1 }
 0x386   :  { %v11091_v40 = vadd.f32 %v3410_v10, %v14993_v41  ;;  %v3413_v12 = vadd.f32 %v14994_v19, %v3123_v13  ;;  %v3125_v5 = vpop.f32.mrb[63].mxu1  ;;  %v3694_v41 = vlaneseq }
 0x388   :  { %v3543_v38 = vadd.f32 %v3542_v61, %v11091_v40  ;;  %v3614_v49 = vmul.f32 %v11091_v40, %v11091_v40  ;;  %v3479_v45 = vadd.f32 %v3413_v12, %v14995_v62  ;;  %v3695_v19 = vshrl.u32 %v3694_v41, 7  ;;  %v3480_v12 = vld [vmem:[%s14534_s3] sm:$0x1] }
 0x389   :  { %v3481_v62 = vld [vmem:[%s14535_s4] sm:$0x1] }
 0x38a   :  { %v3677_v26 = vadd.f32 %v3676_v6, %v3614_v49  ;;  %v3544_v39 = vadd.f32 %v3543_v38, %v3479_v45  ;;  %v3615_v21 = vmul.f32 %v3479_v45, %v3479_v45  ;;  %v11101_v5 = vsub.s32 0, %v3695_v19  ;;  %v15006_v19 = vld [vmem:[#allocation94_spill] sm:$0xff] }
 0x38c   :  { %v3545_v1 = vrot.slane %v3544_v39, 4  ;;  %v3678_v20 = vadd.f32 %v3677_v26, %v3615_v21  ;;  %14996 = vst [vmem:[#allocation99_spill] sm:$0xff] %v11101_v5 }
 0x38e   :  { %v3546_v31 = vadd.f32 %v3545_v1, %v3544_v39  ;;  %v3679_v48 = vrot.slane %v3678_v20, 4 }
 0x390   :  { %v3547_v22 = vrot.slane %v3546_v31, 2  ;;  %v3680_v11 = vadd.f32 %v3679_v48, %v3678_v20  ;;  %v14997_v20 = vld [vmem:[#allocation81_spill] sm:$0xff]  ;;  %v14998_v48 = vld [vmem:[#allocation79_spill] sm:$0xff] }
 0x392   :  { %v3548_v57 = vadd.f32 %v3547_v22, %v3546_v31  ;;  %v3681_v24 = vrot.slane %v3680_v11, 2 }
 0x394   :  { %v3549_v29 = vrot.slane %v3548_v57, 1  ;;  %v3682_v56 = vadd.f32 %v3681_v24, %v3680_v11  ;;  %v14999_v11 = vld [vmem:[#allocation76_spill] sm:$0xff]  ;;  %v15000_v24 = vld [vmem:[#allocation74_spill] sm:$0xff] }
 0x396   :  { %v3550_v32 = vadd.f32 %v3549_v29, %v3548_v57  ;;  %v3683_v61 = vrot.slane %v3682_v56, 1 }
 0x398   :  { %v3551_v59 = vmul.f32 0.001953125, %v3550_v32  ;;  %v3684_v36 = vadd.f32 %v3683_v61, %v3682_v56  ;;  %v15001_v56 = vld [vmem:[#allocation80_spill] sm:$0xff] }
 0x39a   :  { %v3685_v10 = vmul.f32 0.001953125, %v3684_v36  ;;  %v3686_v43 = vmul.f32 %v3551_v59, %v3551_v59  ;;  %v15003_v36 = vld [vmem:[#allocation82_spill] sm:$0xff] }
 0x39c   :  { %v3687_v13 = vsub.f32 %v3685_v10, %v3686_v43  ;;  %v15004_v43 = vld [vmem:[#allocation85_spill] sm:$0xff] }
 0x39e   :  { %v3688_v6 = vadd.f32 1e-05, %v3687_v13 }
 0x3a0   :  { %8758 = vrsqrt.f32 %v3688_v6  ;;  %v15005_v6 = vld [vmem:[#allocation86_spill] sm:$0xff] }
 0x3aa   :  { %v8759_v38 = vpop.eup %8758 }
 0x3ab   :  { %v3690_v49 = vmul.f32 %v8759_v38, %v3480_v12  ;;  %v15007_v38 = vld [vmem:[#allocation84_spill] sm:$0xff] }
 0x3ad   :  { %v3691_v26 = vmul.f32 %v3690_v49, %v3551_v59  ;;  %v11107_v39 = vrot.slane %v3690_v49, %v11101_v5 }
 0x3af   :  { %v3692_v21 = vsub.f32 %v3481_v62, %v3691_v26  ;;  %v3762_v1 = vmul.f32 %v11107_v39, %v3479_v45  ;;  %v11112_v31 = vmul.f32 %v11107_v39, %v14997_v20  ;;  %v11116_v22 = vmul.f32 %v11107_v39, %v14998_v48  ;;  %v15002_v45 = vld [vmem:[#allocation87_spill] sm:$0xff]  ;;  %v15008_v62 = vld [vmem:[#allocation92_spill] sm:$0xff] }
 0x3b0   :  { %v11120_v57 = vmul.f32 %v11107_v39, %v14999_v11  ;;  %v11124_v29 = vmul.f32 %v11107_v39, %v15000_v24  ;;  %v11128_v32 = vmul.f32 %v11107_v39, %v15001_v56  ;;  %v11132_v61 = vmul.f32 %v11107_v39, %v15002_v45  ;;  %v15010_v11 = vld [vmem:[#allocation98_spill] sm:$0xff]  ;;  %v15011_v56 = vld [vmem:[#allocation91_spill] sm:$0xff] }
 0x3b1   :  { %v11135_v59 = vrot.slane %v3692_v21, %v11101_v5  ;;  %v11139_v10 = vmul.f32 %v11107_v39, %v15003_v36  ;;  %v11143_v13 = vmul.f32 %v11107_v39, %v15004_v43  ;;  %v11147_v41 = vmul.f32 %v11107_v39, %v15005_v6  ;;  %v15009_v21 = vld [vmem:[#allocation89_spill] sm:$0xff]  ;;  %v15013_v6 = vld [vmem:[#allocation106_spill] sm:$0xff] }
 0x3b2   :  { %v11151_v12 = vmul.f32 %v11107_v39, %v15006_v19  ;;  %v11155_v49 = vmul.f32 %v11107_v39, %v15007_v38  ;;  %v11159_v26 = vmul.f32 %v11107_v39, %v15008_v62  ;;  %v11163_v20 = vmul.f32 %v11107_v39, %v15009_v21  ;;  %v15012_v36 = vld [vmem:[#allocation105_spill] sm:$0xff]  ;;  %v15015_v38 = vld [vmem:[#allocation107_spill] sm:$0xff] }
 0x3b3   :  { %v3832_v48 = vadd.f32 %v11135_v59, %v3762_v1  ;;  %v11168_v24 = vmul.f32 %v11107_v39, %v15010_v11  ;;  %v11172_v45 = vmul.f32 %v11107_v39, %v15011_v56  ;;  %v11176_v43 = vmul.f32 %v11107_v39, %v15012_v36  ;;  %v15017_v1 = vld [vmem:[#allocation108_spill] sm:$0xff]  ;;  %v15019_v11 = vld [vmem:[#allocation109_spill] sm:$0xff] }
 0x3b4   :  { %v11180_v19 = vmul.f32 %v11107_v39, %v15013_v6  ;;  %v11184_v62 = vmul.f32 %v11107_v39, %v15015_v38  ;;  %v11188_v21 = vmul.f32 %v11107_v39, %v15017_v1  ;;  %v11192_v56 = vmul.f32 %v11107_v39, %v15019_v11 }
 0x3b5   :  { %v3896_v5 = vmax.f32 %v3832_v48, 0.0  ;;  %v11196_v36 = vmul.f32 %v11107_v39, %v15020_v17  ;;  %v11200_v6 = vmul.f32 %v11107_v39, %v15022_v52  ;;  %v15029_v48 = vld [vmem:[#allocation93_spill] sm:$0xff] }
 0x3b6   :  { %15014 = vst [vmem:[#allocation102_spill] sm:$0xff] %v11180_v19  ;;  %15016 = vst [vmem:[#allocation65_spill] sm:$0xff] %v11184_v62  ;;  %v15024_v19 = vld [vmem:[#allocation100_spill] sm:$0xff]  ;;  %v11216_v17 = vmul.f32 %v11107_v39, %v15029_v48  ;;  %v11236_v48 = vmul.f32 %v11107_v39, %v10754_v34  ;;  %v11256_v34 = vmul.f32 %v11107_v39, %v10812_v30 }
 0x3b7   :  { %15018 = vst [vmem:[#allocation66_spill] sm:$0xff] %v11188_v21  ;;  %15021 = vst [vmem:[#allocation104_spill] sm:$0xff] %v11196_v36  ;;  %v11204_v38 = vmul.f32 %v11107_v39, %v15024_v19  ;;  %v15026_v62 = vld [vmem:[#allocation88_spill] sm:$0xff]  ;;  %v15028_v21 = vld [vmem:[#allocation95_spill] sm:$0xff]  ;;  %v11276_v30 = vmul.f32 %v11107_v39, %v10869_v42  ;;  %v11296_v42 = vmul.f32 %v11107_v39, %v10907_v35 }
 0x3b8   :  { %15023 = vst [vmem:[#allocation69_spill] sm:$0xff] %v11200_v6  ;;  %v11208_v1 = vmul.f32 %v11107_v39, %v15026_v62  ;;  %v11212_v11 = vmul.f32 %v11107_v39, %v15028_v21  ;;  %v15030_v36 = vld [vmem:[#allocation90_spill] sm:$0xff]  ;;  %v15031_v6 = vld [vmem:[#allocation97_spill] sm:$0xff]  ;;  %3960 = vst [vmem:[#allocation2 + $0x339] sm:$0xff] %v3896_v5  ;;  %v11316_v35 = vmul.f32 %v11107_v39, %v10957_v16 }
 0x3b9   :  { %15025 = vst [vmem:[#allocation70_spill] sm:$0xff] %v11204_v38  ;;  %v11220_v52 = vmul.f32 %v11107_v39, %v15030_v36  ;;  %v11224_v19 = vmul.f32 %v11107_v39, %v15031_v6  ;;  %v15032_v38 = vld [vmem:[#allocation112_spill] sm:$0xff]  ;;  %v11240_v36 = vmul.f32 %v11107_v39, %v10759_v58  ;;  %v11244_v6 = vmul.f32 %v11107_v39, %v10781_v46 }
 0x3ba   :  { %15027 = vst [vmem:[#allocation73_spill] sm:$0xff] %v11208_v1  ;;  %v11228_v62 = vmul.f32 %v11107_v39, %v15032_v38  ;;  %v15033_v1 = vld [vmem:[#allocation113_spill] sm:$0xff]  ;;  %v11248_v38 = vmul.f32 %v11107_v39, %v10787_v15  ;;  %v11260_v58 = vmul.f32 %v11107_v39, %v10830_v51  ;;  %v11264_v46 = vmul.f32 %v11107_v39, %v10835_v9 }
 0x3bb   :  { %v11232_v21 = vmul.f32 %v11107_v39, %v15033_v1  ;;  %v11252_v1 = vmul.f32 %v11107_v39, %v10805_v7  ;;  %v11268_v15 = vmul.f32 %v11107_v39, %v10853_v8  ;;  %v11272_v7 = vmul.f32 %v11107_v39, %v10859_v54 }
 0x3bc   :  { %v11280_v51 = vmul.f32 %v11107_v39, %v10876_v14  ;;  %v11284_v9 = vmul.f32 %v11107_v39, %v10886_v50  ;;  %v11288_v8 = vmul.f32 %v11107_v39, %v10891_v28  ;;  %v11292_v54 = vmul.f32 %v11107_v39, %v10901_v55 }
 0x3bd   :  { %v11300_v14 = vmul.f32 %v11107_v39, %v10917_v27  ;;  %v11304_v50 = vmul.f32 %v11107_v39, %v10924_v60  ;;  %v11308_v28 = vmul.f32 %v11107_v39, %v10934_v44  ;;  %v11312_v55 = vmul.f32 %v11107_v39, %v10942_v37 }
 0x3be   :  { %v11320_v27 = vmul.f32 %v11107_v39, %v10969_v53  ;;  %v11324_v60 = vmul.f32 %v11107_v39, %v10987_v23  ;;  %v11328_v44 = vmul.f32 %v11107_v39, %v11000_v18  ;;  %v11332_v37 = vmul.f32 %v11107_v39, %v11029_v0 }
 0x3bf   :  { %v11336_v16 = vmul.f32 %v11107_v39, %v11034_v2  ;;  %v11340_v53 = vmul.f32 %v11107_v39, %v11046_v3  ;;  %v11344_v23 = vmul.f32 %v11107_v39, %v11052_v33  ;;  %v11348_v18 = vmul.f32 %v11107_v39, %v11062_v25 }
 0x3c0   :  { %v11352_v0 = vmul.f32 %v11107_v39, %v11069_v47  ;;  %v11356_v2 = vmul.f32 %v11107_v39, %v11077_v63  ;;  %v11360_v3 = vmul.f32 %v11107_v39, %v11084_v4  ;;  %v11364_v33 = vmul.f32 %v11107_v39, %v11091_v40 }
 0x3c1   :  { %v11368_v25 = vadd.f32 %v11135_v59, %v11112_v31  ;;  %v11372_v47 = vadd.f32 %v11135_v59, %v11116_v22  ;;  %v11376_v63 = vadd.f32 %v11135_v59, %v11120_v57  ;;  %v11380_v4 = vadd.f32 %v11135_v59, %v11124_v29 }
 0x3c2   :  { %v11384_v40 = vadd.f32 %v11135_v59, %v11128_v32  ;;  %v11388_v5 = vadd.f32 %v11135_v59, %v11132_v61  ;;  %v11392_v39 = vadd.f32 %v11135_v59, %v11139_v10  ;;  %v11396_v31 = vadd.f32 %v11135_v59, %v11143_v13 }
 0x3c3   :  { %15034 = vst [vmem:[#allocation78_spill] sm:$0xff] %v11368_v25  ;;  %15035 = vst [vmem:[#allocation71_spill] sm:$0xff] %v11372_v47  ;;  %v11400_v22 = vadd.f32 %v11135_v59, %v11147_v41  ;;  %v11404_v57 = vadd.f32 %v11135_v59, %v11151_v12  ;;  %v11408_v29 = vadd.f32 %v11135_v59, %v11155_v49  ;;  %v15040_v12 = vld [vmem:[#allocation102_spill] sm:$0xff] }
 0x3c4   :  { %15036 = vst [vmem:[#allocation72_spill] sm:$0xff] %v11388_v5  ;;  %v11412_v32 = vadd.f32 %v11135_v59, %v11159_v26  ;;  %v11416_v61 = vadd.f32 %v11135_v59, %v11163_v20  ;;  %v11420_v10 = vadd.f32 %v11135_v59, %v11168_v24  ;;  %v11424_v13 = vadd.f32 %v11135_v59, %v11172_v45  ;;  %v15042_v26 = vld [vmem:[#allocation65_spill] sm:$0xff] }
 0x3c5   :  { %v11428_v41 = vadd.f32 %v11135_v59, %v11176_v43  ;;  %v11432_v49 = vadd.f32 %v11135_v59, %v15040_v12  ;;  %v11436_v20 = vadd.f32 %v11135_v59, %v15042_v26  ;;  %v11444_v45 = vadd.f32 %v11135_v59, %v11192_v56 }
 0x3c6   :  { %15037 = vst [vmem:[#allocation83_spill] sm:$0xff] %v11416_v61  ;;  %15038 = vst [vmem:[#allocation96_spill] sm:$0xff] %v11424_v13  ;;  %v15044_v61 = vld [vmem:[#allocation66_spill] sm:$0xff]  ;;  %v15045_v13 = vld [vmem:[#allocation104_spill] sm:$0xff]  ;;  %v11464_v56 = vadd.f32 %v11135_v59, %v11212_v11  ;;  %v11484_v11 = vadd.f32 %v11135_v59, %v11232_v21  ;;  %v11504_v21 = vadd.f32 %v11135_v59, %v11252_v1 }
 0x3c7   :  { %15039 = vst [vmem:[#allocation77_spill] sm:$0xff] %v11428_v41  ;;  %15041 = vst [vmem:[#allocation101_spill] sm:$0xff] %v11432_v49  ;;  %v11440_v24 = vadd.f32 %v11135_v59, %v15044_v61  ;;  %v11448_v43 = vadd.f32 %v11135_v59, %v15045_v13  ;;  %v15046_v41 = vld [vmem:[#allocation69_spill] sm:$0xff]  ;;  %v15047_v49 = vld [vmem:[#allocation70_spill] sm:$0xff]  ;;  %v11468_v13 = vadd.f32 %v11135_v59, %v11216_v17 }
 0x3c8   :  { %15043 = vst [vmem:[#allocation75_spill] sm:$0xff] %v11436_v20  ;;  %v11452_v12 = vadd.f32 %v11135_v59, %v15046_v41  ;;  %v11456_v26 = vadd.f32 %v11135_v59, %v15047_v49  ;;  %v15048_v20 = vld [vmem:[#allocation73_spill] sm:$0xff]  ;;  %v11472_v41 = vadd.f32 %v11135_v59, %v11220_v52  ;;  %v11476_v49 = vadd.f32 %v11135_v59, %v11224_v19 }
 0x3c9   :  { %v11460_v61 = vadd.f32 %v11135_v59, %v15048_v20  ;;  %v11480_v20 = vadd.f32 %v11135_v59, %v11228_v62  ;;  %v11488_v17 = vadd.f32 %v11135_v59, %v11236_v48  ;;  %v11492_v52 = vadd.f32 %v11135_v59, %v11240_v36 }
 0x3ca   :  { %v11496_v19 = vadd.f32 %v11135_v59, %v11244_v6  ;;  %v11500_v62 = vadd.f32 %v11135_v59, %v11248_v38  ;;  %v11508_v48 = vadd.f32 %v11135_v59, %v11256_v34  ;;  %v11512_v36 = vadd.f32 %v11135_v59, %v11260_v58 }
 0x3cb   :  { %v11516_v6 = vadd.f32 %v11135_v59, %v11264_v46  ;;  %v11520_v38 = vadd.f32 %v11135_v59, %v11268_v15  ;;  %v11524_v1 = vadd.f32 %v11135_v59, %v11272_v7  ;;  %v11528_v34 = vadd.f32 %v11135_v59, %v11276_v30 }
 0x3cc   :  { %v11532_v58 = vadd.f32 %v11135_v59, %v11280_v51  ;;  %v11536_v46 = vadd.f32 %v11135_v59, %v11284_v9  ;;  %v11540_v15 = vadd.f32 %v11135_v59, %v11288_v8  ;;  %v11544_v7 = vadd.f32 %v11135_v59, %v11292_v54 }
 0x3cd   :  { %15049 = vst [vmem:[#allocation81_spill] sm:$0xff] %v11516_v6  ;;  %15050 = vst [vmem:[#allocation79_spill] sm:$0xff] %v11520_v38  ;;  %v11548_v30 = vadd.f32 %v11135_v59, %v11296_v42  ;;  %v11552_v51 = vadd.f32 %v11135_v59, %v11300_v14  ;;  %v11556_v9 = vadd.f32 %v11135_v59, %v11304_v50 }
 0x3ce   :  { %15051 = vst [vmem:[#allocation76_spill] sm:$0xff] %v11524_v1  ;;  %15052 = vst [vmem:[#allocation74_spill] sm:$0xff] %v11528_v34  ;;  %v11560_v8 = vadd.f32 %v11135_v59, %v11308_v28  ;;  %v11564_v54 = vadd.f32 %v11135_v59, %v11312_v55  ;;  %v11568_v42 = vadd.f32 %v11135_v59, %v11316_v35 }
 0x3cf   :  { %15053 = vst [vmem:[#allocation80_spill] sm:$0xff] %v11532_v58  ;;  %v11572_v14 = vadd.f32 %v11135_v59, %v11320_v27  ;;  %v11576_v50 = vadd.f32 %v11135_v59, %v11324_v60  ;;  %v11580_v28 = vadd.f32 %v11135_v59, %v11328_v44  ;;  %v11584_v55 = vadd.f32 %v11135_v59, %v11332_v37 }
 0x3d0   :  { %v11588_v35 = vadd.f32 %v11135_v59, %v11336_v16  ;;  %v11592_v27 = vadd.f32 %v11135_v59, %v11340_v53  ;;  %v11596_v60 = vadd.f32 %v11135_v59, %v11344_v23  ;;  %v11600_v44 = vadd.f32 %v11135_v59, %v11348_v18 }
 0x3d1   :  { %v11604_v37 = vadd.f32 %v11135_v59, %v11352_v0  ;;  %v11608_v16 = vadd.f32 %v11135_v59, %v11356_v2  ;;  %v11612_v53 = vadd.f32 %v11135_v59, %v11360_v3  ;;  %v11616_v23 = vadd.f32 %v11135_v59, %v11364_v33  ;;  %v15059_v0 = vld [vmem:[#allocation83_spill] sm:$0xff]  ;;  %v15064_v59 = vld [vmem:[#allocation96_spill] sm:$0xff]  ;;  %v15065_v2 = vld [vmem:[#allocation77_spill] sm:$0xff] }
 0x3d2   :  { %15054 = vst [vmem:[#allocation87_spill] sm:$0xff] %v11596_v60  ;;  %15055 = vst [vmem:[#allocation82_spill] sm:$0xff] %v11600_v44  ;;  %v14666_v60 = vmax.f32 %v11368_v25, 0.0  ;;  %v15062_v3 = vmax.f32 %v11380_v4, 0.0  ;;  %v15066_v25 = vld [vmem:[#allocation101_spill] sm:$0xff]  ;;  %v3875_v33 = vmax.f32 %v11536_v46, 0.0 }
 0x3d3   :  { %15056 = vst [vmem:[#allocation85_spill] sm:$0xff] %v11604_v37  ;;  %15057 = vst [vmem:[#allocation86_spill] sm:$0xff] %v11608_v16  ;;  %v15060_v37 = vmax.f32 %v11372_v47, 0.0  ;;  %v15061_v16 = vmax.f32 %v11376_v63, 0.0  ;;  %v15067_v47 = vmax.f32 %v11388_v5, 0.0  ;;  %v15072_v5 = vmax.f32 %v11404_v57, 0.0 }
 0x3d4   :  { %15058 = vst [vmem:[#allocation94_spill] sm:$0xff] %v11612_v53  ;;  %3897 = vst [vmem:[#allocation2 + $0x19] sm:$0xff] %v14666_v60  ;;  %v15063_v53 = vmax.f32 %v11384_v40, 0.0  ;;  %v15076_v60 = vmax.f32 %v11420_v10, 0.0  ;;  %v3876_v44 = vmax.f32 %v11540_v15, 0.0  ;;  %v3877_v18 = vmax.f32 %v11544_v7, 0.0 }
 0x3d5   :  { %3898 = vst [vmem:[#allocation2 + $0x21] sm:$0xff] %v15060_v37  ;;  %3899 = vst [vmem:[#allocation2 + $0x31] sm:$0xff] %v15061_v16  ;;  %v15068_v37 = vmax.f32 %v11392_v39, 0.0  ;;  %v15069_v16 = vmax.f32 %v11396_v31, 0.0  ;;  %v3879_v46 = vmax.f32 %v11552_v51, 0.0  ;;  %v3880_v15 = vmax.f32 %v11556_v9, 0.0 }
 0x3d6   :  { %3900 = vst [vmem:[#allocation2 + $0x39] sm:$0xff] %v15062_v3  ;;  %3901 = vst [vmem:[#allocation2 + $0x49] sm:$0xff] %v15063_v53  ;;  %v15070_v3 = vmax.f32 %v11400_v22, 0.0  ;;  %v15071_v53 = vld [vmem:[#allocation75_spill] sm:$0xff]  ;;  %v3881_v7 = vmax.f32 %v11560_v8, 0.0  ;;  %v3882_v51 = vmax.f32 %v11564_v54, 0.0 }
 0x3d7   :  { %3902 = vst [vmem:[#allocation2 + $0x51] sm:$0xff] %v15067_v47  ;;  %3903 = vst [vmem:[#allocation2 + $0x61] sm:$0xff] %v15068_v37  ;;  %v15073_v47 = vmax.f32 %v11408_v29, 0.0  ;;  %v15074_v37 = vmax.f32 %v11412_v32, 0.0  ;;  %v3883_v9 = vmax.f32 %v11568_v42, 0.0  ;;  %v3884_v8 = vmax.f32 %v11572_v14, 0.0 }
 0x3d8   :  { %3904 = vst [vmem:[#allocation2 + $0x69] sm:$0xff] %v15069_v16  ;;  %3905 = vst [vmem:[#allocation2 + $0x79] sm:$0xff] %v15070_v3  ;;  %v15075_v16 = vmax.f32 %v15059_v0, 0.0  ;;  %v15080_v3 = vmax.f32 %v15071_v53, 0.0  ;;  %v3888_v54 = vmax.f32 %v11588_v35, 0.0  ;;  %v3889_v42 = vmax.f32 %v11592_v27, 0.0 }
 0x3d9   :  { %3906 = vst [vmem:[#allocation2 + $0x81] sm:$0xff] %v15072_v5  ;;  %3907 = vst [vmem:[#allocation2 + $0x91] sm:$0xff] %v15073_v47  ;;  %v15077_v5 = vmax.f32 %v15064_v59, 0.0  ;;  %v15078_v47 = vmax.f32 %v15065_v2, 0.0 }
 0x3da   :  { %3908 = vst [vmem:[#allocation2 + $0x99] sm:$0xff] %v15074_v37  ;;  %3909 = vst [vmem:[#allocation2 + $0xa9] sm:$0xff] %v15075_v16  ;;  %v15079_v37 = vmax.f32 %v15066_v25, 0.0  ;;  %v15084_v16 = vmax.f32 %v11452_v12, 0.0 }
 0x3db   :  { %3910 = vst [vmem:[#allocation2 + $0xb1] sm:$0xff] %v15076_v60  ;;  %3911 = vst [vmem:[#allocation2 + $0xc1] sm:$0xff] %v15077_v5  ;;  %v15081_v60 = vmax.f32 %v11440_v24, 0.0  ;;  %v15082_v5 = vmax.f32 %v11444_v45, 0.0  ;;  %v15109_v27 = vld [vmem:[#allocation94_spill] sm:$0xff] }
 0x3dc   :  { %3912 = vst [vmem:[#allocation2 + $0xc9] sm:$0xff] %v15078_v47  ;;  %3913 = vst [vmem:[#allocation2 + $0xd9] sm:$0xff] %v15079_v37  ;;  %v15083_v47 = vmax.f32 %v11448_v43, 0.0  ;;  %v15088_v37 = vmax.f32 %v11468_v13, 0.0 }
 0x3dd   :  { %3914 = vst [vmem:[#allocation2 + $0xe1] sm:$0xff] %v15080_v3  ;;  %3915 = vst [vmem:[#allocation2 + $0xf1] sm:$0xff] %v15081_v60  ;;  %v15085_v3 = vmax.f32 %v11456_v26, 0.0  ;;  %v15086_v60 = vmax.f32 %v11460_v61, 0.0  ;;  %v4491_v14 = vld [vmem:[#allocation2 + $0x32] sm:$0xff] }
 0x3de   :  { %3916 = vst [vmem:[#allocation2 + $0xf9] sm:$0xff] %v15082_v5  ;;  %3917 = vst [vmem:[#allocation2 + $0x109] sm:$0xff] %v15083_v47  ;;  %v15087_v5 = vmax.f32 %v11464_v56, 0.0  ;;  %v15092_v47 = vmax.f32 %v11484_v11, 0.0  ;;  %v4494_v35 = vld [vmem:[#allocation2 + $0x52] sm:$0xff] }
 0x3df   :  { %3918 = vst [vmem:[#allocation2 + $0x111] sm:$0xff] %v15084_v16  ;;  %3919 = vst [vmem:[#allocation2 + $0x121] sm:$0xff] %v15085_v3  ;;  %v15089_v16 = vmax.f32 %v11472_v41, 0.0  ;;  %v15090_v3 = vmax.f32 %v11476_v49, 0.0 }
 0x3e0   :  { %3920 = vst [vmem:[#allocation2 + $0x129] sm:$0xff] %v15086_v60  ;;  %3921 = vst [vmem:[#allocation2 + $0x139] sm:$0xff] %v15087_v5  ;;  %v15091_v60 = vmax.f32 %v11480_v20, 0.0  ;;  %v15096_v5 = vmax.f32 %v11500_v62, 0.0 }
 0x3e1   :  { %3922 = vst [vmem:[#allocation2 + $0x141] sm:$0xff] %v15088_v37  ;;  %3923 = vst [vmem:[#allocation2 + $0x151] sm:$0xff] %v15089_v16  ;;  %v15093_v37 = vmax.f32 %v11488_v17, 0.0  ;;  %v15094_v16 = vmax.f32 %v11492_v52, 0.0 }
 0x3e2   :  { %3924 = vst [vmem:[#allocation2 + $0x159] sm:$0xff] %v15090_v3  ;;  %3925 = vst [vmem:[#allocation2 + $0x169] sm:$0xff] %v15091_v60  ;;  %v15095_v3 = vmax.f32 %v11496_v19, 0.0  ;;  %v15100_v60 = vmax.f32 %v11516_v6, 0.0  ;;  %v3885_v6 = vmax.f32 %v11576_v50, 0.0  ;;  %v4492_v50 = vld [vmem:[#allocation2 + $0x3a] sm:$0xff] }
 0x3e3   :  { %3926 = vst [vmem:[#allocation2 + $0x171] sm:$0xff] %v15092_v47  ;;  %3927 = vst [vmem:[#allocation2 + $0x181] sm:$0xff] %v15093_v37  ;;  %v15097_v47 = vmax.f32 %v11504_v21, 0.0  ;;  %v15098_v37 = vmax.f32 %v11508_v48, 0.0 }
 0x3e4   :  { %3928 = vst [vmem:[#allocation2 + $0x189] sm:$0xff] %v15094_v16  ;;  %3929 = vst [vmem:[#allocation2 + $0x1c9] sm:$0xff] %v15095_v3  ;;  %v15099_v16 = vmax.f32 %v11512_v36, 0.0  ;;  %v3878_v3 = vmax.f32 %v11548_v30, 0.0  ;;  %v4297_v30 = vld [vmem:[#allocation2 + $0x18] sm:$0xff] }
 0x3e5   :  { %3930 = vst [vmem:[#allocation2 + $0x1d1] sm:$0xff] %v15096_v5  ;;  %3931 = vst [vmem:[#allocation2 + $0x1e1] sm:$0xff] %v15097_v47  ;;  %v15101_v5 = vmax.f32 %v11520_v38, 0.0  ;;  %v15102_v47 = vmax.f32 %v11524_v1, 0.0  ;;  %v15108_v38 = vld [vmem:[#allocation86_spill] sm:$0xff] }
 0x3e6   :  { %3932 = vst [vmem:[#allocation2 + $0x1e9] sm:$0xff] %v15098_v37  ;;  %3933 = vst [vmem:[#allocation2 + $0x1f9] sm:$0xff] %v15099_v16  ;;  %v15103_v37 = vmax.f32 %v11528_v34, 0.0  ;;  %v4489_v16 = vld [vmem:[#allocation2 + $0x1a] sm:$0xff]  ;;  %v3887_v34 = vmax.f32 %v11584_v55, 0.0  ;;  %v4493_v55 = vld [vmem:[#allocation2 + $0x4a] sm:$0xff] }
 0x3e7   :  { %3934 = vst [vmem:[#allocation2 + $0x201] sm:$0xff] %v15100_v60  ;;  %3935 = vst [vmem:[#allocation2 + $0x211] sm:$0xff] %v15101_v5  ;;  %v15104_v60 = vmax.f32 %v11532_v58, 0.0  ;;  %v4490_v5 = vld [vmem:[#allocation2 + $0x22] sm:$0xff]  ;;  %v15107_v58 = vld [vmem:[#allocation85_spill] sm:$0xff] }
 0x3e8   :  { %3936 = vst [vmem:[#allocation2 + $0x219] sm:$0xff] %v15102_v47  ;;  %3937 = vst [vmem:[#allocation2 + $0x229] sm:$0xff] %v15103_v37  ;;  %v4298_v47 = vld [vmem:[#allocation2 + $0x20] sm:$0xff]  ;;  %v3886_v37 = vmax.f32 %v11580_v28, 0.0  ;;  %v3892_v1 = vmax.f32 %v15107_v58, 0.0  ;;  %v3893_v28 = vmax.f32 %v15108_v38, 0.0  ;;  %v4553_v38 = vpack.c.bf16 %v4490_v5, %v4489_v16 }
 0x3e9   :  { %3938 = vst [vmem:[#allocation2 + $0x231] sm:$0xff] %v15104_v60  ;;  %3939 = vst [vmem:[#allocation2 + $0x241] sm:$0xff] %v3875_v33  ;;  %v15105_v60 = vld [vmem:[#allocation87_spill] sm:$0xff]  ;;  %v15116_v16 = vmax.f32 %v11384_v40, 0.0  ;;  %v15117_v5 = vld [vmem:[#allocation72_spill] sm:$0xff]  ;;  %v15120_v40 = vmax.f32 %v11396_v31, 0.0 }
 0x3ea   :  { %3940 = vst [vmem:[#allocation2 + $0x249] sm:$0xff] %v3876_v44  ;;  %3941 = vst [vmem:[#allocation2 + $0x259] sm:$0xff] %v3877_v18  ;;  %v3890_v33 = vmax.f32 %v15105_v60, 0.0  ;;  %v15106_v44 = vld [vmem:[#allocation82_spill] sm:$0xff]  ;;  %v15112_v60 = vld [vmem:[#allocation71_spill] sm:$0xff]  ;;  %8388 = vmatprep.mubr.bf16.mxu1 %v4553_v38  ;;  %v15125_v31 = vmax.f32 %v11412_v32, 0.0 }
 0x3eb   :  { %3942 = vst [vmem:[#allocation2 + $0x261] sm:$0xff] %v3878_v3  ;;  %3943 = vst [vmem:[#allocation2 + $0x271] sm:$0xff] %v3879_v46  ;;  %v3891_v18 = vmax.f32 %v15106_v44, 0.0  ;;  %v3894_v3 = vmax.f32 %v15109_v27, 0.0  ;;  %v3895_v46 = vmax.f32 %v11616_v23, 0.0  ;;  %v15113_v58 = vmax.f32 %v15112_v60, 0.0 }
 0x3ec   :  { %3944 = vst [vmem:[#allocation2 + $0x279] sm:$0xff] %v3880_v15  ;;  %3945 = vst [vmem:[#allocation2 + $0x289] sm:$0xff] %v3881_v7  ;;  %v15110_v15 = vld [vmem:[#allocation78_spill] sm:$0xff]  ;;  %v15114_v23 = vmax.f32 %v11376_v63, 0.0  ;;  %v8713_v63 = vld [vmem:[%s14533_s2] sm:$0xff]   ;;  %v15131_v32 = vmax.f32 %v15071_v53, 0.0 }
 0x3ed   :  { %3946 = vst [vmem:[#allocation2 + $0x291] sm:$0xff] %v3882_v51  ;;  %3947 = vst [vmem:[#allocation2 + $0x2a1] sm:$0xff] %v3883_v9  ;;  %v15111_v7 = vmax.f32 %v15110_v15, 0.0  ;;  %v4554_v51 = vpack.c.bf16 %v4492_v50, %v4491_v14  ;;  %v15122_v14 = vmax.f32 %v11400_v22, 0.0  ;;  %v15123_v50 = vmax.f32 %v11404_v57, 0.0  ;;  %v4497_v60 = vld [vmem:[#allocation2 + $0x7a] sm:$0xff] }
 0x3ee   :  { %3948 = vst [vmem:[#allocation2 + $0x2a9] sm:$0xff] %v3884_v8  ;;  %3949 = vst [vmem:[#allocation2 + $0x2b9] sm:$0xff] %v3885_v6  ;;  %v11771_v6 = vpack.c.bf16 %v4298_v47, %v4297_v30  ;;  %v4555_v8 = vpack.c.bf16 %v4494_v35, %v4493_v55  ;;  %v8711_v30 = vld [vmem:[%s14533_s2 + $0x88] sm:$0xff]   ;;  %v15126_v22 = vmax.f32 %v15059_v0, 0.0  ;;  %v15127_v57 = vmax.f32 %v11420_v10, 0.0 }
 0x3ef   :  { %3950 = vst [vmem:[#allocation2 + $0x2c1] sm:$0xff] %v3886_v37  ;;  %3951 = vst [vmem:[#allocation2 + $0x2d1] sm:$0xff] %v3887_v34  ;;  %v11769_v44 = vpack.c.bf16 %v15113_v58, %v15111_v7  ;;  %v15115_v34 = vmax.f32 %v11380_v4, 0.0  ;;  %v15118_v37 = vmax.f32 %v15117_v5, 0.0  ;;  %8389 = vmatmul.mubr.bf16.vlgmr.msra.gmra.mrb[64].mxu1 %v4554_v51  ;;  %v15119_v4 = vmax.f32 %v11392_v39, 0.0  ;;  %v4495_v55 = vld [vmem:[#allocation2 + $0x62] sm:$0xff] }
 0x3f0   :  { %3952 = vst [vmem:[#allocation2 + $0x2d9] sm:$0xff] %v3888_v54  ;;  %3953 = vst [vmem:[#allocation2 + $0x2e9] sm:$0xff] %v3889_v42  ;;  %8392 = vmatprep.mubr.bf16.mxu1 %v4555_v8  ;;  %v15121_v54 = vld [vmem:[#allocation103_spill] sm:$0xff]  ;;  %v4299_v42 = vld [vmem:[#allocation2 + $0x30] sm:$0xff]  ;;  %v15124_v39 = vmax.f32 %v11408_v29, 0.0  ;;  %v15129_v15 = vmax.f32 %v15065_v2, 0.0  ;;  %5500 = vmatpush1.bf16.msra.mxu1 %v8713_v63 }
 0x3f1   :  { %3954 = vst [vmem:[#allocation2 + $0x2f1] sm:$0xff] %v3890_v33  ;;  %3955 = vst [vmem:[#allocation2 + $0x301] sm:$0xff] %v3891_v18  ;;  %v4458_v9 = vpack.c.bf16 %v15115_v34, %v15114_v23  ;;  %4809 = vmatprep.mubr.bf16.mxu0 %v11769_v44  ;;  %v4460_v47 = vpack.c.bf16 %v15120_v40, %v15119_v4  ;;  %v11798_v33 = vpack.c.bf16 %v15123_v50, %v15122_v14  ;;  %v8712_v18 = vld [vmem:[%s14533_s2 + $0x90] sm:$0xff]   ;;  %v4498_v58 = vld [vmem:[#allocation2 + $0x82] sm:$0xff] }
 0x3f2   :  { %3956 = vst [vmem:[#allocation2 + $0x309] sm:$0xff] %v3892_v1  ;;  %3957 = vst [vmem:[#allocation2 + $0x319] sm:$0xff] %v3893_v28  ;;  %v4459_v1 = vpack.c.bf16 %v15118_v37, %v15116_v16  ;;  %4810 = vmatmul.mubr.bf16.vlgmr.msra.gmra.mrb[0].mxu0 %v11771_v6  ;;  %v4300_v28 = vld [vmem:[#allocation2 + $0x38] sm:$0xff]  ;;  %v4496_v35 = vld [vmem:[#allocation2 + $0x6a] sm:$0xff]  ;;  %v11807_v27 = vpack.c.bf16 %v15125_v31, %v15124_v39  ;;  %v15130_v29 = vmax.f32 %v15066_v25, 0.0  ;;  %v15132_v0 = vmax.f32 %v11440_v24, 0.0 }
 0x3f3   :  { %3958 = vst [vmem:[#allocation2 + $0x321] sm:$0xff] %v3894_v3  ;;  %3959 = vst [vmem:[#allocation2 + $0x331] sm:$0xff] %v3895_v46  ;;  %4817 = vmatprep.mubr.bf16.mxu0 %v4458_v9  ;;  %8453 = vmatpush3.bf16.msra.mxu0 %v15121_v54  ;;  %v11813_v3 = vpack.c.bf16 %v15127_v57, %v15126_v22  ;;  %v15128_v46 = vmax.f32 %v15064_v59, 0.0  ;;  %v15133_v10 = vmax.f32 %v11444_v45, 0.0  ;;  %v15134_v59 = vmov 0   ;;  %v15160_v31 = vld [vmem:[#allocation80_spill] sm:$0xff] }
 0x3f4   :  { %8454 = vmatprep.subr.bf16.mxu0 %v8711_v30  ;;  %v11825_v38 = vpack.c.bf16 %v15131_v32, %v15130_v29  ;;  %5501 = vmatprep.subr.bf16.mxu1 %v15134_v59  ;;  %v15135_v2 = vmax.f32 %v11448_v43, 0.0  ;;  %v15136_v23 = vmax.f32 %v11452_v12, 0.0  ;;  %v15137_v25 = vmax.f32 %v11456_v26, 0.0  ;;  %v8714_v43 = vld [vmem:[%s14533_s2 + $0x8] sm:$0xff]   ;;  %v4502_v29 = vld [vmem:[#allocation2 + $0xb2] sm:$0xff] }
 0x3f5   :  { %v11819_v7 = vpack.c.bf16 %v15129_v15, %v15128_v46  ;;  %v11831_v51 = vpack.c.bf16 %v15133_v10, %v15132_v0  ;;  %v15138_v53 = vmax.f32 %v11460_v61, 0.0  ;;  %v15139_v24 = vmax.f32 %v11464_v56, 0.0  ;;  %v4301_v46 = vld [vmem:[#allocation2 + $0x48] sm:$0xff]  ;;  %5502 = vmatpush1.bf16.msra.mxu1 %v8714_v43  ;;  %v4499_v15 = vld [vmem:[#allocation2 + $0x92] sm:$0xff] }
 0x3f6   :  { %v11838_v34 = vpack.c.bf16 %v15136_v23, %v15135_v2  ;;  %v15140_v45 = vmax.f32 %v11468_v13, 0.0  ;;  %v11852_v16 = vpack.c.bf16 %v4300_v28, %v4299_v42  ;;  %v4556_v5 = vpack.c.bf16 %v4496_v35, %v4495_v55  ;;  %v15156_v55 = vld [vmem:[#allocation76_spill] sm:$0xff]  ;;  %5503 = vmatprep.subr.bf16.mxu1 %v15134_v59  ;;  %v4303_v2 = vld [vmem:[#allocation2 + $0x60] sm:$0xff] }
 0x3f7   :  { %v11844_v9 = vpack.c.bf16 %v15138_v53, %v15137_v25  ;;  %8455 = vmatpush3.bf16.msra.mxu0 %v8711_v30  ;;  %v15141_v12 = vmax.f32 %v11472_v41, 0.0  ;;  %v15142_v26 = vmax.f32 %v11476_v49, 0.0  ;;  %v15143_v56 = vmax.f32 %v11480_v20, 0.0  ;;  %v8721_v30 = vld [vmem:[%s14533_s2 + $0x98] sm:$0xff]   ;;  %v8717_v23 = vld [vmem:[%s14533_s2 + $0x20] sm:$0xff]   ;;  %v4304_v25 = vld [vmem:[#allocation2 + $0x68] sm:$0xff] }
 0x3f8   :  { %v11850_v8 = vpack.c.bf16 %v15140_v45, %v15139_v24  ;;  %v15144_v13 = vmax.f32 %v11484_v11, 0.0  ;;  %v4557_v63 = vpack.c.bf16 %v4498_v58, %v4497_v60  ;;  %8456 = vmatprep.subr.bf16.mxu0 %v8712_v18  ;;  %v15145_v4 = vmax.f32 %v11488_v17, 0.0  ;;  %8393 = vmatmul.mubr.bf16.gmra.mrb[68].mxu1 %v4556_v5  ;;  %v4500_v60 = vld [vmem:[#allocation2 + $0x9a] sm:$0xff]  ;;  %v4501_v58 = vld [vmem:[#allocation2 + $0xaa] sm:$0xff]  ;;  %v4503_v53 = vld [vmem:[#allocation2 + $0xc2] sm:$0xff] }
 0x3f9   :  { %v11861_v61 = vpack.c.bf16 %v15142_v26, %v15141_v12  ;;  %v15146_v41 = vmax.f32 %v11492_v52, 0.0  ;;  %v15147_v49 = vmax.f32 %v11496_v19, 0.0  ;;  %v15148_v20 = vmax.f32 %v11500_v62, 0.0  ;;  %v15152_v52 = vld [vmem:[#allocation81_spill] sm:$0xff]  ;;  %v15154_v19 = vld [vmem:[#allocation79_spill] sm:$0xff] }
 0x3fa   :  { %v11867_v37 = vpack.c.bf16 %v15144_v13, %v15143_v56  ;;  %v15149_v11 = vmax.f32 %v11504_v21, 0.0  ;;  %v15150_v42 = vmax.f32 %v11508_v48, 0.0  ;;  %4818 = vmatmul.mubr.bf16.gmra.mrb[4].mxu0 %v11852_v16  ;;  %v15151_v17 = vmax.f32 %v11512_v36, 0.0  ;;  %8396 = vmatprep.mubr.bf16.mxu1 %v4557_v63  ;;  %v15158_v48 = vld [vmem:[#allocation74_spill] sm:$0xff]  ;;  %v8715_v36 = vld [vmem:[%s14533_s2 + $0x10] sm:$0xff]   ;;  %v4506_v5 = vld [vmem:[#allocation2 + $0xe2] sm:$0xff] }
 0x3fb   :  { %v11876_v40 = vpack.c.bf16 %v15146_v41, %v15145_v4  ;;  %v11882_v54 = vpack.c.bf16 %v15148_v20, %v15147_v49  ;;  %v15153_v50 = vmax.f32 %v15152_v52, 0.0  ;;  %4825 = vmatprep.mubr.bf16.mxu0 %v4459_v1  ;;  %v15155_v62 = vmax.f32 %v15154_v19, 0.0  ;;  %8457 = vmatpush3.bf16.msra.mxu0 %v8712_v18  ;;  %v4302_v1 = vld [vmem:[#allocation2 + $0x50] sm:$0xff]  ;;  %v8716_v18 = vld [vmem:[%s14533_s2 + $0x18] sm:$0xff]   ;;  %v8730_v63 = vld [vmem:[%s14533_s2 + $0xa0] sm:$0xff]  }
 0x3fc   :  { %v11888_v14 = vpack.c.bf16 %v15150_v42, %v15149_v11  ;;  %v15157_v35 = vmax.f32 %v15156_v55, 0.0  ;;  %v15159_v39 = vmax.f32 %v15158_v48, 0.0  ;;  %v15161_v22 = vmax.f32 %v15160_v31, 0.0  ;;  %8458 = vmatprep.subr.bf16.mxu0 %v8721_v30  ;;  %5504 = vmatpush1.bf16.msra.mxu1 %v8715_v36  ;;  %v4504_v24 = vld [vmem:[#allocation2 + $0xca] sm:$0xff]  ;;  %v4505_v45 = vld [vmem:[#allocation2 + $0xda] sm:$0xff]  ;;  %v4507_v4 = vld [vmem:[#allocation2 + $0xf2] sm:$0xff] }
 0x3fd   :  { %v11895_v28 = vpack.c.bf16 %v15153_v50, %v15151_v17  ;;  %v11913_v32 = vpack.c.bf16 %v4302_v1, %v4301_v46  ;;  %v4558_v0 = vpack.c.bf16 %v4500_v60, %v4499_v15  ;;  %v4559_v10 = vpack.c.bf16 %v4502_v29, %v4501_v58  ;;  %5505 = vmatprep.subr.bf16.mxu1 %v15134_v59  ;;  %v4305_v56 = vld [vmem:[#allocation2 + $0x78] sm:$0xff]  ;;  %v8719_v13 = vld [vmem:[%s14533_s2 + $0x30] sm:$0xff]   ;;  %v8731_v52 = vld [vmem:[%s14533_s2 + $0xa8] sm:$0xff]  }
 0x3fe   :  { %v11901_v21 = vpack.c.bf16 %v15157_v35, %v15155_v62  ;;  %v11907_v57 = vpack.c.bf16 %v15161_v22, %v15159_v39  ;;  %v11924_v43 = vpack.c.bf16 %v4304_v25, %v4303_v2  ;;  %v4560_v12 = vpack.c.bf16 %v4504_v24, %v4503_v53  ;;  %v4508_v41 = vld [vmem:[#allocation2 + $0xfa] sm:$0xff]  ;;  %v4509_v49 = vld [vmem:[#allocation2 + $0x10a] sm:$0xff]  ;;  %v4510_v20 = vld [vmem:[#allocation2 + $0x112] sm:$0xff] }
 0x3ff   :  { %8459 = vmatpush3.bf16.msra.mxu0 %v8721_v30  ;;  %v4561_v26 = vpack.c.bf16 %v4506_v5, %v4505_v45  ;;  %v4306_v30 = vld [vmem:[#allocation2 + $0x80] sm:$0xff]  ;;  %v4562_v11 = vpack.c.bf16 %v4508_v41, %v4507_v4  ;;  %v8720_v42 = vld [vmem:[%s14533_s2 + $0x38] sm:$0xff]   ;;  %v4563_v17 = vpack.c.bf16 %v4510_v20, %v4509_v49  ;;  %v4307_v50 = vld [vmem:[#allocation2 + $0x90] sm:$0xff] }
 0x400   :  { %8397 = vmatmul.mubr.bf16.gmra.mrb[72].mxu1 %v4558_v0  ;;  %8460 = vmatprep.subr.bf16.mxu0 %v8730_v63  ;;  %v8722_v19 = vld [vmem:[%s14533_s2 + $0x40] sm:$0xff]   ;;  %v4308_v62 = vld [vmem:[#allocation2 + $0x98] sm:$0xff]  ;;  %v4512_v35 = vld [vmem:[#allocation2 + $0x12a] sm:$0xff] }
 0x401   :  { %8400 = vmatprep.mubr.bf16.mxu1 %v4559_v10  ;;  %5506 = vmatpush1.bf16.msra.mxu1 %v8716_v18  ;;  %v4511_v55 = vld [vmem:[#allocation2 + $0x122] sm:$0xff]  ;;  %v4513_v48 = vld [vmem:[#allocation2 + $0x13a] sm:$0xff]  ;;  %v11954_v31 = vpack.c.bf16 %v4308_v62, %v4307_v50  ;;  %v8724_v1 = vld [vmem:[%s14533_s2 + $0x50] sm:$0xff]  }
 0x402   :  { %4826 = vmatmul.mubr.bf16.gmra.mrb[8].mxu0 %v11913_v32  ;;  %5507 = vmatprep.subr.bf16.mxu1 %v15134_v59  ;;  %v4514_v39 = vld [vmem:[#allocation2 + $0x142] sm:$0xff]  ;;  %v4564_v22 = vpack.c.bf16 %v4512_v35, %v4511_v55  ;;  %v4310_v15 = vld [vmem:[#allocation2 + $0xb0] sm:$0xff]  ;;  %v4516_v58 = vld [vmem:[#allocation2 + $0x15a] sm:$0xff] }
 0x403   :  { %4833 = vmatprep.mubr.bf16.mxu0 %v4460_v47  ;;  %v8718_v47 = vld [vmem:[%s14533_s2 + $0x28] sm:$0xff]   ;;  %8461 = vmatpush3.bf16.msra.mxu0 %v8730_v63  ;;  %v4565_v46 = vpack.c.bf16 %v4514_v39, %v4513_v48  ;;  %v4515_v60 = vld [vmem:[#allocation2 + $0x152] sm:$0xff]  ;;  %v8726_v25 = vld [vmem:[%s14533_s2 + $0x60] sm:$0xff]  }
 0x404   :  { %8462 = vmatprep.subr.bf16.mxu0 %v8731_v52  ;;  %v4309_v36 = vld [vmem:[#allocation2 + $0xa8] sm:$0xff]  ;;  %v4518_v0 = vld [vmem:[#allocation2 + $0x172] sm:$0xff]  ;;  %v4566_v10 = vpack.c.bf16 %v4516_v58, %v4515_v60  ;;  %v4525_v49 = vld [vmem:[#allocation2 + $0x1fa] sm:$0xff] }
 0x405   :  { %5508 = vmatpush1.bf16.msra.mxu1 %v8717_v23  ;;  %v4517_v29 = vld [vmem:[#allocation2 + $0x16a] sm:$0xff]  ;;  %v11966_v18 = vpack.c.bf16 %v4310_v15, %v4309_v36  ;;  %v4311_v23 = vld [vmem:[#allocation2 + $0xc0] sm:$0xff]  ;;  %v4527_v62 = vld [vmem:[#allocation2 + $0x212] sm:$0xff] }
 0x406   :  { %5509 = vmatprep.subr.bf16.mxu1 %v15134_v59  ;;  %v4567_v2 = vpack.c.bf16 %v4518_v0, %v4517_v29  ;;  %v4312_v53 = vld [vmem:[#allocation2 + $0xc8] sm:$0xff]  ;;  %v8728_v63 = vld [vmem:[%s14533_s2 + $0x70] sm:$0xff]   ;;  %v4528_v55 = vld [vmem:[#allocation2 + $0x21a] sm:$0xff] }
 0x407   :  { %8463 = vmatpush3.bf16.msra.mxu0 %v8731_v52  ;;  %v4519_v24 = vld [vmem:[#allocation2 + $0x182] sm:$0xff]  ;;  %v4520_v45 = vld [vmem:[#allocation2 + $0x18a] sm:$0xff]  ;;  %v4530_v48 = vld [vmem:[#allocation2 + $0x232] sm:$0xff] }
 0x408   :  { %8401 = vmatmul.mubr.bf16.gmra.mrb[76].mxu1 %v4560_v12  ;;  %v4521_v5 = vld [vmem:[#allocation2 + $0x1ca] sm:$0xff]  ;;  %v4522_v12 = vld [vmem:[#allocation2 + $0x1d2] sm:$0xff]  ;;  %v4523_v4 = vld [vmem:[#allocation2 + $0x1e2] sm:$0xff] }
 0x409   :  { %8404 = vmatprep.mubr.bf16.mxu1 %v4561_v26  ;;  %5510 = vmatpush1.bf16.msra.mxu1 %v8718_v47  ;;  %v11978_v47 = vpack.c.bf16 %v4312_v53, %v4311_v23  ;;  %v4568_v26 = vpack.c.bf16 %v4520_v45, %v4519_v24  ;;  %v4524_v41 = vld [vmem:[#allocation2 + $0x1ea] sm:$0xff]  ;;  %v4526_v20 = vld [vmem:[#allocation2 + $0x202] sm:$0xff]  ;;  %v4533_v15 = vld [vmem:[#allocation2 + $0x25a] sm:$0xff] }
 0x40a   :  { %4834 = vmatmul.mubr.bf16.gmra.mrb[12].mxu0 %v11924_v43  ;;  %5511 = vmatprep.subr.bf16.mxu1 %v15134_v59  ;;  %v8732_v52 = vld [vmem:[%s14533_s2 + $0xb0] sm:$0xff]   ;;  %v4531_v36 = vld [vmem:[#allocation2 + $0x242] sm:$0xff] }
 0x40b   :  { %4841 = vmatprep.mubr.bf16.mxu0 %v11798_v33  ;;  %v11939_v33 = vpack.c.bf16 %v4306_v30, %v4305_v56  ;;  %v4569_v56 = vpack.c.bf16 %v4522_v12, %v4521_v5  ;;  %v4314_v30 = vld [vmem:[#allocation2 + $0xe0] sm:$0xff]  ;;  %v4315_v50 = vld [vmem:[#allocation2 + $0xf0] sm:$0xff]  ;;  %8464 = vmatprep.subr.bf16.mxu0 %v8732_v52  ;;  %v4321_v5 = vld [vmem:[#allocation2 + $0x138] sm:$0xff] }
 0x40c   :  { %8465 = vmatpush3.bf16.msra.mxu0 %v8732_v52  ;;  %v4529_v35 = vld [vmem:[#allocation2 + $0x22a] sm:$0xff]  ;;  %v4534_v60 = vld [vmem:[#allocation2 + $0x262] sm:$0xff] }
 0x40d   :  { %5512 = vmatpush1.bf16.msra.mxu1 %v8719_v13  ;;  %v4313_v13 = vld [vmem:[#allocation2 + $0xd8] sm:$0xff]  ;;  %v4575_v0 = vpack.c.bf16 %v4534_v60, %v4533_v15  ;;  %v4537_v23 = vld [vmem:[#allocation2 + $0x28a] sm:$0xff]  ;;  %v4322_v12 = vld [vmem:[#allocation2 + $0x140] sm:$0xff] }
 0x40e   :  { %5513 = vmatprep.subr.bf16.mxu1 %v15134_v59  ;;  %v4328_v15 = vld [vmem:[#allocation2 + $0x188] sm:$0xff]  ;;  %v4551_v60 = vld [vmem:[#allocation2 + $0x332] sm:$0xff] }
 0x410   :  { %8405 = vmatmul.mubr.bf16.gmra.mrb[80].mxu1 %v4562_v11  ;;  %v11990_v11 = vpack.c.bf16 %v4314_v30, %v4313_v13  ;;  %v12013_v13 = vpack.c.bf16 %v4322_v12, %v4321_v5  ;;  %v4061_v5 = vld [vmem:[#allocation2 + $0x31] sm:$0xff]  ;;  %v4062_v12 = vld [vmem:[#allocation2 + $0x39] sm:$0xff] }
 0x411   :  { %8408 = vmatprep.mubr.bf16.mxu1 %v4563_v17  ;;  %5514 = vmatpush1.bf16.msra.mxu1 %v8720_v42  ;;  %v4570_v42 = vpack.c.bf16 %v4524_v41, %v4523_v4  ;;  %v4571_v17 = vpack.c.bf16 %v4526_v20, %v4525_v49  ;;  %v8733_v4 = vld [vmem:[%s14533_s2 + $0xb8] sm:$0xff]  }
 0x412   :  { %4842 = vmatmul.mubr.bf16.gmra.mrb[16].mxu0 %v11939_v33  ;;  %5515 = vmatprep.subr.bf16.mxu1 %v15134_v59  ;;  %v4324_v41 = vld [vmem:[#allocation2 + $0x158] sm:$0xff] }
 0x413   :  { %4849 = vmatprep.mubr.bf16.mxu0 %v11807_v27  ;;  %v8723_v27 = vld [vmem:[%s14533_s2 + $0x48] sm:$0xff]   ;;  %8466 = vmatprep.subr.bf16.mxu0 %v8733_v4  ;;  %v4543_v49 = vld [vmem:[#allocation2 + $0x2d2] sm:$0xff]  ;;  %v4544_v20 = vld [vmem:[#allocation2 + $0x2da] sm:$0xff] }
 0x414   :  { %8467 = vmatpush3.bf16.msra.mxu0 %v8733_v4  ;;  %v4580_v52 = vpack.c.bf16 %v4544_v20, %v4543_v49  ;;  %v4335_v4 = vld [vmem:[#allocation2 + $0x210] sm:$0xff]  ;;  %v4337_v20 = vld [vmem:[#allocation2 + $0x228] sm:$0xff] }
 0x415   :  { %5516 = vmatpush1.bf16.msra.mxu1 %v8722_v19  ;;  %v4316_v19 = vld [vmem:[#allocation2 + $0xf8] sm:$0xff]  ;;  %6557 = vmatprep.subr.bf16.mxu0 %v15134_v59 }
 0x416   :  { %5517 = vmatprep.subr.bf16.mxu1 %v15134_v59  ;;  %v12001_v39 = vpack.c.bf16 %v4316_v19, %v4315_v50  ;;  %v4326_v19 = vld [vmem:[#allocation2 + $0x170] sm:$0xff] }
 0x418   :  { %8409 = vmatmul.mubr.bf16.gmra.mrb[84].mxu1 %v4564_v22  ;;  %v4572_v22 = vpack.c.bf16 %v4528_v55, %v4527_v62  ;;  %v4547_v62 = vld [vmem:[#allocation2 + $0x302] sm:$0xff]  ;;  %v4548_v55 = vld [vmem:[#allocation2 + $0x30a] sm:$0xff] }
 0x419   :  { %8412 = vmatprep.mubr.bf16.mxu1 %v4565_v46  ;;  %5518 = vmatpush1.bf16.msra.mxu1 %v8723_v27  ;;  %v4573_v27 = vpack.c.bf16 %v4530_v48, %v4529_v35  ;;  %v4318_v46 = vld [vmem:[#allocation2 + $0x110] sm:$0xff]  ;;  %v4549_v35 = vld [vmem:[#allocation2 + $0x31a] sm:$0xff]  ;;  %v4550_v48 = vld [vmem:[#allocation2 + $0x322] sm:$0xff] }
 0x41a   :  { %4850 = vmatmul.mubr.bf16.gmra.mrb[20].mxu0 %v11954_v31  ;;  %5519 = vmatprep.subr.bf16.mxu1 %v15134_v59 }
 0x41b   :  { %4857 = vmatprep.mubr.bf16.mxu0 %v11813_v3  ;;  %v8725_v3 = vld [vmem:[%s14533_s2 + $0x58] sm:$0xff]  }
 0x41d   :  { %5520 = vmatpush1.bf16.msra.mxu1 %v8724_v1  ;;  %v4532_v1 = vld [vmem:[#allocation2 + $0x24a] sm:$0xff] }
 0x41e   :  { %5521 = vmatprep.subr.bf16.mxu1 %v15134_v59  ;;  %v4574_v29 = vpack.c.bf16 %v4532_v1, %v4531_v36  ;;  %v4057_v36 = vld [vmem:[#allocation2 + $0x1] sm:$0xff] }
 0x41f   :  { %v4327_v1 = vld [vmem:[#allocation2 + $0x180] sm:$0xff] }
 0x420   :  { %8413 = vmatmul.mubr.bf16.gmra.mrb[88].mxu1 %v4566_v10  ;;  %v4319_v10 = vld [vmem:[#allocation2 + $0x120] sm:$0xff] }
 0x421   :  { %8416 = vmatprep.mubr.bf16.mxu1 %v4567_v2  ;;  %5522 = vmatpush1.bf16.msra.mxu1 %v8725_v3  ;;  %v4320_v3 = vld [vmem:[#allocation2 + $0x128] sm:$0xff]  ;;  %v4536_v2 = vld [vmem:[#allocation2 + $0x27a] sm:$0xff] }
 0x422   :  { %4858 = vmatmul.mubr.bf16.gmra.mrb[24].mxu0 %v11966_v18  ;;  %5523 = vmatprep.subr.bf16.mxu1 %v15134_v59  ;;  %v12009_v53 = vpack.c.bf16 %v4320_v3, %v4319_v10  ;;  %v3961_v3 = vld [vmem:[#allocation2] sm:$0xff] }
 0x423   :  { %4865 = vmatprep.mubr.bf16.mxu0 %v11819_v7  ;;  %v8727_v7 = vld [vmem:[%s14533_s2 + $0x68] sm:$0xff]  }
 0x425   :  { %5524 = vmatpush1.bf16.msra.mxu1 %v8726_v25  ;;  %v4538_v25 = vld [vmem:[#allocation2 + $0x292] sm:$0xff] }
 0x426   :  { %5525 = vmatprep.subr.bf16.mxu1 %v15134_v59  ;;  %v4577_v45 = vpack.c.bf16 %v4538_v25, %v4537_v23  ;;  %v12033_v23 = vld [vmem:[#allocation2 + $0x8] sm:$0xff] }
 0x427   :  { %v4025_v25 = vpack.c.bf16 %v12033_v23, %v3961_v3 }
 0x428   :  { %8417 = vmatmul.mubr.bf16.gmra.mrb[92].mxu1 %v4568_v26  ;;  %v4540_v26 = vld [vmem:[#allocation2 + $0x2aa] sm:$0xff] }
 0x429   :  { %8420 = vmatprep.mubr.bf16.mxu1 %v4569_v56  ;;  %5526 = vmatpush1.bf16.msra.mxu1 %v8727_v7  ;;  %v4541_v7 = vld [vmem:[#allocation2 + $0x2ba] sm:$0xff]  ;;  %v4542_v56 = vld [vmem:[#allocation2 + $0x2c2] sm:$0xff] }
 0x42a   :  { %4866 = vmatmul.mubr.bf16.gmra.mrb[28].mxu0 %v11978_v47  ;;  %5527 = vmatprep.subr.bf16.mxu1 %v15134_v59  ;;  %v4579_v30 = vpack.c.bf16 %v4542_v56, %v4541_v7  ;;  %v4333_v7 = vld [vmem:[#allocation2 + $0x1f8] sm:$0xff]  ;;  %v4334_v56 = vld [vmem:[#allocation2 + $0x200] sm:$0xff] }
 0x42b   :  { %4873 = vmatprep.mubr.bf16.mxu0 %v11825_v38  ;;  %v8729_v38 = vld [vmem:[%s14533_s2 + $0x78] sm:$0xff]  }
 0x42d   :  { %5528 = vmatpush1.bf16.msra.mxu1 %v8728_v63 }
 0x42e   :  { %5529 = vmatprep.subr.bf16.mxu1 %v15134_v59 }
 0x430   :  { %8421 = vmatmul.mubr.bf16.gmra.mrb[96].mxu1 %v4570_v42  ;;  %v4545_v42 = vld [vmem:[#allocation2 + $0x2ea] sm:$0xff] }
 0x431   :  { %8424 = vmatprep.mubr.bf16.mxu1 %v4571_v17  ;;  %5530 = vmatpush1.bf16.msra.mxu1 %v8729_v38  ;;  %v4546_v38 = vld [vmem:[#allocation2 + $0x2f2] sm:$0xff] }
 0x432   :  { %4874 = vmatmul.mubr.bf16.gmra.mrb[32].mxu0 %v11990_v11  ;;  %v4581_v50 = vpack.c.bf16 %v4546_v38, %v4545_v42  ;;  %v4338_v42 = vld [vmem:[#allocation2 + $0x230] sm:$0xff] }
 0x433   :  { %4881 = vmatprep.mubr.bf16.mxu0 %v11831_v51  ;;  %v4317_v51 = vld [vmem:[#allocation2 + $0x108] sm:$0xff] }
 0x434   :  { %v12005_v58 = vpack.c.bf16 %v4318_v46, %v4317_v51  ;;  %v4583_v51 = vpack.c.bf16 %v4550_v48, %v4549_v35  ;;  %v4552_v46 = vld [vmem:[#allocation2 + $0x33a] sm:$0xff]  ;;  %v4436_v38 = vld [vmem:[#allocation2 + $0x249] sm:$0xff]  ;;  %v4069_v48 = vld [vmem:[#allocation2 + $0x91] sm:$0xff] }
 0x435   :  { %v4584_v10 = vpack.c.bf16 %v4552_v46, %v4551_v60  ;;  %v4438_v35 = vld [vmem:[#allocation2 + $0x261] sm:$0xff]  ;;  %v4071_v60 = vld [vmem:[#allocation2 + $0xa9] sm:$0xff] }
 0x438   :  { %8425 = vmatmul.mubr.bf16.gmra.mrb[100].mxu1 %v4572_v22 }
 0x439   :  { %8428 = vmatprep.mubr.bf16.mxu1 %v4573_v27  ;;  %v4582_v27 = vpack.c.bf16 %v4548_v55, %v4547_v62  ;;  %v4340_v62 = vld [vmem:[#allocation2 + $0x248] sm:$0xff]  ;;  %v4437_v55 = vld [vmem:[#allocation2 + $0x259] sm:$0xff] }
 0x43a   :  { %4882 = vmatmul.mubr.bf16.gmra.mrb[36].mxu0 %v12001_v39  ;;  %v12068_v46 = vpack.c.bf16 %v4438_v35, %v4437_v55  ;;  %v4080_v55 = vld [vmem:[#allocation2 + $0x111] sm:$0xff] }
 0x43b   :  { %4889 = vmatprep.mubr.bf16.mxu0 %v11838_v34  ;;  %v4535_v34 = vld [vmem:[#allocation2 + $0x272] sm:$0xff] }
 0x43c   :  { %v4576_v24 = vpack.c.bf16 %v4536_v2, %v4535_v34  ;;  %v4329_v34 = vld [vmem:[#allocation2 + $0x1c8] sm:$0xff]  ;;  %v4330_v2 = vld [vmem:[#allocation2 + $0x1d0] sm:$0xff] }
 0x440   :  { %8429 = vmatmul.mubr.bf16.gmra.mrb[104].mxu1 %v4574_v29 }
 0x441   :  { %8432 = vmatprep.mubr.bf16.mxu1 %v4575_v0  ;;  %v4376_v0 = vpack.c.bf16 %v4328_v15, %v4327_v1  ;;  %v4439_v1 = vld [vmem:[#allocation2 + $0x271] sm:$0xff]  ;;  %v4440_v15 = vld [vmem:[#allocation2 + $0x279] sm:$0xff] }
 0x442   :  { %4890 = vmatmul.mubr.bf16.gmra.mrb[40].mxu0 %v12005_v58 }
 0x443   :  { %4897 = vmatprep.mubr.bf16.mxu0 %v11844_v9  ;;  %v4539_v9 = vld [vmem:[#allocation2 + $0x2a2] sm:$0xff] }
 0x444   :  { %v4578_v63 = vpack.c.bf16 %v4540_v26, %v4539_v9  ;;  %v4123_v26 = vpack.c.bf16 %v4062_v12, %v4061_v5 }
 0x448   :  { %8433 = vmatmul.mubr.bf16.gmra.mrb[108].mxu1 %v4576_v24  ;;  %v12036_v24 = vpack.c.bf16 %v4330_v2, %v4329_v34  ;;  %v4344_v34 = vld [vmem:[#allocation2 + $0x278] sm:$0xff]  ;;  %v4441_v2 = vld [vmem:[#allocation2 + $0x289] sm:$0xff] }
 0x449   :  { %8436 = vmatprep.mubr.bf16.mxu1 %v4577_v45  ;;  %v4332_v45 = vld [vmem:[#allocation2 + $0x1e8] sm:$0xff] }
 0x44a   :  { %4898 = vmatmul.mubr.bf16.gmra.mrb[44].mxu0 %v12009_v53 }
 0x44b   :  { %4905 = vmatprep.mubr.bf16.mxu0 %v11850_v8  ;;  %v4323_v8 = vld [vmem:[#allocation2 + $0x150] sm:$0xff] }
 0x44c   :  { %v12021_v17 = vpack.c.bf16 %v4324_v41, %v4323_v8  ;;  %v4336_v8 = vld [vmem:[#allocation2 + $0x218] sm:$0xff]  ;;  %v4066_v41 = vld [vmem:[#allocation2 + $0x69] sm:$0xff] }
 0x450   :  { %8437 = vmatmul.mubr.bf16.gmra.mrb[112].mxu1 %v4578_v63  ;;  %v4064_v63 = vld [vmem:[#allocation2 + $0x51] sm:$0xff] }
 0x451   :  { %8440 = vmatprep.mubr.bf16.mxu1 %v4579_v30 }
 0x452   :  { %4906 = vmatmul.mubr.bf16.gmra.mrb[48].mxu0 %v12013_v13 }
 0x453   :  { %4913 = vmatprep.mubr.bf16.mxu0 %v11861_v61  ;;  %v4325_v61 = vld [vmem:[#allocation2 + $0x168] sm:$0xff] }
 0x454   :  { %v12025_v22 = vpack.c.bf16 %v4326_v19, %v4325_v61  ;;  %v12059_v61 = vpack.c.bf16 %v4338_v42, %v4337_v20  ;;  %v4446_v20 = vld [vmem:[#allocation2 + $0x2c1] sm:$0xff]  ;;  %v4077_v42 = vld [vmem:[#allocation2 + $0xf1] sm:$0xff] }
 0x458   :  { %8441 = vmatmul.mubr.bf16.gmra.mrb[116].mxu1 %v4580_v52  ;;  %v4067_v52 = vld [vmem:[#allocation2 + $0x79] sm:$0xff] }
 0x459   :  { %8444 = vmatprep.mubr.bf16.mxu1 %v4581_v50  ;;  %v4068_v50 = vld [vmem:[#allocation2 + $0x81] sm:$0xff] }
 0x45a   :  { %4914 = vmatmul.mubr.bf16.gmra.mrb[52].mxu0 %v12021_v17 }
 0x45b   :  { %4921 = vmatprep.mubr.bf16.mxu0 %v11867_v37  ;;  %v4058_v37 = vld [vmem:[#allocation2 + $0x9] sm:$0xff] }
 0x45c   :  { %v4121_v29 = vpack.c.bf16 %v4058_v37, %v4057_v36  ;;  %v4342_v37 = vld [vmem:[#allocation2 + $0x260] sm:$0xff] }
 0x460   :  { %8445 = vmatmul.mubr.bf16.gmra.mrb[120].mxu1 %v4582_v27  ;;  %v4070_v27 = vld [vmem:[#allocation2 + $0x99] sm:$0xff] }
 0x461   :  { %8448 = vmatprep.mubr.bf16.mxu1 %v4583_v51  ;;  %v4127_v36 = vpack.c.bf16 %v4070_v27, %v4069_v48 }
 0x462   :  { %4922 = vmatmul.mubr.bf16.gmra.mrb[56].mxu0 %v12025_v22 }
 0x463   :  { %4929 = vmatprep.mubr.bf16.mxu0 %v11876_v40  ;;  %v8734_v40 = vld [vmem:[%s14533_s2 + $0x200] sm:$0xff]  }
 0x464   :  { %8532 = vmatprep.subr.bf16.mxu1 %v8734_v40 }
 0x468   :  { %8449 = vmatmul.mubr.bf16.gmra.mrb[124].mxu1 %v4584_v10  ;;  %v12075_v10 = vpack.c.bf16 %v4440_v15, %v4439_v1  ;;  %v4449_v1 = vld [vmem:[#allocation2 + $0x2e9] sm:$0xff] }
 0x469   :  { %5531 = vmatprep.mubr.bf16.mxu1 %v4121_v29  ;;  %v4072_v29 = vld [vmem:[#allocation2 + $0xb1] sm:$0xff] }
 0x46a   :  { %4930 = vmatmul.mubr.bf16.gmra.mrb[60].mxu0 %v4376_v0  ;;  %v4128_v3 = vpack.c.bf16 %v4072_v29, %v4071_v60  ;;  %v4450_v29 = vld [vmem:[#allocation2 + $0x2f1] sm:$0xff] }
 0x46b   :  { %4937 = vmatprep.mubr.bf16.mxu0 %v11882_v54  ;;  %v4331_v54 = vld [vmem:[#allocation2 + $0x1e0] sm:$0xff] }
 0x46c   :  { %v12041_v9 = vpack.c.bf16 %v4332_v45, %v4331_v54  ;;  %v4074_v54 = vld [vmem:[#allocation2 + $0xc9] sm:$0xff] }
 0x470   :  { %5532 = vmatmul.mubr.bf16.vlgmr.msra.gmra.mrb[128].mxu1 %v4025_v25  ;;  %v4073_v25 = vld [vmem:[#allocation2 + $0xc1] sm:$0xff] }
 0x471   :  { %5539 = vmatprep.mubr.bf16.mxu1 %v11769_v44  ;;  %8533 = vmatpush3.bf16.msra.mxu1 %v8734_v40  ;;  %v12046_v44 = vpack.c.bf16 %v4334_v56, %v4333_v7  ;;  %v4442_v40 = vld [vmem:[#allocation2 + $0x291] sm:$0xff]  ;;  %v4129_v12 = vpack.c.bf16 %v4074_v54, %v4073_v25  ;;  %v4443_v7 = vld [vmem:[#allocation2 + $0x2a1] sm:$0xff] }
 0x472   :  { %4938 = vmatmul.mubr.bf16.gmra.mrb[64].mxu0 %v12036_v24  ;;  %v12082_v5 = vpack.c.bf16 %v4442_v40, %v4441_v2  ;;  %v8744_v56 = vld [vmem:[%s14533_s2 + $0x210] sm:$0xff]  }
 0x473   :  { %4945 = vmatprep.mubr.bf16.mxu0 %v11888_v14  ;;  %v4063_v14 = vld [vmem:[#allocation2 + $0x49] sm:$0xff] }
 0x474   :  { %v4124_v30 = vpack.c.bf16 %v4064_v63, %v4063_v14  ;;  %v4444_v14 = vld [vmem:[#allocation2 + $0x2a9] sm:$0xff]  ;;  %v4075_v63 = vld [vmem:[#allocation2 + $0xd9] sm:$0xff] }
 0x478   :  { %5540 = vmatmul.mubr.bf16.gmra.mrb[132].mxu1 %v11771_v6  ;;  %v4065_v6 = vld [vmem:[#allocation2 + $0x61] sm:$0xff] }
 0x479   :  { %5547 = vmatprep.mubr.bf16.mxu1 %v4123_v26  ;;  %v4125_v49 = vpack.c.bf16 %v4066_v41, %v4065_v6  ;;  %v4346_v26 = vld [vmem:[#allocation2 + $0x290] sm:$0xff]  ;;  %v4347_v6 = vld [vmem:[#allocation2 + $0x2a0] sm:$0xff]  ;;  %v4348_v41 = vld [vmem:[#allocation2 + $0x2a8] sm:$0xff] }
 0x47a   :  { %4946 = vmatmul.mubr.bf16.gmra.mrb[68].mxu0 %v12041_v9 }
 0x47b   :  { %4953 = vmatprep.mubr.bf16.mxu0 %v11895_v28  ;;  %v12051_v28 = vpack.c.bf16 %v4336_v8, %v4335_v4  ;;  %v12092_v8 = vpack.c.bf16 %v4444_v14, %v4443_v7  ;;  %v4353_v7 = vld [vmem:[#allocation2 + $0x2e8] sm:$0xff] }
 0x480   :  { %5548 = vmatmul.mubr.bf16.gmra.mrb[136].mxu1 %v11852_v16  ;;  %v4435_v16 = vld [vmem:[#allocation2 + $0x241] sm:$0xff] }
 0x481   :  { %5555 = vmatprep.mubr.bf16.mxu1 %v4124_v30  ;;  %v12061_v19 = vpack.c.bf16 %v4436_v38, %v4435_v16  ;;  %v4076_v30 = vld [vmem:[#allocation2 + $0xe1] sm:$0xff]  ;;  %v4078_v16 = vld [vmem:[#allocation2 + $0xf9] sm:$0xff] }
 0x482   :  { %4954 = vmatmul.mubr.bf16.gmra.mrb[72].mxu0 %v12046_v44 }
 0x483   :  { %4961 = vmatprep.mubr.bf16.mxu0 %v11901_v21  ;;  %v8739_v21 = vld [vmem:[%s14533_s2 + $0x208] sm:$0xff]  }
 0x484   :  { %8534 = vmatprep.subr.bf16.mxu1 %v8739_v21 }
 0x485   :  { %8535 = vmatpush3.bf16.msra.mxu1 %v8739_v21  ;;  %v12097_v21 = vpack.c.bf16 %v4348_v41, %v4347_v6 }
 0x486   :  { %8536 = vmatprep.subr.bf16.mxu1 %v8744_v56 }
 0x488   :  { %5556 = vmatmul.mubr.bf16.gmra.mrb[140].mxu1 %v11913_v32  ;;  %v4126_v32 = vpack.c.bf16 %v4068_v50, %v4067_v52  ;;  %v4131_v52 = vpack.c.bf16 %v4078_v16, %v4077_v42  ;;  %v4350_v50 = vld [vmem:[#allocation2 + $0x2c0] sm:$0xff]  ;;  %v8749_v16 = vld [vmem:[%s14533_s2 + $0x218] sm:$0xff]  }
 0x489   :  { %5563 = vmatprep.mubr.bf16.mxu1 %v4125_v49  ;;  %8537 = vmatpush3.bf16.msra.mxu1 %v8744_v56  ;;  %v4445_v49 = vld [vmem:[#allocation2 + $0x2b9] sm:$0xff] }
 0x48a   :  { %4962 = vmatmul.mubr.bf16.gmra.mrb[76].mxu0 %v12051_v28  ;;  %v12099_v38 = vpack.c.bf16 %v4446_v20, %v4445_v49  ;;  %v4083_v49 = vld [vmem:[#allocation2 + $0x139] sm:$0xff]  ;;  %v4084_v20 = vld [vmem:[#allocation2 + $0x141] sm:$0xff]  ;;  %8538 = vmatprep.subr.bf16.mxu1 %v8749_v16 }
 0x48b   :  { %4969 = vmatprep.mubr.bf16.mxu0 %v11907_v57  ;;  %v4339_v57 = vld [vmem:[#allocation2 + $0x240] sm:$0xff] }
 0x48c   :  { %v12066_v51 = vpack.c.bf16 %v4340_v62, %v4339_v57  ;;  %v4448_v57 = vld [vmem:[#allocation2 + $0x2d9] sm:$0xff]  ;;  %v4079_v62 = vld [vmem:[#allocation2 + $0x109] sm:$0xff] }
 0x48d   :  { %v4132_v27 = vpack.c.bf16 %v4080_v55, %v4079_v62  ;;  %v4134_v55 = vpack.c.bf16 %v4084_v20, %v4083_v49  ;;  %8539 = vmatpush3.bf16.msra.mxu1 %v8749_v16  ;;  %v4455_v16 = vld [vmem:[#allocation2 + $0x331] sm:$0xff] }
 0x490   :  { %5564 = vmatmul.mubr.bf16.gmra.mrb[144].mxu1 %v11924_v43  ;;  %v4341_v43 = vld [vmem:[#allocation2 + $0x258] sm:$0xff] }
 0x491   :  { %5571 = vmatprep.mubr.bf16.mxu1 %v4126_v32  ;;  %v12073_v0 = vpack.c.bf16 %v4342_v37, %v4341_v43  ;;  %v4447_v32 = vld [vmem:[#allocation2 + $0x2d1] sm:$0xff] }
 0x492   :  { %4970 = vmatmul.mubr.bf16.gmra.mrb[80].mxu0 %v12059_v61  ;;  %v12106_v48 = vpack.c.bf16 %v4448_v57, %v4447_v32  ;;  %v4351_v43 = vld [vmem:[#allocation2 + $0x2d0] sm:$0xff]  ;;  %v4352_v37 = vld [vmem:[#allocation2 + $0x2d8] sm:$0xff] }
 0x493   :  { %4977 = vmatprep.mubr.bf16.mxu0 %v12061_v19 }
 0x498   :  { %5572 = vmatmul.mubr.bf16.gmra.mrb[148].mxu1 %v11939_v33  ;;  %v4343_v33 = vld [vmem:[#allocation2 + $0x270] sm:$0xff] }
 0x499   :  { %5579 = vmatprep.mubr.bf16.mxu1 %v4127_v36  ;;  %v12080_v45 = vpack.c.bf16 %v4344_v34, %v4343_v33  ;;  %v4082_v33 = vld [vmem:[#allocation2 + $0x129] sm:$0xff] }
 0x49a   :  { %4978 = vmatmul.mubr.bf16.gmra.mrb[84].mxu0 %v12066_v51 }
 0x49b   :  { %4985 = vmatprep.mubr.bf16.mxu0 %v12068_v46 }
 0x4a0   :  { %5580 = vmatmul.mubr.bf16.gmra.mrb[152].mxu1 %v11954_v31  ;;  %v4345_v31 = vld [vmem:[#allocation2 + $0x288] sm:$0xff] }
 0x4a1   :  { %5587 = vmatprep.mubr.bf16.mxu1 %v4128_v3  ;;  %v12090_v4 = vpack.c.bf16 %v4346_v26, %v4345_v31  ;;  %v4081_v3 = vld [vmem:[#allocation2 + $0x121] sm:$0xff]  ;;  %v12117_v31 = vpack.c.bf16 %v4450_v29, %v4449_v1  ;;  %v4085_v29 = vld [vmem:[#allocation2 + $0x151] sm:$0xff] }
 0x4a2   :  { %4986 = vmatmul.mubr.bf16.gmra.mrb[88].mxu0 %v12073_v0  ;;  %v4133_v26 = vpack.c.bf16 %v4082_v33, %v4081_v3  ;;  %v4086_v3 = vld [vmem:[#allocation2 + $0x159] sm:$0xff] }
 0x4a3   :  { %4993 = vmatprep.mubr.bf16.mxu0 %v12075_v10 }
 0x4a8   :  { %5588 = vmatmul.mubr.bf16.gmra.mrb[156].mxu1 %v11966_v18  ;;  %v4130_v18 = vpack.c.bf16 %v4076_v30, %v4075_v63  ;;  %v4354_v63 = vld [vmem:[#allocation2 + $0x2f0] sm:$0xff]  ;;  %v4451_v30 = vld [vmem:[#allocation2 + $0x301] sm:$0xff] }
 0x4a9   :  { %5595 = vmatprep.mubr.bf16.mxu1 %v4129_v12  ;;  %v4389_v32 = vpack.c.bf16 %v4354_v63, %v4353_v7 }
 0x4aa   :  { %4994 = vmatmul.mubr.bf16.gmra.mrb[92].mxu0 %v12080_v45 }
 0x4ab   :  { %5001 = vmatprep.mubr.bf16.mxu0 %v12082_v5 }
 0x4b0   :  { %5596 = vmatmul.mubr.bf16.gmra.mrb[160].mxu1 %v11978_v47  ;;  %v4349_v47 = vld [vmem:[#allocation2 + $0x2b8] sm:$0xff] }
 0x4b1   :  { %5603 = vmatprep.mubr.bf16.mxu1 %v4130_v18  ;;  %v12104_v35 = vpack.c.bf16 %v4350_v50, %v4349_v47  ;;  %v4452_v18 = vld [vmem:[#allocation2 + $0x309] sm:$0xff] }
 0x4b2   :  { %5002 = vmatmul.mubr.bf16.gmra.mrb[96].mxu0 %v12090_v4  ;;  %v12129_v62 = vpack.c.bf16 %v4452_v18, %v4451_v30  ;;  %v4357_v18 = vld [vmem:[#allocation2 + $0x318] sm:$0xff] }
 0x4b3   :  { %5009 = vmatprep.mubr.bf16.mxu0 %v12092_v8 }
 0x4b8   :  { %5604 = vmatmul.mubr.bf16.gmra.mrb[164].mxu1 %v11990_v11 }
 0x4b9   :  { %5611 = vmatprep.mubr.bf16.mxu1 %v4131_v52 }
 0x4ba   :  { %5010 = vmatmul.mubr.bf16.gmra.mrb[100].mxu0 %v12097_v21 }
 0x4bb   :  { %5017 = vmatprep.mubr.bf16.mxu0 %v12099_v38 }
 0x4c0   :  { %5612 = vmatmul.mubr.bf16.gmra.mrb[168].mxu1 %v12001_v39  ;;  %v12113_v39 = vpack.c.bf16 %v4352_v37, %v4351_v43  ;;  %v4356_v43 = vld [vmem:[#allocation2 + $0x308] sm:$0xff]  ;;  %v4453_v37 = vld [vmem:[#allocation2 + $0x319] sm:$0xff] }
 0x4c1   :  { %5619 = vmatprep.mubr.bf16.mxu1 %v4132_v27 }
 0x4c2   :  { %5018 = vmatmul.mubr.bf16.gmra.mrb[104].mxu0 %v12104_v35  ;;  %v8390_v36 = vpop.f32.mrb[64].mxu1 }
 0x4c3   :  { %5025 = vmatprep.mubr.bf16.mxu0 %v12106_v48  ;;  %v5100_v60 = vpop.f32.mrb[65].mxu1 }
 0x4c4   :  { %v8391_v40 = vpop.f32.mrb[66].mxu1 }
 0x4c5   :  { %v4811_v11 = vpop.f32.mrb[0].mxu0  ;;  %v5103_v54 = vpop.f32.mrb[67].mxu1 }
 0x4c6   :  { %v4813_v15 = vpop.f32.mrb[1].mxu0  ;;  %v12111_v34 = vadd.f32 %v5100_v60, %v4811_v11  ;;  %v4454_v60 = vld [vmem:[#allocation2 + $0x321] sm:$0xff] }
 0x4c7   :  { %v4814_v2 = vpop.f32.mrb[2].mxu0  ;;  %v4487_v7 = vpack.c.bf16 %v4454_v60, %v4453_v37  ;;  %v8752_v60 = vld [vmem:[%s14533_s2 + $0x220] sm:$0xff]  }
 0x4c8   :  { %v4816_v25 = vpop.f32.mrb[3].mxu0  ;;  %v12115_v12 = vadd.f32 %v5103_v54, %v4814_v2  ;;  %5620 = vmatmul.mubr.bf16.gmra.mrb[172].mxu1 %v12005_v58  ;;  %8540 = vmatprep.subr.bf16.mxu1 %v8752_v60 }
 0x4c9   :  { %5627 = vmatprep.mubr.bf16.mxu1 %v4133_v26  ;;  %8541 = vmatpush3.bf16.msra.mxu1 %v8752_v60 }
 0x4ca   :  { %5026 = vmatmul.mubr.bf16.gmra.mrb[108].mxu0 %v12113_v39 }
 0x4cb   :  { %5033 = vmatprep.mubr.bf16.mxu0 %v12117_v31  ;;  %v8394_v14 = vpop.f32.mrb[68].mxu1 }
 0x4cc   :  { %v5116_v41 = vpop.f32.mrb[69].mxu1 }
 0x4cd   :  { %v4819_v56 = vpop.f32.mrb[4].mxu0  ;;  %v8395_v52 = vpop.f32.mrb[70].mxu1 }
 0x4ce   :  { %v4821_v6 = vpop.f32.mrb[5].mxu0  ;;  %v12122_v42 = vadd.f32 %v8390_v36, %v4819_v56  ;;  %v5119_v50 = vpop.f32.mrb[71].mxu1  ;;  %v4355_v36 = vld [vmem:[#allocation2 + $0x300] sm:$0xff]  ;;  %v4135_v56 = vpack.c.bf16 %v4086_v3, %v4085_v29 }
 0x4cf   :  { %v4822_v58 = vpop.f32.mrb[6].mxu0  ;;  %v4390_v54 = vpack.c.bf16 %v4356_v43, %v4355_v36  ;;  %v4358_v6 = vld [vmem:[#allocation2 + $0x320] sm:$0xff] }
 0x4d0   :  { %v4824_v47 = vpop.f32.mrb[7].mxu0  ;;  %v12127_v57 = vadd.f32 %v8391_v40, %v4822_v58  ;;  %5628 = vmatmul.mubr.bf16.gmra.mrb[176].mxu1 %v12009_v53  ;;  %v4087_v58 = vld [vmem:[#allocation2 + $0x169] sm:$0xff]  ;;  %v4391_v36 = vpack.c.bf16 %v4358_v6, %v4357_v18  ;;  %v4090_v29 = vld [vmem:[#allocation2 + $0x1b9] sm:$0xff] }
 0x4d1   :  { %5635 = vmatprep.mubr.bf16.mxu1 %v4134_v55  ;;  %v4088_v47 = vld [vmem:[#allocation2 + $0x171] sm:$0xff]  ;;  %v4153_v3 = vld [vmem:[#allocation2 + $0x2] sm:$0xff] }
 0x4d2   :  { %5034 = vmatmul.mubr.bf16.gmra.mrb[112].mxu0 %v4389_v32  ;;  %v8754_v18 = vld [vmem:[%s14533_s2 + $0x228] sm:$0xff]  }
 0x4d3   :  { %5041 = vmatprep.mubr.bf16.mxu0 %v12129_v62  ;;  %v12133_v11 = vpop.f32.mrb[72].mxu1  ;;  %8542 = vmatprep.subr.bf16.mxu1 %v8754_v18 }
 0x4d4   :  { %v5132_v15 = vpop.f32.mrb[73].mxu1  ;;  %8543 = vmatpush3.bf16.msra.mxu1 %v8754_v18 }
 0x4d5   :  { %v4827_v27 = vpop.f32.mrb[8].mxu0  ;;  %v12137_v40 = vpop.f32.mrb[74].mxu1 }
 0x4d6   :  { %v4829_v1 = vpop.f32.mrb[9].mxu0  ;;  %v12135_v33 = vadd.f32 %v5116_v41, %v4827_v27  ;;  %v5135_v25 = vpop.f32.mrb[75].mxu1  ;;  %v4456_v41 = vld [vmem:[#allocation2 + $0x339] sm:$0xff] }
 0x4d7   :  { %v4830_v2 = vpop.f32.mrb[10].mxu0  ;;  %v4488_v37 = vpack.c.bf16 %v4456_v41, %v4455_v16  ;;  %v4136_v1 = vpack.c.bf16 %v4088_v47, %v4087_v58 }
 0x4d8   :  { %v4832_v53 = vpop.f32.mrb[11].mxu0  ;;  %v12139_v26 = vadd.f32 %v5119_v50, %v4830_v2  ;;  %5636 = vmatmul.mubr.bf16.gmra.mrb[180].mxu1 %v12013_v13  ;;  %v4154_v2 = vld [vmem:[#allocation2 + $0xa] sm:$0xff] }
 0x4d9   :  { %5643 = vmatprep.mubr.bf16.mxu1 %v4135_v56  ;;  %v4217_v16 = vpack.c.bf16 %v4154_v2, %v4153_v3 }
 0x4da   :  { %5042 = vmatmul.mubr.bf16.gmra.mrb[116].mxu0 %v4390_v54 }
 0x4db   :  { %5049 = vmatprep.mubr.bf16.mxu0 %v4487_v7  ;;  %v12142_v30 = vpop.f32.mrb[76].mxu1  ;;  %v4360_v7 = vld [vmem:[#allocation2 + $0x338] sm:$0xff] }
 0x4dc   :  { %v12144_v20 = vpop.f32.mrb[77].mxu1 }
 0x4dd   :  { %v4835_v63 = vpop.f32.mrb[12].mxu0  ;;  %v12148_v55 = vpop.f32.mrb[78].mxu1 }
 0x4de   :  { %v4837_v49 = vpop.f32.mrb[13].mxu0  ;;  %v12146_v50 = vadd.f32 %v8394_v14, %v4835_v63  ;;  %v12150_v27 = vpop.f32.mrb[79].mxu1  ;;  %v4089_v14 = vld [vmem:[#allocation2 + $0x1b1] sm:$0xff] }
 0x4df   :  { %v4838_v32 = vpop.f32.mrb[14].mxu0  ;;  %v4137_v49 = vpack.c.bf16 %v4090_v29, %v4089_v14  ;;  %v4156_v14 = vld [vmem:[#allocation2 + $0x22] sm:$0xff] }
 0x4e0   :  { %v4840_v13 = vpop.f32.mrb[15].mxu0  ;;  %v12152_v43 = vadd.f32 %v8395_v52, %v4838_v32  ;;  %5644 = vmatmul.mubr.bf16.gmra.mrb[184].mxu1 %v12021_v17  ;;  %v4359_v52 = vld [vmem:[#allocation2 + $0x330] sm:$0xff] }
 0x4e1   :  { %5651 = vmatprep.mubr.bf16.mxu1 %v4136_v1  ;;  %v4392_v32 = vpack.c.bf16 %v4360_v7, %v4359_v52  ;;  %v4091_v29 = vld [vmem:[#allocation2 + $0x1c9] sm:$0xff]  ;;  %v4158_v52 = vld [vmem:[#allocation2 + $0x3a] sm:$0xff] }
 0x4e2   :  { %15162 = vst [vmem:[#allocation84_spill] sm:$0xff] %v12152_v43  ;;  %5050 = vmatmul.mubr.bf16.gmra.mrb[120].mxu0 %v4391_v36  ;;  %v3993_v36 = vld [vmem:[#allocation2 + $0x1b0] sm:$0xff] }
 0x4e3   :  { %5057 = vmatprep.mubr.bf16.mxu0 %v4488_v37  ;;  %v12158_v54 = vpop.f32.mrb[80].mxu1  ;;  %v4155_v37 = vld [vmem:[#allocation2 + $0x1a] sm:$0xff] }
 0x4e4   :  { %v12160_v63 = vpop.f32.mrb[81].mxu1 }
 0x4e5   :  { %v4843_v53 = vpop.f32.mrb[16].mxu0  ;;  %v12167_v41 = vpop.f32.mrb[82].mxu1 }
 0x4e6   :  { %v4845_v56 = vpop.f32.mrb[17].mxu0  ;;  %v12162_v17 = vadd.f32 %v5132_v15, %v4843_v53  ;;  %v12169_v47 = vpop.f32.mrb[83].mxu1  ;;  %v8755_v15 = vld [vmem:[%s14533_s2 + $0x230] sm:$0xff]  }
 0x4e7   :  { %v4846_v6 = vpop.f32.mrb[18].mxu0  ;;  %8544 = vmatprep.subr.bf16.mxu1 %v8755_v15  ;;  %v4157_v53 = vld [vmem:[#allocation2 + $0x32] sm:$0xff] }
 0x4e8   :  { %15163 = vst [vmem:[#allocation92_spill] sm:$0xff] %v12162_v17  ;;  %v4848_v58 = vpop.f32.mrb[19].mxu0  ;;  %v12171_v13 = vadd.f32 %v5135_v25, %v4846_v6  ;;  %5652 = vmatmul.mubr.bf16.gmra.mrb[188].mxu1 %v12025_v22  ;;  %v4092_v25 = vld [vmem:[#allocation2 + $0x1d1] sm:$0xff]  ;;  %v4041_v22 = vpack.c.bf16 %v12033_v23, %v3993_v36  ;;  %v8735_v23 = vld [vmem:[%s14533_s2 + $0x180] sm:$0xff]   ;;  %v8736_v36 = vld [vmem:[%s14533_s2 + $0x188] sm:$0xff]  }
 0x4e9   :  { %5659 = vmatprep.mubr.bf16.mxu1 %v4137_v49  ;;  %8545 = vmatpush3.bf16.msra.mxu1 %v8755_v15  ;;  %v8757_v56 = vld [vmem:[%s14533_s2 + $0x238] sm:$0xff]   ;;  %v4218_v58 = vpack.c.bf16 %v4156_v14, %v4155_v37  ;;  %v12198_v15 = vpack.c.bf16 %v4158_v52, %v4157_v53  ;;  %v4159_v14 = vld [vmem:[#allocation2 + $0x4a] sm:$0xff]  ;;  %v4161_v53 = vld [vmem:[#allocation2 + $0x62] sm:$0xff] }
 0x4ea   :  { %15164 = vst [vmem:[#allocation89_spill] sm:$0xff] %v12171_v13  ;;  %5058 = vmatmul.mubr.bf16.gmra.mrb[124].mxu0 %v4392_v32  ;;  %8546 = vmatprep.subr.bf16.mxu1 %v8757_v56  ;;  %v4162_v52 = vld [vmem:[#allocation2 + $0x6a] sm:$0xff] }
 0x4eb   :  { %8468 = vmatprep.mubr.bf16.mxu0 %v4217_v16  ;;  %v12177_v60 = vpop.f32.mrb[84].mxu1  ;;  %15167 = vst [vmem:[#allocation105_spill] sm:$0xff] %v12198_v15 }
 0x4ec   :  { %v12179_v2 = vpop.f32.mrb[85].mxu1 }
 0x4ed   :  { %v4851_v1 = vpop.f32.mrb[20].mxu0  ;;  %v12188_v6 = vpop.f32.mrb[86].mxu1  ;;  %8547 = vmatpush3.bf16.msra.mxu1 %v8757_v56 }
 0x4ee   :  { %v4853_v3 = vpop.f32.mrb[21].mxu0  ;;  %v12183_v7 = vadd.f32 %v12133_v11, %v4851_v1  ;;  %v12190_v16 = vpop.f32.mrb[87].mxu1  ;;  %v4138_v11 = vpack.c.bf16 %v4092_v25, %v4091_v29  ;;  %v4093_v29 = vld [vmem:[#allocation2 + $0x1e1] sm:$0xff] }
 0x4ef   :  { %v4854_v18 = vpop.f32.mrb[22].mxu0 }
 0x4f0   :  { %15165 = vst [vmem:[#allocation98_spill] sm:$0xff] %v12183_v7  ;;  %v4856_v49 = vpop.f32.mrb[23].mxu0  ;;  %v12196_v32 = vadd.f32 %v12137_v40, %v4854_v18  ;;  %5660 = vmatmul.mubr.bf16.gmra.mrb[192].mxu1 %v4041_v22  ;;  %v4160_v40 = vld [vmem:[#allocation2 + $0x52] sm:$0xff]  ;;  %v4094_v22 = vld [vmem:[#allocation2 + $0x1e9] sm:$0xff] }
 0x4f1   :  { %5667 = vmatprep.mubr.bf16.mxu1 %v4138_v11  ;;  %v12216_v11 = vpack.c.bf16 %v4160_v40, %v4159_v14  ;;  %v4139_v7 = vpack.c.bf16 %v4094_v22, %v4093_v29  ;;  %v4164_v14 = vld [vmem:[#allocation2 + $0x82] sm:$0xff]  ;;  %v4095_v40 = vld [vmem:[#allocation2 + $0x1f9] sm:$0xff] }
 0x4f2   :  { %15166 = vst [vmem:[#allocation91_spill] sm:$0xff] %v12196_v32  ;;  %8469 = vmatmul.mubr.bf16.vlgmr.msra.gmra.mrb[128].mxu0 %v4218_v58  ;;  %v4096_v22 = vld [vmem:[#allocation2 + $0x201] sm:$0xff] }
 0x4f3   :  { %8472 = vmatprep.mubr.bf16.mxu0 %v12198_v15  ;;  %6558 = vmatpush1.bf16.msra.mxu0 %v8735_v23  ;;  %v12204_v1 = vpop.f32.mrb[88].mxu1  ;;  %15169 = vst [vmem:[#allocation107_spill] sm:$0xff] %v12216_v11  ;;  %v12224_v15 = vpack.c.bf16 %v4162_v52, %v4161_v53  ;;  %v4166_v53 = vld [vmem:[#allocation2 + $0x9a] sm:$0xff] }
 0x4f4   :  { %6559 = vmatprep.subr.bf16.mxu0 %v15134_v59  ;;  %v12207_v3 = vpop.f32.mrb[89].mxu1 }
 0x4f5   :  { %v4859_v37 = vpop.f32.mrb[24].mxu0  ;;  %v12212_v49 = vpop.f32.mrb[90].mxu1  ;;  %15171 = vst [vmem:[#allocation109_spill] sm:$0xff] %v12224_v15 }
 0x4f6   :  { %v4861_v25 = vpop.f32.mrb[25].mxu0  ;;  %v12210_v56 = vadd.f32 %v12144_v20, %v4859_v37  ;;  %v12214_v23 = vpop.f32.mrb[91].mxu1  ;;  %v8738_v20 = vld [vmem:[%s14533_s2 + $0x198] sm:$0xff]  }
 0x4f7   :  { %v4862_v18 = vpop.f32.mrb[26].mxu0  ;;  %6560 = vmatpush1.bf16.msra.mxu0 %v8736_v36  ;;  %v8737_v25 = vld [vmem:[%s14533_s2 + $0x190] sm:$0xff]   ;;  %v4163_v37 = vld [vmem:[#allocation2 + $0x7a] sm:$0xff] }
 0x4f8   :  { %15168 = vst [vmem:[#allocation106_spill] sm:$0xff] %v12210_v56  ;;  %v4864_v58 = vpop.f32.mrb[27].mxu0  ;;  %v12222_v32 = vadd.f32 %v12150_v27, %v4862_v18  ;;  %6561 = vmatprep.subr.bf16.mxu0 %v15134_v59  ;;  %5668 = vmatmul.mubr.bf16.gmra.mrb[196].mxu1 %v12036_v24  ;;  %v12245_v56 = vpack.c.bf16 %v4164_v14, %v4163_v37  ;;  %v4168_v37 = vld [vmem:[#allocation2 + $0xb2] sm:$0xff] }
 0x4f9   :  { %5675 = vmatprep.mubr.bf16.mxu1 %v4139_v7  ;;  %v4165_v7 = vld [vmem:[#allocation2 + $0x92] sm:$0xff] }
 0x4fa   :  { %15170 = vst [vmem:[#allocation108_spill] sm:$0xff] %v12222_v32  ;;  %8473 = vmatmul.mubr.bf16.gmra.mrb[132].mxu0 %v12216_v11  ;;  %15173 = vst [vmem:[#allocation111_spill] sm:$0xff] %v12245_v56  ;;  %v4140_v11 = vpack.c.bf16 %v4096_v22, %v4095_v40  ;;  %v12253_v13 = vpack.c.bf16 %v4166_v53, %v4165_v7  ;;  %v4097_v14 = vld [vmem:[#allocation2 + $0x211] sm:$0xff]  ;;  %v4098_v22 = vld [vmem:[#allocation2 + $0x219] sm:$0xff] }
 0x4fb   :  { %8476 = vmatprep.mubr.bf16.mxu0 %v12224_v15  ;;  %6562 = vmatpush1.bf16.msra.mxu0 %v8737_v25  ;;  %v12233_v27 = vpop.f32.mrb[92].mxu1  ;;  %v4170_v7 = vld [vmem:[#allocation2 + $0xca] sm:$0xff] }
 0x4fc   :  { %6563 = vmatprep.subr.bf16.mxu0 %v15134_v59  ;;  %v12236_v24 = vpop.f32.mrb[93].mxu1  ;;  %15175 = vst [vmem:[#allocation88_spill] sm:$0xff] %v12253_v13 }
 0x4fd   :  { %v4867_v36 = vpop.f32.mrb[28].mxu0  ;;  %v12241_v58 = vpop.f32.mrb[94].mxu1 }
 0x4fe   :  { %v4869_v29 = vpop.f32.mrb[29].mxu0  ;;  %v12239_v52 = vadd.f32 %v12142_v30, %v4867_v36  ;;  %v12243_v32 = vpop.f32.mrb[95].mxu1  ;;  %v8741_v30 = vld [vmem:[%s14533_s2 + $0x1a8] sm:$0xff]  }
 0x4ff   :  { %v4870_v18 = vpop.f32.mrb[30].mxu0  ;;  %6564 = vmatpush1.bf16.msra.mxu0 %v8738_v20  ;;  %v8740_v29 = vld [vmem:[%s14533_s2 + $0x1a0] sm:$0xff]   ;;  %v4167_v36 = vld [vmem:[#allocation2 + $0xaa] sm:$0xff] }
 0x500   :  { %15172 = vst [vmem:[#allocation110_spill] sm:$0xff] %v12239_v52  ;;  %v4872_v25 = vpop.f32.mrb[31].mxu0  ;;  %v12251_v15 = vadd.f32 %v12148_v55, %v4870_v18  ;;  %6565 = vmatprep.subr.bf16.mxu0 %v15134_v59  ;;  %5676 = vmatmul.mubr.bf16.gmra.mrb[200].mxu1 %v12041_v9  ;;  %v12274_v52 = vpack.c.bf16 %v4168_v37, %v4167_v36  ;;  %v4172_v36 = vld [vmem:[#allocation2 + $0xe2] sm:$0xff] }
 0x501   :  { %5683 = vmatprep.mubr.bf16.mxu1 %v4140_v11  ;;  %v4169_v11 = vld [vmem:[#allocation2 + $0xc2] sm:$0xff] }
 0x502   :  { %15174 = vst [vmem:[#allocation100_spill] sm:$0xff] %v12251_v15  ;;  %8477 = vmatmul.mubr.bf16.gmra.mrb[136].mxu0 %v12245_v56  ;;  %15177 = vst [vmem:[#allocation93_spill] sm:$0xff] %v12274_v52  ;;  %v4141_v56 = vpack.c.bf16 %v4098_v22, %v4097_v14  ;;  %v12282_v17 = vpack.c.bf16 %v4170_v7, %v4169_v11  ;;  %v4099_v37 = vld [vmem:[#allocation2 + $0x229] sm:$0xff]  ;;  %v4100_v22 = vld [vmem:[#allocation2 + $0x231] sm:$0xff] }
 0x503   :  { %8480 = vmatprep.mubr.bf16.mxu0 %v12253_v13  ;;  %6566 = vmatpush1.bf16.msra.mxu0 %v8740_v29  ;;  %v12262_v55 = vpop.f32.mrb[96].mxu1  ;;  %v4174_v11 = vld [vmem:[#allocation2 + $0xfa] sm:$0xff] }
 0x504   :  { %6567 = vmatprep.subr.bf16.mxu0 %v15134_v59  ;;  %v12265_v9 = vpop.f32.mrb[97].mxu1  ;;  %15179 = vst [vmem:[#allocation97_spill] sm:$0xff] %v12282_v17 }
 0x505   :  { %v4875_v20 = vpop.f32.mrb[32].mxu0  ;;  %v12270_v25 = vpop.f32.mrb[98].mxu1 }
 0x506   :  { %v4877_v40 = vpop.f32.mrb[33].mxu0  ;;  %v12268_v53 = vadd.f32 %v12160_v63, %v4875_v20  ;;  %v12272_v15 = vpop.f32.mrb[99].mxu1  ;;  %v8743_v63 = vld [vmem:[%s14533_s2 + $0x1b8] sm:$0xff]  }
 0x507   :  { %v4878_v18 = vpop.f32.mrb[34].mxu0  ;;  %6568 = vmatpush1.bf16.msra.mxu0 %v8741_v30  ;;  %v8742_v40 = vld [vmem:[%s14533_s2 + $0x1b0] sm:$0xff]   ;;  %v4171_v20 = vld [vmem:[#allocation2 + $0xda] sm:$0xff] }
 0x508   :  { %15176 = vst [vmem:[#allocation95_spill] sm:$0xff] %v12268_v53  ;;  %v4880_v29 = vpop.f32.mrb[35].mxu0  ;;  %v12280_v13 = vadd.f32 %v12169_v47, %v4878_v18  ;;  %6569 = vmatprep.subr.bf16.mxu0 %v15134_v59  ;;  %5684 = vmatmul.mubr.bf16.gmra.mrb[204].mxu1 %v12046_v44  ;;  %v12303_v53 = vpack.c.bf16 %v4172_v36, %v4171_v20  ;;  %v4176_v20 = vld [vmem:[#allocation2 + $0x112] sm:$0xff] }
 0x509   :  { %5691 = vmatprep.mubr.bf16.mxu1 %v4141_v56  ;;  %v4173_v56 = vld [vmem:[#allocation2 + $0xf2] sm:$0xff] }
 0x50a   :  { %15178 = vst [vmem:[#allocation90_spill] sm:$0xff] %v12280_v13  ;;  %8481 = vmatmul.mubr.bf16.gmra.mrb[140].mxu0 %v12274_v52  ;;  %v4142_v52 = vpack.c.bf16 %v4100_v22, %v4099_v37  ;;  %v12311_v43 = vpack.c.bf16 %v4174_v11, %v4173_v56  ;;  %v4178_v22 = vld [vmem:[#allocation2 + $0x12a] sm:$0xff] }
 0x50b   :  { %8484 = vmatprep.mubr.bf16.mxu0 %v12282_v17  ;;  %6570 = vmatpush1.bf16.msra.mxu0 %v8742_v40  ;;  %v12291_v47 = vpop.f32.mrb[100].mxu1 }
 0x50c   :  { %6571 = vmatprep.subr.bf16.mxu0 %v15134_v59  ;;  %v12294_v44 = vpop.f32.mrb[101].mxu1 }
 0x50d   :  { %v4883_v30 = vpop.f32.mrb[36].mxu0  ;;  %v12299_v29 = vpop.f32.mrb[102].mxu1 }
 0x50e   :  { %v4885_v14 = vpop.f32.mrb[37].mxu0  ;;  %v12297_v7 = vadd.f32 %v12158_v54, %v4883_v30  ;;  %v12301_v13 = vpop.f32.mrb[103].mxu1  ;;  %v8746_v54 = vld [vmem:[%s14533_s2 + $0x1c8] sm:$0xff]  }
 0x50f   :  { %v4886_v18 = vpop.f32.mrb[38].mxu0  ;;  %6572 = vmatpush1.bf16.msra.mxu0 %v8743_v63  ;;  %v8745_v14 = vld [vmem:[%s14533_s2 + $0x1c0] sm:$0xff]   ;;  %v4175_v30 = vld [vmem:[#allocation2 + $0x10a] sm:$0xff] }
 0x510   :  { %15180 = vst [vmem:[#allocation112_spill] sm:$0xff] %v12297_v7  ;;  %v4888_v40 = vpop.f32.mrb[39].mxu0  ;;  %v12309_v17 = vadd.f32 %v12167_v41, %v4886_v18  ;;  %6573 = vmatprep.subr.bf16.mxu0 %v15134_v59  ;;  %5692 = vmatmul.mubr.bf16.gmra.mrb[208].mxu1 %v12051_v28  ;;  %v4177_v28 = vld [vmem:[#allocation2 + $0x122] sm:$0xff] }
 0x511   :  { %5699 = vmatprep.mubr.bf16.mxu1 %v4142_v52  ;;  %v12340_v7 = vpack.c.bf16 %v4178_v22, %v4177_v28  ;;  %v4181_v28 = vld [vmem:[#allocation2 + $0x152] sm:$0xff]  ;;  %v4182_v22 = vld [vmem:[#allocation2 + $0x15a] sm:$0xff] }
 0x512   :  { %15181 = vst [vmem:[#allocation113_spill] sm:$0xff] %v12309_v17  ;;  %8485 = vmatmul.mubr.bf16.gmra.mrb[144].mxu0 %v12303_v53 }
 0x513   :  { %8488 = vmatprep.mubr.bf16.mxu0 %v12311_v43  ;;  %6574 = vmatpush1.bf16.msra.mxu0 %v8745_v14  ;;  %v12320_v41 = vpop.f32.mrb[104].mxu1  ;;  %v12332_v14 = vpack.c.bf16 %v4176_v20, %v4175_v30  ;;  %15185 = vst [vmem:[#allocation104_spill] sm:$0xff] %v12340_v7  ;;  %v4180_v30 = vld [vmem:[#allocation2 + $0x142] sm:$0xff] }
 0x514   :  { %6575 = vmatprep.subr.bf16.mxu0 %v15134_v59  ;;  %v12323_v37 = vpop.f32.mrb[105].mxu1 }
 0x515   :  { %v4891_v63 = vpop.f32.mrb[40].mxu0  ;;  %v12328_v11 = vpop.f32.mrb[106].mxu1  ;;  %15183 = vst [vmem:[#allocation65_spill] sm:$0xff] %v12332_v14 }
 0x516   :  { %v4893_v36 = vpop.f32.mrb[41].mxu0  ;;  %v12326_v52 = vadd.f32 %v12179_v2, %v4891_v63  ;;  %v12330_v40 = vpop.f32.mrb[107].mxu1  ;;  %v8748_v2 = vld [vmem:[%s14533_s2 + $0x1d8] sm:$0xff]  }
 0x517   :  { %v4894_v56 = vpop.f32.mrb[42].mxu0  ;;  %6576 = vmatpush1.bf16.msra.mxu0 %v8746_v54  ;;  %v8747_v36 = vld [vmem:[%s14533_s2 + $0x1d0] sm:$0xff]   ;;  %v4179_v63 = vld [vmem:[#allocation2 + $0x13a] sm:$0xff] }
 0x518   :  { %15182 = vst [vmem:[#allocation102_spill] sm:$0xff] %v12326_v52  ;;  %v4896_v18 = vpop.f32.mrb[43].mxu0  ;;  %v12338_v17 = vadd.f32 %v12190_v16, %v4894_v56  ;;  %6577 = vmatprep.subr.bf16.mxu0 %v15134_v59  ;;  %5700 = vmatmul.mubr.bf16.gmra.mrb[212].mxu1 %v12059_v61  ;;  %v12362_v52 = vpack.c.bf16 %v4180_v30, %v4179_v63  ;;  %v4183_v30 = vld [vmem:[#allocation2 + $0x16a] sm:$0xff] }
 0x519   :  { %5707 = vmatprep.mubr.bf16.mxu1 %v12061_v19 }
 0x51a   :  { %15184 = vst [vmem:[#allocation66_spill] sm:$0xff] %v12338_v17  ;;  %8489 = vmatmul.mubr.bf16.gmra.mrb[148].mxu0 %v12332_v14  ;;  %15187 = vst [vmem:[#allocation70_spill] sm:$0xff] %v12362_v52  ;;  %v12370_v14 = vpack.c.bf16 %v4182_v22, %v4181_v28  ;;  %v4184_v28 = vld [vmem:[#allocation2 + $0x172] sm:$0xff] }
 0x51b   :  { %8492 = vmatprep.mubr.bf16.mxu0 %v12340_v7  ;;  %6578 = vmatpush1.bf16.msra.mxu0 %v8747_v36  ;;  %v12350_v16 = vpop.f32.mrb[108].mxu1 }
 0x51c   :  { %6579 = vmatprep.subr.bf16.mxu0 %v15134_v59  ;;  %v12353_v61 = vpop.f32.mrb[109].mxu1  ;;  %15189 = vst [vmem:[#allocation83_spill] sm:$0xff] %v12370_v14 }
 0x51d   :  { %v4899_v54 = vpop.f32.mrb[44].mxu0  ;;  %v12358_v18 = vpop.f32.mrb[110].mxu1 }
 0x51e   :  { %v4901_v20 = vpop.f32.mrb[45].mxu0  ;;  %v12356_v19 = vadd.f32 %v12177_v60, %v4899_v54  ;;  %v12360_v17 = vpop.f32.mrb[111].mxu1  ;;  %v4185_v60 = vld [vmem:[#allocation2 + $0x1b2] sm:$0xff] }
 0x51f   :  { %v4902_v56 = vpop.f32.mrb[46].mxu0  ;;  %6580 = vmatpush1.bf16.msra.mxu0 %v8748_v2  ;;  %v8750_v20 = vld [vmem:[%s14533_s2 + $0x1e0] sm:$0xff]  }
 0x520   :  { %15186 = vst [vmem:[#allocation69_spill] sm:$0xff] %v12356_v19  ;;  %v4904_v36 = vpop.f32.mrb[47].mxu0  ;;  %v12368_v7 = vadd.f32 %v12188_v6, %v4902_v56  ;;  %6581 = vmatprep.subr.bf16.mxu0 %v15134_v59  ;;  %5708 = vmatmul.mubr.bf16.gmra.mrb[216].mxu1 %v12066_v51  ;;  %v4186_v2 = vld [vmem:[#allocation2 + $0x1ba] sm:$0xff]  ;;  %v8751_v6 = vld [vmem:[%s14533_s2 + $0x1e8] sm:$0xff]  }
 0x521   :  { %5715 = vmatprep.mubr.bf16.mxu1 %v12068_v46 }
 0x522   :  { %15188 = vst [vmem:[#allocation73_spill] sm:$0xff] %v12368_v7  ;;  %8493 = vmatmul.mubr.bf16.gmra.mrb[152].mxu0 %v12362_v52  ;;  %v8753_v52 = vld [vmem:[%s14533_s2 + $0x1f0] sm:$0xff]  }
 0x523   :  { %8496 = vmatprep.mubr.bf16.mxu0 %v12370_v14  ;;  %6582 = vmatpush1.bf16.msra.mxu0 %v8750_v20  ;;  %v12380_v63 = vpop.f32.mrb[112].mxu1  ;;  %v4233_v20 = vpack.c.bf16 %v4186_v2, %v4185_v60  ;;  %v12392_v14 = vpack.c.bf16 %v4184_v28, %v4183_v30  ;;  %v4187_v2 = vld [vmem:[#allocation2 + $0x1ca] sm:$0xff] }
 0x524   :  { %6583 = vmatprep.subr.bf16.mxu0 %v15134_v59  ;;  %v12383_v22 = vpop.f32.mrb[113].mxu1  ;;  %v4190_v30 = vld [vmem:[#allocation2 + $0x1ea] sm:$0xff] }
 0x525   :  { %v4907_v54 = vpop.f32.mrb[48].mxu0  ;;  %v12388_v36 = vpop.f32.mrb[114].mxu1 }
 0x526   :  { %v4909_v51 = vpop.f32.mrb[49].mxu0  ;;  %v12386_v46 = vadd.f32 %v12207_v3, %v4907_v54  ;;  %v12390_v19 = vpop.f32.mrb[115].mxu1  ;;  %v8756_v3 = vld [vmem:[%s14533_s2 + $0x1f8] sm:$0xff]  }
 0x527   :  { %v4910_v56 = vpop.f32.mrb[50].mxu0  ;;  %6584 = vmatpush1.bf16.msra.mxu0 %v8751_v6 }
 0x528   :  { %15190 = vst [vmem:[#allocation96_spill] sm:$0xff] %v12386_v46  ;;  %v4912_v7 = vpop.f32.mrb[51].mxu0  ;;  %v12398_v51 = vadd.f32 %v12214_v23, %v4910_v56  ;;  %6585 = vmatprep.subr.bf16.mxu0 %v15134_v59  ;;  %5716 = vmatmul.mubr.bf16.gmra.mrb[220].mxu1 %v12073_v0  ;;  %v4188_v23 = vld [vmem:[#allocation2 + $0x1d2] sm:$0xff]  ;;  %v4189_v0 = vld [vmem:[#allocation2 + $0x1e2] sm:$0xff] }
 0x529   :  { %5723 = vmatprep.mubr.bf16.mxu1 %v12075_v10 }
 0x52a   :  { %15191 = vst [vmem:[#allocation77_spill] sm:$0xff] %v12398_v51  ;;  %8497 = vmatmul.mubr.bf16.gmra.mrb[156].mxu0 %v12392_v14  ;;  %v4234_v51 = vpack.c.bf16 %v4188_v23, %v4187_v2 }
 0x52b   :  { %8500 = vmatprep.mubr.bf16.mxu0 %v4233_v20  ;;  %6586 = vmatpush1.bf16.msra.mxu0 %v8753_v52  ;;  %v12407_v60 = vpop.f32.mrb[116].mxu1 }
 0x52c   :  { %6587 = vmatprep.subr.bf16.mxu0 %v15134_v59  ;;  %v12410_v54 = vpop.f32.mrb[117].mxu1  ;;  %v12422_v59 = vpack.c.bf16 %v4190_v30, %v4189_v0 }
 0x52d   :  { %v4915_v7 = vpop.f32.mrb[52].mxu0  ;;  %v12415_v28 = vpop.f32.mrb[118].mxu1 }
 0x52e   :  { %v4917_v6 = vpop.f32.mrb[53].mxu0  ;;  %v12413_v10 = vadd.f32 %v12204_v1, %v4915_v7  ;;  %v12417_v20 = vpop.f32.mrb[119].mxu1 }
 0x52f   :  { %v4918_v52 = vpop.f32.mrb[54].mxu0  ;;  %6588 = vmatpush1.bf16.msra.mxu0 %v8756_v3  ;;  %v4191_v6 = vld [vmem:[#allocation2 + $0x1fa] sm:$0xff]  ;;  %v4193_v3 = vld [vmem:[#allocation2 + $0x212] sm:$0xff] }
 0x530   :  { %15192 = vst [vmem:[#allocation101_spill] sm:$0xff] %v12413_v10  ;;  %v4920_v56 = vpop.f32.mrb[55].mxu0  ;;  %v12420_v46 = vadd.f32 %v12212_v49, %v4918_v52  ;;  %5724 = vmatmul.mubr.bf16.gmra.mrb[224].mxu1 %v12080_v45  ;;  %v4194_v49 = vld [vmem:[#allocation2 + $0x21a] sm:$0xff] }
 0x531   :  { %5731 = vmatprep.mubr.bf16.mxu1 %v12082_v5  ;;  %v4192_v56 = vld [vmem:[#allocation2 + $0x202] sm:$0xff] }
 0x532   :  { %15193 = vst [vmem:[#allocation75_spill] sm:$0xff] %v12420_v46  ;;  %8501 = vmatmul.mubr.bf16.gmra.mrb[160].mxu0 %v4234_v51  ;;  %v12438_v30 = vpack.c.bf16 %v4192_v56, %v4191_v6  ;;  %v12443_v46 = vpack.c.bf16 %v4194_v49, %v4193_v3 }
 0x533   :  { %8504 = vmatprep.mubr.bf16.mxu0 %v12422_v59  ;;  %v12427_v7 = vpop.f32.mrb[120].mxu1 }
 0x534   :  { %v12429_v2 = vpop.f32.mrb[121].mxu1  ;;  %15196 = vst [vmem:[#allocation85_spill] sm:$0xff] %v12443_v46 }
 0x535   :  { %v4923_v1 = vpop.f32.mrb[56].mxu0  ;;  %v12434_v45 = vpop.f32.mrb[122].mxu1 }
 0x536   :  { %v4925_v10 = vpop.f32.mrb[57].mxu0  ;;  %v12432_v23 = vadd.f32 %v12236_v24, %v4923_v1  ;;  %v12436_v5 = vpop.f32.mrb[123].mxu1  ;;  %v4195_v1 = vld [vmem:[#allocation2 + $0x22a] sm:$0xff] }
 0x537   :  { %v4926_v0 = vpop.f32.mrb[58].mxu0 }
 0x538   :  { %15194 = vst [vmem:[#allocation87_spill] sm:$0xff] %v12432_v23  ;;  %v4928_v51 = vpop.f32.mrb[59].mxu0  ;;  %v12441_v52 = vadd.f32 %v12243_v32, %v4926_v0  ;;  %5732 = vmatmul.mubr.bf16.gmra.mrb[228].mxu1 %v12090_v4  ;;  %v4197_v32 = vld [vmem:[#allocation2 + $0x242] sm:$0xff]  ;;  %v4198_v0 = vld [vmem:[#allocation2 + $0x24a] sm:$0xff] }
 0x539   :  { %5739 = vmatprep.mubr.bf16.mxu1 %v12092_v8  ;;  %v4196_v51 = vld [vmem:[#allocation2 + $0x232] sm:$0xff] }
 0x53a   :  { %15195 = vst [vmem:[#allocation82_spill] sm:$0xff] %v12441_v52  ;;  %8505 = vmatmul.mubr.bf16.gmra.mrb[164].mxu0 %v12438_v30  ;;  %v12460_v23 = vpack.c.bf16 %v4196_v51, %v4195_v1 }
 0x53b   :  { %8508 = vmatprep.mubr.bf16.mxu0 %v12443_v46  ;;  %v12449_v10 = vpop.f32.mrb[124].mxu1  ;;  %v12465_v46 = vpack.c.bf16 %v4198_v0, %v4197_v32  ;;  %v4201_v0 = vld [vmem:[#allocation2 + $0x272] sm:$0xff] }
 0x53c   :  { %15197 = vst [vmem:[#allocation86_spill] sm:$0xff] %v12449_v10  ;;  %v12451_v56 = vpop.f32.mrb[125].mxu1 }
 0x53d   :  { %v4931_v24 = vpop.f32.mrb[60].mxu0  ;;  %v12456_v49 = vpop.f32.mrb[126].mxu1  ;;  %15201 = vst [vmem:[#allocation72_spill] sm:$0xff] %v12465_v46 }
 0x53e   :  { %v4933_v6 = vpop.f32.mrb[61].mxu0  ;;  %v12454_v3 = vadd.f32 %v12233_v27, %v4931_v24  ;;  %15199 = vst [vmem:[#allocation78_spill] sm:$0xff] %v12456_v49  ;;  %v12458_v8 = vpop.f32.mrb[127].mxu1 }
 0x53f   :  { %v4934_v4 = vpop.f32.mrb[62].mxu0  ;;  %v4200_v6 = vld [vmem:[#allocation2 + $0x262] sm:$0xff] }
 0x540   :  { %15198 = vst [vmem:[#allocation94_spill] sm:$0xff] %v12454_v3  ;;  %v4936_v52 = vpop.f32.mrb[63].mxu0  ;;  %v12463_v10 = vadd.f32 %v12241_v58, %v4934_v4  ;;  %5740 = vmatmul.mubr.bf16.gmra.mrb[232].mxu1 %v12097_v21  ;;  %v4202_v21 = vld [vmem:[#allocation2 + $0x27a] sm:$0xff] }
 0x541   :  { %5747 = vmatprep.mubr.bf16.mxu1 %v12099_v38  ;;  %v4199_v52 = vld [vmem:[#allocation2 + $0x25a] sm:$0xff] }
 0x542   :  { %15200 = vst [vmem:[#allocation71_spill] sm:$0xff] %v12463_v10  ;;  %8509 = vmatmul.mubr.bf16.gmra.mrb[168].mxu0 %v12460_v23 }
 0x543   :  { %8512 = vmatprep.mubr.bf16.mxu0 %v12465_v46  ;;  %v5533_v24 = vpop.f32.mrb[128].mxu1  ;;  %v12483_v46 = vpack.c.bf16 %v4200_v6, %v4199_v52  ;;  %v4205_v6 = vld [vmem:[#allocation2 + $0x2a2] sm:$0xff] }
 0x544   :  { %v12475_v58 = vadd.f32 %v5533_v24, %v12111_v34  ;;  %v5535_v32 = vpop.f32.mrb[129].mxu1  ;;  %v4203_v24 = vld [vmem:[#allocation2 + $0x28a] sm:$0xff] }
 0x545   :  { %v4939_v27 = vpop.f32.mrb[64].mxu0  ;;  %v5536_v10 = vpop.f32.mrb[130].mxu1 }
 0x546   :  { %v12472_v1 = vadd.f32 %v12265_v9, %v4939_v27  ;;  %v4941_v51 = vpop.f32.mrb[65].mxu0  ;;  %v12481_v49 = vadd.f32 %v5536_v10, %v12115_v12  ;;  %v5538_v9 = vpop.f32.mrb[131].mxu1  ;;  %v12485_v27 = vpack.c.bf16 %v4202_v21, %v4201_v0 }
 0x547   :  { %v4942_v4 = vpop.f32.mrb[66].mxu0  ;;  %v4204_v51 = vld [vmem:[#allocation2 + $0x292] sm:$0xff] }
 0x548   :  { %v12478_v38 = vadd.f32 %v12272_v15, %v4942_v4  ;;  %15202 = vst [vmem:[#allocation103_spill] sm:$0xff] %v12481_v49  ;;  %v4944_v3 = vpop.f32.mrb[67].mxu0  ;;  %5748 = vmatmul.mubr.bf16.gmra.mrb[236].mxu1 %v12104_v35  ;;  %v4206_v35 = vld [vmem:[#allocation2 + $0x2aa] sm:$0xff]  ;;  %v12503_v49 = vpack.c.bf16 %v4204_v51, %v4203_v24 }
 0x549   :  { %5755 = vmatprep.mubr.bf16.mxu1 %v12106_v48 }
 0x54a   :  { %8513 = vmatmul.mubr.bf16.gmra.mrb[172].mxu0 %v12483_v46 }
 0x54b   :  { %8516 = vmatprep.mubr.bf16.mxu0 %v12485_v27  ;;  %v5541_v15 = vpop.f32.mrb[132].mxu1 }
 0x54c   :  { %v12495_v10 = vadd.f32 %v5541_v15, %v12122_v42  ;;  %v5543_v52 = vpop.f32.mrb[133].mxu1  ;;  %v4019_v42 = vld [vmem:[#allocation2 + $0x2e8] sm:$0xff]  ;;  %v4020_v15 = vld [vmem:[#allocation2 + $0x2f0] sm:$0xff] }
 0x54d   :  { %v4947_v34 = vpop.f32.mrb[68].mxu0  ;;  %v5544_v0 = vpop.f32.mrb[134].mxu1 }
 0x54e   :  { %v12492_v12 = vadd.f32 %v12262_v55, %v4947_v34  ;;  %v4949_v3 = vpop.f32.mrb[69].mxu0  ;;  %v12501_v21 = vadd.f32 %v5544_v0, %v12127_v57  ;;  %v5546_v9 = vpop.f32.mrb[135].mxu1  ;;  %v12505_v55 = vpack.c.bf16 %v4206_v35, %v4205_v6  ;;  %v4207_v57 = vld [vmem:[#allocation2 + $0x2ba] sm:$0xff]  ;;  %v4209_v6 = vld [vmem:[#allocation2 + $0x2d2] sm:$0xff] }
 0x54f   :  { %v4950_v32 = vpop.f32.mrb[70].mxu0  ;;  %v4208_v3 = vld [vmem:[#allocation2 + $0x2c2] sm:$0xff]  ;;  %v4210_v35 = vld [vmem:[#allocation2 + $0x2da] sm:$0xff] }
 0x550   :  { %15203 = vst [vmem:[#allocation81_spill] sm:$0xff] %v12492_v12  ;;  %v12498_v48 = vadd.f32 %v12270_v25, %v4950_v32  ;;  %v4952_v4 = vpop.f32.mrb[71].mxu0  ;;  %5756 = vmatmul.mubr.bf16.gmra.mrb[240].mxu1 %v12113_v39  ;;  %v4054_v12 = vpack.c.bf16 %v4020_v15, %v4019_v42 }
 0x551   :  { %5763 = vmatprep.mubr.bf16.mxu1 %v12117_v31 }
 0x552   :  { %15204 = vst [vmem:[#allocation79_spill] sm:$0xff] %v12498_v48  ;;  %8517 = vmatmul.mubr.bf16.gmra.mrb[176].mxu0 %v12503_v49 }
 0x553   :  { %8520 = vmatprep.mubr.bf16.mxu0 %v12505_v55  ;;  %v5549_v34 = vpop.f32.mrb[136].mxu1 }
 0x554   :  { %v12515_v24 = vadd.f32 %v5549_v34, %v12135_v33  ;;  %v5551_v39 = vpop.f32.mrb[137].mxu1  ;;  %v4021_v33 = vld [vmem:[#allocation2 + $0x300] sm:$0xff] }
 0x555   :  { %v4955_v25 = vpop.f32.mrb[72].mxu0  ;;  %v5552_v31 = vpop.f32.mrb[138].mxu1  ;;  %v4212_v39 = vld [vmem:[#allocation2 + $0x2f2] sm:$0xff] }
 0x556   :  { %v12512_v52 = vadd.f32 %v12294_v44, %v4955_v25  ;;  %v4957_v51 = vpop.f32.mrb[73].mxu0  ;;  %v12521_v4 = vadd.f32 %v5552_v31, %v12139_v26  ;;  %v5554_v48 = vpop.f32.mrb[139].mxu1  ;;  %v12523_v44 = vpack.c.bf16 %v4208_v3, %v4207_v57  ;;  %v12525_v25 = vpack.c.bf16 %v4210_v35, %v4209_v6  ;;  %v4211_v26 = vld [vmem:[#allocation2 + $0x2ea] sm:$0xff]  ;;  %v4120_v57 = vld [vmem:[#allocation2 + $0x321] sm:$0xff] }
 0x557   :  { %v4958_v32 = vpop.f32.mrb[74].mxu0  ;;  %v4213_v3 = vld [vmem:[#allocation2 + $0x302] sm:$0xff] }
 0x558   :  { %15205 = vst [vmem:[#allocation76_spill] sm:$0xff] %v12512_v52  ;;  %v12518_v0 = vadd.f32 %v12301_v13, %v4958_v32  ;;  %v4960_v9 = vpop.f32.mrb[75].mxu0  ;;  %15207 = vst [vmem:[#allocation80_spill] sm:$0xff] %v12525_v25  ;;  %5764 = vmatmul.mubr.bf16.gmra.mrb[244].mxu1 %v4054_v12  ;;  %v4022_v13 = vld [vmem:[#allocation2 + $0x308] sm:$0xff]  ;;  %v4119_v32 = vld [vmem:[#allocation2 + $0x319] sm:$0xff] }
 0x559   :  { %5771 = vmatprep.mubr.bf16.mxu1 %v12129_v62  ;;  %v4214_v62 = vld [vmem:[#allocation2 + $0x30a] sm:$0xff] }
 0x55a   :  { %15206 = vst [vmem:[#allocation74_spill] sm:$0xff] %v12518_v0  ;;  %8521 = vmatmul.mubr.bf16.gmra.mrb[180].mxu0 %v12523_v44  ;;  %v15210_v9 = vld [vmem:[#allocation84_spill] sm:$0xff] }
 0x55b   :  { %8524 = vmatprep.mubr.bf16.mxu0 %v12525_v25  ;;  %v5557_v51 = vpop.f32.mrb[140].mxu1 }
 0x55c   :  { %v12534_v42 = vadd.f32 %v5557_v51, %v12146_v50  ;;  %v5559_v15 = vpop.f32.mrb[141].mxu1  ;;  %v4152_v50 = vpack.c.bf16 %v4120_v57, %v4119_v32  ;;  %v12544_v51 = vpack.c.bf16 %v4214_v62, %v4213_v3  ;;  %v6174_v32 = vld [vmem:[#allocation2 + $0x39] sm:$0xff] }
 0x55d   :  { %v4963_v34 = vpop.f32.mrb[76].mxu0  ;;  %v5560_v35 = vpop.f32.mrb[142].mxu1 }
 0x55e   :  { %v12531_v48 = vadd.f32 %v12291_v47, %v4963_v34  ;;  %v4965_v12 = vpop.f32.mrb[77].mxu0  ;;  %v12540_v0 = vadd.f32 %v5560_v35, %v15210_v9  ;;  %v5562_v25 = vpop.f32.mrb[143].mxu1  ;;  %v4055_v47 = vpack.c.bf16 %v4022_v13, %v4021_v33  ;;  %v12542_v34 = vpack.c.bf16 %v4212_v39, %v4211_v26  ;;  %15211 = vst [vmem:[#allocation84_spill] sm:$0xff] %v12544_v51  ;;  %v4215_v35 = vld [vmem:[#allocation2 + $0x31a] sm:$0xff]  ;;  %v4216_v9 = vld [vmem:[#allocation2 + $0x322] sm:$0xff]  ;;  %v6173_v39 = vld [vmem:[#allocation2 + $0x31] sm:$0xff] }
 0x55f   :  { %v4966_v6 = vpop.f32.mrb[78].mxu0  ;;  %v4023_v12 = vld [vmem:[#allocation2 + $0x318] sm:$0xff]  ;;  %v15212_v25 = vld [vmem:[#allocation92_spill] sm:$0xff] }
 0x560   :  { %15208 = vst [vmem:[#allocation114_spill] sm:$0xff] %v12531_v48  ;;  %v12537_v31 = vadd.f32 %v12299_v29, %v4966_v6  ;;  %v4968_v52 = vpop.f32.mrb[79].mxu0  ;;  %5772 = vmatmul.mubr.bf16.gmra.mrb[248].mxu1 %v4055_v47  ;;  %v4024_v6 = vld [vmem:[#allocation2 + $0x320] sm:$0xff]  ;;  %v15214_v47 = vld [vmem:[#allocation89_spill] sm:$0xff] }
 0x561   :  { %5779 = vmatprep.mubr.bf16.mxu1 %v4152_v50 }
 0x562   :  { %15209 = vst [vmem:[#allocation115_spill] sm:$0xff] %v12537_v31  ;;  %8525 = vmatmul.mubr.bf16.gmra.mrb[184].mxu0 %v12542_v34 }
 0x563   :  { %8528 = vmatprep.mubr.bf16.mxu0 %v12544_v51  ;;  %v5565_v15 = vpop.f32.mrb[144].mxu1  ;;  %v4056_v51 = vpack.c.bf16 %v4024_v6, %v4023_v12  ;;  %v6175_v6 = vld [vmem:[#allocation2 + $0x49] sm:$0xff] }
 0x564   :  { %v12552_v33 = vadd.f32 %v5565_v15, %v15212_v25  ;;  %v5567_v26 = vpop.f32.mrb[145].mxu1  ;;  %v15215_v15 = vld [vmem:[#allocation105_spill] sm:$0xff] }
 0x565   :  { %v4971_v29 = vpop.f32.mrb[80].mxu0  ;;  %v5568_v3 = vpop.f32.mrb[146].mxu1  ;;  %v6077_v26 = vld [vmem:[#allocation2 + $0x30] sm:$0xff] }
 0x566   :  { %v12549_v52 = vadd.f32 %v12323_v37, %v4971_v29  ;;  %v4973_v13 = vpop.f32.mrb[81].mxu0  ;;  %v12558_v50 = vadd.f32 %v5568_v3, %v15214_v47  ;;  %v5570_v48 = vpop.f32.mrb[147].mxu1  ;;  %v12560_v37 = vpack.c.bf16 %v4216_v9, %v4215_v35  ;;  %v6237_v29 = vpack.c.bf16 %v6174_v32, %v6173_v39  ;;  %v15217_v3 = vld [vmem:[#allocation98_spill] sm:$0xff]  ;;  %v15219_v32 = vld [vmem:[#allocation91_spill] sm:$0xff] }
 0x567   :  { %v4974_v57 = vpop.f32.mrb[82].mxu0  ;;  %v6176_v35 = vld [vmem:[#allocation2 + $0x51] sm:$0xff] }
 0x568   :  { %v12555_v62 = vadd.f32 %v12330_v40, %v4974_v57  ;;  %v4976_v31 = vpop.f32.mrb[83].mxu0  ;;  %5780 = vmatmul.mubr.bf16.gmra.mrb[252].mxu1 %v4056_v51  ;;  %v6078_v40 = vld [vmem:[#allocation2 + $0x38] sm:$0xff] }
 0x569   :  { %8548 = vmatprep.mubr.bf16.mxu1 %v15215_v15 }
 0x56a   :  { %15213 = vst [vmem:[#allocation92_spill] sm:$0xff] %v12555_v62  ;;  %8529 = vmatmul.mubr.bf16.gmra.mrb[188].mxu0 %v12560_v37  ;;  %v6141_v62 = vpack.c.bf16 %v6078_v40, %v6077_v26  ;;  %v6177_v26 = vld [vmem:[#allocation2 + $0x61] sm:$0xff]  ;;  %v6178_v40 = vld [vmem:[#allocation2 + $0x69] sm:$0xff] }
 0x56b   :  { %6589 = vmatprep.mubr.bf16.mxu0 %v6237_v29  ;;  %v5573_v13 = vpop.f32.mrb[148].mxu1 }
 0x56c   :  { %v12568_v31 = vadd.f32 %v5573_v13, %v15217_v3  ;;  %v5575_v12 = vpop.f32.mrb[149].mxu1  ;;  %v15221_v13 = vld [vmem:[#allocation109_spill] sm:$0xff] }
 0x56d   :  { %v4979_v25 = vpop.f32.mrb[84].mxu0  ;;  %v5576_v9 = vpop.f32.mrb[150].mxu1  ;;  %v6079_v12 = vld [vmem:[#allocation2 + $0x48] sm:$0xff] }
 0x56e   :  { %v12565_v57 = vadd.f32 %v12320_v41, %v4979_v25  ;;  %v4981_v48 = vpop.f32.mrb[85].mxu0  ;;  %v12574_v47 = vadd.f32 %v5576_v9, %v15219_v32  ;;  %v5578_v15 = vpop.f32.mrb[151].mxu1  ;;  %v6238_v41 = vpack.c.bf16 %v6176_v35, %v6175_v6  ;;  %v15220_v25 = vld [vmem:[#allocation107_spill] sm:$0xff] }
 0x56f   :  { %v4982_v51 = vpop.f32.mrb[86].mxu0  ;;  %v15225_v15 = vld [vmem:[#allocation108_spill] sm:$0xff] }
 0x570   :  { %15216 = vst [vmem:[#allocation89_spill] sm:$0xff] %v12565_v57  ;;  %v12571_v39 = vadd.f32 %v12328_v11, %v4982_v51  ;;  %v4984_v29 = vpop.f32.mrb[87].mxu0  ;;  %8549 = vmatmul.mubr.bf16.vlgmr.msra.gmra.mrb[0].mxu1 %v15220_v25  ;;  %v6080_v57 = vld [vmem:[#allocation2 + $0x50] sm:$0xff]  ;;  %v15223_v51 = vld [vmem:[#allocation106_spill] sm:$0xff] }
 0x571   :  { %8552 = vmatprep.mubr.bf16.mxu1 %v15221_v13 }
 0x572   :  { %15218 = vst [vmem:[#allocation105_spill] sm:$0xff] %v12571_v39  ;;  %6590 = vmatmul.mubr.bf16.vlgmr.msra.gmra.mrb[192].mxu0 %v6141_v62  ;;  %v6142_v39 = vpack.c.bf16 %v6080_v57, %v6079_v12  ;;  %v6179_v57 = vld [vmem:[#allocation2 + $0x79] sm:$0xff]  ;;  %v6180_v12 = vld [vmem:[#allocation2 + $0x81] sm:$0xff] }
 0x573   :  { %6597 = vmatprep.mubr.bf16.mxu0 %v6238_v41  ;;  %v5581_v48 = vpop.f32.mrb[152].mxu1 }
 0x574   :  { %v12582_v9 = vadd.f32 %v5581_v48, %v15223_v51  ;;  %v5583_v29 = vpop.f32.mrb[153].mxu1  ;;  %v15227_v48 = vld [vmem:[#allocation88_spill] sm:$0xff] }
 0x575   :  { %v4987_v3 = vpop.f32.mrb[88].mxu0  ;;  %v5584_v6 = vpop.f32.mrb[154].mxu1  ;;  %v6081_v29 = vld [vmem:[#allocation2 + $0x60] sm:$0xff] }
 0x576   :  { %v12579_v11 = vadd.f32 %v12353_v61, %v4987_v3  ;;  %v4989_v32 = vpop.f32.mrb[89].mxu0  ;;  %v12588_v41 = vadd.f32 %v5584_v6, %v15225_v15  ;;  %v5586_v13 = vpop.f32.mrb[155].mxu1  ;;  %v6239_v61 = vpack.c.bf16 %v6178_v40, %v6177_v26  ;;  %v15226_v3 = vld [vmem:[#allocation111_spill] sm:$0xff] }
 0x577   :  { %v4990_v62 = vpop.f32.mrb[90].mxu0  ;;  %v15231_v13 = vld [vmem:[#allocation100_spill] sm:$0xff] }
 0x578   :  { %15222 = vst [vmem:[#allocation98_spill] sm:$0xff] %v12579_v11  ;;  %v12585_v35 = vadd.f32 %v12360_v17, %v4990_v62  ;;  %v4992_v25 = vpop.f32.mrb[91].mxu0  ;;  %8553 = vmatmul.mubr.bf16.gmra.mrb[4].mxu1 %v15226_v3  ;;  %v6082_v11 = vld [vmem:[#allocation2 + $0x68] sm:$0xff]  ;;  %v15229_v62 = vld [vmem:[#allocation110_spill] sm:$0xff] }
 0x579   :  { %8556 = vmatprep.mubr.bf16.mxu1 %v15227_v48 }
 0x57a   :  { %15224 = vst [vmem:[#allocation91_spill] sm:$0xff] %v12585_v35  ;;  %6598 = vmatmul.mubr.bf16.gmra.mrb[196].mxu0 %v6142_v39  ;;  %v6143_v35 = vpack.c.bf16 %v6082_v11, %v6081_v29  ;;  %v6181_v11 = vld [vmem:[#allocation2 + $0x91] sm:$0xff]  ;;  %v6182_v29 = vld [vmem:[#allocation2 + $0x99] sm:$0xff] }
 0x57b   :  { %6605 = vmatprep.mubr.bf16.mxu0 %v6239_v61  ;;  %v5589_v32 = vpop.f32.mrb[156].mxu1 }
 0x57c   :  { %v12596_v6 = vadd.f32 %v5589_v32, %v15229_v62  ;;  %v5591_v25 = vpop.f32.mrb[157].mxu1  ;;  %v15233_v32 = vld [vmem:[#allocation97_spill] sm:$0xff] }
 0x57d   :  { %v4995_v51 = vpop.f32.mrb[92].mxu0  ;;  %v5592_v26 = vpop.f32.mrb[158].mxu1  ;;  %v6083_v25 = vld [vmem:[#allocation2 + $0x78] sm:$0xff] }
 0x57e   :  { %v12593_v17 = vadd.f32 %v12350_v16, %v4995_v51  ;;  %v4997_v15 = vpop.f32.mrb[93].mxu0  ;;  %v12602_v61 = vadd.f32 %v5592_v26, %v15231_v13  ;;  %v5594_v48 = vpop.f32.mrb[159].mxu1  ;;  %v6240_v16 = vpack.c.bf16 %v6180_v12, %v6179_v57  ;;  %v15232_v51 = vld [vmem:[#allocation93_spill] sm:$0xff] }
 0x57f   :  { %v4998_v39 = vpop.f32.mrb[94].mxu0  ;;  %v15237_v48 = vld [vmem:[#allocation90_spill] sm:$0xff] }
 0x580   :  { %15228 = vst [vmem:[#allocation107_spill] sm:$0xff] %v12593_v17  ;;  %v12599_v40 = vadd.f32 %v12358_v18, %v4998_v39  ;;  %v5000_v3 = vpop.f32.mrb[95].mxu0  ;;  %8557 = vmatmul.mubr.bf16.gmra.mrb[8].mxu1 %v15232_v51  ;;  %v6084_v17 = vld [vmem:[#allocation2 + $0x80] sm:$0xff] }
 0x581   :  { %8560 = vmatprep.mubr.bf16.mxu1 %v15233_v32  ;;  %v15235_v39 = vld [vmem:[#allocation95_spill] sm:$0xff] }
 0x582   :  { %15230 = vst [vmem:[#allocation109_spill] sm:$0xff] %v12599_v40  ;;  %6606 = vmatmul.mubr.bf16.gmra.mrb[200].mxu0 %v6143_v35  ;;  %v6144_v40 = vpack.c.bf16 %v6084_v17, %v6083_v25  ;;  %v6183_v17 = vld [vmem:[#allocation2 + $0xa9] sm:$0xff]  ;;  %v6184_v25 = vld [vmem:[#allocation2 + $0xb1] sm:$0xff] }
 0x583   :  { %6613 = vmatprep.mubr.bf16.mxu0 %v6240_v16  ;;  %v5597_v15 = vpop.f32.mrb[160].mxu1 }
 0x584   :  { %v12610_v26 = vadd.f32 %v5597_v15, %v15235_v39  ;;  %v5599_v3 = vpop.f32.mrb[161].mxu1  ;;  %v6085_v39 = vld [vmem:[#allocation2 + $0x90] sm:$0xff] }
 0x585   :  { %v5003_v62 = vpop.f32.mrb[96].mxu0  ;;  %v5600_v57 = vpop.f32.mrb[162].mxu1  ;;  %v15239_v3 = vld [vmem:[#allocation112_spill] sm:$0xff] }
 0x586   :  { %v12607_v18 = vadd.f32 %v12383_v22, %v5003_v62  ;;  %v5005_v13 = vpop.f32.mrb[97].mxu0  ;;  %v12616_v16 = vadd.f32 %v5600_v57, %v15237_v48  ;;  %v5602_v32 = vpop.f32.mrb[163].mxu1  ;;  %v6241_v22 = vpack.c.bf16 %v6182_v29, %v6181_v11 }
 0x587   :  { %v5006_v35 = vpop.f32.mrb[98].mxu0  ;;  %v6086_v13 = vld [vmem:[#allocation2 + $0x98] sm:$0xff] }
 0x588   :  { %15234 = vst [vmem:[#allocation106_spill] sm:$0xff] %v12607_v18  ;;  %v12613_v12 = vadd.f32 %v12390_v19, %v5006_v35  ;;  %v5008_v51 = vpop.f32.mrb[99].mxu0  ;;  %8561 = vmatmul.mubr.bf16.gmra.mrb[12].mxu1 %v12303_v53  ;;  %v6091_v18 = vld [vmem:[#allocation2 + $0xd8] sm:$0xff] }
 0x589   :  { %8564 = vmatprep.mubr.bf16.mxu1 %v12311_v43  ;;  %v15241_v43 = vld [vmem:[#allocation113_spill] sm:$0xff] }
 0x58a   :  { %15236 = vst [vmem:[#allocation108_spill] sm:$0xff] %v12613_v12  ;;  %6614 = vmatmul.mubr.bf16.gmra.mrb[204].mxu0 %v6144_v40  ;;  %v6187_v12 = vld [vmem:[#allocation2 + $0xd9] sm:$0xff] }
 0x58b   :  { %6621 = vmatprep.mubr.bf16.mxu0 %v6241_v22  ;;  %v5605_v15 = vpop.f32.mrb[164].mxu1  ;;  %v6145_v22 = vpack.c.bf16 %v6086_v13, %v6085_v39  ;;  %v6185_v39 = vld [vmem:[#allocation2 + $0xc1] sm:$0xff]  ;;  %v6186_v13 = vld [vmem:[#allocation2 + $0xc9] sm:$0xff] }
 0x58c   :  { %v12624_v35 = vadd.f32 %v5605_v15, %v15239_v3  ;;  %v5607_v48 = vpop.f32.mrb[165].mxu1  ;;  %v15243_v15 = vld [vmem:[#allocation104_spill] sm:$0xff] }
 0x58d   :  { %v5011_v62 = vpop.f32.mrb[100].mxu0  ;;  %v5608_v11 = vpop.f32.mrb[166].mxu1  ;;  %v6087_v48 = vld [vmem:[#allocation2 + $0xa8] sm:$0xff] }
 0x58e   :  { %v12621_v19 = vadd.f32 %v12380_v63, %v5011_v62  ;;  %v5013_v57 = vpop.f32.mrb[101].mxu0  ;;  %v12630_v29 = vadd.f32 %v5608_v11, %v15241_v43  ;;  %v5610_v32 = vpop.f32.mrb[167].mxu1  ;;  %v6242_v63 = vpack.c.bf16 %v6184_v25, %v6183_v17  ;;  %v15242_v62 = vld [vmem:[#allocation65_spill] sm:$0xff] }
 0x58f   :  { %v5014_v40 = vpop.f32.mrb[102].mxu0 }
 0x590   :  { %15238 = vst [vmem:[#allocation111_spill] sm:$0xff] %v12621_v19  ;;  %v12627_v53 = vadd.f32 %v12388_v36, %v5014_v40  ;;  %v5016_v51 = vpop.f32.mrb[103].mxu0  ;;  %8565 = vmatmul.mubr.bf16.gmra.mrb[16].mxu1 %v15242_v62  ;;  %v6088_v19 = vld [vmem:[#allocation2 + $0xb0] sm:$0xff]  ;;  %v15245_v40 = vld [vmem:[#allocation102_spill] sm:$0xff] }
 0x591   :  { %8568 = vmatprep.mubr.bf16.mxu1 %v15243_v15 }
 0x592   :  { %15240 = vst [vmem:[#allocation88_spill] sm:$0xff] %v12627_v53  ;;  %6622 = vmatmul.mubr.bf16.gmra.mrb[208].mxu0 %v6145_v22  ;;  %v15247_v22 = vld [vmem:[#allocation66_spill] sm:$0xff]  ;;  %v6146_v53 = vpack.c.bf16 %v6088_v19, %v6087_v48  ;;  %v6188_v48 = vld [vmem:[#allocation2 + $0xe1] sm:$0xff] }
 0x593   :  { %6629 = vmatprep.mubr.bf16.mxu0 %v6242_v63  ;;  %v5613_v57 = vpop.f32.mrb[168].mxu1 }
 0x594   :  { %v12638_v11 = vadd.f32 %v5613_v57, %v15245_v40  ;;  %v5615_v51 = vpop.f32.mrb[169].mxu1  ;;  %v15249_v57 = vld [vmem:[#allocation83_spill] sm:$0xff] }
 0x595   :  { %v5019_v3 = vpop.f32.mrb[104].mxu0  ;;  %v5616_v25 = vpop.f32.mrb[170].mxu1  ;;  %v6089_v51 = vld [vmem:[#allocation2 + $0xc0] sm:$0xff] }
 0x596   :  { %v12635_v36 = vadd.f32 %v12410_v54, %v5019_v3  ;;  %v5021_v43 = vpop.f32.mrb[105].mxu0  ;;  %v12644_v63 = vadd.f32 %v5616_v25, %v15247_v22  ;;  %v5618_v15 = vpop.f32.mrb[171].mxu1  ;;  %v6243_v54 = vpack.c.bf16 %v6186_v13, %v6185_v39  ;;  %v15248_v3 = vld [vmem:[#allocation70_spill] sm:$0xff]  ;;  %v6298_v39 = vld [vmem:[#allocation2 + $0x18a] sm:$0xff] }
 0x597   :  { %v5022_v17 = vpop.f32.mrb[106].mxu0 }
 0x598   :  { %15244 = vst [vmem:[#allocation110_spill] sm:$0xff] %v12635_v36  ;;  %v12641_v32 = vadd.f32 %v12417_v20, %v5022_v17  ;;  %v5024_v62 = vpop.f32.mrb[107].mxu0  ;;  %8569 = vmatmul.mubr.bf16.gmra.mrb[20].mxu1 %v15248_v3  ;;  %v6090_v36 = vld [vmem:[#allocation2 + $0xc8] sm:$0xff]  ;;  %v15251_v17 = vld [vmem:[#allocation69_spill] sm:$0xff] }
 0x599   :  { %8572 = vmatprep.mubr.bf16.mxu1 %v15249_v57 }
 0x59a   :  { %15246 = vst [vmem:[#allocation100_spill] sm:$0xff] %v12641_v32  ;;  %6630 = vmatmul.mubr.bf16.gmra.mrb[212].mxu0 %v6146_v53  ;;  %v6297_v53 = vld [vmem:[#allocation2 + $0x182] sm:$0xff] }
 0x59b   :  { %6637 = vmatprep.mubr.bf16.mxu0 %v6243_v54  ;;  %v5621_v43 = vpop.f32.mrb[172].mxu1  ;;  %v15252_v54 = vld [vmem:[#allocation73_spill] sm:$0xff] }
 0x59c   :  { %v12652_v25 = vadd.f32 %v5621_v43, %v15251_v17  ;;  %v5623_v19 = vpop.f32.mrb[173].mxu1  ;;  %v6299_v43 = vld [vmem:[#allocation2 + $0x19a] sm:$0xff]  ;;  %v6300_v17 = vld [vmem:[#allocation2 + $0x1a2] sm:$0xff] }
 0x59d   :  { %v5027_v40 = vpop.f32.mrb[108].mxu0  ;;  %v5624_v62 = vpop.f32.mrb[174].mxu1 }
 0x59e   :  { %v12649_v20 = vadd.f32 %v12407_v60, %v5027_v40  ;;  %v5029_v22 = vpop.f32.mrb[109].mxu0  ;;  %v12658_v3 = vadd.f32 %v5624_v62, %v15252_v54  ;;  %v5626_v32 = vpop.f32.mrb[175].mxu1  ;;  %v6147_v60 = vpack.c.bf16 %v6090_v36, %v6089_v51  ;;  %v6244_v40 = vpack.c.bf16 %v6188_v48, %v6187_v12  ;;  %v15253_v62 = vld [vmem:[#allocation96_spill] sm:$0xff]  ;;  %v6189_v51 = vld [vmem:[#allocation2 + $0xf1] sm:$0xff]  ;;  %v6190_v48 = vld [vmem:[#allocation2 + $0xf9] sm:$0xff] }
 0x59f   :  { %v5030_v13 = vpop.f32.mrb[110].mxu0  ;;  %v6348_v32 = vpack.c.bf16 %v6300_v17, %v6299_v43 }
 0x5a0   :  { %15250 = vst [vmem:[#allocation93_spill] sm:$0xff] %v12649_v20  ;;  %v12655_v15 = vadd.f32 %v12415_v28, %v5030_v13  ;;  %v5032_v57 = vpop.f32.mrb[111].mxu0  ;;  %v6347_v20 = vpack.c.bf16 %v6298_v39, %v6297_v53  ;;  %8573 = vmatmul.mubr.bf16.gmra.mrb[24].mxu1 %v12392_v14  ;;  %v6092_v28 = vld [vmem:[#allocation2 + $0xe0] sm:$0xff]  ;;  %v15254_v39 = vld [vmem:[#allocation77_spill] sm:$0xff] }
 0x5a2   :  { %6638 = vmatmul.mubr.bf16.gmra.mrb[216].mxu0 %v6147_v60  ;;  %8576 = vmatprep.mubr.bf16.mxu1 %v6347_v20 }
 0x5a3   :  { %6645 = vmatprep.mubr.bf16.mxu0 %v6244_v40  ;;  %v5629_v19 = vpop.f32.mrb[176].mxu1 }
 0x5a4   :  { %v12665_v54 = vadd.f32 %v5629_v19, %v15253_v62  ;;  %v5631_v12 = vpop.f32.mrb[177].mxu1  ;;  %v6093_v19 = vld [vmem:[#allocation2 + $0xf0] sm:$0xff]  ;;  %v6094_v62 = vld [vmem:[#allocation2 + $0xf8] sm:$0xff] }
 0x5a5   :  { %v5035_v22 = vpop.f32.mrb[112].mxu0  ;;  %v5632_v53 = vpop.f32.mrb[178].mxu1 }
 0x5a6   :  { %v12662_v13 = vadd.f32 %v12429_v2, %v5035_v22  ;;  %v5037_v36 = vpop.f32.mrb[113].mxu0  ;;  %v12671_v57 = vadd.f32 %v5632_v53, %v15254_v39  ;;  %v5634_v40 = vpop.f32.mrb[179].mxu1  ;;  %v6148_v2 = vpack.c.bf16 %v6092_v28, %v6091_v18  ;;  %v6245_v22 = vpack.c.bf16 %v6190_v48, %v6189_v51  ;;  %v6191_v39 = vld [vmem:[#allocation2 + $0x109] sm:$0xff]  ;;  %v6192_v18 = vld [vmem:[#allocation2 + $0x111] sm:$0xff] }
 0x5a7   :  { %v5038_v14 = vpop.f32.mrb[114].mxu0 }
 0x5a8   :  { %v12668_v20 = vadd.f32 %v12436_v5, %v5038_v14  ;;  %v5040_v60 = vpop.f32.mrb[115].mxu0  ;;  %8577 = vmatmul.mubr.bf16.gmra.mrb[28].mxu1 %v6348_v32  ;;  %v15255_v5 = vld [vmem:[#allocation101_spill] sm:$0xff] }
 0x5a9   :  { %8580 = vmatprep.mubr.bf16.mxu1 %v12422_v59  ;;  %v15257_v59 = vld [vmem:[#allocation75_spill] sm:$0xff] }
 0x5aa   :  { %6646 = vmatmul.mubr.bf16.gmra.mrb[220].mxu0 %v6148_v2  ;;  %v6149_v2 = vpack.c.bf16 %v6094_v62, %v6093_v19  ;;  %v6193_v19 = vld [vmem:[#allocation2 + $0x121] sm:$0xff]  ;;  %v6194_v62 = vld [vmem:[#allocation2 + $0x129] sm:$0xff] }
 0x5ab   :  { %6653 = vmatprep.mubr.bf16.mxu0 %v6245_v22  ;;  %v5637_v17 = vpop.f32.mrb[180].mxu1  ;;  %v15258_v22 = vld [vmem:[#allocation85_spill] sm:$0xff] }
 0x5ac   :  { %v12678_v12 = vadd.f32 %v5637_v17, %v15255_v5  ;;  %v5639_v53 = vpop.f32.mrb[181].mxu1  ;;  %v6095_v5 = vld [vmem:[#allocation2 + $0x108] sm:$0xff] }
 0x5ad   :  { %v5043_v43 = vpop.f32.mrb[116].mxu0  ;;  %v5640_v51 = vpop.f32.mrb[182].mxu1  ;;  %v15260_v53 = vld [vmem:[#allocation87_spill] sm:$0xff] }
 0x5ae   :  { %v12675_v36 = vadd.f32 %v12427_v7, %v5043_v43  ;;  %v5045_v14 = vpop.f32.mrb[117].mxu0  ;;  %v12684_v48 = vadd.f32 %v5640_v51, %v15257_v59  ;;  %v5642_v40 = vpop.f32.mrb[183].mxu1  ;;  %v6246_v7 = vpack.c.bf16 %v6192_v18, %v6191_v39 }
 0x5af   :  { %v5046_v28 = vpop.f32.mrb[118].mxu0  ;;  %v6096_v14 = vld [vmem:[#allocation2 + $0x110] sm:$0xff] }
 0x5b0   :  { %v12681_v32 = vadd.f32 %v12434_v45, %v5046_v28  ;;  %v5048_v60 = vpop.f32.mrb[119].mxu0  ;;  %8581 = vmatmul.mubr.bf16.gmra.mrb[32].mxu1 %v12438_v30 }
 0x5b1   :  { %8584 = vmatprep.mubr.bf16.mxu1 %v15258_v22  ;;  %v15262_v60 = vld [vmem:[#allocation82_spill] sm:$0xff]  ;;  %v6150_v22 = vpack.c.bf16 %v6096_v14, %v6095_v5  ;;  %v6196_v14 = vld [vmem:[#allocation2 + $0x141] sm:$0xff] }
 0x5b2   :  { %15256 = vst [vmem:[#allocation97_spill] sm:$0xff] %v12681_v32  ;;  %6654 = vmatmul.mubr.bf16.gmra.mrb[224].mxu0 %v6149_v2  ;;  %v6195_v5 = vld [vmem:[#allocation2 + $0x139] sm:$0xff] }
 0x5b3   :  { %6661 = vmatprep.mubr.bf16.mxu0 %v6246_v7  ;;  %v5645_v17 = vpop.f32.mrb[184].mxu1 }
 0x5b4   :  { %v12692_v28 = vadd.f32 %v5645_v17, %v15260_v53  ;;  %v5647_v59 = vpop.f32.mrb[185].mxu1 }
 0x5b5   :  { %v5051_v43 = vpop.f32.mrb[120].mxu0  ;;  %v5648_v18 = vpop.f32.mrb[186].mxu1  ;;  %v6098_v59 = vld [vmem:[#allocation2 + $0x128] sm:$0xff] }
 0x5b6   :  { %v12689_v45 = vadd.f32 %v12451_v56, %v5051_v43  ;;  %v5053_v51 = vpop.f32.mrb[121].mxu0  ;;  %v12698_v40 = vadd.f32 %v5648_v18, %v15262_v60  ;;  %v5650_v7 = vpop.f32.mrb[187].mxu1  ;;  %v6247_v56 = vpack.c.bf16 %v6194_v62, %v6193_v19  ;;  %v15263_v43 = vld [vmem:[#allocation72_spill] sm:$0xff] }
 0x5b7   :  { %v5054_v39 = vpop.f32.mrb[122].mxu0  ;;  %v6097_v51 = vld [vmem:[#allocation2 + $0x120] sm:$0xff] }
 0x5b8   :  { %15259 = vst [vmem:[#allocation95_spill] sm:$0xff] %v12689_v45  ;;  %v12695_v30 = vadd.f32 %v12458_v8, %v5054_v39  ;;  %v5056_v2 = vpop.f32.mrb[123].mxu0  ;;  %8585 = vmatmul.mubr.bf16.gmra.mrb[36].mxu1 %v12460_v23  ;;  %v15264_v45 = vld [vmem:[#allocation86_spill] sm:$0xff]  ;;  %v6151_v32 = vpack.c.bf16 %v6098_v59, %v6097_v51 }
 0x5b9   :  { %8588 = vmatprep.mubr.bf16.mxu1 %v15263_v43  ;;  %v15265_v39 = vld [vmem:[#allocation94_spill] sm:$0xff] }
 0x5ba   :  { %15261 = vst [vmem:[#allocation90_spill] sm:$0xff] %v12695_v30  ;;  %6662 = vmatmul.mubr.bf16.gmra.mrb[228].mxu0 %v6150_v22  ;;  %v15266_v23 = vld [vmem:[#allocation78_spill] sm:$0xff]  ;;  %v15267_v22 = vld [vmem:[#allocation71_spill] sm:$0xff] }
 0x5bb   :  { %6669 = vmatprep.mubr.bf16.mxu0 %v6247_v56  ;;  %v5653_v53 = vpop.f32.mrb[188].mxu1  ;;  %v6197_v51 = vld [vmem:[#allocation2 + $0x151] sm:$0xff]  ;;  %v6198_v59 = vld [vmem:[#allocation2 + $0x159] sm:$0xff] }
 0x5bc   :  { %v12706_v18 = vadd.f32 %v5653_v53, %v15265_v39  ;;  %v5655_v2 = vpop.f32.mrb[189].mxu1  ;;  %v6099_v39 = vld [vmem:[#allocation2 + $0x138] sm:$0xff] }
 0x5bd   :  { %v5059_v17 = vpop.f32.mrb[124].mxu0  ;;  %v5656_v62 = vpop.f32.mrb[190].mxu1 }
 0x5be   :  { %v12703_v8 = vadd.f32 %v15264_v45, %v5059_v17  ;;  %v5061_v60 = vpop.f32.mrb[125].mxu0  ;;  %v12712_v56 = vadd.f32 %v5656_v62, %v15267_v22  ;;  %v5658_v30 = vpop.f32.mrb[191].mxu1  ;;  %v6248_v45 = vpack.c.bf16 %v6196_v14, %v6195_v5 }
 0x5bf   :  { %v5062_v19 = vpop.f32.mrb[126].mxu0  ;;  %v6100_v60 = vld [vmem:[#allocation2 + $0x140] sm:$0xff] }
 0x5c0   :  { %v12709_v7 = vadd.f32 %v15266_v23, %v5062_v19  ;;  %v5064_v43 = vpop.f32.mrb[127].mxu0  ;;  %8589 = vmatmul.mubr.bf16.gmra.mrb[40].mxu1 %v12483_v46  ;;  %v6152_v23 = vpack.c.bf16 %v6100_v60, %v6099_v39 }
 0x5c1   :  { %8592 = vmatprep.mubr.bf16.mxu1 %v12485_v27 }
 0x5c2   :  { %6670 = vmatmul.mubr.bf16.gmra.mrb[232].mxu0 %v6151_v32 }
 0x5c3   :  { %6677 = vmatprep.mubr.bf16.mxu0 %v6248_v45  ;;  %v5661_v17 = vpop.f32.mrb[192].mxu1  ;;  %v6249_v45 = vpack.c.bf16 %v6198_v59, %v6197_v51  ;;  %v6200_v51 = vld [vmem:[#allocation2 + $0x171] sm:$0xff] }
 0x5c4   :  { %v12717_v2 = vadd.f32 %v5661_v17, %v12472_v1  ;;  %v5663_v62 = vpop.f32.mrb[193].mxu1 }
 0x5c5   :  { %v8470_v53 = vpop.f32.mrb[128].mxu0  ;;  %v5664_v46 = vpop.f32.mrb[194].mxu1  ;;  %v15269_v62 = vld [vmem:[#allocation81_spill] sm:$0xff] }
 0x5c6   :  { %v12720_v19 = vadd.f32 %v8470_v53, %v12495_v10  ;;  %v5822_v30 = vpop.f32.mrb[129].mxu0  ;;  %v12726_v27 = vadd.f32 %v5664_v46, %v12478_v38  ;;  %v5666_v22 = vpop.f32.mrb[195].mxu1  ;;  %v15268_v10 = vld [vmem:[#allocation103_spill] sm:$0xff]  ;;  %v6101_v38 = vld [vmem:[#allocation2 + $0x150] sm:$0xff]  ;;  %v6102_v53 = vld [vmem:[#allocation2 + $0x158] sm:$0xff] }
 0x5c7   :  { %v12723_v32 = vadd.f32 %v5822_v30, %v12475_v58  ;;  %v8471_v5 = vpop.f32.mrb[130].mxu0  ;;  %v6199_v46 = vld [vmem:[#allocation2 + $0x169] sm:$0xff] }
 0x5c8   :  { %v12729_v14 = vadd.f32 %v8471_v5, %v12501_v21  ;;  %v5825_v1 = vpop.f32.mrb[131].mxu0  ;;  %8593 = vmatmul.mubr.bf16.gmra.mrb[44].mxu1 %v12503_v49 }
 0x5c9   :  { %v12732_v43 = vadd.f32 %v5825_v1, %v15268_v10  ;;  %8596 = vmatprep.mubr.bf16.mxu1 %v12505_v55  ;;  %v15270_v55 = vld [vmem:[#allocation79_spill] sm:$0xff] }
 0x5ca   :  { %6678 = vmatmul.mubr.bf16.gmra.mrb[236].mxu0 %v6152_v23 }
 0x5cb   :  { %6685 = vmatprep.mubr.bf16.mxu0 %v6249_v45  ;;  %v5669_v58 = vpop.f32.mrb[196].mxu1  ;;  %v6153_v45 = vpack.c.bf16 %v6102_v53, %v6101_v38  ;;  %v6201_v53 = vld [vmem:[#allocation2 + $0x181] sm:$0xff] }
 0x5cc   :  { %v12737_v21 = vadd.f32 %v5669_v58, %v15269_v62  ;;  %v5671_v60 = vpop.f32.mrb[197].mxu1  ;;  %v6250_v58 = vpack.c.bf16 %v6200_v51, %v6199_v46  ;;  %v6202_v46 = vld [vmem:[#allocation2 + $0x189] sm:$0xff] }
 0x5cd   :  { %v8474_v17 = vpop.f32.mrb[132].mxu0  ;;  %v5672_v49 = vpop.f32.mrb[198].mxu1  ;;  %v6103_v60 = vld [vmem:[#allocation2 + $0x168] sm:$0xff] }
 0x5ce   :  { %v12740_v39 = vadd.f32 %v8474_v17, %v12534_v42  ;;  %v5838_v30 = vpop.f32.mrb[133].mxu0  ;;  %v12746_v1 = vadd.f32 %v5672_v49, %v15270_v55  ;;  %v5674_v22 = vpop.f32.mrb[199].mxu1  ;;  %v15272_v49 = vld [vmem:[#allocation76_spill] sm:$0xff] }
 0x5cf   :  { %v12743_v59 = vadd.f32 %v5838_v30, %v12515_v24  ;;  %v8475_v5 = vpop.f32.mrb[134].mxu0  ;;  %v15271_v24 = vld [vmem:[#allocation80_spill] sm:$0xff]  ;;  %v6104_v30 = vld [vmem:[#allocation2 + $0x170] sm:$0xff]  ;;  %v15274_v22 = vld [vmem:[#allocation74_spill] sm:$0xff] }
 0x5d0   :  { %v12749_v23 = vadd.f32 %v8475_v5, %v12540_v0  ;;  %v5841_v10 = vpop.f32.mrb[135].mxu0  ;;  %8597 = vmatmul.mubr.bf16.gmra.mrb[48].mxu1 %v12523_v44 }
 0x5d1   :  { %v12752_v42 = vadd.f32 %v5841_v10, %v12521_v4  ;;  %8600 = vmatprep.mubr.bf16.mxu1 %v15271_v24 }
 0x5d2   :  { %6686 = vmatmul.mubr.bf16.gmra.mrb[240].mxu0 %v6153_v45 }
 0x5d3   :  { %6693 = vmatprep.mubr.bf16.mxu0 %v6250_v58  ;;  %v5677_v17 = vpop.f32.mrb[200].mxu1 }
 0x5d4   :  { %v12757_v0 = vadd.f32 %v5677_v17, %v15272_v49  ;;  %v5679_v38 = vpop.f32.mrb[201].mxu1  ;;  %v6154_v17 = vpack.c.bf16 %v6104_v30, %v6103_v60  ;;  %v6203_v49 = vld [vmem:[#allocation2 + $0x199] sm:$0xff] }
 0x5d5   :  { %v8478_v62 = vpop.f32.mrb[136].mxu0  ;;  %v5680_v44 = vpop.f32.mrb[202].mxu1  ;;  %v6204_v38 = vld [vmem:[#allocation2 + $0x1a1] sm:$0xff] }
 0x5d6   :  { %v12760_v5 = vadd.f32 %v8478_v62, %v12568_v31  ;;  %v5854_v4 = vpop.f32.mrb[137].mxu0  ;;  %v12766_v10 = vadd.f32 %v5680_v44, %v15274_v22  ;;  %v5682_v58 = vpop.f32.mrb[203].mxu1  ;;  %v6251_v62 = vpack.c.bf16 %v6202_v46, %v6201_v53  ;;  %v6105_v22 = vld [vmem:[#allocation2 + $0x180] sm:$0xff]  ;;  %v6329_v53 = vld [vmem:[#allocation2 + $0x332] sm:$0xff] }
 0x5d7   :  { %v12763_v51 = vadd.f32 %v5854_v4, %v12552_v33  ;;  %v8479_v55 = vpop.f32.mrb[138].mxu0  ;;  %v15276_v33 = vld [vmem:[#allocation84_spill] sm:$0xff]  ;;  %v6330_v46 = vld [vmem:[#allocation2 + $0x33a] sm:$0xff] }
 0x5d8   :  { %15273 = vst [vmem:[#allocation112_spill] sm:$0xff] %v12760_v5  ;;  %v12769_v45 = vadd.f32 %v8479_v55, %v12574_v47  ;;  %v5857_v24 = vpop.f32.mrb[139].mxu0  ;;  %8601 = vmatmul.mubr.bf16.gmra.mrb[52].mxu1 %v12542_v34  ;;  %v6106_v47 = vld [vmem:[#allocation2 + $0x188] sm:$0xff]  ;;  %v15277_v55 = vld [vmem:[#allocation114_spill] sm:$0xff] }
 0x5d9   :  { %v12772_v31 = vadd.f32 %v5857_v24, %v12558_v50  ;;  %8604 = vmatprep.mubr.bf16.mxu1 %v15276_v33  ;;  %v15278_v33 = vld [vmem:[#allocation115_spill] sm:$0xff] }
 0x5da   :  { %15275 = vst [vmem:[#allocation113_spill] sm:$0xff] %v12769_v45  ;;  %6694 = vmatmul.mubr.bf16.gmra.mrb[244].mxu0 %v6154_v17 }
 0x5db   :  { %6701 = vmatprep.mubr.bf16.mxu0 %v6251_v62  ;;  %v5685_v4 = vpop.f32.mrb[204].mxu1  ;;  %v6252_v62 = vpack.c.bf16 %v6204_v38, %v6203_v49 }
 0x5dc   :  { %v12777_v58 = vadd.f32 %v5685_v4, %v15277_v55  ;;  %v5687_v50 = vpop.f32.mrb[205].mxu1 }
 0x5dd   :  { %v8482_v44 = vpop.f32.mrb[140].mxu0  ;;  %v5688_v24 = vpop.f32.mrb[206].mxu1  ;;  %v6363_v50 = vpack.c.bf16 %v6330_v46, %v6329_v53  ;;  %v6206_v46 = vld [vmem:[#allocation2 + $0x1e9] sm:$0xff] }
 0x5de   :  { %v12780_v60 = vadd.f32 %v8482_v44, %v12596_v6  ;;  %v5870_v30 = vpop.f32.mrb[141].mxu0  ;;  %v12786_v45 = vadd.f32 %v5688_v24, %v15278_v33  ;;  %v5690_v4 = vpop.f32.mrb[207].mxu1  ;;  %v6155_v6 = vpack.c.bf16 %v6106_v47, %v6105_v22 }
 0x5df   :  { %v12783_v34 = vadd.f32 %v5870_v30, %v12582_v9  ;;  %v8483_v17 = vpop.f32.mrb[142].mxu0  ;;  %v6107_v9 = vld [vmem:[#allocation2 + $0x198] sm:$0xff]  ;;  %v6205_v30 = vld [vmem:[#allocation2 + $0x1e1] sm:$0xff] }
 0x5e0   :  { %v12789_v5 = vadd.f32 %v8483_v17, %v12602_v61  ;;  %v5873_v55 = vpop.f32.mrb[143].mxu0  ;;  %8605 = vmatmul.mubr.bf16.gmra.mrb[56].mxu1 %v12560_v37  ;;  %v6331_v37 = vld [vmem:[#allocation2 + $0x34a] sm:$0xff]  ;;  %v6332_v17 = vld [vmem:[#allocation2 + $0x352] sm:$0xff] }
 0x5e1   :  { %v12792_v44 = vadd.f32 %v5873_v55, %v12588_v41  ;;  %8608 = vmatprep.mubr.bf16.mxu1 %v6363_v50  ;;  %v12801_v41 = vld [vmem:[#allocation2 + $0x8] sm:$0xff]  ;;  %v6364_v55 = vpack.c.bf16 %v6332_v17, %v6331_v37  ;;  %v15282_v37 = vld [vmem:[#allocation89_spill] sm:$0xff] }
 0x5e2   :  { %6702 = vmatmul.mubr.bf16.gmra.mrb[248].mxu0 %v6155_v6  ;;  %v6156_v53 = vpack.c.bf16 %v12801_v41, %v6107_v9  ;;  %v6253_v9 = vpack.c.bf16 %v6206_v46, %v6205_v30  ;;  %v15285_v46 = vld [vmem:[#allocation105_spill] sm:$0xff] }
 0x5e3   :  { %6709 = vmatprep.mubr.bf16.mxu0 %v6252_v62  ;;  %v5693_v49 = vpop.f32.mrb[208].mxu1 }
 0x5e4   :  { %v12796_v24 = vadd.f32 %v5693_v49, %v12549_v52  ;;  %v5695_v22 = vpop.f32.mrb[209].mxu1  ;;  %v15280_v52 = vld [vmem:[#allocation92_spill] sm:$0xff] }
 0x5e5   :  { %v8486_v38 = vpop.f32.mrb[144].mxu0  ;;  %v5696_v33 = vpop.f32.mrb[210].mxu1 }
 0x5e6   :  { %v12799_v61 = vadd.f32 %v8486_v38, %v12624_v35  ;;  %v5886_v47 = vpop.f32.mrb[145].mxu0  ;;  %v12808_v6 = vadd.f32 %v5696_v33, %v15280_v52  ;;  %v5698_v50 = vpop.f32.mrb[211].mxu1  ;;  %v6207_v52 = vld [vmem:[#allocation2 + $0x1f9] sm:$0xff] }
 0x5e7   :  { %v12805_v62 = vadd.f32 %v5886_v47, %v12610_v26  ;;  %v8487_v4 = vpop.f32.mrb[146].mxu0  ;;  %v6109_v47 = vld [vmem:[#allocation2 + $0x1e0] sm:$0xff] }
 0x5e8   :  { %15279 = vst [vmem:[#allocation65_spill] sm:$0xff] %v12799_v61  ;;  %v12811_v35 = vadd.f32 %v8487_v4, %v12630_v29  ;;  %v5889_v49 = vpop.f32.mrb[147].mxu0  ;;  %8609 = vmatmul.mubr.bf16.gmra.mrb[60].mxu1 %v6364_v55  ;;  %v6110_v61 = vld [vmem:[#allocation2 + $0x1e8] sm:$0xff] }
 0x5e9   :  { %v12814_v38 = vadd.f32 %v5889_v49, %v12616_v16  ;;  %v6208_v50 = vld [vmem:[#allocation2 + $0x201] sm:$0xff] }
 0x5ea   :  { %15281 = vst [vmem:[#allocation104_spill] sm:$0xff] %v12811_v35  ;;  %6710 = vmatmul.mubr.bf16.gmra.mrb[252].mxu0 %v6156_v53 }
 0x5eb   :  { %6717 = vmatprep.mubr.bf16.mxu0 %v6253_v9  ;;  %v5701_v26 = vpop.f32.mrb[212].mxu1 }
 0x5ec   :  { %v12817_v17 = vadd.f32 %v5701_v26, %v15282_v37  ;;  %v5703_v29 = vpop.f32.mrb[213].mxu1  ;;  %v6157_v37 = vpack.c.bf16 %v6110_v61, %v6109_v47  ;;  %v6210_v61 = vld [vmem:[#allocation2 + $0x219] sm:$0xff] }
 0x5ed   :  { %v8490_v22 = vpop.f32.mrb[148].mxu0  ;;  %v5704_v30 = vpop.f32.mrb[214].mxu1 }
 0x5ee   :  { %v12820_v33 = vadd.f32 %v8490_v22, %v12652_v25  ;;  %v5902_v4 = vpop.f32.mrb[149].mxu0  ;;  %v12826_v55 = vadd.f32 %v5704_v30, %v15285_v46  ;;  %v5706_v9 = vpop.f32.mrb[215].mxu1  ;;  %v6254_v22 = vpack.c.bf16 %v6208_v50, %v6207_v52  ;;  %v6209_v46 = vld [vmem:[#allocation2 + $0x211] sm:$0xff]  ;;  %v15289_v50 = vld [vmem:[#allocation91_spill] sm:$0xff] }
 0x5ef   :  { %v12823_v16 = vadd.f32 %v5902_v4, %v12638_v11  ;;  %v8491_v53 = vpop.f32.mrb[150].mxu0  ;;  %v6111_v4 = vld [vmem:[#allocation2 + $0x1f8] sm:$0xff] }
 0x5f0   :  { %15283 = vst [vmem:[#allocation102_spill] sm:$0xff] %v12820_v33  ;;  %v12829_v49 = vadd.f32 %v8491_v53, %v12658_v3  ;;  %v5905_v26 = vpop.f32.mrb[151].mxu0  ;;  %v6112_v33 = vld [vmem:[#allocation2 + $0x200] sm:$0xff] }
 0x5f1   :  { %15284 = vst [vmem:[#allocation66_spill] sm:$0xff] %v12823_v16  ;;  %v12832_v25 = vadd.f32 %v5905_v26, %v12644_v63  ;;  %v15286_v16 = vld [vmem:[#allocation98_spill] sm:$0xff] }
 0x5f2   :  { %6718 = vmatmul.mubr.bf16.gmra.mrb[0].mxu0 %v6157_v37 }
 0x5f3   :  { %6725 = vmatprep.mubr.bf16.mxu0 %v6254_v22  ;;  %v5709_v29 = vpop.f32.mrb[216].mxu1  ;;  %v6158_v22 = vpack.c.bf16 %v6112_v33, %v6111_v4  ;;  %v6212_v33 = vld [vmem:[#allocation2 + $0x231] sm:$0xff] }
 0x5f4   :  { %v12835_v35 = vadd.f32 %v5709_v29, %v15286_v16  ;;  %v5711_v3 = vpop.f32.mrb[217].mxu1  ;;  %v6255_v29 = vpack.c.bf16 %v6210_v61, %v6209_v46  ;;  %v15293_v61 = vld [vmem:[#allocation109_spill] sm:$0xff] }
 0x5f5   :  { %v8494_v11 = vpop.f32.mrb[152].mxu0  ;;  %v5712_v47 = vpop.f32.mrb[218].mxu1  ;;  %v6113_v3 = vld [vmem:[#allocation2 + $0x210] sm:$0xff] }
 0x5f6   :  { %v12838_v30 = vadd.f32 %v8494_v11, %v12678_v12  ;;  %v5918_v53 = vpop.f32.mrb[153].mxu0  ;;  %v12844_v9 = vadd.f32 %v5712_v47, %v15289_v50  ;;  %v5714_v16 = vpop.f32.mrb[219].mxu1  ;;  %v6211_v50 = vld [vmem:[#allocation2 + $0x229] sm:$0xff] }
 0x5f7   :  { %v12841_v63 = vadd.f32 %v5918_v53, %v12665_v54  ;;  %v8495_v52 = vpop.f32.mrb[154].mxu0  ;;  %v6114_v53 = vld [vmem:[#allocation2 + $0x218] sm:$0xff] }
 0x5f8   :  { %15287 = vst [vmem:[#allocation70_spill] sm:$0xff] %v12838_v30  ;;  %v12847_v26 = vadd.f32 %v8495_v52, %v12684_v48  ;;  %v5921_v37 = vpop.f32.mrb[155].mxu0  ;;  %v15290_v30 = vld [vmem:[#allocation107_spill] sm:$0xff] }
 0x5f9   :  { %15288 = vst [vmem:[#allocation83_spill] sm:$0xff] %v12841_v63  ;;  %v12850_v12 = vadd.f32 %v5921_v37, %v12671_v57 }
 0x5fa   :  { %6726 = vmatmul.mubr.bf16.gmra.mrb[4].mxu0 %v6158_v22 }
 0x5fb   :  { %6733 = vmatprep.mubr.bf16.mxu0 %v6255_v29  ;;  %v5717_v11 = vpop.f32.mrb[220].mxu1  ;;  %v6159_v29 = vpack.c.bf16 %v6114_v53, %v6113_v3  ;;  %v6214_v3 = vld [vmem:[#allocation2 + $0x249] sm:$0xff] }
 0x5fc   :  { %v12853_v63 = vadd.f32 %v5717_v11, %v15290_v30  ;;  %v5719_v48 = vpop.f32.mrb[221].mxu1  ;;  %v6256_v11 = vpack.c.bf16 %v6212_v33, %v6211_v50  ;;  %v15297_v33 = vld [vmem:[#allocation108_spill] sm:$0xff] }
 0x5fd   :  { %v8498_v54 = vpop.f32.mrb[156].mxu0  ;;  %v5720_v4 = vpop.f32.mrb[222].mxu1  ;;  %v6115_v48 = vld [vmem:[#allocation2 + $0x228] sm:$0xff] }
 0x5fe   :  { %v12856_v47 = vadd.f32 %v8498_v54, %v12706_v18  ;;  %v5934_v52 = vpop.f32.mrb[157].mxu0  ;;  %v12862_v16 = vadd.f32 %v5720_v4, %v15293_v61  ;;  %v5722_v30 = vpop.f32.mrb[223].mxu1  ;;  %v6213_v61 = vld [vmem:[#allocation2 + $0x241] sm:$0xff] }
 0x5ff   :  { %v12859_v57 = vadd.f32 %v5934_v52, %v12692_v28  ;;  %v8499_v46 = vpop.f32.mrb[158].mxu0  ;;  %v6116_v52 = vld [vmem:[#allocation2 + $0x230] sm:$0xff] }
 0x600   :  { %15291 = vst [vmem:[#allocation69_spill] sm:$0xff] %v12856_v47  ;;  %v12865_v37 = vadd.f32 %v8499_v46, %v12712_v56  ;;  %v5937_v22 = vpop.f32.mrb[159].mxu0  ;;  %v15294_v47 = vld [vmem:[#allocation106_spill] sm:$0xff] }
 0x601   :  { %15292 = vst [vmem:[#allocation73_spill] sm:$0xff] %v12859_v57  ;;  %v12868_v18 = vadd.f32 %v5937_v22, %v12698_v40 }
 0x602   :  { %6734 = vmatmul.mubr.bf16.gmra.mrb[8].mxu0 %v6159_v29 }
 0x603   :  { %6741 = vmatprep.mubr.bf16.mxu0 %v6256_v11  ;;  %v5725_v54 = vpop.f32.mrb[224].mxu1  ;;  %v6160_v11 = vpack.c.bf16 %v6116_v52, %v6115_v48  ;;  %v6216_v48 = vld [vmem:[#allocation2 + $0x261] sm:$0xff] }
 0x604   :  { %v12871_v57 = vadd.f32 %v5725_v54, %v15294_v47  ;;  %v5727_v56 = vpop.f32.mrb[225].mxu1  ;;  %v6257_v54 = vpack.c.bf16 %v6214_v3, %v6213_v61  ;;  %v15301_v3 = vld [vmem:[#allocation88_spill] sm:$0xff] }
 0x605   :  { %v8502_v28 = vpop.f32.mrb[160].mxu0  ;;  %v5728_v53 = vpop.f32.mrb[226].mxu1  ;;  %v6117_v56 = vld [vmem:[#allocation2 + $0x240] sm:$0xff] }
 0x606   :  { %v12874_v4 = vadd.f32 %v8502_v28, %v12737_v21  ;;  %v5950_v46 = vpop.f32.mrb[161].mxu0  ;;  %v12880_v30 = vadd.f32 %v5728_v53, %v15297_v33  ;;  %v5730_v47 = vpop.f32.mrb[227].mxu1  ;;  %v6215_v33 = vld [vmem:[#allocation2 + $0x259] sm:$0xff] }
 0x607   :  { %v12877_v40 = vadd.f32 %v5950_v46, %v12717_v2  ;;  %v8503_v50 = vpop.f32.mrb[162].mxu0  ;;  %v6118_v46 = vld [vmem:[#allocation2 + $0x248] sm:$0xff] }
 0x608   :  { %15295 = vst [vmem:[#allocation96_spill] sm:$0xff] %v12874_v4  ;;  %v12883_v22 = vadd.f32 %v8503_v50, %v12746_v1  ;;  %v5953_v29 = vpop.f32.mrb[163].mxu0  ;;  %v15298_v4 = vld [vmem:[#allocation111_spill] sm:$0xff] }
 0x609   :  { %15296 = vst [vmem:[#allocation77_spill] sm:$0xff] %v12877_v40  ;;  %v12886_v21 = vadd.f32 %v5953_v29, %v12726_v27 }
 0x60a   :  { %6742 = vmatmul.mubr.bf16.gmra.mrb[12].mxu0 %v6160_v11 }
 0x60b   :  { %6749 = vmatprep.mubr.bf16.mxu0 %v6257_v54  ;;  %v5733_v28 = vpop.f32.mrb[228].mxu1  ;;  %v6161_v54 = vpack.c.bf16 %v6118_v46, %v6117_v56  ;;  %v6218_v56 = vld [vmem:[#allocation2 + $0x279] sm:$0xff] }
 0x60c   :  { %v12889_v40 = vadd.f32 %v5733_v28, %v15298_v4  ;;  %v5735_v1 = vpop.f32.mrb[229].mxu1  ;;  %v6258_v28 = vpack.c.bf16 %v6216_v48, %v6215_v33  ;;  %v15305_v48 = vld [vmem:[#allocation100_spill] sm:$0xff] }
 0x60d   :  { %v8506_v2 = vpop.f32.mrb[164].mxu0  ;;  %v5736_v52 = vpop.f32.mrb[230].mxu1  ;;  %v6119_v1 = vld [vmem:[#allocation2 + $0x258] sm:$0xff] }
 0x60e   :  { %v12892_v53 = vadd.f32 %v8506_v2, %v12777_v58  ;;  %v5966_v50 = vpop.f32.mrb[165].mxu0  ;;  %v12898_v47 = vadd.f32 %v5736_v52, %v15301_v3  ;;  %v5738_v4 = vpop.f32.mrb[231].mxu1  ;;  %v6217_v3 = vld [vmem:[#allocation2 + $0x271] sm:$0xff] }
 0x60f   :  { %v12895_v27 = vadd.f32 %v5966_v50, %v12757_v0  ;;  %v8507_v61 = vpop.f32.mrb[166].mxu0  ;;  %v6120_v50 = vld [vmem:[#allocation2 + $0x260] sm:$0xff] }
 0x610   :  { %15299 = vst [vmem:[#allocation101_spill] sm:$0xff] %v12892_v53  ;;  %v12901_v29 = vadd.f32 %v8507_v61, %v12786_v45  ;;  %v5969_v11 = vpop.f32.mrb[167].mxu0  ;;  %v15302_v53 = vld [vmem:[#allocation110_spill] sm:$0xff] }
 0x611   :  { %15300 = vst [vmem:[#allocation75_spill] sm:$0xff] %v12895_v27  ;;  %v12904_v58 = vadd.f32 %v5969_v11, %v12766_v10 }
 0x612   :  { %6750 = vmatmul.mubr.bf16.gmra.mrb[16].mxu0 %v6161_v54 }
 0x613   :  { %6757 = vmatprep.mubr.bf16.mxu0 %v6258_v28  ;;  %v5741_v2 = vpop.f32.mrb[232].mxu1  ;;  %v6162_v28 = vpack.c.bf16 %v6120_v50, %v6119_v1 }
 0x614   :  { %v12907_v27 = vadd.f32 %v5741_v2, %v15302_v53  ;;  %v5743_v45 = vpop.f32.mrb[233].mxu1  ;;  %v6259_v2 = vpack.c.bf16 %v6218_v56, %v6217_v3 }
 0x615   :  { %v8510_v0 = vpop.f32.mrb[168].mxu0  ;;  %v5744_v46 = vpop.f32.mrb[234].mxu1  ;;  %v6121_v45 = vld [vmem:[#allocation2 + $0x270] sm:$0xff] }
 0x616   :  { %v12910_v52 = vadd.f32 %v8510_v0, %v12817_v17  ;;  %v5982_v61 = vpop.f32.mrb[169].mxu0  ;;  %v12916_v4 = vadd.f32 %v5744_v46, %v15305_v48  ;;  %v5746_v53 = vpop.f32.mrb[235].mxu1  ;;  %v6219_v48 = vld [vmem:[#allocation2 + $0x289] sm:$0xff] }
 0x617   :  { %v12913_v10 = vadd.f32 %v5982_v61, %v12796_v24  ;;  %v8511_v33 = vpop.f32.mrb[170].mxu0  ;;  %v6122_v61 = vld [vmem:[#allocation2 + $0x278] sm:$0xff] }
 0x618   :  { %15303 = vst [vmem:[#allocation85_spill] sm:$0xff] %v12910_v52  ;;  %v12919_v11 = vadd.f32 %v8511_v33, %v12826_v55  ;;  %v5985_v54 = vpop.f32.mrb[171].mxu0  ;;  %v15306_v52 = vld [vmem:[#allocation93_spill] sm:$0xff] }
 0x619   :  { %15304 = vst [vmem:[#allocation87_spill] sm:$0xff] %v12913_v10  ;;  %v12922_v17 = vadd.f32 %v5985_v54, %v12808_v6  ;;  %v6220_v53 = vld [vmem:[#allocation2 + $0x291] sm:$0xff] }
 0x61a   :  { %6758 = vmatmul.mubr.bf16.gmra.mrb[20].mxu0 %v6162_v28 }
 0x61b   :  { %6765 = vmatprep.mubr.bf16.mxu0 %v6259_v2  ;;  %v5749_v0 = vpop.f32.mrb[236].mxu1  ;;  %v6260_v2 = vpack.c.bf16 %v6220_v53, %v6219_v48 }
 0x61c   :  { %v5750_v10 = vadd.f32 %v5749_v0, %v15306_v52  ;;  %v5751_v55 = vpop.f32.mrb[237].mxu1  ;;  %v6163_v52 = vpack.c.bf16 %v6122_v61, %v6121_v45 }
 0x61d   :  { %v8514_v24 = vpop.f32.mrb[172].mxu0  ;;  %v5752_v6 = vpop.f32.mrb[238].mxu1  ;;  %v6124_v55 = vld [vmem:[#allocation2 + $0x290] sm:$0xff] }
 0x61e   :  { %v12926_v46 = vadd.f32 %v8514_v24, %v12853_v63  ;;  %v5998_v33 = vpop.f32.mrb[173].mxu0  ;;  %v5753_v3 = vadd.f32 %v5752_v6, %v12655_v15  ;;  %v5754_v54 = vpop.f32.mrb[239].mxu1 }
 0x61f   :  { %v12929_v1 = vadd.f32 %v5998_v33, %v12835_v35  ;;  %v8515_v50 = vpop.f32.mrb[174].mxu0  ;;  %v6123_v35 = vld [vmem:[#allocation2 + $0x288] sm:$0xff] }
 0x620   :  { %15307 = vst [vmem:[#allocation82_spill] sm:$0xff] %v12926_v46  ;;  %v12933_v56 = vadd.f32 %v8515_v50, %v12862_v16  ;;  %v6001_v28 = vpop.f32.mrb[175].mxu0  ;;  %v6221_v50 = vld [vmem:[#allocation2 + $0x2a1] sm:$0xff]  ;;  %v6222_v54 = vld [vmem:[#allocation2 + $0x2a9] sm:$0xff] }
 0x621   :  { %15308 = vst [vmem:[#allocation72_spill] sm:$0xff] %v12929_v1  ;;  %v12936_v63 = vadd.f32 %v6001_v28, %v12844_v9 }
 0x622   :  { %15309 = vst [vmem:[#allocation86_spill] sm:$0xff] %v12933_v56  ;;  %6766 = vmatmul.mubr.bf16.gmra.mrb[24].mxu0 %v6163_v52 }
 0x623   :  { %15310 = vst [vmem:[#allocation94_spill] sm:$0xff] %v12936_v63  ;;  %6773 = vmatprep.mubr.bf16.mxu0 %v6260_v2  ;;  %v5757_v0 = vpop.f32.mrb[240].mxu1  ;;  %v6261_v2 = vpack.c.bf16 %v6222_v54, %v6221_v50  ;;  %v15317_v50 = vld [vmem:[#allocation97_spill] sm:$0xff] }
 0x624   :  { %v5758_v33 = vadd.f32 %v5757_v0, %v12662_v13  ;;  %v5759_v16 = vpop.f32.mrb[241].mxu1  ;;  %v6164_v13 = vpack.c.bf16 %v6124_v55, %v6123_v35 }
 0x625   :  { %v8518_v24 = vpop.f32.mrb[176].mxu0  ;;  %v5760_v9 = vpop.f32.mrb[242].mxu1  ;;  %v6126_v16 = vld [vmem:[#allocation2 + $0x2a8] sm:$0xff] }
 0x626   :  { %v12940_v15 = vadd.f32 %v8518_v24, %v12889_v40  ;;  %v6014_v6 = vpop.f32.mrb[177].mxu0  ;;  %v5761_v48 = vadd.f32 %v5760_v9, %v12668_v20  ;;  %v5762_v28 = vpop.f32.mrb[243].mxu1  ;;  %v6223_v9 = vld [vmem:[#allocation2 + $0x2b9] sm:$0xff] }
 0x627   :  { %v12943_v45 = vadd.f32 %v6014_v6, %v12871_v57  ;;  %v8519_v61 = vpop.f32.mrb[178].mxu0  ;;  %v6125_v57 = vld [vmem:[#allocation2 + $0x2a0] sm:$0xff] }
 0x628   :  { %15311 = vst [vmem:[#allocation78_spill] sm:$0xff] %v12940_v15  ;;  %v12947_v53 = vadd.f32 %v8519_v61, %v12898_v47  ;;  %v6017_v52 = vpop.f32.mrb[179].mxu0  ;;  %v6224_v61 = vld [vmem:[#allocation2 + $0x2c1] sm:$0xff] }
 0x629   :  { %15312 = vst [vmem:[#allocation71_spill] sm:$0xff] %v12943_v45  ;;  %v12950_v40 = vadd.f32 %v6017_v52, %v12880_v30 }
 0x62a   :  { %15313 = vst [vmem:[#allocation103_spill] sm:$0xff] %v12947_v53  ;;  %6774 = vmatmul.mubr.bf16.gmra.mrb[28].mxu0 %v6164_v13 }
 0x62b   :  { %15314 = vst [vmem:[#allocation81_spill] sm:$0xff] %v12950_v40  ;;  %6781 = vmatprep.mubr.bf16.mxu0 %v6261_v2  ;;  %v5765_v0 = vpop.f32.mrb[244].mxu1  ;;  %v6165_v2 = vpack.c.bf16 %v6126_v16, %v6125_v57  ;;  %v15323_v16 = vld [vmem:[#allocation90_spill] sm:$0xff] }
 0x62c   :  { %v5766_v6 = vadd.f32 %v5765_v0, %v12675_v36  ;;  %v5767_v20 = vpop.f32.mrb[245].mxu1 }
 0x62d   :  { %v8522_v24 = vpop.f32.mrb[180].mxu0  ;;  %v5768_v30 = vpop.f32.mrb[246].mxu1  ;;  %v6127_v20 = vld [vmem:[#allocation2 + $0x2b8] sm:$0xff] }
 0x62e   :  { %v12953_v15 = vadd.f32 %v8522_v24, %v5750_v10  ;;  %v6030_v47 = vpop.f32.mrb[181].mxu0  ;;  %v5769_v54 = vadd.f32 %v5768_v30, %v15317_v50  ;;  %v5770_v52 = vpop.f32.mrb[247].mxu1  ;;  %v6262_v10 = vpack.c.bf16 %v6224_v61, %v6223_v9  ;;  %v6226_v50 = vld [vmem:[#allocation2 + $0x2d9] sm:$0xff] }
 0x62f   :  { %v12956_v35 = vadd.f32 %v6030_v47, %v12907_v27  ;;  %v8523_v55 = vpop.f32.mrb[182].mxu0  ;;  %v6128_v27 = vld [vmem:[#allocation2 + $0x2c0] sm:$0xff] }
 0x630   :  { %15315 = vst [vmem:[#allocation79_spill] sm:$0xff] %v12953_v15  ;;  %v12959_v28 = vadd.f32 %v8523_v55, %v5753_v3  ;;  %v6033_v13 = vpop.f32.mrb[183].mxu0  ;;  %v15320_v47 = vld [vmem:[#allocation95_spill] sm:$0xff]  ;;  %v6225_v55 = vld [vmem:[#allocation2 + $0x2d1] sm:$0xff] }
 0x631   :  { %15316 = vst [vmem:[#allocation80_spill] sm:$0xff] %v12956_v35  ;;  %v12962_v36 = vadd.f32 %v6033_v13, %v12916_v4 }
 0x632   :  { %15318 = vst [vmem:[#allocation76_spill] sm:$0xff] %v12959_v28  ;;  %6782 = vmatmul.mubr.bf16.gmra.mrb[32].mxu0 %v6165_v2 }
 0x633   :  { %15319 = vst [vmem:[#allocation74_spill] sm:$0xff] %v12962_v36  ;;  %6789 = vmatprep.mubr.bf16.mxu0 %v6262_v10  ;;  %v5773_v0 = vpop.f32.mrb[248].mxu1  ;;  %v6166_v10 = vpack.c.bf16 %v6128_v27, %v6127_v20 }
 0x634   :  { %v5774_v15 = vadd.f32 %v5773_v0, %v15320_v47  ;;  %v5775_v30 = vpop.f32.mrb[249].mxu1  ;;  %v6263_v0 = vpack.c.bf16 %v6226_v50, %v6225_v55  ;;  %v6129_v47 = vld [vmem:[#allocation2 + $0x2d0] sm:$0xff] }
 0x635   :  { %v8526_v24 = vpop.f32.mrb[184].mxu0  ;;  %v5776_v57 = vpop.f32.mrb[250].mxu1  ;;  %v6130_v30 = vld [vmem:[#allocation2 + $0x2d8] sm:$0xff] }
 0x636   :  { %v12965_v35 = vadd.f32 %v8526_v24, %v5766_v6  ;;  %v6046_v3 = vpop.f32.mrb[185].mxu0  ;;  %v5777_v9 = vadd.f32 %v5776_v57, %v15323_v16  ;;  %v5778_v13 = vpop.f32.mrb[251].mxu1  ;;  %v6228_v57 = vld [vmem:[#allocation2 + $0x2f1] sm:$0xff]  ;;  %v6167_v50 = vpack.c.bf16 %v6130_v30, %v6129_v47 }
 0x637   :  { %v12967_v52 = vadd.f32 %v6046_v3, %v5758_v33  ;;  %v8527_v4 = vpop.f32.mrb[186].mxu0 }
 0x638   :  { %15321 = vst [vmem:[#allocation84_spill] sm:$0xff] %v12965_v35  ;;  %v12970_v61 = vadd.f32 %v8527_v4, %v5769_v54  ;;  %v6049_v2 = vpop.f32.mrb[187].mxu0 }
 0x639   :  { %15322 = vst [vmem:[#allocation114_spill] sm:$0xff] %v12967_v52  ;;  %v12972_v28 = vadd.f32 %v6049_v2, %v5761_v48  ;;  %v6227_v52 = vld [vmem:[#allocation2 + $0x2e9] sm:$0xff] }
 0x63a   :  { %15324 = vst [vmem:[#allocation115_spill] sm:$0xff] %v12970_v61  ;;  %6790 = vmatmul.mubr.bf16.gmra.mrb[36].mxu0 %v6166_v10  ;;  %v6264_v2 = vpack.c.bf16 %v6228_v57, %v6227_v52 }
 0x63b   :  { %15325 = vst [vmem:[#allocation92_spill] sm:$0xff] %v12972_v28  ;;  %6797 = vmatprep.mubr.bf16.mxu0 %v6263_v0  ;;  %v5781_v6 = vpop.f32.mrb[252].mxu1 }
 0x63c   :  { %v5782_v33 = vadd.f32 %v5781_v6, %v12703_v8  ;;  %v5783_v3 = vpop.f32.mrb[253].mxu1 }
 0x63d   :  { %v8530_v24 = vpop.f32.mrb[188].mxu0  ;;  %v5784_v4 = vpop.f32.mrb[254].mxu1 }
 0x63e   :  { %v6062_v35 = vpop.f32.mrb[189].mxu0  ;;  %v12977_v20 = vadd.f32 %v8530_v24, %v5782_v33  ;;  %v5785_v48 = vadd.f32 %v5784_v4, %v12709_v7  ;;  %v5786_v27 = vpop.f32.mrb[255].mxu1  ;;  %v6229_v24 = vld [vmem:[#allocation2 + $0x301] sm:$0xff]  ;;  %v6230_v33 = vld [vmem:[#allocation2 + $0x309] sm:$0xff] }
 0x63f   :  { %v12975_v54 = vadd.f32 %v6062_v35, %v5774_v15  ;;  %v8531_v16 = vpop.f32.mrb[190].mxu0  ;;  %v6131_v15 = vld [vmem:[#allocation2 + $0x2e8] sm:$0xff]  ;;  %v6132_v35 = vld [vmem:[#allocation2 + $0x2f0] sm:$0xff]  ;;  %v6265_v57 = vpack.c.bf16 %v6230_v33, %v6229_v24 }
 0x640   :  { %15327 = vst [vmem:[#allocation105_spill] sm:$0xff] %v12977_v20  ;;  %v6065_v55 = vpop.f32.mrb[191].mxu0  ;;  %v12982_v10 = vadd.f32 %v8531_v16, %v5785_v48 }
 0x641   :  { %15326 = vst [vmem:[#allocation89_spill] sm:$0xff] %v12975_v54  ;;  %v12980_v13 = vadd.f32 %v6065_v55, %v5777_v9  ;;  %v6168_v9 = vpack.c.bf16 %v6132_v35, %v6131_v15  ;;  %v6233_v54 = vld [vmem:[#allocation2 + $0x331] sm:$0xff] }
 0x642   :  { %15329 = vst [vmem:[#allocation91_spill] sm:$0xff] %v12982_v10  ;;  %6798 = vmatmul.mubr.bf16.gmra.mrb[40].mxu0 %v6167_v50  ;;  %v6133_v50 = vld [vmem:[#allocation2 + $0x300] sm:$0xff] }
 0x643   :  { %15328 = vst [vmem:[#allocation98_spill] sm:$0xff] %v12980_v13  ;;  %6805 = vmatprep.mubr.bf16.mxu0 %v6264_v2  ;;  %v8550_v0 = vpop.f32.mrb[0].mxu1  ;;  %v6134_v2 = vld [vmem:[#allocation2 + $0x308] sm:$0xff] }
 0x644   :  { %v6880_v3 = vpop.f32.mrb[1].mxu1  ;;  %v6232_v10 = vld [vmem:[#allocation2 + $0x321] sm:$0xff] }
 0x645   :  { %v6591_v8 = vpop.f32.mrb[192].mxu0  ;;  %v8551_v4 = vpop.f32.mrb[2].mxu1 }
 0x646   :  { %v6593_v6 = vpop.f32.mrb[193].mxu0  ;;  %v6881_v20 = vadd.f32 %v6880_v3, %v6591_v8  ;;  %v6883_v47 = vpop.f32.mrb[3].mxu1 }
 0x647   :  { %v6594_v7 = vpop.f32.mrb[194].mxu0 }
 0x648   :  { %v6596_v27 = vpop.f32.mrb[195].mxu0  ;;  %v12985_v52 = vadd.f32 %v6881_v20, %v12723_v32  ;;  %v6884_v30 = vadd.f32 %v6883_v47, %v6594_v7 }
 0x649   :  { %v6231_v27 = vld [vmem:[#allocation2 + $0x319] sm:$0xff] }
 0x64a   :  { %15330 = vst [vmem:[#allocation107_spill] sm:$0xff] %v12985_v52  ;;  %6806 = vmatmul.mubr.bf16.gmra.mrb[44].mxu0 %v6168_v9  ;;  %v12988_v16 = vadd.f32 %v6884_v30, %v12732_v43  ;;  %v6169_v43 = vpack.c.bf16 %v6134_v2, %v6133_v50  ;;  %v6266_v7 = vpack.c.bf16 %v6232_v10, %v6231_v27  ;;  %v6135_v30 = vld [vmem:[#allocation2 + $0x318] sm:$0xff] }
 0x64b   :  { %6813 = vmatprep.mubr.bf16.mxu0 %v6265_v57  ;;  %v8554_v55 = vpop.f32.mrb[4].mxu1  ;;  %v6136_v57 = vld [vmem:[#allocation2 + $0x320] sm:$0xff] }
 0x64c   :  { %15331 = vst [vmem:[#allocation109_spill] sm:$0xff] %v12988_v16  ;;  %v6896_v3 = vpop.f32.mrb[5].mxu1  ;;  %v6170_v2 = vpack.c.bf16 %v6136_v57, %v6135_v30 }
 0x64d   :  { %v6599_v48 = vpop.f32.mrb[196].mxu0  ;;  %v8555_v35 = vpop.f32.mrb[6].mxu1 }
 0x64e   :  { %v6889_v8 = vadd.f32 %v8550_v0, %v6599_v48  ;;  %v6601_v6 = vpop.f32.mrb[197].mxu0  ;;  %v6899_v33 = vpop.f32.mrb[7].mxu1 }
 0x64f   :  { %v6602_v15 = vpop.f32.mrb[198].mxu0 }
 0x650   :  { %v12991_v32 = vadd.f32 %v6889_v8, %v12720_v19  ;;  %v6892_v20 = vadd.f32 %v8551_v4, %v6602_v15  ;;  %v6604_v24 = vpop.f32.mrb[199].mxu0  ;;  %v6234_v19 = vld [vmem:[#allocation2 + $0x339] sm:$0xff] }
 0x651   :  { %v6267_v27 = vpack.c.bf16 %v6234_v19, %v6233_v54  ;;  %v6236_v24 = vld [vmem:[#allocation2 + $0x351] sm:$0xff] }
 0x652   :  { %15332 = vst [vmem:[#allocation106_spill] sm:$0xff] %v12991_v32  ;;  %v12994_v47 = vadd.f32 %v6892_v20, %v12729_v14  ;;  %6814 = vmatmul.mubr.bf16.gmra.mrb[48].mxu0 %v6169_v43 }
 0x653   :  { %6821 = vmatprep.mubr.bf16.mxu0 %v6266_v7  ;;  %v8558_v9 = vpop.f32.mrb[8].mxu1 }
 0x654   :  { %15333 = vst [vmem:[#allocation108_spill] sm:$0xff] %v12994_v47  ;;  %v6912_v13 = vpop.f32.mrb[9].mxu1 }
 0x655   :  { %v6607_v0 = vpop.f32.mrb[200].mxu0  ;;  %v8559_v4 = vpop.f32.mrb[10].mxu1 }
 0x656   :  { %v6897_v48 = vadd.f32 %v6896_v3, %v6607_v0  ;;  %v6609_v6 = vpop.f32.mrb[201].mxu0  ;;  %v6915_v14 = vpop.f32.mrb[11].mxu1  ;;  %v6235_v3 = vld [vmem:[#allocation2 + $0x349] sm:$0xff] }
 0x657   :  { %v6610_v8 = vpop.f32.mrb[202].mxu0  ;;  %v6137_v0 = vld [vmem:[#allocation2 + $0x330] sm:$0xff]  ;;  %v6138_v6 = vld [vmem:[#allocation2 + $0x338] sm:$0xff] }
 0x658   :  { %v12997_v15 = vadd.f32 %v6897_v48, %v12743_v59  ;;  %v6900_v10 = vadd.f32 %v6899_v33, %v6610_v8  ;;  %v6612_v50 = vpop.f32.mrb[203].mxu0  ;;  %v6268_v8 = vpack.c.bf16 %v6236_v24, %v6235_v3  ;;  %v6171_v19 = vpack.c.bf16 %v6138_v6, %v6137_v0 }
 0x659   :  { %v6139_v50 = vld [vmem:[#allocation2 + $0x348] sm:$0xff] }
 0x65a   :  { %15334 = vst [vmem:[#allocation111_spill] sm:$0xff] %v12997_v15  ;;  %v13000_v20 = vadd.f32 %v6900_v10, %v12752_v42  ;;  %6822 = vmatmul.mubr.bf16.gmra.mrb[52].mxu0 %v6170_v2  ;;  %v6172_v3 = vpack.c.bf16 %v12801_v41, %v6139_v50  ;;  %v15340_v50 = vld [vmem:[#allocation112_spill] sm:$0xff] }
 0x65b   :  { %6829 = vmatprep.mubr.bf16.mxu0 %v6267_v27  ;;  %v8562_v7 = vpop.f32.mrb[12].mxu1 }
 0x65c   :  { %15335 = vst [vmem:[#allocation88_spill] sm:$0xff] %v13000_v20  ;;  %v6928_v59 = vpop.f32.mrb[13].mxu1 }
 0x65d   :  { %v6615_v43 = vpop.f32.mrb[204].mxu0  ;;  %v8563_v33 = vpop.f32.mrb[14].mxu1 }
 0x65e   :  { %v6905_v61 = vadd.f32 %v8554_v55, %v6615_v43  ;;  %v6617_v28 = vpop.f32.mrb[205].mxu0  ;;  %v6931_v57 = vpop.f32.mrb[15].mxu1 }
 0x65f   :  { %v6618_v48 = vpop.f32.mrb[206].mxu0 }
 0x660   :  { %v13003_v30 = vadd.f32 %v6905_v61, %v12740_v39  ;;  %v6908_v54 = vadd.f32 %v8555_v35, %v6618_v48  ;;  %v6620_v42 = vpop.f32.mrb[207].mxu0 }
 0x662   :  { %15336 = vst [vmem:[#allocation110_spill] sm:$0xff] %v13003_v30  ;;  %v13006_v10 = vadd.f32 %v6908_v54, %v12749_v23  ;;  %6830 = vmatmul.mubr.bf16.gmra.mrb[56].mxu0 %v6171_v19 }
 0x663   :  { %6837 = vmatprep.mubr.bf16.mxu0 %v6268_v8  ;;  %v13008_v55 = vpop.f32.mrb[16].mxu1 }
 0x664   :  { %15337 = vst [vmem:[#allocation100_spill] sm:$0xff] %v13006_v10  ;;  %v6944_v43 = vpop.f32.mrb[17].mxu1 }
 0x665   :  { %v6623_v2 = vpop.f32.mrb[208].mxu0  ;;  %v13011_v61 = vpop.f32.mrb[18].mxu1 }
 0x666   :  { %v6913_v28 = vadd.f32 %v6912_v13, %v6623_v2  ;;  %v6625_v27 = vpop.f32.mrb[209].mxu0  ;;  %v6947_v0 = vpop.f32.mrb[19].mxu1 }
 0x667   :  { %v6626_v39 = vpop.f32.mrb[210].mxu0 }
 0x668   :  { %v13014_v35 = vadd.f32 %v6913_v28, %v12763_v51  ;;  %v6916_v24 = vadd.f32 %v6915_v14, %v6626_v39  ;;  %v6628_v23 = vpop.f32.mrb[211].mxu0 }
 0x66a   :  { %15338 = vst [vmem:[#allocation93_spill] sm:$0xff] %v13014_v35  ;;  %v13017_v6 = vadd.f32 %v6916_v24, %v12772_v31  ;;  %6838 = vmatmul.mubr.bf16.gmra.mrb[60].mxu0 %v6172_v3  ;;  %v15342_v31 = vld [vmem:[#allocation113_spill] sm:$0xff] }
 0x66b   :  { %v13019_v8 = vpop.f32.mrb[20].mxu1 }
 0x66c   :  { %15339 = vst [vmem:[#allocation97_spill] sm:$0xff] %v13017_v6  ;;  %v13021_v42 = vpop.f32.mrb[21].mxu1 }
 0x66d   :  { %v6631_v48 = vpop.f32.mrb[212].mxu0  ;;  %v13023_v19 = vpop.f32.mrb[22].mxu1 }
 0x66e   :  { %v6921_v13 = vadd.f32 %v8558_v9, %v6631_v48  ;;  %v6633_v54 = vpop.f32.mrb[213].mxu0  ;;  %v13028_v28 = vpop.f32.mrb[23].mxu1 }
 0x66f   :  { %v6634_v41 = vpop.f32.mrb[214].mxu0 }
 0x670   :  { %v13026_v51 = vadd.f32 %v6921_v13, %v15340_v50  ;;  %v6924_v14 = vadd.f32 %v8559_v4, %v6634_v41  ;;  %v6636_v2 = vpop.f32.mrb[215].mxu0 }
 0x672   :  { %15341 = vst [vmem:[#allocation95_spill] sm:$0xff] %v13026_v51  ;;  %v13031_v27 = vadd.f32 %v6924_v14, %v15342_v31 }
 0x673   :  { %v13033_v39 = vpop.f32.mrb[24].mxu1 }
 0x674   :  { %15343 = vst [vmem:[#allocation90_spill] sm:$0xff] %v13031_v27  ;;  %v13035_v23 = vpop.f32.mrb[25].mxu1 }
 0x675   :  { %v6639_v3 = vpop.f32.mrb[216].mxu0  ;;  %v13037_v54 = vpop.f32.mrb[26].mxu1 }
 0x676   :  { %v6929_v9 = vadd.f32 %v6928_v59, %v6639_v3  ;;  %v6641_v24 = vpop.f32.mrb[217].mxu0  ;;  %v13042_v50 = vpop.f32.mrb[27].mxu1 }
 0x677   :  { %v6642_v48 = vpop.f32.mrb[218].mxu0 }
 0x678   :  { %v13040_v13 = vadd.f32 %v6929_v9, %v12783_v34  ;;  %v6932_v4 = vadd.f32 %v6931_v57, %v6642_v48  ;;  %v6644_v41 = vpop.f32.mrb[219].mxu0 }
 0x67a   :  { %15344 = vst [vmem:[#allocation112_spill] sm:$0xff] %v13040_v13  ;;  %v13045_v14 = vadd.f32 %v6932_v4, %v12792_v44 }
 0x67b   :  { %v13047_v31 = vpop.f32.mrb[28].mxu1 }
 0x67c   :  { %15345 = vst [vmem:[#allocation113_spill] sm:$0xff] %v13045_v14  ;;  %v13049_v24 = vpop.f32.mrb[29].mxu1 }
 0x67d   :  { %v6647_v2 = vpop.f32.mrb[220].mxu0  ;;  %v13051_v53 = vpop.f32.mrb[30].mxu1 }
 0x67e   :  { %v6937_v59 = vadd.f32 %v8562_v7, %v6647_v2  ;;  %v6649_v3 = vpop.f32.mrb[221].mxu0  ;;  %v13056_v48 = vpop.f32.mrb[31].mxu1  ;;  %v7272_v7 = vmul.f32 %v12988_v16, %v12988_v16 }
 0x67f   :  { %v6650_v36 = vpop.f32.mrb[222].mxu0 }
 0x680   :  { %v13054_v34 = vadd.f32 %v6937_v59, %v12780_v60  ;;  %v6940_v57 = vadd.f32 %v8563_v33, %v6650_v36  ;;  %v6652_v9 = vpop.f32.mrb[223].mxu0  ;;  %v7271_v60 = vmul.f32 %v12985_v52, %v12985_v52  ;;  %v7273_v59 = vmul.f32 %v12991_v32, %v12991_v32 }
 0x682   :  { %15346 = vst [vmem:[#allocation116_spill] sm:$0xff] %v13054_v34  ;;  %v13059_v44 = vadd.f32 %v6940_v57, %v12789_v5  ;;  %v7201_v5 = vadd.f32 %v12988_v16, %v12985_v52  ;;  %v7274_v16 = vmul.f32 %v12994_v47, %v12994_v47 }
 0x683   :  { %v13061_v41 = vpop.f32.mrb[32].mxu1 }
 0x684   :  { %15347 = vst [vmem:[#allocation117_spill] sm:$0xff] %v13059_v44  ;;  %v13065_v40 = vpop.f32.mrb[33].mxu1  ;;  %v7202_v45 = vadd.f32 %v7201_v5, %v12991_v32 }
 0x685   :  { %v6655_v4 = vpop.f32.mrb[224].mxu0  ;;  %v13069_v33 = vpop.f32.mrb[34].mxu1 }
 0x686   :  { %v6945_v2 = vadd.f32 %v6944_v43, %v6655_v4  ;;  %v6657_v3 = vpop.f32.mrb[225].mxu0  ;;  %v13078_v4 = vpop.f32.mrb[35].mxu1 }
 0x687   :  { %v6658_v36 = vpop.f32.mrb[226].mxu0  ;;  %v7335_v3 = vadd.f32 %v7272_v7, %v7271_v60 }
 0x688   :  { %v13076_v57 = vadd.f32 %v6945_v2, %v12805_v62  ;;  %v6948_v9 = vadd.f32 %v6947_v0, %v6658_v36  ;;  %v6660_v43 = vpop.f32.mrb[227].mxu0  ;;  %v7203_v62 = vadd.f32 %v7202_v45, %v12994_v47  ;;  %v7275_v0 = vmul.f32 %v12997_v15, %v12997_v15 }
 0x689   :  { %v7336_v46 = vadd.f32 %v7335_v3, %v7273_v59 }
 0x68a   :  { %15348 = vst [vmem:[#allocation118_spill] sm:$0xff] %v13076_v57  ;;  %v13082_v56 = vadd.f32 %v6948_v9, %v12814_v38  ;;  %v7204_v59 = vadd.f32 %v7203_v62, %v12997_v15  ;;  %v15350_v9 = vld [vmem:[#allocation65_spill] sm:$0xff] }
 0x68b   :  { %v13086_v63 = vpop.f32.mrb[36].mxu1  ;;  %v7337_v5 = vadd.f32 %v7336_v46, %v7274_v16  ;;  %v7277_v46 = vmul.f32 %v13003_v30, %v13003_v30 }
 0x68c   :  { %15349 = vst [vmem:[#allocation119_spill] sm:$0xff] %v13082_v56  ;;  %v13092_v60 = vpop.f32.mrb[37].mxu1  ;;  %v7205_v1 = vadd.f32 %v7204_v59, %v13000_v20  ;;  %v7278_v59 = vmul.f32 %v13006_v10, %v13006_v10 }
 0x68d   :  { %v6663_v52 = vpop.f32.mrb[228].mxu0  ;;  %v13094_v38 = vpop.f32.mrb[38].mxu1  ;;  %v7338_v32 = vadd.f32 %v7337_v5, %v7275_v0 }
 0x68e   :  { %v6953_v2 = vadd.f32 %v13008_v55, %v6663_v52  ;;  %v6665_v7 = vpop.f32.mrb[229].mxu0  ;;  %v13101_v47 = vpop.f32.mrb[39].mxu1  ;;  %v7276_v52 = vmul.f32 %v13000_v20, %v13000_v20  ;;  %v15352_v55 = vld [vmem:[#allocation104_spill] sm:$0xff] }
 0x68f   :  { %v6666_v36 = vpop.f32.mrb[230].mxu0 }
 0x690   :  { %v13098_v43 = vadd.f32 %v6953_v2, %v15350_v9  ;;  %v6956_v3 = vadd.f32 %v13011_v61, %v6666_v36  ;;  %v6668_v45 = vpop.f32.mrb[231].mxu0  ;;  %v7339_v2 = vadd.f32 %v7338_v32, %v7276_v52  ;;  %v7206_v61 = vadd.f32 %v7205_v1, %v13003_v30 }
 0x692   :  { %15351 = vst [vmem:[#allocation65_spill] sm:$0xff] %v13098_v43  ;;  %v13106_v7 = vadd.f32 %v6956_v3, %v15352_v55  ;;  %v7340_v3 = vadd.f32 %v7339_v2, %v7277_v46  ;;  %v15354_v55 = vld [vmem:[#allocation66_spill] sm:$0xff]  ;;  %v7207_v1 = vadd.f32 %v7206_v61, %v13006_v10 }
 0x693   :  { %v13111_v62 = vpop.f32.mrb[40].mxu1 }
 0x694   :  { %15353 = vst [vmem:[#allocation104_spill] sm:$0xff] %v13106_v7  ;;  %v13115_v5 = vpop.f32.mrb[41].mxu1  ;;  %v7341_v46 = vadd.f32 %v7340_v3, %v7278_v59  ;;  %v7208_v2 = vadd.f32 %v7207_v1, %v13014_v35  ;;  %v15357_v3 = vld [vmem:[#allocation102_spill] sm:$0xff] }
 0x695   :  { %v6671_v16 = vpop.f32.mrb[232].mxu0  ;;  %v13117_v45 = vpop.f32.mrb[42].mxu1 }
 0x696   :  { %v6961_v36 = vadd.f32 %v13021_v42, %v6671_v16  ;;  %v6673_v0 = vpop.f32.mrb[233].mxu0  ;;  %v13125_v52 = vpop.f32.mrb[43].mxu1  ;;  %v7279_v42 = vmul.f32 %v13014_v35, %v13014_v35 }
 0x697   :  { %v6674_v9 = vpop.f32.mrb[234].mxu0 }
 0x698   :  { %v13122_v20 = vadd.f32 %v6961_v36, %v15354_v55  ;;  %v6964_v15 = vadd.f32 %v13028_v28, %v6674_v9  ;;  %v6676_v32 = vpop.f32.mrb[235].mxu0  ;;  %v7342_v36 = vadd.f32 %v7341_v46, %v7279_v42  ;;  %v7280_v28 = vmul.f32 %v13017_v6, %v13017_v6 }
 0x69a   :  { %v13131_v16 = vadd.f32 %v6964_v15, %v12832_v25  ;;  %v7209_v25 = vadd.f32 %v7208_v2, %v13017_v6  ;;  %v7281_v15 = vmul.f32 %v13026_v51, %v13026_v51  ;;  %v7282_v2 = vmul.f32 %v13031_v27, %v13031_v27 }
 0x69b   :  { %v13134_v30 = vpop.f32.mrb[44].mxu1 }
 0x69c   :  { %15355 = vst [vmem:[#allocation66_spill] sm:$0xff] %v13131_v16  ;;  %v13139_v61 = vpop.f32.mrb[45].mxu1 }
 0x69d   :  { %v6679_v0 = vpop.f32.mrb[236].mxu0  ;;  %v13141_v10 = vpop.f32.mrb[46].mxu1 }
 0x69e   :  { %v6969_v9 = vadd.f32 %v13019_v8, %v6679_v0  ;;  %v6681_v55 = vpop.f32.mrb[237].mxu0  ;;  %15356 = vst [vmem:[#allocation120_spill] sm:$0xff] %v13141_v10  ;;  %v13150_v46 = vpop.f32.mrb[47].mxu1  ;;  %v7343_v8 = vadd.f32 %v7342_v36, %v7280_v28  ;;  %v7210_v0 = vadd.f32 %v7209_v25, %v13026_v51 }
 0x69f   :  { %v6682_v32 = vpop.f32.mrb[238].mxu0 }
 0x6a0   :  { %v13147_v59 = vadd.f32 %v6969_v9, %v15357_v3  ;;  %v6972_v1 = vadd.f32 %v13023_v19, %v6682_v32  ;;  %v6684_v42 = vpop.f32.mrb[239].mxu0  ;;  %v7344_v35 = vadd.f32 %v7343_v8, %v7281_v15  ;;  %v7211_v9 = vadd.f32 %v7210_v0, %v13031_v27 }
 0x6a1   :  { %v7283_v19 = vmul.f32 %v13040_v13, %v13040_v13 }
 0x6a2   :  { %v13154_v55 = vadd.f32 %v6972_v1, %v12829_v49  ;;  %v7345_v15 = vadd.f32 %v7344_v35, %v7282_v2  ;;  %v7212_v3 = vadd.f32 %v7211_v9, %v13040_v13  ;;  %v15358_v1 = vld [vmem:[#allocation83_spill] sm:$0xff]  ;;  %v7285_v35 = vmul.f32 %v13054_v34, %v13054_v34 }
 0x6a3   :  { %v13158_v10 = vpop.f32.mrb[48].mxu1 }
 0x6a4   :  { %v13164_v28 = vpop.f32.mrb[49].mxu1  ;;  %v7346_v51 = vadd.f32 %v7345_v15, %v7283_v19 }
 0x6a5   :  { %v6687_v6 = vpop.f32.mrb[240].mxu0  ;;  %v13166_v49 = vpop.f32.mrb[50].mxu1 }
 0x6a6   :  { %v6977_v32 = vadd.f32 %v13035_v23, %v6687_v6  ;;  %v6689_v36 = vpop.f32.mrb[241].mxu0  ;;  %v13173_v27 = vpop.f32.mrb[51].mxu1  ;;  %v7284_v6 = vmul.f32 %v13045_v14, %v13045_v14 }
 0x6a7   :  { %v6690_v25 = vpop.f32.mrb[242].mxu0  ;;  %v7213_v36 = vadd.f32 %v7212_v3, %v13045_v14  ;;  %v7286_v3 = vmul.f32 %v13059_v44, %v13059_v44 }
 0x6a8   :  { %v13170_v42 = vadd.f32 %v6977_v32, %v15358_v1  ;;  %v6980_v8 = vadd.f32 %v13042_v50, %v6690_v25  ;;  %v6692_v0 = vpop.f32.mrb[243].mxu0  ;;  %v7347_v32 = vadd.f32 %v7346_v51, %v7284_v6 }
 0x6a9   :  { %v7214_v50 = vadd.f32 %v7213_v36, %v13054_v34  ;;  %v7287_v36 = vmul.f32 %v13076_v57, %v13076_v57 }
 0x6aa   :  { %v13178_v23 = vadd.f32 %v6980_v8, %v12850_v12  ;;  %v7348_v12 = vadd.f32 %v7347_v32, %v7285_v35  ;;  %v15359_v8 = vld [vmem:[#allocation70_spill] sm:$0xff] }
 0x6ab   :  { %v13183_v9 = vpop.f32.mrb[52].mxu1 }
 0x6ac   :  { %v13187_v15 = vpop.f32.mrb[53].mxu1  ;;  %v7349_v35 = vadd.f32 %v7348_v12, %v7286_v3  ;;  %v15361_v12 = vld [vmem:[#allocation73_spill] sm:$0xff] }
 0x6ad   :  { %v6695_v2 = vpop.f32.mrb[244].mxu0  ;;  %v13189_v0 = vpop.f32.mrb[54].mxu1 }
 0x6ae   :  { %v6985_v25 = vadd.f32 %v13033_v39, %v6695_v2  ;;  %v6697_v19 = vpop.f32.mrb[245].mxu0  ;;  %v13197_v6 = vpop.f32.mrb[55].mxu1  ;;  %v7215_v39 = vadd.f32 %v7214_v50, %v13059_v44 }
 0x6af   :  { %v6698_v1 = vpop.f32.mrb[246].mxu0 }
 0x6b0   :  { %v13194_v14 = vadd.f32 %v6985_v25, %v15359_v8  ;;  %v6988_v13 = vadd.f32 %v13037_v54, %v6698_v1  ;;  %v6700_v51 = vpop.f32.mrb[247].mxu0  ;;  %v7216_v32 = vadd.f32 %v7215_v39, %v13076_v57  ;;  %v7350_v25 = vadd.f32 %v7349_v35, %v7287_v36 }
 0x6b1   :  { %v7288_v54 = vmul.f32 %v13082_v56, %v13082_v56 }
 0x6b2   :  { %v13203_v2 = vadd.f32 %v6988_v13, %v12847_v26  ;;  %v7217_v26 = vadd.f32 %v7216_v32, %v13082_v56  ;;  %v7289_v13 = vmul.f32 %v13098_v43, %v13098_v43  ;;  %v7290_v32 = vmul.f32 %v13106_v7, %v13106_v7 }
 0x6b3   :  { %v13206_v34 = vpop.f32.mrb[56].mxu1 }
 0x6b4   :  { %v13211_v50 = vpop.f32.mrb[57].mxu1 }
 0x6b5   :  { %v6703_v19 = vpop.f32.mrb[248].mxu0  ;;  %v13213_v44 = vpop.f32.mrb[58].mxu1 }
 0x6b6   :  { %v6993_v1 = vadd.f32 %v13049_v24, %v6703_v19  ;;  %v6705_v8 = vpop.f32.mrb[249].mxu0  ;;  %15360 = vst [vmem:[#allocation102_spill] sm:$0xff] %v13213_v44  ;;  %v13222_v35 = vpop.f32.mrb[59].mxu1  ;;  %v7351_v24 = vadd.f32 %v7350_v25, %v7288_v54  ;;  %v7218_v19 = vadd.f32 %v7217_v26, %v13098_v43 }
 0x6b7   :  { %v6706_v51 = vpop.f32.mrb[250].mxu0 }
 0x6b8   :  { %v13219_v3 = vadd.f32 %v6993_v1, %v15361_v12  ;;  %v6996_v39 = vadd.f32 %v13056_v48, %v6706_v51  ;;  %v6708_v36 = vpop.f32.mrb[251].mxu0  ;;  %v7352_v57 = vadd.f32 %v7351_v24, %v7289_v13  ;;  %v7219_v1 = vadd.f32 %v7218_v19, %v13106_v7 }
 0x6b9   :  { %v7291_v48 = vmul.f32 %v13122_v20, %v13122_v20 }
 0x6ba   :  { %v13226_v8 = vadd.f32 %v6996_v39, %v12868_v18  ;;  %v7353_v13 = vadd.f32 %v7352_v57, %v7290_v32  ;;  %v7220_v12 = vadd.f32 %v7219_v1, %v13122_v20  ;;  %v15362_v39 = vld [vmem:[#allocation69_spill] sm:$0xff]  ;;  %v7293_v57 = vmul.f32 %v13147_v59, %v13147_v59 }
 0x6bb   :  { %v13230_v44 = vpop.f32.mrb[60].mxu1 }
 0x6bc   :  { %v13236_v54 = vpop.f32.mrb[61].mxu1  ;;  %v7354_v43 = vadd.f32 %v7353_v13, %v7291_v48  ;;  %v7294_v13 = vmul.f32 %v13154_v55, %v13154_v55 }
 0x6bd   :  { %v6711_v56 = vpop.f32.mrb[252].mxu0  ;;  %v13238_v18 = vpop.f32.mrb[62].mxu1 }
 0x6be   :  { %v7001_v51 = vadd.f32 %v13047_v31, %v6711_v56  ;;  %v6713_v25 = vpop.f32.mrb[253].mxu0  ;;  %v13245_v7 = vpop.f32.mrb[63].mxu1  ;;  %v7292_v56 = vmul.f32 %v13131_v16, %v13131_v16 }
 0x6bf   :  { %v6714_v26 = vpop.f32.mrb[254].mxu0  ;;  %v7221_v25 = vadd.f32 %v7220_v12, %v13131_v16 }
 0x6c0   :  { %v13242_v36 = vadd.f32 %v7001_v51, %v15362_v39  ;;  %v7004_v24 = vadd.f32 %v13051_v53, %v6714_v26  ;;  %v6716_v19 = vpop.f32.mrb[255].mxu0  ;;  %v7355_v1 = vadd.f32 %v7354_v43, %v7292_v56  ;;  %v7295_v43 = vmul.f32 %v13170_v42, %v13170_v42 }
 0x6c1   :  { %v7222_v51 = vadd.f32 %v7221_v25, %v13147_v59  ;;  %v15363_v19 = vld [vmem:[#allocation77_spill] sm:$0xff] }
 0x6c2   :  { %v13250_v31 = vadd.f32 %v7004_v24, %v12865_v37  ;;  %v7356_v48 = vadd.f32 %v7355_v1, %v7293_v57  ;;  %v7296_v1 = vmul.f32 %v13178_v23, %v13178_v23 }
 0x6c3   :  { %v7223_v16 = vadd.f32 %v7222_v51, %v13154_v55 }
 0x6c5   :  { %v6719_v32 = vpop.f32.mrb[0].mxu0  ;;  %v7224_v25 = vadd.f32 %v7223_v16, %v13170_v42 }
 0x6c6   :  { %v7009_v53 = vadd.f32 %v13065_v40, %v6719_v32  ;;  %v6721_v26 = vpop.f32.mrb[1].mxu0  ;;  %v7357_v40 = vadd.f32 %v7356_v48, %v7294_v13 }
 0x6c7   :  { %v6722_v39 = vpop.f32.mrb[2].mxu0  ;;  %v7225_v51 = vadd.f32 %v7224_v25, %v13178_v23 }
 0x6c8   :  { %v13260_v37 = vadd.f32 %v7009_v53, %v15363_v19  ;;  %v7012_v12 = vadd.f32 %v13078_v4, %v6722_v39  ;;  %v6724_v24 = vpop.f32.mrb[3].mxu0  ;;  %v7358_v32 = vadd.f32 %v7357_v40, %v7295_v43  ;;  %v7297_v39 = vmul.f32 %v13194_v14, %v13194_v14  ;;  %v15364_v19 = vld [vmem:[#allocation96_spill] sm:$0xff] }
 0x6c9   :  { %v7298_v43 = vmul.f32 %v13203_v2, %v13203_v2 }
 0x6ca   :  { %v13267_v56 = vadd.f32 %v7012_v12, %v12886_v21  ;;  %v7359_v13 = vadd.f32 %v7358_v32, %v7296_v1  ;;  %v7226_v12 = vadd.f32 %v7225_v51, %v13194_v14 }
 0x6cc   :  { %v7227_v25 = vadd.f32 %v7226_v12, %v13203_v2 }
 0x6cd   :  { %v6727_v57 = vpop.f32.mrb[4].mxu0 }
 0x6ce   :  { %v7017_v53 = vadd.f32 %v13061_v41, %v6727_v57  ;;  %v6729_v4 = vpop.f32.mrb[5].mxu0  ;;  %v7360_v41 = vadd.f32 %v7359_v13, %v7297_v39  ;;  %v7299_v57 = vmul.f32 %v13219_v3, %v13219_v3  ;;  %v7228_v1 = vadd.f32 %v7227_v25, %v13219_v3 }
 0x6cf   :  { %v6730_v26 = vpop.f32.mrb[6].mxu0  ;;  %v7301_v13 = vmul.f32 %v13242_v36, %v13242_v36 }
 0x6d0   :  { %v13277_v21 = vadd.f32 %v7017_v53, %v15364_v19  ;;  %v7020_v48 = vadd.f32 %v13069_v33, %v6730_v26  ;;  %v6732_v16 = vpop.f32.mrb[7].mxu0  ;;  %v7361_v32 = vadd.f32 %v7360_v41, %v7298_v43  ;;  %v15365_v26 = vld [vmem:[#allocation75_spill] sm:$0xff] }
 0x6d2   :  { %v13282_v24 = vadd.f32 %v7020_v48, %v12883_v22  ;;  %v7362_v19 = vadd.f32 %v7361_v32, %v7299_v57  ;;  %v7300_v48 = vmul.f32 %v13226_v8, %v13226_v8 }
 0x6d4   :  { %v7363_v41 = vadd.f32 %v7362_v19, %v7300_v48 }
 0x6d5   :  { %v6735_v40 = vpop.f32.mrb[8].mxu0 }
 0x6d6   :  { %v7025_v53 = vadd.f32 %v13092_v60, %v6735_v40  ;;  %v6737_v33 = vpop.f32.mrb[9].mxu0  ;;  %v7229_v60 = vadd.f32 %v7228_v1, %v13226_v8  ;;  %v7364_v57 = vadd.f32 %v7363_v41, %v7301_v13 }
 0x6d7   :  { %v6738_v4 = vpop.f32.mrb[10].mxu0  ;;  %v15366_v33 = vld [vmem:[#allocation101_spill] sm:$0xff] }
 0x6d8   :  { %v13292_v22 = vadd.f32 %v7025_v53, %v15365_v26  ;;  %v7028_v51 = vadd.f32 %v13101_v47, %v6738_v4  ;;  %v6740_v39 = vpop.f32.mrb[11].mxu0  ;;  %v7230_v43 = vadd.f32 %v7229_v60, %v13242_v36  ;;  %v7302_v53 = vmul.f32 %v13250_v31, %v13250_v31 }
 0x6d9   :  { %v7303_v26 = vmul.f32 %v13260_v37, %v13260_v37  ;;  %v7304_v60 = vmul.f32 %v13267_v56, %v13267_v56 }
 0x6da   :  { %v13298_v16 = vadd.f32 %v7028_v51, %v12904_v58  ;;  %v7231_v1 = vadd.f32 %v7230_v43, %v13250_v31  ;;  %v7305_v43 = vmul.f32 %v13277_v21, %v13277_v21 }
 0x6dc   :  { %v7232_v39 = vadd.f32 %v7231_v1, %v13260_v37 }
 0x6dd   :  { %v6743_v12 = vpop.f32.mrb[12].mxu0 }
 0x6de   :  { %v7033_v40 = vadd.f32 %v13086_v63, %v6743_v12  ;;  %v6745_v47 = vpop.f32.mrb[13].mxu0  ;;  %v7365_v63 = vadd.f32 %v7364_v57, %v7302_v53  ;;  %v7233_v41 = vadd.f32 %v7232_v39, %v13267_v56 }
 0x6df   :  { %v6746_v25 = vpop.f32.mrb[14].mxu0 }
 0x6e0   :  { %v13308_v58 = vadd.f32 %v7033_v40, %v15366_v33  ;;  %v7036_v4 = vadd.f32 %v13094_v38, %v6746_v25  ;;  %v6748_v32 = vpop.f32.mrb[15].mxu0  ;;  %v7366_v48 = vadd.f32 %v7365_v63, %v7303_v26  ;;  %v15367_v40 = vld [vmem:[#allocation87_spill] sm:$0xff]  ;;  %v7234_v53 = vadd.f32 %v7233_v41, %v13277_v21 }
 0x6e1   :  { %v7307_v26 = vmul.f32 %v13292_v22, %v13292_v22  ;;  %v7308_v41 = vmul.f32 %v13298_v16, %v13298_v16 }
 0x6e2   :  { %v13315_v51 = vadd.f32 %v7036_v4, %v12901_v29  ;;  %v7367_v57 = vadd.f32 %v7366_v48, %v7304_v60  ;;  %v7306_v4 = vmul.f32 %v13282_v24, %v13282_v24  ;;  %v7235_v1 = vadd.f32 %v7234_v53, %v13282_v24  ;;  %v15368_v60 = vld [vmem:[#allocation85_spill] sm:$0xff] }
 0x6e4   :  { %v7236_v48 = vadd.f32 %v7235_v1, %v13292_v22  ;;  %v15369_v1 = vld [vmem:[#allocation72_spill] sm:$0xff] }
 0x6e5   :  { %v6751_v19 = vpop.f32.mrb[16].mxu0 }
 0x6e6   :  { %v7041_v13 = vadd.f32 %v13115_v5, %v6751_v19  ;;  %v6753_v38 = vpop.f32.mrb[17].mxu0  ;;  %v7368_v5 = vadd.f32 %v7367_v57, %v7305_v43 }
 0x6e7   :  { %v6754_v12 = vpop.f32.mrb[18].mxu0 }
 0x6e8   :  { %v13325_v29 = vadd.f32 %v7041_v13, %v15367_v40  ;;  %v7044_v47 = vadd.f32 %v13125_v52, %v6754_v12  ;;  %v6756_v25 = vpop.f32.mrb[19].mxu0  ;;  %v7369_v19 = vadd.f32 %v7368_v5, %v7306_v4  ;;  %v7309_v40 = vmul.f32 %v13308_v58, %v13308_v58 }
 0x6ea   :  { %v13330_v33 = vadd.f32 %v7044_v47, %v12922_v17  ;;  %v7370_v12 = vadd.f32 %v7369_v19, %v7307_v26  ;;  %v15370_v19 = vld [vmem:[#allocation94_spill] sm:$0xff] }
 0x6ec   :  { %v7371_v25 = vadd.f32 %v7370_v12, %v7308_v41  ;;  %v7312_v12 = vmul.f32 %v13330_v33, %v13330_v33 }
 0x6ed   :  { %v6759_v32 = vpop.f32.mrb[20].mxu0 }
 0x6ee   :  { %v7049_v63 = vadd.f32 %v13111_v62, %v6759_v32  ;;  %v6761_v52 = vpop.f32.mrb[21].mxu0  ;;  %v7237_v62 = vadd.f32 %v7236_v48, %v13298_v16  ;;  %v7372_v4 = vadd.f32 %v7371_v25, %v7309_v40  ;;  %v7310_v32 = vmul.f32 %v13315_v51, %v13315_v51  ;;  %v15371_v25 = vld [vmem:[#allocation82_spill] sm:$0xff] }
 0x6ef   :  { %v6762_v39 = vpop.f32.mrb[22].mxu0 }
 0x6f0   :  { %v13340_v17 = vadd.f32 %v7049_v63, %v15368_v60  ;;  %v7052_v13 = vadd.f32 %v13117_v45, %v6762_v39  ;;  %v6764_v38 = vpop.f32.mrb[23].mxu0  ;;  %v7238_v57 = vadd.f32 %v7237_v62, %v13308_v58  ;;  %v7311_v39 = vmul.f32 %v13325_v29, %v13325_v29 }
 0x6f2   :  { %v13346_v43 = vadd.f32 %v7052_v13, %v12919_v11  ;;  %v7239_v52 = vadd.f32 %v7238_v57, %v13315_v51 }
 0x6f4   :  { %v7240_v60 = vadd.f32 %v7239_v52, %v13325_v29 }
 0x6f5   :  { %v6767_v47 = vpop.f32.mrb[24].mxu0 }
 0x6f6   :  { %v7057_v53 = vadd.f32 %v13139_v61, %v6767_v47  ;;  %v6769_v45 = vpop.f32.mrb[25].mxu0  ;;  %v7373_v61 = vadd.f32 %v7372_v4, %v7310_v32  ;;  %v7241_v40 = vadd.f32 %v7240_v60, %v13330_v33  ;;  %v7313_v47 = vmul.f32 %v13340_v17, %v13340_v17 }
 0x6f7   :  { %v6770_v5 = vpop.f32.mrb[26].mxu0 }
 0x6f8   :  { %v13356_v11 = vadd.f32 %v7057_v53, %v15369_v1  ;;  %v7060_v26 = vadd.f32 %v13150_v46, %v6770_v5  ;;  %v6772_v63 = vpop.f32.mrb[27].mxu0  ;;  %v7374_v38 = vadd.f32 %v7373_v61, %v7311_v39  ;;  %v15372_v53 = vld [vmem:[#allocation120_spill] sm:$0xff]  ;;  %v7242_v32 = vadd.f32 %v7241_v40, %v13340_v17  ;;  %v15373_v1 = vld [vmem:[#allocation86_spill] sm:$0xff] }
 0x6f9   :  { %v7314_v63 = vmul.f32 %v13346_v43, %v13346_v43 }
 0x6fa   :  { %v13363_v48 = vadd.f32 %v7060_v26, %v15370_v19  ;;  %v7375_v4 = vadd.f32 %v7374_v38, %v7312_v12  ;;  %v7243_v39 = vadd.f32 %v7242_v32, %v13346_v43  ;;  %v7315_v19 = vmul.f32 %v13356_v11, %v13356_v11 }
 0x6fc   :  { %v7244_v12 = vadd.f32 %v7243_v39, %v13356_v11 }
 0x6fd   :  { %v6775_v13 = vpop.f32.mrb[28].mxu0 }
 0x6fe   :  { %v7065_v41 = vadd.f32 %v13134_v30, %v6775_v13  ;;  %v6777_v46 = vpop.f32.mrb[29].mxu0  ;;  %v7376_v30 = vadd.f32 %v7375_v4, %v7313_v47 }
 0x6ff   :  { %v6778_v62 = vpop.f32.mrb[30].mxu0 }
 0x700   :  { %v13373_v57 = vadd.f32 %v7065_v41, %v15371_v25  ;;  %v7068_v45 = vadd.f32 %v15372_v53, %v6778_v62  ;;  %v6780_v5 = vpop.f32.mrb[31].mxu0  ;;  %v7377_v38 = vadd.f32 %v7376_v30, %v7314_v63  ;;  %v15374_v41 = vld [vmem:[#allocation71_spill] sm:$0xff]  ;;  %v7316_v25 = vmul.f32 %v13363_v48, %v13363_v48  ;;  %v15375_v53 = vld [vmem:[#allocation81_spill] sm:$0xff] }
 0x702   :  { %v13378_v26 = vadd.f32 %v7068_v45, %v15373_v1  ;;  %v7378_v47 = vadd.f32 %v7377_v38, %v7315_v19  ;;  %v7317_v5 = vmul.f32 %v13373_v57, %v13373_v57  ;;  %v15376_v19 = vld [vmem:[#allocation78_spill] sm:$0xff] }
 0x704   :  { %v7379_v32 = vadd.f32 %v7378_v47, %v7316_v25  ;;  %v7318_v39 = vmul.f32 %v13378_v26, %v13378_v26 }
 0x705   :  { %v6783_v52 = vpop.f32.mrb[32].mxu0 }
 0x706   :  { %v7073_v61 = vadd.f32 %v13164_v28, %v6783_v52  ;;  %v6785_v60 = vpop.f32.mrb[33].mxu0  ;;  %v7245_v28 = vadd.f32 %v7244_v12, %v13363_v48  ;;  %v7380_v52 = vadd.f32 %v7379_v32, %v7317_v5 }
 0x707   :  { %v6786_v13 = vpop.f32.mrb[34].mxu0 }
 0x708   :  { %v13388_v46 = vadd.f32 %v7073_v61, %v15374_v41  ;;  %v7076_v62 = vadd.f32 %v13173_v27, %v6786_v13  ;;  %v6788_v40 = vpop.f32.mrb[35].mxu0  ;;  %v7246_v1 = vadd.f32 %v7245_v28, %v13373_v57  ;;  %v15377_v41 = vld [vmem:[#allocation103_spill] sm:$0xff] }
 0x70a   :  { %v13394_v45 = vadd.f32 %v7076_v62, %v15375_v53  ;;  %v7247_v38 = vadd.f32 %v7246_v1, %v13378_v26  ;;  %v7319_v12 = vmul.f32 %v13388_v46, %v13388_v46  ;;  %v15378_v1 = vld [vmem:[#allocation80_spill] sm:$0xff] }
 0x70c   :  { %v7248_v40 = vadd.f32 %v7247_v38, %v13388_v46  ;;  %v7320_v53 = vmul.f32 %v13394_v45, %v13394_v45 }
 0x70d   :  { %v6791_v4 = vpop.f32.mrb[36].mxu0 }
 0x70e   :  { %v7081_v30 = vadd.f32 %v13158_v10, %v6791_v4  ;;  %v6793_v27 = vpop.f32.mrb[37].mxu0  ;;  %v7381_v10 = vadd.f32 %v7380_v52, %v7318_v39  ;;  %v7249_v4 = vadd.f32 %v7248_v40, %v13394_v45 }
 0x70f   :  { %v6794_v63 = vpop.f32.mrb[38].mxu0 }
 0x710   :  { %v13404_v61 = vadd.f32 %v7081_v30, %v15376_v19  ;;  %v7084_v60 = vadd.f32 %v13166_v49, %v6794_v63  ;;  %v6796_v13 = vpop.f32.mrb[39].mxu0  ;;  %v7382_v25 = vadd.f32 %v7381_v10, %v7319_v12  ;;  %v15379_v19 = vld [vmem:[#allocation74_spill] sm:$0xff] }
 0x712   :  { %v13411_v62 = vadd.f32 %v7084_v60, %v15377_v41  ;;  %v7321_v32 = vmul.f32 %v13404_v61, %v13404_v61  ;;  %v7383_v52 = vadd.f32 %v7382_v25, %v7320_v53  ;;  %v7250_v39 = vadd.f32 %v7249_v4, %v13404_v61  ;;  %v15380_v53 = vld [vmem:[#allocation79_spill] sm:$0xff] }
 0x714   :  { %v7322_v13 = vmul.f32 %v13411_v62, %v13411_v62  ;;  %v7251_v12 = vadd.f32 %v7250_v39, %v13411_v62 }
 0x715   :  { %v6799_v47 = vpop.f32.mrb[40].mxu0 }
 0x716   :  { %v7089_v28 = vadd.f32 %v13187_v15, %v6799_v47  ;;  %v6801_v49 = vpop.f32.mrb[41].mxu0  ;;  %v7384_v15 = vadd.f32 %v7383_v52, %v7321_v32 }
 0x717   :  { %v6802_v5 = vpop.f32.mrb[42].mxu0 }
 0x718   :  { %v13421_v30 = vadd.f32 %v7089_v28, %v15378_v1  ;;  %v7092_v27 = vadd.f32 %v13197_v6, %v6802_v5  ;;  %v6804_v63 = vpop.f32.mrb[43].mxu0  ;;  %v7385_v47 = vadd.f32 %v7384_v15, %v7322_v13  ;;  %v15381_v1 = vld [vmem:[#allocation76_spill] sm:$0xff] }
 0x71a   :  { %v13426_v60 = vadd.f32 %v7092_v27, %v15379_v19  ;;  %v7323_v41 = vmul.f32 %v13421_v30, %v13421_v30  ;;  %v7252_v25 = vadd.f32 %v7251_v12, %v13421_v30 }
 0x71c   :  { %v7386_v4 = vadd.f32 %v7385_v47, %v7323_v41  ;;  %v7324_v32 = vmul.f32 %v13426_v60, %v13426_v60  ;;  %v15382_v41 = vld [vmem:[#allocation114_spill] sm:$0xff] }
 0x71d   :  { %v6807_v38 = vpop.f32.mrb[44].mxu0 }
 0x71e   :  { %v7097_v10 = vadd.f32 %v13183_v9, %v6807_v38  ;;  %v6809_v6 = vpop.f32.mrb[45].mxu0  ;;  %v7253_v9 = vadd.f32 %v7252_v25, %v13426_v60  ;;  %v7387_v39 = vadd.f32 %v7386_v4, %v7324_v32 }
 0x71f   :  { %v6810_v40 = vpop.f32.mrb[46].mxu0 }
 0x720   :  { %v13436_v28 = vadd.f32 %v7097_v10, %v15380_v53  ;;  %v7100_v49 = vadd.f32 %v13189_v0, %v6810_v40  ;;  %v6812_v5 = vpop.f32.mrb[47].mxu0  ;;  %v15383_v53 = vld [vmem:[#allocation92_spill] sm:$0xff] }
 0x722   :  { %v13442_v27 = vadd.f32 %v7100_v49, %v15381_v1  ;;  %v7325_v63 = vmul.f32 %v13436_v28, %v13436_v28  ;;  %v7254_v19 = vadd.f32 %v7253_v9, %v13436_v28 }
 0x724   :  { %v7388_v38 = vadd.f32 %v7387_v39, %v7325_v63  ;;  %v7326_v12 = vmul.f32 %v13442_v27, %v13442_v27  ;;  %v7255_v47 = vadd.f32 %v7254_v19, %v13442_v27  ;;  %v15384_v39 = vld [vmem:[#allocation84_spill] sm:$0xff] }
 0x725   :  { %v6815_v52 = vpop.f32.mrb[48].mxu0 }
 0x726   :  { %v7105_v15 = vadd.f32 %v13211_v50, %v6815_v52  ;;  %v6817_v0 = vpop.f32.mrb[49].mxu0  ;;  %v7389_v50 = vadd.f32 %v7388_v38, %v7326_v12 }
 0x727   :  { %v6818_v13 = vpop.f32.mrb[50].mxu0 }
 0x728   :  { %v13452_v10 = vadd.f32 %v7105_v15, %v15382_v41  ;;  %v7108_v6 = vadd.f32 %v13222_v35, %v6818_v13  ;;  %v6820_v40 = vpop.f32.mrb[51].mxu0  ;;  %v15385_v15 = vld [vmem:[#allocation102_spill] sm:$0xff] }
 0x72a   :  { %v7327_v25 = vmul.f32 %v13452_v10, %v13452_v10  ;;  %v13459_v49 = vadd.f32 %v7108_v6, %v15383_v53  ;;  %v7256_v5 = vadd.f32 %v7255_v47, %v13452_v10  ;;  %v15386_v6 = vld [vmem:[#allocation115_spill] sm:$0xff] }
 0x72c   :  { %v7390_v32 = vadd.f32 %v7389_v50, %v7327_v25  ;;  %v7328_v1 = vmul.f32 %v13459_v49, %v13459_v49  ;;  %v7257_v52 = vadd.f32 %v7256_v5, %v13459_v49 }
 0x72d   :  { %v6823_v4 = vpop.f32.mrb[52].mxu0 }
 0x72e   :  { %v7113_v9 = vadd.f32 %v13206_v34, %v6823_v4  ;;  %v6825_v35 = vpop.f32.mrb[53].mxu0  ;;  %v7391_v38 = vadd.f32 %v7390_v32, %v7328_v1  ;;  %v15387_v1 = vld [vmem:[#allocation89_spill] sm:$0xff] }
 0x72f   :  { %v6826_v63 = vpop.f32.mrb[54].mxu0 }
 0x730   :  { %v13467_v19 = vadd.f32 %v7113_v9, %v15384_v39  ;;  %v7116_v0 = vadd.f32 %v15385_v15, %v6826_v63  ;;  %v6828_v13 = vpop.f32.mrb[55].mxu0  ;;  %v15388_v15 = vld [vmem:[#allocation98_spill] sm:$0xff] }
 0x732   :  { %v7258_v12 = vadd.f32 %v7257_v52, %v13467_v19  ;;  %v7329_v41 = vmul.f32 %v13467_v19, %v13467_v19  ;;  %v13474_v40 = vadd.f32 %v7116_v0, %v15386_v6 }
 0x734   :  { %v7392_v34 = vadd.f32 %v7391_v38, %v7329_v41  ;;  %v7259_v47 = vadd.f32 %v7258_v12, %v13474_v40  ;;  %v7330_v25 = vmul.f32 %v13474_v40, %v13474_v40 }
 0x735   :  { %v6831_v53 = vpop.f32.mrb[56].mxu0 }
 0x736   :  { %v7393_v50 = vadd.f32 %v7392_v34, %v7330_v25  ;;  %v7121_v5 = vadd.f32 %v13236_v54, %v6831_v53  ;;  %v6833_v4 = vpop.f32.mrb[57].mxu0  ;;  %v15389_v25 = vld [vmem:[#allocation105_spill] sm:$0xff] }
 0x737   :  { %v6834_v32 = vpop.f32.mrb[58].mxu0 }
 0x738   :  { %v13481_v9 = vadd.f32 %v7121_v5, %v15387_v1  ;;  %v7124_v35 = vadd.f32 %v13245_v7, %v6834_v32  ;;  %v6836_v63 = vpop.f32.mrb[59].mxu0  ;;  %v15390_v32 = vld [vmem:[#allocation91_spill] sm:$0xff] }
 0x73a   :  { %v7260_v52 = vadd.f32 %v7259_v47, %v13481_v9  ;;  %v7331_v39 = vmul.f32 %v13481_v9, %v13481_v9  ;;  %v13488_v0 = vadd.f32 %v7124_v35, %v15388_v15 }
 0x73c   :  { %v7394_v13 = vadd.f32 %v7393_v50, %v7331_v39  ;;  %v7261_v38 = vadd.f32 %v7260_v52, %v13488_v0  ;;  %v7332_v54 = vmul.f32 %v13488_v0, %v13488_v0 }
 0x73d   :  { %v6839_v12 = vpop.f32.mrb[60].mxu0 }
 0x73e   :  { %v7395_v41 = vadd.f32 %v7394_v13, %v7332_v54  ;;  %v7129_v6 = vadd.f32 %v13230_v44, %v6839_v12  ;;  %v6841_v7 = vpop.f32.mrb[61].mxu0 }
 0x73f   :  { %v6842_v34 = vpop.f32.mrb[62].mxu0 }
 0x740   :  { %v13495_v47 = vadd.f32 %v7129_v6, %v15389_v25  ;;  %v7132_v53 = vadd.f32 %v13238_v18, %v6842_v34  ;;  %v6844_v5 = vpop.f32.mrb[63].mxu0 }
 0x742   :  { %v7262_v4 = vadd.f32 %v7261_v38, %v13495_v47  ;;  %v7333_v50 = vmul.f32 %v13495_v47, %v13495_v47  ;;  %v13502_v1 = vadd.f32 %v7132_v53, %v15390_v32 }
 0x744   :  { %v7396_v35 = vadd.f32 %v7395_v41, %v7333_v50  ;;  %v7263_v63 = vadd.f32 %v7262_v4, %v13502_v1  ;;  %v7334_v44 = vmul.f32 %v13502_v1, %v13502_v1 }
 0x746   :  { %v7264_v52 = vrot.slane %v7263_v63, 4  ;;  %v7397_v39 = vadd.f32 %v7396_v35, %v7334_v44  ;;  %v7199_v35 = vld [vmem:[%s14536_s5] sm:$0x1] }
 0x748   :  { %v7265_v15 = vadd.f32 %v7264_v52, %v7263_v63  ;;  %v7398_v13 = vrot.slane %v7397_v39, 4  ;;  %v13513_v52 = vld [vmem:[%s14537_s6] sm:$0x1] }
 0x74a   :  { %v7266_v18 = vrot.slane %v7265_v15, 2  ;;  %v7399_v54 = vadd.f32 %v7398_v13, %v7397_v39 }
 0x74c   :  { %v7267_v12 = vadd.f32 %v7266_v18, %v7265_v15  ;;  %v7400_v38 = vrot.slane %v7399_v54, 2  ;;  %v15391_v15 = vld [vmem:[#allocation99_spill] sm:$0xff] }
 0x74e   :  { %v7268_v6 = vrot.slane %v7267_v12, 1  ;;  %v7401_v7 = vadd.f32 %v7400_v38, %v7399_v54  ;;  %v15392_v54 = vld [vmem:[#allocation107_spill] sm:$0xff]  ;;  %v15393_v38 = vld [vmem:[#allocation109_spill] sm:$0xff] }
 0x750   :  { %v7269_v34 = vadd.f32 %v7268_v6, %v7267_v12  ;;  %v7402_v25 = vrot.slane %v7401_v7, 1 }
 0x752   :  { %v7270_v53 = vmul.f32 0.001953125, %v7269_v34  ;;  %v7403_v5 = vadd.f32 %v7402_v25, %v7401_v7  ;;  %v15394_v7 = vld [vmem:[#allocation106_spill] sm:$0xff]  ;;  %v15395_v25 = vld [vmem:[#allocation108_spill] sm:$0xff] }
 0x754   :  { %v7404_v41 = vmul.f32 0.001953125, %v7403_v5  ;;  %v7405_v50 = vmul.f32 %v7270_v53, %v7270_v53  ;;  %v15396_v5 = vld [vmem:[#allocation111_spill] sm:$0xff] }
 0x756   :  { %v7406_v4 = vsub.f32 %v7404_v41, %v7405_v50  ;;  %v15397_v50 = vld [vmem:[#allocation88_spill] sm:$0xff] }
 0x758   :  { %v7407_v32 = vadd.f32 1e-05, %v7406_v4 }
 0x75a   :  { %8760 = vrsqrt.f32 %v7407_v32  ;;  %v15398_v32 = vld [vmem:[#allocation110_spill] sm:$0xff] }
 0x764   :  { %v8761_v63 = vpop.eup %8760 }
 0x765   :  { %v7409_v44 = vmul.f32 %v8761_v63, %v7199_v35  ;;  %v15399_v63 = vld [vmem:[#allocation100_spill] sm:$0xff] }
 0x767   :  { %v13515_v39 = vmul.f32 %v7409_v44, %v7270_v53  ;;  %v13518_v13 = vrot.slane %v7409_v44, %v15391_v15 }
 0x769   :  { %v7411_v18 = vsub.f32 %v13513_v52, %v13515_v39  ;;  %v13524_v12 = vmul.f32 %v13518_v13, %v15392_v54  ;;  %v13528_v6 = vmul.f32 %v13518_v13, %v15393_v38  ;;  %v13532_v34 = vmul.f32 %v13518_v13, %v15394_v7  ;;  %v15401_v52 = vld [vmem:[#allocation93_spill] sm:$0xff]  ;;  %v15405_v7 = vld [vmem:[#allocation95_spill] sm:$0xff] }
 0x76a   :  { %v13536_v53 = vmul.f32 %v13518_v13, %v15395_v25  ;;  %v13540_v41 = vmul.f32 %v13518_v13, %v15396_v5  ;;  %v13544_v4 = vmul.f32 %v13518_v13, %v15397_v50  ;;  %v13548_v35 = vmul.f32 %v13518_v13, %v15398_v32  ;;  %v15403_v54 = vld [vmem:[#allocation97_spill] sm:$0xff]  ;;  %v15407_v5 = vld [vmem:[#allocation90_spill] sm:$0xff]  ;;  %v15409_v32 = vld [vmem:[#allocation112_spill] sm:$0xff] }
 0x76b   :  { %v13552_v44 = vmul.f32 %v13518_v13, %v15399_v63  ;;  %v13556_v39 = vmul.f32 %v13518_v13, %v15401_v52  ;;  %v13560_v38 = vmul.f32 %v13518_v13, %v15403_v54  ;;  %v13564_v25 = vmul.f32 %v13518_v13, %v15405_v7 }
 0x76c   :  { %v13568_v50 = vmul.f32 %v13518_v13, %v15407_v5  ;;  %v13572_v63 = vmul.f32 %v13518_v13, %v15409_v32 }
 0x76d   :  { %15400 = vst [vmem:[#allocation83_spill] sm:$0xff] %v13552_v44  ;;  %15402 = vst [vmem:[#allocation70_spill] sm:$0xff] %v13556_v39  ;;  %v15411_v44 = vld [vmem:[#allocation113_spill] sm:$0xff]  ;;  %v15413_v39 = vld [vmem:[#allocation116_spill] sm:$0xff] }
 0x76e   :  { %15404 = vst [vmem:[#allocation73_spill] sm:$0xff] %v13560_v38  ;;  %15406 = vst [vmem:[#allocation69_spill] sm:$0xff] %v13564_v25  ;;  %v13576_v52 = vmul.f32 %v13518_v13, %v15411_v44  ;;  %v13580_v54 = vmul.f32 %v13518_v13, %v15413_v39  ;;  %v15414_v38 = vld [vmem:[#allocation117_spill] sm:$0xff]  ;;  %v15416_v25 = vld [vmem:[#allocation118_spill] sm:$0xff] }
 0x76f   :  { %15408 = vst [vmem:[#allocation77_spill] sm:$0xff] %v13568_v50  ;;  %15410 = vst [vmem:[#allocation96_spill] sm:$0xff] %v13572_v63  ;;  %v13584_v7 = vmul.f32 %v13518_v13, %v15414_v38  ;;  %v13588_v5 = vmul.f32 %v13518_v13, %v15416_v25  ;;  %v15417_v50 = vld [vmem:[#allocation119_spill] sm:$0xff]  ;;  %v15418_v63 = vld [vmem:[#allocation65_spill] sm:$0xff]  ;;  %v13604_v38 = vmul.f32 %v13518_v13, %v13122_v20 }
 0x770   :  { %15412 = vst [vmem:[#allocation75_spill] sm:$0xff] %v13576_v52  ;;  %v13592_v32 = vmul.f32 %v13518_v13, %v15417_v50  ;;  %v13596_v44 = vmul.f32 %v13518_v13, %v15418_v63  ;;  %v15419_v52 = vld [vmem:[#allocation104_spill] sm:$0xff]  ;;  %v13612_v50 = vmul.f32 %v13518_v13, %v13147_v59  ;;  %v13616_v63 = vmul.f32 %v13518_v13, %v13154_v55 }
 0x771   :  { %15415 = vst [vmem:[#allocation101_spill] sm:$0xff] %v13584_v7  ;;  %v13600_v39 = vmul.f32 %v13518_v13, %v15419_v52  ;;  %v15420_v7 = vld [vmem:[#allocation66_spill] sm:$0xff]  ;;  %v13620_v52 = vmul.f32 %v13518_v13, %v13170_v42  ;;  %v13624_v20 = vmul.f32 %v13518_v13, %v13178_v23  ;;  %v13632_v59 = vmul.f32 %v13518_v13, %v13203_v2 }
 0x772   :  { %v13608_v25 = vmul.f32 %v13518_v13, %v15420_v7  ;;  %v13628_v7 = vmul.f32 %v13518_v13, %v13194_v14  ;;  %v13636_v55 = vmul.f32 %v13518_v13, %v13219_v3  ;;  %v13640_v42 = vmul.f32 %v13518_v13, %v13226_v8 }
 0x773   :  { %v13644_v23 = vmul.f32 %v13518_v13, %v13242_v36  ;;  %v13648_v14 = vmul.f32 %v13518_v13, %v13250_v31  ;;  %v13652_v2 = vmul.f32 %v13518_v13, %v13260_v37  ;;  %v13656_v3 = vmul.f32 %v13518_v13, %v13267_v56 }
 0x774   :  { %v13660_v8 = vmul.f32 %v13518_v13, %v13277_v21  ;;  %v13664_v36 = vmul.f32 %v13518_v13, %v13282_v24  ;;  %v13668_v31 = vmul.f32 %v13518_v13, %v13292_v22  ;;  %v13672_v37 = vmul.f32 %v13518_v13, %v13298_v16 }
 0x775   :  { %v13676_v56 = vmul.f32 %v13518_v13, %v13308_v58  ;;  %v13680_v21 = vmul.f32 %v13518_v13, %v13315_v51  ;;  %v13684_v24 = vmul.f32 %v13518_v13, %v13325_v29  ;;  %v13688_v22 = vmul.f32 %v13518_v13, %v13330_v33 }
 0x776   :  { %v13692_v16 = vmul.f32 %v13518_v13, %v13340_v17  ;;  %v13696_v58 = vmul.f32 %v13518_v13, %v13346_v43  ;;  %v13700_v51 = vmul.f32 %v13518_v13, %v13356_v11  ;;  %v13704_v29 = vmul.f32 %v13518_v13, %v13363_v48 }
 0x777   :  { %v13708_v33 = vmul.f32 %v13518_v13, %v13373_v57  ;;  %v13712_v17 = vmul.f32 %v13518_v13, %v13378_v26  ;;  %v13716_v43 = vmul.f32 %v13518_v13, %v13388_v46  ;;  %v13720_v11 = vmul.f32 %v13518_v13, %v13394_v45 }
 0x778   :  { %v13724_v48 = vmul.f32 %v13518_v13, %v13404_v61  ;;  %v13728_v57 = vmul.f32 %v13518_v13, %v13411_v62  ;;  %v13732_v26 = vmul.f32 %v13518_v13, %v13467_v19  ;;  %v13736_v46 = vmul.f32 %v13518_v13, %v13474_v40 }
 0x779   :  { %v13740_v45 = vmul.f32 %v13518_v13, %v13481_v9  ;;  %v13744_v61 = vmul.f32 %v13518_v13, %v13488_v0  ;;  %v13748_v62 = vmul.f32 %v13518_v13, %v13495_v47  ;;  %v7470_v19 = vmul.f32 %v13518_v13, %v13421_v30 }
 0x77a   :  { %15421 = vst [vmem:[#allocation87_spill] sm:$0xff] %v13732_v26  ;;  %v7471_v26 = vmul.f32 %v13518_v13, %v13426_v60  ;;  %v13756_v40 = vmul.f32 %v13518_v13, %v13502_v1  ;;  %v13759_v9 = vrot.slane %v7411_v18, %v15391_v15  ;;  %v7472_v0 = vmul.f32 %v13518_v13, %v13436_v28 }
 0x77b   :  { %15422 = vst [vmem:[#allocation85_spill] sm:$0xff] %v13748_v62  ;;  %v7473_v47 = vmul.f32 %v13518_v13, %v13442_v27  ;;  %v7474_v62 = vmul.f32 %v13518_v13, %v13452_v10  ;;  %v7475_v30 = vmul.f32 %v13518_v13, %v13459_v49  ;;  %v15425_v13 = vld [vmem:[#allocation83_spill] sm:$0xff] }
 0x77c   :  { %v13771_v60 = vadd.f32 %v13759_v9, %v13524_v12  ;;  %v13775_v1 = vadd.f32 %v13759_v9, %v13528_v6  ;;  %v13779_v28 = vadd.f32 %v13759_v9, %v13532_v34  ;;  %v13783_v27 = vadd.f32 %v13759_v9, %v13536_v53  ;;  %v15427_v12 = vld [vmem:[#allocation70_spill] sm:$0xff]  ;;  %v15428_v34 = vld [vmem:[#allocation73_spill] sm:$0xff] }
 0x77d   :  { %v13787_v10 = vadd.f32 %v13759_v9, %v13540_v41  ;;  %v13791_v49 = vadd.f32 %v13759_v9, %v13544_v4  ;;  %v13795_v15 = vadd.f32 %v13759_v9, %v13548_v35  ;;  %v13799_v18 = vadd.f32 %v13759_v9, %v15425_v13  ;;  %v15430_v41 = vld [vmem:[#allocation69_spill] sm:$0xff] }
 0x77e   :  { %v13803_v6 = vadd.f32 %v13759_v9, %v15427_v12  ;;  %v13807_v53 = vadd.f32 %v13759_v9, %v15428_v34  ;;  %v13811_v4 = vadd.f32 %v13759_v9, %v15430_v41  ;;  %v13827_v34 = vadd.f32 %v13759_v9, %v13580_v54 }
 0x77f   :  { %15423 = vst [vmem:[#allocation72_spill] sm:$0xff] %v13791_v49  ;;  %15424 = vst [vmem:[#allocation94_spill] sm:$0xff] %v13795_v15  ;;  %v15431_v49 = vld [vmem:[#allocation77_spill] sm:$0xff]  ;;  %v15432_v15 = vld [vmem:[#allocation96_spill] sm:$0xff]  ;;  %v13847_v54 = vadd.f32 %v13759_v9, %v13600_v39  ;;  %v13867_v39 = vadd.f32 %v13759_v9, %v13620_v52  ;;  %v13887_v52 = vadd.f32 %v13759_v9, %v13640_v42 }
 0x780   :  { %15426 = vst [vmem:[#allocation82_spill] sm:$0xff] %v13799_v18  ;;  %15429 = vst [vmem:[#allocation120_spill] sm:$0xff] %v13807_v53  ;;  %v13815_v35 = vadd.f32 %v13759_v9, %v15431_v49  ;;  %v13819_v13 = vadd.f32 %v13759_v9, %v15432_v15  ;;  %v15433_v18 = vld [vmem:[#allocation75_spill] sm:$0xff]  ;;  %v15434_v53 = vld [vmem:[#allocation101_spill] sm:$0xff]  ;;  %v13835_v49 = vadd.f32 %v13759_v9, %v13588_v5 }
 0x781   :  { %v13823_v12 = vadd.f32 %v13759_v9, %v15433_v18  ;;  %v13831_v41 = vadd.f32 %v13759_v9, %v15434_v53  ;;  %v13839_v15 = vadd.f32 %v13759_v9, %v13592_v32  ;;  %v13843_v18 = vadd.f32 %v13759_v9, %v13596_v44 }
 0x782   :  { %v13851_v53 = vadd.f32 %v13759_v9, %v13604_v38  ;;  %v13855_v5 = vadd.f32 %v13759_v9, %v13608_v25  ;;  %v13859_v32 = vadd.f32 %v13759_v9, %v13612_v50  ;;  %v13863_v44 = vadd.f32 %v13759_v9, %v13616_v63 }
 0x783   :  { %v13871_v38 = vadd.f32 %v13759_v9, %v13624_v20  ;;  %v13875_v25 = vadd.f32 %v13759_v9, %v13628_v7  ;;  %v13879_v50 = vadd.f32 %v13759_v9, %v13632_v59  ;;  %v13883_v63 = vadd.f32 %v13759_v9, %v13636_v55 }
 0x784   :  { %v13891_v20 = vadd.f32 %v13759_v9, %v13644_v23  ;;  %v13895_v7 = vadd.f32 %v13759_v9, %v13648_v14  ;;  %v13899_v59 = vadd.f32 %v13759_v9, %v13652_v2  ;;  %v13903_v55 = vadd.f32 %v13759_v9, %v13656_v3 }
 0x785   :  { %v13907_v42 = vadd.f32 %v13759_v9, %v13660_v8  ;;  %v13911_v23 = vadd.f32 %v13759_v9, %v13664_v36  ;;  %v13915_v14 = vadd.f32 %v13759_v9, %v13668_v31  ;;  %v13919_v2 = vadd.f32 %v13759_v9, %v13672_v37 }
 0x786   :  { %v13923_v3 = vadd.f32 %v13759_v9, %v13676_v56  ;;  %v13927_v8 = vadd.f32 %v13759_v9, %v13680_v21  ;;  %v13931_v36 = vadd.f32 %v13759_v9, %v13684_v24  ;;  %v13935_v31 = vadd.f32 %v13759_v9, %v13688_v22 }
 0x787   :  { %v13939_v37 = vadd.f32 %v13759_v9, %v13692_v16  ;;  %v13943_v56 = vadd.f32 %v13759_v9, %v13696_v58  ;;  %v13947_v21 = vadd.f32 %v13759_v9, %v13700_v51  ;;  %v13951_v24 = vadd.f32 %v13759_v9, %v13704_v29 }
 0x788   :  { %v13955_v22 = vadd.f32 %v13759_v9, %v13708_v33  ;;  %v13959_v16 = vadd.f32 %v13759_v9, %v13712_v17  ;;  %v13963_v58 = vadd.f32 %v13759_v9, %v13716_v43  ;;  %v13967_v51 = vadd.f32 %v13759_v9, %v13720_v11 }
 0x789   :  { %v13971_v29 = vadd.f32 %v13759_v9, %v13724_v48  ;;  %v13975_v33 = vadd.f32 %v13759_v9, %v13728_v57  ;;  %v13981_v17 = vadd.f32 %v13759_v9, %v7471_v26  ;;  %v13984_v43 = vadd.f32 %v13759_v9, %v7472_v0  ;;  %v15438_v57 = vld [vmem:[#allocation87_spill] sm:$0xff] }
 0x78a   :  { %15435 = vst [vmem:[#allocation86_spill] sm:$0xff] %v13955_v22  ;;  %15436 = vst [vmem:[#allocation71_spill] sm:$0xff] %v13967_v51  ;;  %v13978_v22 = vadd.f32 %v13759_v9, %v7470_v19  ;;  %v13987_v11 = vadd.f32 %v13759_v9, %v7473_v47  ;;  %v13990_v51 = vadd.f32 %v13759_v9, %v7474_v62  ;;  %v15442_v62 = vld [vmem:[#allocation85_spill] sm:$0xff] }
 0x78b   :  { %15437 = vst [vmem:[#allocation81_spill] sm:$0xff] %v13975_v33  ;;  %v13993_v48 = vadd.f32 %v13759_v9, %v7475_v30  ;;  %v13997_v33 = vadd.f32 %v13759_v9, %v15438_v57  ;;  %v14001_v26 = vadd.f32 %v13759_v9, %v13736_v46  ;;  %v14005_v19 = vadd.f32 %v13759_v9, %v13740_v45  ;;  %v15445_v57 = vld [vmem:[#allocation3_spill] sm:$0xff] }
 0x78c   :  { %v14009_v0 = vadd.f32 %v13759_v9, %v13744_v61  ;;  %v14013_v47 = vadd.f32 %v13759_v9, %v15442_v62  ;;  %v14017_v30 = vadd.f32 %v13759_v9, %v13756_v40  ;;  %v14021_v46 = vadd.f32 %v13771_v60, %v15445_v57  ;;  %v15453_v9 = vld [vmem:[#allocation8_spill] sm:$0xff]  ;;  %v15455_v57 = vld [vmem:[#allocation9_spill] sm:$0xff] }
 0x78d   :  { %15439 = vst [vmem:[#allocation78_spill] sm:$0xff] %v14001_v26  ;;  %15440 = vst [vmem:[#allocation103_spill] sm:$0xff] %v14005_v19  ;;  %v15447_v26 = vld [vmem:[#allocation4_spill] sm:$0xff]  ;;  %v15449_v19 = vld [vmem:[#allocation5_spill] sm:$0xff] }
 0x78e   :  { %15441 = vst [vmem:[#allocation80_spill] sm:$0xff] %v14009_v0  ;;  %15443 = vst [vmem:[#allocation74_spill] sm:$0xff] %v14013_v47  ;;  %v14025_v45 = vadd.f32 %v13775_v1, %v15447_v26  ;;  %v14029_v61 = vadd.f32 %v13779_v28, %v15449_v19  ;;  %v15450_v0 = vld [vmem:[#allocation6_spill] sm:$0xff]  ;;  %v15452_v47 = vld [vmem:[#allocation7_spill] sm:$0xff] }
 0x78f   :  { %15444 = vst [vmem:[#allocation79_spill] sm:$0xff] %v14017_v30  ;;  %15446 = vst [vmem:[#allocation76_spill] sm:$0xff] %v14021_v46  ;;  %v14033_v62 = vadd.f32 %v13783_v27, %v15450_v0  ;;  %v14037_v40 = vadd.f32 %v13787_v10, %v15452_v47  ;;  %v15454_v30 = vld [vmem:[#allocation72_spill] sm:$0xff]  ;;  %v15456_v46 = vld [vmem:[#allocation94_spill] sm:$0xff] }
 0x790   :  { %15448 = vst [vmem:[#allocation114_spill] sm:$0xff] %v14025_v45  ;;  %v14041_v60 = vadd.f32 %v15454_v30, %v15453_v9  ;;  %v14045_v1 = vadd.f32 %v15456_v46, %v15455_v57  ;;  %v15457_v26 = vld [vmem:[#allocation10_spill] sm:$0xff]  ;;  %v15459_v19 = vld [vmem:[#allocation11_spill] sm:$0xff]  ;;  %v15460_v0 = vld [vmem:[#allocation12_spill] sm:$0xff] }
 0x791   :  { %15451 = vst [vmem:[#allocation92_spill] sm:$0xff] %v14033_v62  ;;  %v15458_v45 = vld [vmem:[#allocation82_spill] sm:$0xff]  ;;  %v14053_v27 = vadd.f32 %v13803_v6, %v15459_v19  ;;  %v15461_v62 = vld [vmem:[#allocation120_spill] sm:$0xff]  ;;  %v15462_v47 = vld [vmem:[#allocation13_spill] sm:$0xff] }
 0x792   :  { %v14049_v28 = vadd.f32 %v15458_v45, %v15457_v26  ;;  %v14057_v10 = vadd.f32 %v15461_v62, %v15460_v0  ;;  %v14061_v30 = vadd.f32 %v13811_v4, %v15462_v47  ;;  %v15463_v9 = vld [vmem:[#allocation14_spill] sm:$0xff]  ;;  %v15464_v57 = vld [vmem:[#allocation15_spill] sm:$0xff]  ;;  %v15465_v26 = vld [vmem:[#allocation16_spill] sm:$0xff] }
 0x793   :  { %v14065_v46 = vadd.f32 %v13815_v35, %v15463_v9  ;;  %v14069_v45 = vadd.f32 %v13819_v13, %v15464_v57  ;;  %v14073_v6 = vadd.f32 %v13823_v12, %v15465_v26  ;;  %v15466_v19 = vld [vmem:[#allocation17_spill] sm:$0xff]  ;;  %v15467_v0 = vld [vmem:[#allocation18_spill] sm:$0xff]  ;;  %v15468_v47 = vld [vmem:[#allocation19_spill] sm:$0xff] }
 0x794   :  { %v14077_v62 = vadd.f32 %v13827_v34, %v15466_v19  ;;  %v14081_v4 = vadd.f32 %v13831_v41, %v15467_v0  ;;  %v14085_v35 = vadd.f32 %v13835_v49, %v15468_v47  ;;  %v15469_v9 = vld [vmem:[#allocation20_spill] sm:$0xff]  ;;  %v15470_v57 = vld [vmem:[#allocation21_spill] sm:$0xff]  ;;  %v15471_v26 = vld [vmem:[#allocation22_spill] sm:$0xff] }
 0x795   :  { %v14089_v13 = vadd.f32 %v13839_v15, %v15469_v9  ;;  %v14093_v12 = vadd.f32 %v13843_v18, %v15470_v57  ;;  %v14097_v34 = vadd.f32 %v13847_v54, %v15471_v26  ;;  %v15472_v19 = vld [vmem:[#allocation23_spill] sm:$0xff]  ;;  %v15473_v0 = vld [vmem:[#allocation24_spill] sm:$0xff]  ;;  %v15474_v47 = vld [vmem:[#allocation25_spill] sm:$0xff] }
 0x796   :  { %v14101_v41 = vadd.f32 %v13851_v53, %v15472_v19  ;;  %v14105_v49 = vadd.f32 %v13855_v5, %v15473_v0  ;;  %v14109_v15 = vadd.f32 %v13859_v32, %v15474_v47  ;;  %v15475_v9 = vld [vmem:[#allocation26_spill] sm:$0xff]  ;;  %v15476_v57 = vld [vmem:[#allocation27_spill] sm:$0xff]  ;;  %v15477_v26 = vld [vmem:[#allocation28_spill] sm:$0xff] }
 0x797   :  { %v14113_v18 = vadd.f32 %v13863_v44, %v15475_v9  ;;  %v14117_v54 = vadd.f32 %v13867_v39, %v15476_v57  ;;  %v14121_v53 = vadd.f32 %v13871_v38, %v15477_v26  ;;  %v15478_v19 = vld [vmem:[#allocation29_spill] sm:$0xff]  ;;  %v15479_v0 = vld [vmem:[#allocation30_spill] sm:$0xff]  ;;  %v15480_v47 = vld [vmem:[#allocation31_spill] sm:$0xff] }
 0x798   :  { %v14125_v5 = vadd.f32 %v13875_v25, %v15478_v19  ;;  %v14129_v32 = vadd.f32 %v13879_v50, %v15479_v0  ;;  %v14133_v44 = vadd.f32 %v13883_v63, %v15480_v47  ;;  %v15481_v9 = vld [vmem:[#allocation32_spill] sm:$0xff]  ;;  %v15482_v57 = vld [vmem:[#allocation33_spill] sm:$0xff]  ;;  %v15483_v26 = vld [vmem:[#allocation34_spill] sm:$0xff] }
 0x799   :  { %v14137_v39 = vadd.f32 %v13887_v52, %v15481_v9  ;;  %v14141_v38 = vadd.f32 %v13891_v20, %v15482_v57  ;;  %v14145_v25 = vadd.f32 %v13895_v7, %v15483_v26  ;;  %v15484_v19 = vld [vmem:[#allocation35_spill] sm:$0xff]  ;;  %v15485_v0 = vld [vmem:[#allocation36_spill] sm:$0xff]  ;;  %v15486_v47 = vld [vmem:[#allocation37_spill] sm:$0xff] }
 0x79a   :  { %v14149_v50 = vadd.f32 %v13899_v59, %v15484_v19  ;;  %v14153_v63 = vadd.f32 %v13903_v55, %v15485_v0  ;;  %v14157_v52 = vadd.f32 %v13907_v42, %v15486_v47  ;;  %v15487_v9 = vld [vmem:[#allocation38_spill] sm:$0xff]  ;;  %v15488_v57 = vld [vmem:[#allocation39_spill] sm:$0xff]  ;;  %v15489_v26 = vld [vmem:[#allocation40_spill] sm:$0xff] }
 0x79b   :  { %v14161_v20 = vadd.f32 %v13911_v23, %v15487_v9  ;;  %v14165_v7 = vadd.f32 %v13915_v14, %v15488_v57  ;;  %v14169_v59 = vadd.f32 %v13919_v2, %v15489_v26  ;;  %v15490_v19 = vld [vmem:[#allocation41_spill] sm:$0xff]  ;;  %v15491_v0 = vld [vmem:[#allocation42_spill] sm:$0xff]  ;;  %v15492_v47 = vld [vmem:[#allocation43_spill] sm:$0xff] }
 0x79c   :  { %v14173_v55 = vadd.f32 %v13923_v3, %v15490_v19  ;;  %v14177_v42 = vadd.f32 %v13927_v8, %v15491_v0  ;;  %v14181_v23 = vadd.f32 %v13931_v36, %v15492_v47  ;;  %v15494_v9 = vld [vmem:[#allocation44_spill] sm:$0xff]  ;;  %v15495_v57 = vld [vmem:[#allocation45_spill] sm:$0xff]  ;;  %v15496_v26 = vld [vmem:[#allocation46_spill] sm:$0xff] }
 0x79d   :  { %v14185_v14 = vadd.f32 %v13935_v31, %v15494_v9  ;;  %v14189_v2 = vadd.f32 %v13939_v37, %v15495_v57  ;;  %v14193_v3 = vadd.f32 %v13943_v56, %v15496_v26  ;;  %v15498_v19 = vld [vmem:[#allocation47_spill] sm:$0xff]  ;;  %v15499_v0 = vld [vmem:[#allocation48_spill] sm:$0xff]  ;;  %v15501_v47 = vld [vmem:[#allocation49_spill] sm:$0xff] }
 0x79e   :  { %15493 = vst [vmem:[#allocation84_spill] sm:$0xff] %v14181_v23  ;;  %v14197_v8 = vadd.f32 %v13947_v21, %v15498_v19  ;;  %v14201_v36 = vadd.f32 %v13951_v24, %v15499_v0  ;;  %v15502_v23 = vld [vmem:[#allocation86_spill] sm:$0xff]  ;;  %v15504_v57 = vld [vmem:[#allocation51_spill] sm:$0xff]  ;;  %v15505_v26 = vld [vmem:[#allocation52_spill] sm:$0xff] }
 0x79f   :  { %15497 = vst [vmem:[#allocation102_spill] sm:$0xff] %v14193_v3  ;;  %v14205_v31 = vadd.f32 %v15502_v23, %v15501_v47  ;;  %v15503_v9 = vld [vmem:[#allocation50_spill] sm:$0xff]  ;;  %v14213_v56 = vadd.f32 %v13963_v58, %v15504_v57  ;;  %v15506_v3 = vld [vmem:[#allocation71_spill] sm:$0xff]  ;;  %v15507_v19 = vld [vmem:[#allocation53_spill] sm:$0xff] }
 0x7a0   :  { %15500 = vst [vmem:[#allocation115_spill] sm:$0xff] %v14201_v36  ;;  %v14209_v37 = vadd.f32 %v13959_v16, %v15503_v9  ;;  %v14217_v21 = vadd.f32 %v15506_v3, %v15505_v26  ;;  %v14221_v24 = vadd.f32 %v13971_v29, %v15507_v19  ;;  %v15508_v0 = vld [vmem:[#allocation54_spill] sm:$0xff]  ;;  %v15509_v36 = vld [vmem:[#allocation81_spill] sm:$0xff]  ;;  %v15510_v47 = vld [vmem:[#allocation55_spill] sm:$0xff] }
 0x7a1   :  { %v14225_v23 = vadd.f32 %v15509_v36, %v15508_v0  ;;  %v14229_v16 = vadd.f32 %v13978_v22, %v15510_v47  ;;  %v15511_v9 = vld [vmem:[#allocation56_spill] sm:$0xff]  ;;  %v15513_v57 = vld [vmem:[#allocation57_spill] sm:$0xff]  ;;  %v15515_v26 = vld [vmem:[#allocation58_spill] sm:$0xff] }
 0x7a2   :  { %v14233_v58 = vadd.f32 %v13981_v17, %v15511_v9  ;;  %v14237_v3 = vadd.f32 %v13984_v43, %v15513_v57  ;;  %v14241_v29 = vadd.f32 %v13987_v11, %v15515_v26  ;;  %v15517_v19 = vld [vmem:[#allocation59_spill] sm:$0xff]  ;;  %v15519_v0 = vld [vmem:[#allocation60_spill] sm:$0xff]  ;;  %v15521_v47 = vld [vmem:[#allocation61_spill] sm:$0xff] }
 0x7a3   :  { %v14245_v36 = vadd.f32 %v13990_v51, %v15517_v19  ;;  %v14249_v22 = vadd.f32 %v13993_v48, %v15519_v0  ;;  %v14253_v17 = vadd.f32 %v13997_v33, %v15521_v47  ;;  %v15523_v9 = vld [vmem:[#allocation62_spill] sm:$0xff]  ;;  %v15526_v57 = vld [vmem:[#allocation63_spill] sm:$0xff]  ;;  %v15529_v26 = vld [vmem:[#allocation64_spill] sm:$0xff] }
 0x7a4   :  { %15512 = vst [vmem:[#allocation89_spill] sm:$0xff] %v14233_v58  ;;  %15514 = vst [vmem:[#allocation98_spill] sm:$0xff] %v14237_v3  ;;  %v15524_v58 = vld [vmem:[#allocation78_spill] sm:$0xff]  ;;  %v15527_v3 = vld [vmem:[#allocation103_spill] sm:$0xff] }
 0x7a5   :  { %15516 = vst [vmem:[#allocation105_spill] sm:$0xff] %v14241_v29  ;;  %15518 = vst [vmem:[#allocation91_spill] sm:$0xff] %v14245_v36  ;;  %v14257_v43 = vadd.f32 %v15524_v58, %v15523_v9  ;;  %v14261_v11 = vadd.f32 %v15527_v3, %v15526_v57  ;;  %v15530_v29 = vld [vmem:[#allocation80_spill] sm:$0xff]  ;;  %v15531_v19 = vld [vmem:[#allocation74_spill] sm:$0xff] }
 0x7a6   :  { %15520 = vst [vmem:[#allocation99_spill] sm:$0xff] %v14249_v22  ;;  %15522 = vst [vmem:[#allocation107_spill] sm:$0xff] %v14253_v17  ;;  %v14265_v51 = vadd.f32 %v15530_v29, %v15529_v26  ;;  %v15532_v36 = vld [vmem:[#allocation67_spill] sm:$0xff]  ;;  %v15534_v22 = vld [vmem:[#allocation68_spill] sm:$0xff]  ;;  %v7621_v29 = vmax.f32 %v14041_v60, 0.0  ;;  %v7622_v26 = vmax.f32 %v14045_v1, 0.0 }
 0x7a7   :  { %15525 = vst [vmem:[#allocation109_spill] sm:$0xff] %v14257_v43  ;;  %15528 = vst [vmem:[#allocation106_spill] sm:$0xff] %v14261_v11  ;;  %v14269_v48 = vadd.f32 %v15532_v36, %v15531_v19  ;;  %v15533_v0 = vld [vmem:[#allocation79_spill] sm:$0xff]  ;;  %v15535_v47 = vld [vmem:[#allocation76_spill] sm:$0xff]  ;;  %v7618_v43 = vmax.f32 %v14029_v61, 0.0  ;;  %v7620_v11 = vmax.f32 %v14037_v40, 0.0 }
 0x7a8   :  { %v14273_v33 = vadd.f32 %v15534_v22, %v15533_v0  ;;  %v7616_v17 = vmax.f32 %v15535_v47, 0.0  ;;  %v15536_v58 = vld [vmem:[#allocation114_spill] sm:$0xff]  ;;  %v15537_v3 = vld [vmem:[#allocation92_spill] sm:$0xff]  ;;  %v7623_v36 = vmax.f32 %v14049_v28, 0.0  ;;  %v7624_v19 = vmax.f32 %v14053_v27, 0.0  ;;  %7685 = vst [vmem:[%s14538_s7 + $0x28] sm:$0xff] %v7621_v29 }
 0x7a9   :  { %v7617_v9 = vmax.f32 %v15536_v58, 0.0  ;;  %v7619_v57 = vmax.f32 %v15537_v3, 0.0  ;;  %v7625_v22 = vmax.f32 %v14057_v10, 0.0  ;;  %v7626_v0 = vmax.f32 %v14061_v30, 0.0  ;;  %7682 = vst [vmem:[%s14538_s7 + $0x10] sm:$0xff] %v7618_v43  ;;  %7684 = vst [vmem:[%s14538_s7 + $0x20] sm:$0xff] %v7620_v11 }
 0x7aa   :  { %v7627_v47 = vmax.f32 %v14065_v46, 0.0  ;;  %7680 = vst [vmem:[%s14538_s7] sm:$0xff] %v7616_v17  ;;  %v7628_v61 = vmax.f32 %v14069_v45, 0.0  ;;  %v7629_v40 = vmax.f32 %v14073_v6, 0.0  ;;  %v7630_v60 = vmax.f32 %v14077_v62, 0.0  ;;  %7686 = vst [vmem:[%s14538_s7 + $0x30] sm:$0xff] %v7622_v26 }
 0x7ab   :  { %7681 = vst [vmem:[%s14538_s7 + $0x8] sm:$0xff] %v7617_v9  ;;  %7683 = vst [vmem:[%s14538_s7 + $0x18] sm:$0xff] %v7619_v57  ;;  %v7631_v1 = vmax.f32 %v14081_v4, 0.0  ;;  %v7632_v28 = vmax.f32 %v14085_v35, 0.0  ;;  %v7633_v27 = vmax.f32 %v14089_v13, 0.0  ;;  %v7634_v10 = vmax.f32 %v14093_v12, 0.0 }
 0x7ac   :  { %7687 = vst [vmem:[%s14538_s7 + $0x38] sm:$0xff] %v7623_v36  ;;  %v7635_v30 = vmax.f32 %v14097_v34, 0.0  ;;  %7688 = vst [vmem:[%s14538_s7 + $0x40] sm:$0xff] %v7624_v19  ;;  %v7636_v46 = vmax.f32 %v14101_v41, 0.0  ;;  %v7637_v45 = vmax.f32 %v14105_v49, 0.0  ;;  %v7638_v6 = vmax.f32 %v14109_v15, 0.0 }
 0x7ad   :  { %7689 = vst [vmem:[%s14538_s7 + $0x48] sm:$0xff] %v7625_v22  ;;  %7690 = vst [vmem:[%s14538_s7 + $0x50] sm:$0xff] %v7626_v0  ;;  %v7639_v62 = vmax.f32 %v14113_v18, 0.0  ;;  %v7640_v4 = vmax.f32 %v14117_v54, 0.0  ;;  %v7641_v35 = vmax.f32 %v14121_v53, 0.0  ;;  %v7642_v13 = vmax.f32 %v14125_v5, 0.0 }
 0x7ae   :  { %7691 = vst [vmem:[%s14538_s7 + $0x58] sm:$0xff] %v7627_v47  ;;  %7692 = vst [vmem:[%s14538_s7 + $0x60] sm:$0xff] %v7628_v61  ;;  %v7643_v12 = vmax.f32 %v14129_v32, 0.0  ;;  %v7644_v34 = vmax.f32 %v14133_v44, 0.0  ;;  %v7645_v41 = vmax.f32 %v14137_v39, 0.0  ;;  %v7646_v49 = vmax.f32 %v14141_v38, 0.0 }
 0x7af   :  { %7693 = vst [vmem:[%s14538_s7 + $0x68] sm:$0xff] %v7629_v40  ;;  %7694 = vst [vmem:[%s14538_s7 + $0x70] sm:$0xff] %v7630_v60  ;;  %v7647_v15 = vmax.f32 %v14145_v25, 0.0  ;;  %v7648_v18 = vmax.f32 %v14149_v50, 0.0  ;;  %v7649_v54 = vmax.f32 %v14153_v63, 0.0  ;;  %v7650_v53 = vmax.f32 %v14157_v52, 0.0 }
 0x7b0   :  { %7695 = vst [vmem:[%s14538_s7 + $0x78] sm:$0xff] %v7631_v1  ;;  %7696 = vst [vmem:[%s14538_s7 + $0x80] sm:$0xff] %v7632_v28  ;;  %v7651_v5 = vmax.f32 %v14161_v20, 0.0  ;;  %v7652_v32 = vmax.f32 %v14165_v7, 0.0  ;;  %v7653_v44 = vmax.f32 %v14169_v59, 0.0  ;;  %v7654_v39 = vmax.f32 %v14173_v55, 0.0 }
 0x7b1   :  { %7697 = vst [vmem:[%s14538_s7 + $0x88] sm:$0xff] %v7633_v27  ;;  %7698 = vst [vmem:[%s14538_s7 + $0x90] sm:$0xff] %v7634_v10  ;;  %v7655_v38 = vmax.f32 %v14177_v42, 0.0  ;;  %v15538_v25 = vld [vmem:[#allocation84_spill] sm:$0xff]  ;;  %v7657_v63 = vmax.f32 %v14185_v14, 0.0  ;;  %v7658_v52 = vmax.f32 %v14189_v2, 0.0 }
 0x7b2   :  { %7699 = vst [vmem:[%s14538_s7 + $0x98] sm:$0xff] %v7635_v30  ;;  %7700 = vst [vmem:[%s14538_s7 + $0xa0] sm:$0xff] %v7636_v46  ;;  %v7656_v50 = vmax.f32 %v15538_v25, 0.0  ;;  %v15539_v20 = vld [vmem:[#allocation102_spill] sm:$0xff]  ;;  %v7660_v59 = vmax.f32 %v14197_v8, 0.0  ;;  %v15540_v55 = vld [vmem:[#allocation115_spill] sm:$0xff] }
 0x7b3   :  { %7701 = vst [vmem:[%s14538_s7 + $0xa8] sm:$0xff] %v7637_v45  ;;  %7702 = vst [vmem:[%s14538_s7 + $0xb0] sm:$0xff] %v7638_v6  ;;  %v7659_v7 = vmax.f32 %v15539_v20, 0.0  ;;  %v7661_v42 = vmax.f32 %v15540_v55, 0.0  ;;  %v7662_v14 = vmax.f32 %v14205_v31, 0.0  ;;  %v7663_v2 = vmax.f32 %v14209_v37, 0.0 }
 0x7b4   :  { %7703 = vst [vmem:[%s14538_s7 + $0xb8] sm:$0xff] %v7639_v62  ;;  %7704 = vst [vmem:[%s14538_s7 + $0xc0] sm:$0xff] %v7640_v4  ;;  %v7664_v8 = vmax.f32 %v14213_v56, 0.0  ;;  %v7665_v31 = vmax.f32 %v14217_v21, 0.0  ;;  %v7666_v37 = vmax.f32 %v14221_v24, 0.0  ;;  %v7667_v17 = vmax.f32 %v14225_v23, 0.0 }
 0x7b5   :  { %7705 = vst [vmem:[%s14538_s7 + $0xc8] sm:$0xff] %v7641_v35  ;;  %7706 = vst [vmem:[%s14538_s7 + $0xd0] sm:$0xff] %v7642_v13  ;;  %v7668_v56 = vmax.f32 %v14229_v16, 0.0  ;;  %v15541_v21 = vld [vmem:[#allocation89_spill] sm:$0xff]  ;;  %v15542_v23 = vld [vmem:[#allocation98_spill] sm:$0xff]  ;;  %v7677_v47 = vmax.f32 %v14265_v51, 0.0 }
 0x7b6   :  { %7707 = vst [vmem:[%s14538_s7 + $0xd8] sm:$0xff] %v7643_v12  ;;  %7708 = vst [vmem:[%s14538_s7 + $0xe0] sm:$0xff] %v7644_v34  ;;  %v7669_v24 = vmax.f32 %v15541_v21, 0.0  ;;  %v7670_v43 = vmax.f32 %v15542_v23, 0.0  ;;  %v15543_v11 = vld [vmem:[#allocation105_spill] sm:$0xff]  ;;  %v15544_v16 = vld [vmem:[#allocation91_spill] sm:$0xff] }
 0x7b7   :  { %7709 = vst [vmem:[%s14538_s7 + $0xe8] sm:$0xff] %v7645_v41  ;;  %7710 = vst [vmem:[%s14538_s7 + $0xf0] sm:$0xff] %v7646_v49  ;;  %v7671_v58 = vmax.f32 %v15543_v11, 0.0  ;;  %v7672_v9 = vmax.f32 %v15544_v16, 0.0  ;;  %v15545_v3 = vld [vmem:[#allocation99_spill] sm:$0xff]  ;;  %v15547_v36 = vld [vmem:[#allocation109_spill] sm:$0xff] }
 0x7b8   :  { %7711 = vst [vmem:[%s14538_s7 + $0xf8] sm:$0xff] %v7647_v15  ;;  %7712 = vst [vmem:[%s14538_s7 + $0x100] sm:$0xff] %v7648_v18  ;;  %v7673_v57 = vmax.f32 %v15545_v3, 0.0  ;;  %v15546_v29 = vld [vmem:[#allocation107_spill] sm:$0xff]  ;;  %v7675_v19 = vmax.f32 %v15547_v36, 0.0  ;;  %v15548_v22 = vld [vmem:[#allocation106_spill] sm:$0xff] }
 0x7b9   :  { %7713 = vst [vmem:[%s14538_s7 + $0x108] sm:$0xff] %v7649_v54  ;;  %7714 = vst [vmem:[%s14538_s7 + $0x110] sm:$0xff] %v7650_v53  ;;  %v7674_v26 = vmax.f32 %v15546_v29, 0.0  ;;  %v7676_v0 = vmax.f32 %v15548_v22, 0.0  ;;  %v7678_v61 = vmax.f32 %v14269_v48, 0.0  ;;  %v7679_v40 = vmax.f32 %v14273_v33, 0.0 }
 0x7ba   :  { %7715 = vst [vmem:[%s14538_s7 + $0x118] sm:$0xff] %v7651_v5  ;;  %7716 = vst [vmem:[%s14538_s7 + $0x120] sm:$0xff] %v7652_v32 }
 0x7bb   :  { %7717 = vst [vmem:[%s14538_s7 + $0x128] sm:$0xff] %v7653_v44  ;;  %7718 = vst [vmem:[%s14538_s7 + $0x130] sm:$0xff] %v7654_v39 }
 0x7bc   :  { %7719 = vst [vmem:[%s14538_s7 + $0x138] sm:$0xff] %v7655_v38  ;;  %7720 = vst [vmem:[%s14538_s7 + $0x140] sm:$0xff] %v7656_v50 }
 0x7bd   :  { %7721 = vst [vmem:[%s14538_s7 + $0x148] sm:$0xff] %v7657_v63  ;;  %7722 = vst [vmem:[%s14538_s7 + $0x150] sm:$0xff] %v7658_v52 }
 0x7be   :  { %7723 = vst [vmem:[%s14538_s7 + $0x158] sm:$0xff] %v7659_v7  ;;  %7724 = vst [vmem:[%s14538_s7 + $0x160] sm:$0xff] %v7660_v59 }
 0x7bf   :  { %7725 = vst [vmem:[%s14538_s7 + $0x168] sm:$0xff] %v7661_v42  ;;  %7726 = vst [vmem:[%s14538_s7 + $0x170] sm:$0xff] %v7662_v14 }
 0x7c0   :  { %7727 = vst [vmem:[%s14538_s7 + $0x178] sm:$0xff] %v7663_v2  ;;  %7728 = vst [vmem:[%s14538_s7 + $0x180] sm:$0xff] %v7664_v8 }
 0x7c1   :  { %7729 = vst [vmem:[%s14538_s7 + $0x188] sm:$0xff] %v7665_v31  ;;  %7730 = vst [vmem:[%s14538_s7 + $0x190] sm:$0xff] %v7666_v37 }
 0x7c2   :  { %7731 = vst [vmem:[%s14538_s7 + $0x198] sm:$0xff] %v7667_v17  ;;  %7732 = vst [vmem:[%s14538_s7 + $0x1a0] sm:$0xff] %v7668_v56 }
 0x7c3   :  { %7733 = vst [vmem:[%s14538_s7 + $0x1a8] sm:$0xff] %v7669_v24  ;;  %7734 = vst [vmem:[%s14538_s7 + $0x1b0] sm:$0xff] %v7670_v43 }
 0x7c4   :  { %7735 = vst [vmem:[%s14538_s7 + $0x1b8] sm:$0xff] %v7671_v58  ;;  %7736 = vst [vmem:[%s14538_s7 + $0x1c0] sm:$0xff] %v7672_v9 }
 0x7c5   :  { %7737 = vst [vmem:[%s14538_s7 + $0x1c8] sm:$0xff] %v7673_v57  ;;  %7738 = vst [vmem:[%s14538_s7 + $0x1d0] sm:$0xff] %v7674_v26 }
 0x7c6   :  { %7739 = vst [vmem:[%s14538_s7 + $0x1d8] sm:$0xff] %v7675_v19  ;;  %7740 = vst [vmem:[%s14538_s7 + $0x1e0] sm:$0xff] %v7676_v0 }
 0x7c7   :  { %7741 = vst [vmem:[%s14538_s7 + $0x1e8] sm:$0xff] %v7677_v47  ;;  %7742 = vst [vmem:[%s14538_s7 + $0x1f0] sm:$0xff] %v7678_v61 }
 0x7c8   :  { %7743 = vst [vmem:[%s14538_s7 + $0x1f8] sm:$0xff] %v7679_v40 }

</bundles_post_ra>
